<compile_context>
chip_gen: v7x
topology: tpu7x:2x2x1
jax: 0.10.0
libtpu: 0.0.40
codegen_flags: <defaults>
</compile_context>

<pallas_src>
import functools

import jax
import jax.numpy as jnp
from jax import lax
from jax.experimental import pallas as pl
from jax.experimental.pallas import tpu as pltpu


# ------------------------------ Pallas kernel -------------------------------
def bilstm_seq_kernel(x_ref,
                      wi_f_ref, wh_f_ref, b_f_ref,
                      wi_b_ref, wh_b_ref, b_b_ref,
                      out_f_ref, out_b_ref,
                      hf_ref, cf_ref, hb_ref, cb_ref):
    """Whole-sequence bidirectional LSTM layer.

    x_ref:      (T, B, D)   full sequence, resident in VMEM
    wi_*_ref:   (D, 4H)     fused input->gate weights  (PyTorch gate order i,f,g,o)
    wh_*_ref:   (H, 4H)     fused hidden->gate weights
    b_*_ref:    (1, 4H)     fused bias (b_ih + b_hh)
    out_f_ref:  (T, B, H)   forward-direction hidden states
    out_b_ref:  (T, B, H)   backward-direction hidden states (time-aligned, PyTorch layout)
    hf/cf/hb/cb: (B, H)     VMEM scratch for the recurrent state
    """
    T = x_ref.shape[0]
    H = hf_ref.shape[-1]

    # h0 = c0 = 0 (PyTorch default).
    hf_ref[...] = jnp.zeros_like(hf_ref)
    cf_ref[...] = jnp.zeros_like(cf_ref)
    hb_ref[...] = jnp.zeros_like(hb_ref)
    cb_ref[...] = jnp.zeros_like(cb_ref)

    def cell(x_t, h, c, wi_ref, wh_ref, b_ref):
        # Two wide MXU matmuls (fused 4 gates), f32 accumulation.
        g = (jnp.dot(x_t, wi_ref[...], preferred_element_type=jnp.float32)
             + jnp.dot(h, wh_ref[...], preferred_element_type=jnp.float32)
             + b_ref[...])
        i_g = jax.nn.sigmoid(g[:, 0 * H:1 * H])
        f_g = jax.nn.sigmoid(g[:, 1 * H:2 * H])
        g_g = jnp.tanh(g[:, 2 * H:3 * H])
        o_g = jax.nn.sigmoid(g[:, 3 * H:4 * H])
        c_new = f_g * c + i_g * g_g
        h_new = o_g * jnp.tanh(c_new)
        return h_new, c_new

    def body(t, carry):
        # Forward direction: reads x[t].
        h_new, c_new = cell(x_ref[t], hf_ref[...], cf_ref[...],
                            wi_f_ref, wh_f_ref, b_f_ref)
        hf_ref[...] = h_new
        cf_ref[...] = c_new
        out_f_ref[t] = h_new.astype(out_f_ref.dtype)

        # Backward direction: reads x[T-1-t]; output stored at T-1-t so that
        # out_b[t] is the reverse-RNN state after reading x[T-1 .. t] (PyTorch layout).
        tb = T - 1 - t
        hb_new, cb_new = cell(x_ref[tb], hb_ref[...], cb_ref[...],
                              wi_b_ref, wh_b_ref, b_b_ref)
        hb_ref[...] = hb_new
        cb_ref[...] = cb_new
        out_b_ref[tb] = hb_new.astype(out_b_ref.dtype)
        return carry

    # Short, static trip count -> fully unroll for LLO scheduler visibility.
    lax.fori_loop(0, T, body, 0, unroll=True)


def bilstm_layer(x_tbd, p):
    """One bidirectional LSTM layer. x_tbd: (T, B, D) -> (T, B, 2H)."""
    T, B, D = x_tbd.shape
    H = p["wh_f"].shape[0]

    vmem = lambda: pl.BlockSpec(memory_space=pltpu.MemorySpace.VMEM)

    out_f, out_b = pl.pallas_call(
        bilstm_seq_kernel,
        out_shape=(jax.ShapeDtypeStruct((T, B, H), jnp.float32),
                   jax.ShapeDtypeStruct((T, B, H), jnp.float32)),
        in_specs=[vmem() for _ in range(7)],
        out_specs=(vmem(), vmem()),
        scratch_shapes=[pltpu.VMEM((B, H), jnp.float32) for _ in range(4)],
    )(x_tbd,
      p["wi_f"], p["wh_f"], p["b_f"],
      p["wi_b"], p["wh_b"], p["b_b"])

    # PyTorch bidirectional output layout: [forward | backward] along features.
    return jnp.concatenate([out_f, out_b], axis=-1)


# --------------------------- parameter construction --------------------------
def init_bilstm_params(key, input_size, hidden_size):
    """PyTorch-style uniform(-1/sqrt(H), 1/sqrt(H)) init; weights are split per
    direction, pre-transposed to (in, 4H) with gate order (i, f, g, o), and the
    two bias vectors are folded into one (1, 4H) buffer."""
    H = hidden_size
    k = 1.0 / float(H) ** 0.5
    keys = jax.random.split(key, 8)

    def one_dir(k0, k1, k2, k3):
        w_ih = jax.random.uniform(k0, (4 * H, input_size), jnp.float32, -k, k)
        w_hh = jax.random.uniform(k1, (4 * H, H), jnp.float32, -k, k)
        b_ih = jax.random.uniform(k2, (4 * H,), jnp.float32, -k, k)
        b_hh = jax.random.uniform(k3, (4 * H,), jnp.float32, -k, k)
        return w_ih.T, w_hh.T, (b_ih + b_hh).reshape(1, 4 * H)

    wi_f, wh_f, b_f = one_dir(*keys[:4])
    wi_b, wh_b, b_b = one_dir(*keys[4:])
    return dict(wi_f=wi_f, wh_f=wh_f, b_f=b_f, wi_b=wi_b, wh_b=wh_b, b_b=b_b)


def init_decoder_params(key, n_features, dec_hidden):
    """LSTMDecoder: 2-layer bidirectional LSTM (hidden=dec_hidden) + Linear(2*dec_hidden, F)."""
    k1, k2, kw, kb = jax.random.split(key, 4)
    layer1 = init_bilstm_params(k1, n_features, dec_hidden)
    layer2 = init_bilstm_params(k2, 2 * dec_hidden, dec_hidden)
    kf = 1.0 / float(2 * dec_hidden) ** 0.5
    fc_w = jax.random.uniform(kw, (n_features, 2 * dec_hidden), jnp.float32, -kf, kf).T
    fc_b = jax.random.uniform(kb, (n_features,), jnp.float32, -kf, kf)
    return dict(layer1=layer1, layer2=layer2, fc_w=fc_w, fc_b=fc_b)


# -------------------------------- forward pass --------------------------------
def lstm_ae_forward(x_btf, params, *, window_size):
    """x_btf: (B, T, n_features) -> (B, n_features), matching LSTMAE.forward."""
    # --- LSTMEncoder.forward ---
    # Original: x = x.transpose(0,1); x_n,_ = lstm(x); return x[-1]
    # NOTE: it returns x[-1] (last time step of the transposed INPUT); the encoder
    # LSTM output is never used, so that dead compute is elided here.
    z = x_btf[:, -1, :].astype(jnp.float32)                       # (B, F)

    # --- LSTMDecoder.forward ---
    B, F = z.shape
    x = jnp.broadcast_to(z[None], (window_size, B, F))            # x.repeat(W, 1, 1)
    h1 = bilstm_layer(x, params["layer1"])                        # (W, B, 2*Hd)
    h2 = bilstm_layer(h1, params["layer2"])                       # (W, B, 2*Hd)
    return h2[-1] @ params["fc_w"] + params["fc_b"]               # fc(x_n[-1]) -> (B, F)


# ------------------------------- pure-JAX reference ----------------------------
def _lstm_dir_ref(x_tbd, wi, wh, b):
    H = wh.shape[0]
    B = x_tbd.shape[1]

    def step(carry, x_t):
        h, c = carry
        g = x_t @ wi + h @ wh + b
        i = jax.nn.sigmoid(g[:, :H])
        f = jax.nn.sigmoid(g[:, H:2 * H])
        gg = jnp.tanh(g[:, 2 * H:3 * H])
        o = jax.nn.sigmoid(g[:, 3 * H:])
        c = f * c + i * gg
        h = o * jnp.tanh(c)
        return (h, c), h

    init = (jnp.zeros((B, H), jnp.float32), jnp.zeros((B, H), jnp.float32))
    _, hs = lax.scan(step, init, x_tbd)
    return hs


def _bilstm_layer_ref(x, p):
    out_f = _lstm_dir_ref(x, p["wi_f"], p["wh_f"], p["b_f"])
    out_b = jnp.flip(_lstm_dir_ref(jnp.flip(x, 0), p["wi_b"], p["wh_b"], p["b_b"]), 0)
    return jnp.concatenate([out_f, out_b], axis=-1)


def lstm_ae_ref(x_btf, params, *, window_size):
    z = x_btf[:, -1, :].astype(jnp.float32)
    B, F = z.shape
    x = jnp.broadcast_to(z[None], (window_size, B, F))
    h1 = _bilstm_layer_ref(x, params["layer1"])
    h2 = _bilstm_layer_ref(h1, params["layer2"])
    return h2[-1] @ params["fc_w"] + params["fc_b"]


if __name__ == "__main__":
    # Small shapes consistent with the module: batch=2, seq=8, n_features=4,
    # hidden_size=32, window_size=8.  Decoder LSTM hidden = 2*hidden_size = 64.
    B, T, F = 2, 8, 4
    HIDDEN = 32
    WINDOW = 8
    DEC_H = 2 * HIDDEN

    key = jax.random.PRNGKey(0)
    kx, kp = jax.random.split(key)
    x = jax.random.normal(kx, (B, T, F), jnp.float32)
    params = init_decoder_params(kp, F, DEC_H)

    fwd = jax.jit(functools.partial(lstm_ae_forward, window_size=WINDOW))
    out = jax.block_until_ready(fwd(x, params))
    assert out.shape == (B, F), out.shape

    ref = jax.block_until_ready(lstm_ae_ref(x, params, window_size=WINDOW))
    max_err = float(jnp.max(jnp.abs(out - ref)))
    assert jnp.allclose(out, ref, atol=1e-3, rtol=1e-3), max_err

    print("KERNEL_OK")
</pallas_src>

<mosaic_0001>
module attributes {stable_mosaic.version = 11 : i64} {
  func.func @bilstm_seq_kernel(%arg0: memref<8x2x4xf32, #tpu.memory_space<vmem>>, %arg1: memref<4x256xf32, #tpu.memory_space<vmem>>, %arg2: memref<64x256xf32, #tpu.memory_space<vmem>>, %arg3: memref<1x256xf32, #tpu.memory_space<vmem>>, %arg4: memref<4x256xf32, #tpu.memory_space<vmem>>, %arg5: memref<64x256xf32, #tpu.memory_space<vmem>>, %arg6: memref<1x256xf32, #tpu.memory_space<vmem>>, %arg7: memref<8x2x64xf32, #tpu.memory_space<vmem>>, %arg8: memref<8x2x64xf32, #tpu.memory_space<vmem>>, %arg9: memref<2x64xf32, #tpu.memory_space<vmem>>, %arg10: memref<2x64xf32, #tpu.memory_space<vmem>>, %arg11: memref<2x64xf32, #tpu.memory_space<vmem>>, %arg12: memref<2x64xf32, #tpu.memory_space<vmem>>) attributes {dimension_semantics = [], scalar_prefetch = 0 : i64, scratch_operands = 4 : i64, tpu.core_type = #tpu.core_type<tc>} {
    %cst = arith.constant 0.000000e+00 : f32
    %0 = vector.broadcast %cst : f32 to vector<2x64xf32>
    %c0 = arith.constant 0 : index
    %c0_0 = arith.constant 0 : index
    %1 = vector.load %arg9[%c0, %c0_0] : memref<2x64xf32, #tpu.memory_space<vmem>>, vector<2x64xf32>
    tpu.vector_store %arg9[%c0, %c0_0], %0 {strides = array<i32>} : memref<2x64xf32, #tpu.memory_space<vmem>>, vector<2x64xf32>,
    %cst_1 = arith.constant 0.000000e+00 : f32
    %2 = vector.broadcast %cst_1 : f32 to vector<2x64xf32>
    %c0_2 = arith.constant 0 : index
    %c0_3 = arith.constant 0 : index
    %3 = vector.load %arg10[%c0_2, %c0_3] : memref<2x64xf32, #tpu.memory_space<vmem>>, vector<2x64xf32>
    tpu.vector_store %arg10[%c0_2, %c0_3], %2 {strides = array<i32>} : memref<2x64xf32, #tpu.memory_space<vmem>>, vector<2x64xf32>,
    %cst_4 = arith.constant 0.000000e+00 : f32
    %4 = vector.broadcast %cst_4 : f32 to vector<2x64xf32>
    %c0_5 = arith.constant 0 : index
    %c0_6 = arith.constant 0 : index
    %5 = vector.load %arg11[%c0_5, %c0_6] : memref<2x64xf32, #tpu.memory_space<vmem>>, vector<2x64xf32>
    tpu.vector_store %arg11[%c0_5, %c0_6], %4 {strides = array<i32>} : memref<2x64xf32, #tpu.memory_space<vmem>>, vector<2x64xf32>,
    %cst_7 = arith.constant 0.000000e+00 : f32
    %6 = vector.broadcast %cst_7 : f32 to vector<2x64xf32>
    %c0_8 = arith.constant 0 : index
    %c0_9 = arith.constant 0 : index
    %7 = vector.load %arg12[%c0_8, %c0_9] : memref<2x64xf32, #tpu.memory_space<vmem>>, vector<2x64xf32>
    tpu.vector_store %arg12[%c0_8, %c0_9], %6 {strides = array<i32>} : memref<2x64xf32, #tpu.memory_space<vmem>>, vector<2x64xf32>,
    %c0_i32 = arith.constant 0 : i32
    %8 = arith.index_cast %c0_i32 : i32 to index
    %c0_10 = arith.constant 0 : index
    %c0_11 = arith.constant 0 : index
    %9 = vector.load %arg0[%8, %c0_10, %c0_11] : memref<8x2x4xf32, #tpu.memory_space<vmem>>, vector<1x2x4xf32>
    %10 = vector.shape_cast %9 : vector<1x2x4xf32> to vector<2x4xf32>
    %c0_12 = arith.constant 0 : index
    %c0_13 = arith.constant 0 : index
    %11 = vector.load %arg9[%c0_12, %c0_13] : memref<2x64xf32, #tpu.memory_space<vmem>>, vector<2x64xf32>
    %c0_14 = arith.constant 0 : index
    %c0_15 = arith.constant 0 : index
    %12 = vector.load %arg10[%c0_14, %c0_15] : memref<2x64xf32, #tpu.memory_space<vmem>>, vector<2x64xf32>
    %c0_16 = arith.constant 0 : index
    %c0_17 = arith.constant 0 : index
    %13 = vector.load %arg1[%c0_16, %c0_17] : memref<4x256xf32, #tpu.memory_space<vmem>>, vector<4x256xf32>
    %cst_18 = arith.constant dense<0.000000e+00> : vector<2x256xf32>
    %14 = tpu.matmul %10, %13, %cst_18 {dimension_numbers = #tpu.dot_dimension_numbers<[1], [0], [0], [1], [0, 0, 1, 1], [], []>} : vector<2x4xf32>, vector<4x256xf32>, vector<2x256xf32> -> vector<2x256xf32>
    %c0_19 = arith.constant 0 : index
    %c0_20 = arith.constant 0 : index
    %15 = vector.load %arg2[%c0_19, %c0_20] : memref<64x256xf32, #tpu.memory_space<vmem>>, vector<64x256xf32>
    %cst_21 = arith.constant dense<0.000000e+00> : vector<2x256xf32>
    %16 = tpu.matmul %11, %15, %cst_21 {dimension_numbers = #tpu.dot_dimension_numbers<[1], [0], [0], [1], [0, 0, 1, 1], [], []>} : vector<2x64xf32>, vector<64x256xf32>, vector<2x256xf32> -> vector<2x256xf32>
    %17 = arith.addf %14, %16 : vector<2x256xf32>
    %c0_22 = arith.constant 0 : index
    %c0_23 = arith.constant 0 : index
    %18 = vector.load %arg3[%c0_22, %c0_23] : memref<1x256xf32, #tpu.memory_space<vmem>>, vector<1x256xf32>
    %19 = vector.broadcast %18 : vector<1x256xf32> to vector<2x256xf32>
    %20 = arith.addf %17, %19 : vector<2x256xf32>
    %21 = vector.extract_strided_slice %20 {offsets = [0, 0], sizes = [2, 64], strides = [1, 1]} : vector<2x256xf32> to vector<2x64xf32>
    %22 = arith.negf %21 : vector<2x64xf32>
    %23 = math.exp %22 : vector<2x64xf32>
    %cst_24 = arith.constant 1.000000e+00 : f32
    %24 = vector.broadcast %cst_24 : f32 to vector<2x64xf32>
    %25 = arith.addf %24, %23 : vector<2x64xf32>
    %26 = arith.divf %24, %25 : vector<2x64xf32>
    %27 = vector.extract_strided_slice %20 {offsets = [0, 64], sizes = [2, 64], strides = [1, 1]} : vector<2x256xf32> to vector<2x64xf32>
    %28 = arith.negf %27 : vector<2x64xf32>
    %29 = math.exp %28 : vector<2x64xf32>
    %cst_25 = arith.constant 1.000000e+00 : f32
    %30 = vector.broadcast %cst_25 : f32 to vector<2x64xf32>
    %31 = arith.addf %30, %29 : vector<2x64xf32>
    %32 = arith.divf %30, %31 : vector<2x64xf32>
    %33 = vector.extract_strided_slice %20 {offsets = [0, 128], sizes = [2, 64], strides = [1, 1]} : vector<2x256xf32> to vector<2x64xf32>
    %34 = math.tanh %33 : vector<2x64xf32>
    %35 = vector.extract_strided_slice %20 {offsets = [0, 192], sizes = [2, 64], strides = [1, 1]} : vector<2x256xf32> to vector<2x64xf32>
    %36 = arith.negf %35 : vector<2x64xf32>
    %37 = math.exp %36 : vector<2x64xf32>
    %cst_26 = arith.constant 1.000000e+00 : f32
    %38 = vector.broadcast %cst_26 : f32 to vector<2x64xf32>
    %39 = arith.addf %38, %37 : vector<2x64xf32>
    %40 = arith.divf %38, %39 : vector<2x64xf32>
    %41 = arith.mulf %32, %12 : vector<2x64xf32>
    %42 = arith.mulf %26, %34 : vector<2x64xf32>
    %43 = arith.addf %41, %42 : vector<2x64xf32>
    %44 = math.tanh %43 : vector<2x64xf32>
    %45 = arith.mulf %40, %44 : vector<2x64xf32>
    %c0_27 = arith.constant 0 : index
    %c0_28 = arith.constant 0 : index
    %46 = vector.load %arg9[%c0_27, %c0_28] : memref<2x64xf32, #tpu.memory_space<vmem>>, vector<2x64xf32>
    tpu.vector_store %arg9[%c0_27, %c0_28], %45 {strides = array<i32>} : memref<2x64xf32, #tpu.memory_space<vmem>>, vector<2x64xf32>,
    %c0_29 = arith.constant 0 : index
    %c0_30 = arith.constant 0 : index
    %47 = vector.load %arg10[%c0_29, %c0_30] : memref<2x64xf32, #tpu.memory_space<vmem>>, vector<2x64xf32>
    tpu.vector_store %arg10[%c0_29, %c0_30], %43 {strides = array<i32>} : memref<2x64xf32, #tpu.memory_space<vmem>>, vector<2x64xf32>,
    %48 = arith.index_cast %c0_i32 : i32 to index
    %c0_31 = arith.constant 0 : index
    %c0_32 = arith.constant 0 : index
    %49 = vector.load %arg7[%48, %c0_31, %c0_32] : memref<8x2x64xf32, #tpu.memory_space<vmem>>, vector<1x2x64xf32>
    %50 = vector.shape_cast %49 : vector<1x2x64xf32> to vector<2x64xf32>
    %51 = vector.shape_cast %45 : vector<2x64xf32> to vector<1x2x64xf32>
    tpu.vector_store %arg7[%48, %c0_31, %c0_32], %51 {strides = array<i32>} : memref<8x2x64xf32, #tpu.memory_space<vmem>>, vector<1x2x64xf32>,
    %c7_i32 = arith.constant 7 : i32
    %52 = arith.subi %c7_i32, %c0_i32 : i32
    %53 = arith.index_cast %52 : i32 to index
    %c0_33 = arith.constant 0 : index
    %c0_34 = arith.constant 0 : index
    %54 = vector.load %arg0[%53, %c0_33, %c0_34] : memref<8x2x4xf32, #tpu.memory_space<vmem>>, vector<1x2x4xf32>
    %55 = vector.shape_cast %54 : vector<1x2x4xf32> to vector<2x4xf32>
    %c0_35 = arith.constant 0 : index
    %c0_36 = arith.constant 0 : index
    %56 = vector.load %arg11[%c0_35, %c0_36] : memref<2x64xf32, #tpu.memory_space<vmem>>, vector<2x64xf32>
    %c0_37 = arith.constant 0 : index
    %c0_38 = arith.constant 0 : index
    %57 = vector.load %arg12[%c0_37, %c0_38] : memref<2x64xf32, #tpu.memory_space<vmem>>, vector<2x64xf32>
    %c0_39 = arith.constant 0 : index
    %c0_40 = arith.constant 0 : index
    %58 = vector.load %arg4[%c0_39, %c0_40] : memref<4x256xf32, #tpu.memory_space<vmem>>, vector<4x256xf32>
    %cst_41 = arith.constant dense<0.000000e+00> : vector<2x256xf32>
    %59 = tpu.matmul %55, %58, %cst_41 {dimension_numbers = #tpu.dot_dimension_numbers<[1], [0], [0], [1], [0, 0, 1, 1], [], []>} : vector<2x4xf32>, vector<4x256xf32>, vector<2x256xf32> -> vector<2x256xf32>
    %c0_42 = arith.constant 0 : index
    %c0_43 = arith.constant 0 : index
    %60 = vector.load %arg5[%c0_42, %c0_43] : memref<64x256xf32, #tpu.memory_space<vmem>>, vector<64x256xf32>
    %cst_44 = arith.constant dense<0.000000e+00> : vector<2x256xf32>
    %61 = tpu.matmul %56, %60, %cst_44 {dimension_numbers = #tpu.dot_dimension_numbers<[1], [0], [0], [1], [0, 0, 1, 1], [], []>} : vector<2x64xf32>, vector<64x256xf32>, vector<2x256xf32> -> vector<2x256xf32>
    %62 = arith.addf %59, %61 : vector<2x256xf32>
    %c0_45 = arith.constant 0 : index
    %c0_46 = arith.constant 0 : index
    %63 = vector.load %arg6[%c0_45, %c0_46] : memref<1x256xf32, #tpu.memory_space<vmem>>, vector<1x256xf32>
    %64 = vector.broadcast %63 : vector<1x256xf32> to vector<2x256xf32>
    %65 = arith.addf %62, %64 : vector<2x256xf32>
    %66 = vector.extract_strided_slice %65 {offsets = [0, 0], sizes = [2, 64], strides = [1, 1]} : vector<2x256xf32> to vector<2x64xf32>
    %67 = arith.negf %66 : vector<2x64xf32>
    %68 = math.exp %67 : vector<2x64xf32>
    %cst_47 = arith.constant 1.000000e+00 : f32
    %69 = vector.broadcast %cst_47 : f32 to vector<2x64xf32>
    %70 = arith.addf %69, %68 : vector<2x64xf32>
    %71 = arith.divf %69, %70 : vector<2x64xf32>
    %72 = vector.extract_strided_slice %65 {offsets = [0, 64], sizes = [2, 64], strides = [1, 1]} : vector<2x256xf32> to vector<2x64xf32>
    %73 = arith.negf %72 : vector<2x64xf32>
    %74 = math.exp %73 : vector<2x64xf32>
    %cst_48 = arith.constant 1.000000e+00 : f32
    %75 = vector.broadcast %cst_48 : f32 to vector<2x64xf32>
    %76 = arith.addf %75, %74 : vector<2x64xf32>
    %77 = arith.divf %75, %76 : vector<2x64xf32>
    %78 = vector.extract_strided_slice %65 {offsets = [0, 128], sizes = [2, 64], strides = [1, 1]} : vector<2x256xf32> to vector<2x64xf32>
    %79 = math.tanh %78 : vector<2x64xf32>
    %80 = vector.extract_strided_slice %65 {offsets = [0, 192], sizes = [2, 64], strides = [1, 1]} : vector<2x256xf32> to vector<2x64xf32>
    %81 = arith.negf %80 : vector<2x64xf32>
    %82 = math.exp %81 : vector<2x64xf32>
    %cst_49 = arith.constant 1.000000e+00 : f32
    %83 = vector.broadcast %cst_49 : f32 to vector<2x64xf32>
    %84 = arith.addf %83, %82 : vector<2x64xf32>
    %85 = arith.divf %83, %84 : vector<2x64xf32>
    %86 = arith.mulf %77, %57 : vector<2x64xf32>
    %87 = arith.mulf %71, %79 : vector<2x64xf32>
    %88 = arith.addf %86, %87 : vector<2x64xf32>
    %89 = math.tanh %88 : vector<2x64xf32>
    %90 = arith.mulf %85, %89 : vector<2x64xf32>
    %c0_50 = arith.constant 0 : index
    %c0_51 = arith.constant 0 : index
    %91 = vector.load %arg11[%c0_50, %c0_51] : memref<2x64xf32, #tpu.memory_space<vmem>>, vector<2x64xf32>
    tpu.vector_store %arg11[%c0_50, %c0_51], %90 {strides = array<i32>} : memref<2x64xf32, #tpu.memory_space<vmem>>, vector<2x64xf32>,
    %c0_52 = arith.constant 0 : index
    %c0_53 = arith.constant 0 : index
    %92 = vector.load %arg12[%c0_52, %c0_53] : memref<2x64xf32, #tpu.memory_space<vmem>>, vector<2x64xf32>
    tpu.vector_store %arg12[%c0_52, %c0_53], %88 {strides = array<i32>} : memref<2x64xf32, #tpu.memory_space<vmem>>, vector<2x64xf32>,
    %93 = arith.index_cast %52 : i32 to index
    %c0_54 = arith.constant 0 : index
    %c0_55 = arith.constant 0 : index
    %94 = vector.load %arg8[%93, %c0_54, %c0_55] : memref<8x2x64xf32, #tpu.memory_space<vmem>>, vector<1x2x64xf32>
    %95 = vector.shape_cast %94 : vector<1x2x64xf32> to vector<2x64xf32>
    %96 = vector.shape_cast %90 : vector<2x64xf32> to vector<1x2x64xf32>
    tpu.vector_store %arg8[%93, %c0_54, %c0_55], %96 {strides = array<i32>} : memref<8x2x64xf32, #tpu.memory_space<vmem>>, vector<1x2x64xf32>,
    %c1_i32 = arith.constant 1 : i32
    %97 = arith.index_cast %c1_i32 : i32 to index
    %c0_56 = arith.constant 0 : index
    %c0_57 = arith.constant 0 : index
    %98 = vector.load %arg0[%97, %c0_56, %c0_57] : memref<8x2x4xf32, #tpu.memory_space<vmem>>, vector<1x2x4xf32>
    %99 = vector.shape_cast %98 : vector<1x2x4xf32> to vector<2x4xf32>
    %c0_58 = arith.constant 0 : index
    %c0_59 = arith.constant 0 : index
    %100 = vector.load %arg9[%c0_58, %c0_59] : memref<2x64xf32, #tpu.memory_space<vmem>>, vector<2x64xf32>
    %c0_60 = arith.constant 0 : index
    %c0_61 = arith.constant 0 : index
    %101 = vector.load %arg10[%c0_60, %c0_61] : memref<2x64xf32, #tpu.memory_space<vmem>>, vector<2x64xf32>
    %c0_62 = arith.constant 0 : index
    %c0_63 = arith.constant 0 : index
    %102 = vector.load %arg1[%c0_62, %c0_63] : memref<4x256xf32, #tpu.memory_space<vmem>>, vector<4x256xf32>
    %cst_64 = arith.constant dense<0.000000e+00> : vector<2x256xf32>
    %103 = tpu.matmul %99, %102, %cst_64 {dimension_numbers = #tpu.dot_dimension_numbers<[1], [0], [0], [1], [0, 0, 1, 1], [], []>} : vector<2x4xf32>, vector<4x256xf32>, vector<2x256xf32> -> vector<2x256xf32>
    %c0_65 = arith.constant 0 : index
    %c0_66 = arith.constant 0 : index
    %104 = vector.load %arg2[%c0_65, %c0_66] : memref<64x256xf32, #tpu.memory_space<vmem>>, vector<64x256xf32>
    %cst_67 = arith.constant dense<0.000000e+00> : vector<2x256xf32>
    %105 = tpu.matmul %100, %104, %cst_67 {dimension_numbers = #tpu.dot_dimension_numbers<[1], [0], [0], [1], [0, 0, 1, 1], [], []>} : vector<2x64xf32>, vector<64x256xf32>, vector<2x256xf32> -> vector<2x256xf32>
    %106 = arith.addf %103, %105 : vector<2x256xf32>
    %c0_68 = arith.constant 0 : index
    %c0_69 = arith.constant 0 : index
    %107 = vector.load %arg3[%c0_68, %c0_69] : memref<1x256xf32, #tpu.memory_space<vmem>>, vector<1x256xf32>
    %108 = vector.broadcast %107 : vector<1x256xf32> to vector<2x256xf32>
    %109 = arith.addf %106, %108 : vector<2x256xf32>
    %110 = vector.extract_strided_slice %109 {offsets = [0, 0], sizes = [2, 64], strides = [1, 1]} : vector<2x256xf32> to vector<2x64xf32>
    %111 = arith.negf %110 : vector<2x64xf32>
    %112 = math.exp %111 : vector<2x64xf32>
    %cst_70 = arith.constant 1.000000e+00 : f32
    %113 = vector.broadcast %cst_70 : f32 to vector<2x64xf32>
    %114 = arith.addf %113, %112 : vector<2x64xf32>
    %115 = arith.divf %113, %114 : vector<2x64xf32>
    %116 = vector.extract_strided_slice %109 {offsets = [0, 64], sizes = [2, 64], strides = [1, 1]} : vector<2x256xf32> to vector<2x64xf32>
    %117 = arith.negf %116 : vector<2x64xf32>
    %118 = math.exp %117 : vector<2x64xf32>
    %cst_71 = arith.constant 1.000000e+00 : f32
    %119 = vector.broadcast %cst_71 : f32 to vector<2x64xf32>
    %120 = arith.addf %119, %118 : vector<2x64xf32>
    %121 = arith.divf %119, %120 : vector<2x64xf32>
    %122 = vector.extract_strided_slice %109 {offsets = [0, 128], sizes = [2, 64], strides = [1, 1]} : vector<2x256xf32> to vector<2x64xf32>
    %123 = math.tanh %122 : vector<2x64xf32>
    %124 = vector.extract_strided_slice %109 {offsets = [0, 192], sizes = [2, 64], strides = [1, 1]} : vector<2x256xf32> to vector<2x64xf32>
    %125 = arith.negf %124 : vector<2x64xf32>
    %126 = math.exp %125 : vector<2x64xf32>
    %cst_72 = arith.constant 1.000000e+00 : f32
    %127 = vector.broadcast %cst_72 : f32 to vector<2x64xf32>
    %128 = arith.addf %127, %126 : vector<2x64xf32>
    %129 = arith.divf %127, %128 : vector<2x64xf32>
    %130 = arith.mulf %121, %101 : vector<2x64xf32>
    %131 = arith.mulf %115, %123 : vector<2x64xf32>
    %132 = arith.addf %130, %131 : vector<2x64xf32>
    %133 = math.tanh %132 : vector<2x64xf32>
    %134 = arith.mulf %129, %133 : vector<2x64xf32>
    %c0_73 = arith.constant 0 : index
    %c0_74 = arith.constant 0 : index
    %135 = vector.load %arg9[%c0_73, %c0_74] : memref<2x64xf32, #tpu.memory_space<vmem>>, vector<2x64xf32>
    tpu.vector_store %arg9[%c0_73, %c0_74], %134 {strides = array<i32>} : memref<2x64xf32, #tpu.memory_space<vmem>>, vector<2x64xf32>,
    %c0_75 = arith.constant 0 : index
    %c0_76 = arith.constant 0 : index
    %136 = vector.load %arg10[%c0_75, %c0_76] : memref<2x64xf32, #tpu.memory_space<vmem>>, vector<2x64xf32>
    tpu.vector_store %arg10[%c0_75, %c0_76], %132 {strides = array<i32>} : memref<2x64xf32, #tpu.memory_space<vmem>>, vector<2x64xf32>,
    %137 = arith.index_cast %c1_i32 : i32 to index
    %c0_77 = arith.constant 0 : index
    %c0_78 = arith.constant 0 : index
    %138 = vector.load %arg7[%137, %c0_77, %c0_78] : memref<8x2x64xf32, #tpu.memory_space<vmem>>, vector<1x2x64xf32>
    %139 = vector.shape_cast %138 : vector<1x2x64xf32> to vector<2x64xf32>
    %140 = vector.shape_cast %134 : vector<2x64xf32> to vector<1x2x64xf32>
    tpu.vector_store %arg7[%137, %c0_77, %c0_78], %140 {strides = array<i32>} : memref<8x2x64xf32, #tpu.memory_space<vmem>>, vector<1x2x64xf32>,
    %c7_i32_79 = arith.constant 7 : i32
    %141 = arith.subi %c7_i32_79, %c1_i32 : i32
    %142 = arith.index_cast %141 : i32 to index
    %c0_80 = arith.constant 0 : index
    %c0_81 = arith.constant 0 : index
    %143 = vector.load %arg0[%142, %c0_80, %c0_81] : memref<8x2x4xf32, #tpu.memory_space<vmem>>, vector<1x2x4xf32>
    %144 = vector.shape_cast %143 : vector<1x2x4xf32> to vector<2x4xf32>
    %c0_82 = arith.constant 0 : index
    %c0_83 = arith.constant 0 : index
    %145 = vector.load %arg11[%c0_82, %c0_83] : memref<2x64xf32, #tpu.memory_space<vmem>>, vector<2x64xf32>
    %c0_84 = arith.constant 0 : index
    %c0_85 = arith.constant 0 : index
    %146 = vector.load %arg12[%c0_84, %c0_85] : memref<2x64xf32, #tpu.memory_space<vmem>>, vector<2x64xf32>
    %c0_86 = arith.constant 0 : index
    %c0_87 = arith.constant 0 : index
    %147 = vector.load %arg4[%c0_86, %c0_87] : memref<4x256xf32, #tpu.memory_space<vmem>>, vector<4x256xf32>
    %cst_88 = arith.constant dense<0.000000e+00> : vector<2x256xf32>
    %148 = tpu.matmul %144, %147, %cst_88 {dimension_numbers = #tpu.dot_dimension_numbers<[1], [0], [0], [1], [0, 0, 1, 1], [], []>} : vector<2x4xf32>, vector<4x256xf32>, vector<2x256xf32> -> vector<2x256xf32>
    %c0_89 = arith.constant 0 : index
    %c0_90 = arith.constant 0 : index
    %149 = vector.load %arg5[%c0_89, %c0_90] : memref<64x256xf32, #tpu.memory_space<vmem>>, vector<64x256xf32>
    %cst_91 = arith.constant dense<0.000000e+00> : vector<2x256xf32>
    %150 = tpu.matmul %145, %149, %cst_91 {dimension_numbers = #tpu.dot_dimension_numbers<[1], [0], [0], [1], [0, 0, 1, 1], [], []>} : vector<2x64xf32>, vector<64x256xf32>, vector<2x256xf32> -> vector<2x256xf32>
    %151 = arith.addf %148, %150 : vector<2x256xf32>
    %c0_92 = arith.constant 0 : index
    %c0_93 = arith.constant 0 : index
    %152 = vector.load %arg6[%c0_92, %c0_93] : memref<1x256xf32, #tpu.memory_space<vmem>>, vector<1x256xf32>
    %153 = vector.broadcast %152 : vector<1x256xf32> to vector<2x256xf32>
    %154 = arith.addf %151, %153 : vector<2x256xf32>
    %155 = vector.extract_strided_slice %154 {offsets = [0, 0], sizes = [2, 64], strides = [1, 1]} : vector<2x256xf32> to vector<2x64xf32>
    %156 = arith.negf %155 : vector<2x64xf32>
    %157 = math.exp %156 : vector<2x64xf32>
    %cst_94 = arith.constant 1.000000e+00 : f32
    %158 = vector.broadcast %cst_94 : f32 to vector<2x64xf32>
    %159 = arith.addf %158, %157 : vector<2x64xf32>
    %160 = arith.divf %158, %159 : vector<2x64xf32>
    %161 = vector.extract_strided_slice %154 {offsets = [0, 64], sizes = [2, 64], strides = [1, 1]} : vector<2x256xf32> to vector<2x64xf32>
    %162 = arith.negf %161 : vector<2x64xf32>
    %163 = math.exp %162 : vector<2x64xf32>
    %cst_95 = arith.constant 1.000000e+00 : f32
    %164 = vector.broadcast %cst_95 : f32 to vector<2x64xf32>
    %165 = arith.addf %164, %163 : vector<2x64xf32>
    %166 = arith.divf %164, %165 : vector<2x64xf32>
    %167 = vector.extract_strided_slice %154 {offsets = [0, 128], sizes = [2, 64], strides = [1, 1]} : vector<2x256xf32> to vector<2x64xf32>
    %168 = math.tanh %167 : vector<2x64xf32>
    %169 = vector.extract_strided_slice %154 {offsets = [0, 192], sizes = [2, 64], strides = [1, 1]} : vector<2x256xf32> to vector<2x64xf32>
    %170 = arith.negf %169 : vector<2x64xf32>
    %171 = math.exp %170 : vector<2x64xf32>
    %cst_96 = arith.constant 1.000000e+00 : f32
    %172 = vector.broadcast %cst_96 : f32 to vector<2x64xf32>
    %173 = arith.addf %172, %171 : vector<2x64xf32>
    %174 = arith.divf %172, %173 : vector<2x64xf32>
    %175 = arith.mulf %166, %146 : vector<2x64xf32>
    %176 = arith.mulf %160, %168 : vector<2x64xf32>
    %177 = arith.addf %175, %176 : vector<2x64xf32>
    %178 = math.tanh %177 : vector<2x64xf32>
    %179 = arith.mulf %174, %178 : vector<2x64xf32>
    %c0_97 = arith.constant 0 : index
    %c0_98 = arith.constant 0 : index
    %180 = vector.load %arg11[%c0_97, %c0_98] : memref<2x64xf32, #tpu.memory_space<vmem>>, vector<2x64xf32>
    tpu.vector_store %arg11[%c0_97, %c0_98], %179 {strides = array<i32>} : memref<2x64xf32, #tpu.memory_space<vmem>>, vector<2x64xf32>,
    %c0_99 = arith.constant 0 : index
    %c0_100 = arith.constant 0 : index
    %181 = vector.load %arg12[%c0_99, %c0_100] : memref<2x64xf32, #tpu.memory_space<vmem>>, vector<2x64xf32>
    tpu.vector_store %arg12[%c0_99, %c0_100], %177 {strides = array<i32>} : memref<2x64xf32, #tpu.memory_space<vmem>>, vector<2x64xf32>,
    %182 = arith.index_cast %141 : i32 to index
    %c0_101 = arith.constant 0 : index
    %c0_102 = arith.constant 0 : index
    %183 = vector.load %arg8[%182, %c0_101, %c0_102] : memref<8x2x64xf32, #tpu.memory_space<vmem>>, vector<1x2x64xf32>
    %184 = vector.shape_cast %183 : vector<1x2x64xf32> to vector<2x64xf32>
    %185 = vector.shape_cast %179 : vector<2x64xf32> to vector<1x2x64xf32>
    tpu.vector_store %arg8[%182, %c0_101, %c0_102], %185 {strides = array<i32>} : memref<8x2x64xf32, #tpu.memory_space<vmem>>, vector<1x2x64xf32>,
    %c2_i32 = arith.constant 2 : i32
    %186 = arith.index_cast %c2_i32 : i32 to index
    %c0_103 = arith.constant 0 : index
    %c0_104 = arith.constant 0 : index
    %187 = vector.load %arg0[%186, %c0_103, %c0_104] : memref<8x2x4xf32, #tpu.memory_space<vmem>>, vector<1x2x4xf32>
    %188 = vector.shape_cast %187 : vector<1x2x4xf32> to vector<2x4xf32>
    %c0_105 = arith.constant 0 : index
    %c0_106 = arith.constant 0 : index
    %189 = vector.load %arg9[%c0_105, %c0_106] : memref<2x64xf32, #tpu.memory_space<vmem>>, vector<2x64xf32>
    %c0_107 = arith.constant 0 : index
    %c0_108 = arith.constant 0 : index
    %190 = vector.load %arg10[%c0_107, %c0_108] : memref<2x64xf32, #tpu.memory_space<vmem>>, vector<2x64xf32>
    %c0_109 = arith.constant 0 : index
    %c0_110 = arith.constant 0 : index
    %191 = vector.load %arg1[%c0_109, %c0_110] : memref<4x256xf32, #tpu.memory_space<vmem>>, vector<4x256xf32>
    %cst_111 = arith.constant dense<0.000000e+00> : vector<2x256xf32>
    %192 = tpu.matmul %188, %191, %cst_111 {dimension_numbers = #tpu.dot_dimension_numbers<[1], [0], [0], [1], [0, 0, 1, 1], [], []>} : vector<2x4xf32>, vector<4x256xf32>, vector<2x256xf32> -> vector<2x256xf32>
    %c0_112 = arith.constant 0 : index
    %c0_113 = arith.constant 0 : index
    %193 = vector.load %arg2[%c0_112, %c0_113] : memref<64x256xf32, #tpu.memory_space<vmem>>, vector<64x256xf32>
    %cst_114 = arith.constant dense<0.000000e+00> : vector<2x256xf32>
    %194 = tpu.matmul %189, %193, %cst_114 {dimension_numbers = #tpu.dot_dimension_numbers<[1], [0], [0], [1], [0, 0, 1, 1], [], []>} : vector<2x64xf32>, vector<64x256xf32>, vector<2x256xf32> -> vector<2x256xf32>
    %195 = arith.addf %192, %194 : vector<2x256xf32>
    %c0_115 = arith.constant 0 : index
    %c0_116 = arith.constant 0 : index
    %196 = vector.load %arg3[%c0_115, %c0_116] : memref<1x256xf32, #tpu.memory_space<vmem>>, vector<1x256xf32>
    %197 = vector.broadcast %196 : vector<1x256xf32> to vector<2x256xf32>
    %198 = arith.addf %195, %197 : vector<2x256xf32>
    %199 = vector.extract_strided_slice %198 {offsets = [0, 0], sizes = [2, 64], strides = [1, 1]} : vector<2x256xf32> to vector<2x64xf32>
    %200 = arith.negf %199 : vector<2x64xf32>
    %201 = math.exp %200 : vector<2x64xf32>
    %cst_117 = arith.constant 1.000000e+00 : f32
    %202 = vector.broadcast %cst_117 : f32 to vector<2x64xf32>
    %203 = arith.addf %202, %201 : vector<2x64xf32>
    %204 = arith.divf %202, %203 : vector<2x64xf32>
    %205 = vector.extract_strided_slice %198 {offsets = [0, 64], sizes = [2, 64], strides = [1, 1]} : vector<2x256xf32> to vector<2x64xf32>
    %206 = arith.negf %205 : vector<2x64xf32>
    %207 = math.exp %206 : vector<2x64xf32>
    %cst_118 = arith.constant 1.000000e+00 : f32
    %208 = vector.broadcast %cst_118 : f32 to vector<2x64xf32>
    %209 = arith.addf %208, %207 : vector<2x64xf32>
    %210 = arith.divf %208, %209 : vector<2x64xf32>
    %211 = vector.extract_strided_slice %198 {offsets = [0, 128], sizes = [2, 64], strides = [1, 1]} : vector<2x256xf32> to vector<2x64xf32>
    %212 = math.tanh %211 : vector<2x64xf32>
    %213 = vector.extract_strided_slice %198 {offsets = [0, 192], sizes = [2, 64], strides = [1, 1]} : vector<2x256xf32> to vector<2x64xf32>
    %214 = arith.negf %213 : vector<2x64xf32>
    %215 = math.exp %214 : vector<2x64xf32>
    %cst_119 = arith.constant 1.000000e+00 : f32
    %216 = vector.broadcast %cst_119 : f32 to vector<2x64xf32>
    %217 = arith.addf %216, %215 : vector<2x64xf32>
    %218 = arith.divf %216, %217 : vector<2x64xf32>
    %219 = arith.mulf %210, %190 : vector<2x64xf32>
    %220 = arith.mulf %204, %212 : vector<2x64xf32>
    %221 = arith.addf %219, %220 : vector<2x64xf32>
    %222 = math.tanh %221 : vector<2x64xf32>
    %223 = arith.mulf %218, %222 : vector<2x64xf32>
    %c0_120 = arith.constant 0 : index
    %c0_121 = arith.constant 0 : index
    %224 = vector.load %arg9[%c0_120, %c0_121] : memref<2x64xf32, #tpu.memory_space<vmem>>, vector<2x64xf32>
    tpu.vector_store %arg9[%c0_120, %c0_121], %223 {strides = array<i32>} : memref<2x64xf32, #tpu.memory_space<vmem>>, vector<2x64xf32>,
    %c0_122 = arith.constant 0 : index
    %c0_123 = arith.constant 0 : index
    %225 = vector.load %arg10[%c0_122, %c0_123] : memref<2x64xf32, #tpu.memory_space<vmem>>, vector<2x64xf32>
    tpu.vector_store %arg10[%c0_122, %c0_123], %221 {strides = array<i32>} : memref<2x64xf32, #tpu.memory_space<vmem>>, vector<2x64xf32>,
    %226 = arith.index_cast %c2_i32 : i32 to index
    %c0_124 = arith.constant 0 : index
    %c0_125 = arith.constant 0 : index
    %227 = vector.load %arg7[%226, %c0_124, %c0_125] : memref<8x2x64xf32, #tpu.memory_space<vmem>>, vector<1x2x64xf32>
    %228 = vector.shape_cast %227 : vector<1x2x64xf32> to vector<2x64xf32>
    %229 = vector.shape_cast %223 : vector<2x64xf32> to vector<1x2x64xf32>
    tpu.vector_store %arg7[%226, %c0_124, %c0_125], %229 {strides = array<i32>} : memref<8x2x64xf32, #tpu.memory_space<vmem>>, vector<1x2x64xf32>,
    %c7_i32_126 = arith.constant 7 : i32
    %230 = arith.subi %c7_i32_126, %c2_i32 : i32
    %231 = arith.index_cast %230 : i32 to index
    %c0_127 = arith.constant 0 : index
    %c0_128 = arith.constant 0 : index
    %232 = vector.load %arg0[%231, %c0_127, %c0_128] : memref<8x2x4xf32, #tpu.memory_space<vmem>>, vector<1x2x4xf32>
    %233 = vector.shape_cast %232 : vector<1x2x4xf32> to vector<2x4xf32>
    %c0_129 = arith.constant 0 : index
    %c0_130 = arith.constant 0 : index
    %234 = vector.load %arg11[%c0_129, %c0_130] : memref<2x64xf32, #tpu.memory_space<vmem>>, vector<2x64xf32>
    %c0_131 = arith.constant 0 : index
    %c0_132 = arith.constant 0 : index
    %235 = vector.load %arg12[%c0_131, %c0_132] : memref<2x64xf32, #tpu.memory_space<vmem>>, vector<2x64xf32>
    %c0_133 = arith.constant 0 : index
    %c0_134 = arith.constant 0 : index
    %236 = vector.load %arg4[%c0_133, %c0_134] : memref<4x256xf32, #tpu.memory_space<vmem>>, vector<4x256xf32>
    %cst_135 = arith.constant dense<0.000000e+00> : vector<2x256xf32>
    %237 = tpu.matmul %233, %236, %cst_135 {dimension_numbers = #tpu.dot_dimension_numbers<[1], [0], [0], [1], [0, 0, 1, 1], [], []>} : vector<2x4xf32>, vector<4x256xf32>, vector<2x256xf32> -> vector<2x256xf32>
    %c0_136 = arith.constant 0 : index
    %c0_137 = arith.constant 0 : index
    %238 = vector.load %arg5[%c0_136, %c0_137] : memref<64x256xf32, #tpu.memory_space<vmem>>, vector<64x256xf32>
    %cst_138 = arith.constant dense<0.000000e+00> : vector<2x256xf32>
    %239 = tpu.matmul %234, %238, %cst_138 {dimension_numbers = #tpu.dot_dimension_numbers<[1], [0], [0], [1], [0, 0, 1, 1], [], []>} : vector<2x64xf32>, vector<64x256xf32>, vector<2x256xf32> -> vector<2x256xf32>
    %240 = arith.addf %237, %239 : vector<2x256xf32>
    %c0_139 = arith.constant 0 : index
    %c0_140 = arith.constant 0 : index
    %241 = vector.load %arg6[%c0_139, %c0_140] : memref<1x256xf32, #tpu.memory_space<vmem>>, vector<1x256xf32>
    %242 = vector.broadcast %241 : vector<1x256xf32> to vector<2x256xf32>
    %243 = arith.addf %240, %242 : vector<2x256xf32>
    %244 = vector.extract_strided_slice %243 {offsets = [0, 0], sizes = [2, 64], strides = [1, 1]} : vector<2x256xf32> to vector<2x64xf32>
    %245 = arith.negf %244 : vector<2x64xf32>
    %246 = math.exp %245 : vector<2x64xf32>
    %cst_141 = arith.constant 1.000000e+00 : f32
    %247 = vector.broadcast %cst_141 : f32 to vector<2x64xf32>
    %248 = arith.addf %247, %246 : vector<2x64xf32>
    %249 = arith.divf %247, %248 : vector<2x64xf32>
    %250 = vector.extract_strided_slice %243 {offsets = [0, 64], sizes = [2, 64], strides = [1, 1]} : vector<2x256xf32> to vector<2x64xf32>
    %251 = arith.negf %250 : vector<2x64xf32>
    %252 = math.exp %251 : vector<2x64xf32>
    %cst_142 = arith.constant 1.000000e+00 : f32
    %253 = vector.broadcast %cst_142 : f32 to vector<2x64xf32>
    %254 = arith.addf %253, %252 : vector<2x64xf32>
    %255 = arith.divf %253, %254 : vector<2x64xf32>
    %256 = vector.extract_strided_slice %243 {offsets = [0, 128], sizes = [2, 64], strides = [1, 1]} : vector<2x256xf32> to vector<2x64xf32>
    %257 = math.tanh %256 : vector<2x64xf32>
    %258 = vector.extract_strided_slice %243 {offsets = [0, 192], sizes = [2, 64], strides = [1, 1]} : vector<2x256xf32> to vector<2x64xf32>
    %259 = arith.negf %258 : vector<2x64xf32>
    %260 = math.exp %259 : vector<2x64xf32>
    %cst_143 = arith.constant 1.000000e+00 : f32
    %261 = vector.broadcast %cst_143 : f32 to vector<2x64xf32>
    %262 = arith.addf %261, %260 : vector<2x64xf32>
    %263 = arith.divf %261, %262 : vector<2x64xf32>
    %264 = arith.mulf %255, %235 : vector<2x64xf32>
    %265 = arith.mulf %249, %257 : vector<2x64xf32>
    %266 = arith.addf %264, %265 : vector<2x64xf32>
    %267 = math.tanh %266 : vector<2x64xf32>
    %268 = arith.mulf %263, %267 : vector<2x64xf32>
    %c0_144 = arith.constant 0 : index
    %c0_145 = arith.constant 0 : index
    %269 = vector.load %arg11[%c0_144, %c0_145] : memref<2x64xf32, #tpu.memory_space<vmem>>, vector<2x64xf32>
    tpu.vector_store %arg11[%c0_144, %c0_145], %268 {strides = array<i32>} : memref<2x64xf32, #tpu.memory_space<vmem>>, vector<2x64xf32>,
    %c0_146 = arith.constant 0 : index
    %c0_147 = arith.constant 0 : index
    %270 = vector.load %arg12[%c0_146, %c0_147] : memref<2x64xf32, #tpu.memory_space<vmem>>, vector<2x64xf32>
    tpu.vector_store %arg12[%c0_146, %c0_147], %266 {strides = array<i32>} : memref<2x64xf32, #tpu.memory_space<vmem>>, vector<2x64xf32>,
    %271 = arith.index_cast %230 : i32 to index
    %c0_148 = arith.constant 0 : index
    %c0_149 = arith.constant 0 : index
    %272 = vector.load %arg8[%271, %c0_148, %c0_149] : memref<8x2x64xf32, #tpu.memory_space<vmem>>, vector<1x2x64xf32>
    %273 = vector.shape_cast %272 : vector<1x2x64xf32> to vector<2x64xf32>
    %274 = vector.shape_cast %268 : vector<2x64xf32> to vector<1x2x64xf32>
    tpu.vector_store %arg8[%271, %c0_148, %c0_149], %274 {strides = array<i32>} : memref<8x2x64xf32, #tpu.memory_space<vmem>>, vector<1x2x64xf32>,
    %c3_i32 = arith.constant 3 : i32
    %275 = arith.index_cast %c3_i32 : i32 to index
    %c0_150 = arith.constant 0 : index
    %c0_151 = arith.constant 0 : index
    %276 = vector.load %arg0[%275, %c0_150, %c0_151] : memref<8x2x4xf32, #tpu.memory_space<vmem>>, vector<1x2x4xf32>
    %277 = vector.shape_cast %276 : vector<1x2x4xf32> to vector<2x4xf32>
    %c0_152 = arith.constant 0 : index
    %c0_153 = arith.constant 0 : index
    %278 = vector.load %arg9[%c0_152, %c0_153] : memref<2x64xf32, #tpu.memory_space<vmem>>, vector<2x64xf32>
    %c0_154 = arith.constant 0 : index
    %c0_155 = arith.constant 0 : index
    %279 = vector.load %arg10[%c0_154, %c0_155] : memref<2x64xf32, #tpu.memory_space<vmem>>, vector<2x64xf32>
    %c0_156 = arith.constant 0 : index
    %c0_157 = arith.constant 0 : index
    %280 = vector.load %arg1[%c0_156, %c0_157] : memref<4x256xf32, #tpu.memory_space<vmem>>, vector<4x256xf32>
    %cst_158 = arith.constant dense<0.000000e+00> : vector<2x256xf32>
    %281 = tpu.matmul %277, %280, %cst_158 {dimension_numbers = #tpu.dot_dimension_numbers<[1], [0], [0], [1], [0, 0, 1, 1], [], []>} : vector<2x4xf32>, vector<4x256xf32>, vector<2x256xf32> -> vector<2x256xf32>
    %c0_159 = arith.constant 0 : index
    %c0_160 = arith.constant 0 : index
    %282 = vector.load %arg2[%c0_159, %c0_160] : memref<64x256xf32, #tpu.memory_space<vmem>>, vector<64x256xf32>
    %cst_161 = arith.constant dense<0.000000e+00> : vector<2x256xf32>
    %283 = tpu.matmul %278, %282, %cst_161 {dimension_numbers = #tpu.dot_dimension_numbers<[1], [0], [0], [1], [0, 0, 1, 1], [], []>} : vector<2x64xf32>, vector<64x256xf32>, vector<2x256xf32> -> vector<2x256xf32>
    %284 = arith.addf %281, %283 : vector<2x256xf32>
    %c0_162 = arith.constant 0 : index
    %c0_163 = arith.constant 0 : index
    %285 = vector.load %arg3[%c0_162, %c0_163] : memref<1x256xf32, #tpu.memory_space<vmem>>, vector<1x256xf32>
    %286 = vector.broadcast %285 : vector<1x256xf32> to vector<2x256xf32>
    %287 = arith.addf %284, %286 : vector<2x256xf32>
    %288 = vector.extract_strided_slice %287 {offsets = [0, 0], sizes = [2, 64], strides = [1, 1]} : vector<2x256xf32> to vector<2x64xf32>
    %289 = arith.negf %288 : vector<2x64xf32>
    %290 = math.exp %289 : vector<2x64xf32>
    %cst_164 = arith.constant 1.000000e+00 : f32
    %291 = vector.broadcast %cst_164 : f32 to vector<2x64xf32>
    %292 = arith.addf %291, %290 : vector<2x64xf32>
    %293 = arith.divf %291, %292 : vector<2x64xf32>
    %294 = vector.extract_strided_slice %287 {offsets = [0, 64], sizes = [2, 64], strides = [1, 1]} : vector<2x256xf32> to vector<2x64xf32>
    %295 = arith.negf %294 : vector<2x64xf32>
    %296 = math.exp %295 : vector<2x64xf32>
    %cst_165 = arith.constant 1.000000e+00 : f32
    %297 = vector.broadcast %cst_165 : f32 to vector<2x64xf32>
    %298 = arith.addf %297, %296 : vector<2x64xf32>
    %299 = arith.divf %297, %298 : vector<2x64xf32>
    %300 = vector.extract_strided_slice %287 {offsets = [0, 128], sizes = [2, 64], strides = [1, 1]} : vector<2x256xf32> to vector<2x64xf32>
    %301 = math.tanh %300 : vector<2x64xf32>
    %302 = vector.extract_strided_slice %287 {offsets = [0, 192], sizes = [2, 64], strides = [1, 1]} : vector<2x256xf32> to vector<2x64xf32>
    %303 = arith.negf %302 : vector<2x64xf32>
    %304 = math.exp %303 : vector<2x64xf32>
    %cst_166 = arith.constant 1.000000e+00 : f32
    %305 = vector.broadcast %cst_166 : f32 to vector<2x64xf32>
    %306 = arith.addf %305, %304 : vector<2x64xf32>
    %307 = arith.divf %305, %306 : vector<2x64xf32>
    %308 = arith.mulf %299, %279 : vector<2x64xf32>
    %309 = arith.mulf %293, %301 : vector<2x64xf32>
    %310 = arith.addf %308, %309 : vector<2x64xf32>
    %311 = math.tanh %310 : vector<2x64xf32>
    %312 = arith.mulf %307, %311 : vector<2x64xf32>
    %c0_167 = arith.constant 0 : index
    %c0_168 = arith.constant 0 : index
    %313 = vector.load %arg9[%c0_167, %c0_168] : memref<2x64xf32, #tpu.memory_space<vmem>>, vector<2x64xf32>
    tpu.vector_store %arg9[%c0_167, %c0_168], %312 {strides = array<i32>} : memref<2x64xf32, #tpu.memory_space<vmem>>, vector<2x64xf32>,
    %c0_169 = arith.constant 0 : index
    %c0_170 = arith.constant 0 : index
    %314 = vector.load %arg10[%c0_169, %c0_170] : memref<2x64xf32, #tpu.memory_space<vmem>>, vector<2x64xf32>
    tpu.vector_store %arg10[%c0_169, %c0_170], %310 {strides = array<i32>} : memref<2x64xf32, #tpu.memory_space<vmem>>, vector<2x64xf32>,
    %315 = arith.index_cast %c3_i32 : i32 to index
    %c0_171 = arith.constant 0 : index
    %c0_172 = arith.constant 0 : index
    %316 = vector.load %arg7[%315, %c0_171, %c0_172] : memref<8x2x64xf32, #tpu.memory_space<vmem>>, vector<1x2x64xf32>
    %317 = vector.shape_cast %316 : vector<1x2x64xf32> to vector<2x64xf32>
    %318 = vector.shape_cast %312 : vector<2x64xf32> to vector<1x2x64xf32>
    tpu.vector_store %arg7[%315, %c0_171, %c0_172], %318 {strides = array<i32>} : memref<8x2x64xf32, #tpu.memory_space<vmem>>, vector<1x2x64xf32>,
    %c7_i32_173 = arith.constant 7 : i32
    %319 = arith.subi %c7_i32_173, %c3_i32 : i32
    %320 = arith.index_cast %319 : i32 to index
    %c0_174 = arith.constant 0 : index
    %c0_175 = arith.constant 0 : index
    %321 = vector.load %arg0[%320, %c0_174, %c0_175] : memref<8x2x4xf32, #tpu.memory_space<vmem>>, vector<1x2x4xf32>
    %322 = vector.shape_cast %321 : vector<1x2x4xf32> to vector<2x4xf32>
    %c0_176 = arith.constant 0 : index
    %c0_177 = arith.constant 0 : index
    %323 = vector.load %arg11[%c0_176, %c0_177] : memref<2x64xf32, #tpu.memory_space<vmem>>, vector<2x64xf32>
    %c0_178 = arith.constant 0 : index
    %c0_179 = arith.constant 0 : index
    %324 = vector.load %arg12[%c0_178, %c0_179] : memref<2x64xf32, #tpu.memory_space<vmem>>, vector<2x64xf32>
    %c0_180 = arith.constant 0 : index
    %c0_181 = arith.constant 0 : index
    %325 = vector.load %arg4[%c0_180, %c0_181] : memref<4x256xf32, #tpu.memory_space<vmem>>, vector<4x256xf32>
    %cst_182 = arith.constant dense<0.000000e+00> : vector<2x256xf32>
    %326 = tpu.matmul %322, %325, %cst_182 {dimension_numbers = #tpu.dot_dimension_numbers<[1], [0], [0], [1], [0, 0, 1, 1], [], []>} : vector<2x4xf32>, vector<4x256xf32>, vector<2x256xf32> -> vector<2x256xf32>
    %c0_183 = arith.constant 0 : index
    %c0_184 = arith.constant 0 : index
    %327 = vector.load %arg5[%c0_183, %c0_184] : memref<64x256xf32, #tpu.memory_space<vmem>>, vector<64x256xf32>
    %cst_185 = arith.constant dense<0.000000e+00> : vector<2x256xf32>
    %328 = tpu.matmul %323, %327, %cst_185 {dimension_numbers = #tpu.dot_dimension_numbers<[1], [0], [0], [1], [0, 0, 1, 1], [], []>} : vector<2x64xf32>, vector<64x256xf32>, vector<2x256xf32> -> vector<2x256xf32>
    %329 = arith.addf %326, %328 : vector<2x256xf32>
    %c0_186 = arith.constant 0 : index
    %c0_187 = arith.constant 0 : index
    %330 = vector.load %arg6[%c0_186, %c0_187] : memref<1x256xf32, #tpu.memory_space<vmem>>, vector<1x256xf32>
    %331 = vector.broadcast %330 : vector<1x256xf32> to vector<2x256xf32>
    %332 = arith.addf %329, %331 : vector<2x256xf32>
    %333 = vector.extract_strided_slice %332 {offsets = [0, 0], sizes = [2, 64], strides = [1, 1]} : vector<2x256xf32> to vector<2x64xf32>
    %334 = arith.negf %333 : vector<2x64xf32>
    %335 = math.exp %334 : vector<2x64xf32>
    %cst_188 = arith.constant 1.000000e+00 : f32
    %336 = vector.broadcast %cst_188 : f32 to vector<2x64xf32>
    %337 = arith.addf %336, %335 : vector<2x64xf32>
    %338 = arith.divf %336, %337 : vector<2x64xf32>
    %339 = vector.extract_strided_slice %332 {offsets = [0, 64], sizes = [2, 64], strides = [1, 1]} : vector<2x256xf32> to vector<2x64xf32>
    %340 = arith.negf %339 : vector<2x64xf32>
    %341 = math.exp %340 : vector<2x64xf32>
    %cst_189 = arith.constant 1.000000e+00 : f32
    %342 = vector.broadcast %cst_189 : f32 to vector<2x64xf32>
    %343 = arith.addf %342, %341 : vector<2x64xf32>
    %344 = arith.divf %342, %343 : vector<2x64xf32>
    %345 = vector.extract_strided_slice %332 {offsets = [0, 128], sizes = [2, 64], strides = [1, 1]} : vector<2x256xf32> to vector<2x64xf32>
    %346 = math.tanh %345 : vector<2x64xf32>
    %347 = vector.extract_strided_slice %332 {offsets = [0, 192], sizes = [2, 64], strides = [1, 1]} : vector<2x256xf32> to vector<2x64xf32>
    %348 = arith.negf %347 : vector<2x64xf32>
    %349 = math.exp %348 : vector<2x64xf32>
    %cst_190 = arith.constant 1.000000e+00 : f32
    %350 = vector.broadcast %cst_190 : f32 to vector<2x64xf32>
    %351 = arith.addf %350, %349 : vector<2x64xf32>
    %352 = arith.divf %350, %351 : vector<2x64xf32>
    %353 = arith.mulf %344, %324 : vector<2x64xf32>
    %354 = arith.mulf %338, %346 : vector<2x64xf32>
    %355 = arith.addf %353, %354 : vector<2x64xf32>
    %356 = math.tanh %355 : vector<2x64xf32>
    %357 = arith.mulf %352, %356 : vector<2x64xf32>
    %c0_191 = arith.constant 0 : index
    %c0_192 = arith.constant 0 : index
    %358 = vector.load %arg11[%c0_191, %c0_192] : memref<2x64xf32, #tpu.memory_space<vmem>>, vector<2x64xf32>
    tpu.vector_store %arg11[%c0_191, %c0_192], %357 {strides = array<i32>} : memref<2x64xf32, #tpu.memory_space<vmem>>, vector<2x64xf32>,
    %c0_193 = arith.constant 0 : index
    %c0_194 = arith.constant 0 : index
    %359 = vector.load %arg12[%c0_193, %c0_194] : memref<2x64xf32, #tpu.memory_space<vmem>>, vector<2x64xf32>
    tpu.vector_store %arg12[%c0_193, %c0_194], %355 {strides = array<i32>} : memref<2x64xf32, #tpu.memory_space<vmem>>, vector<2x64xf32>,
    %360 = arith.index_cast %319 : i32 to index
    %c0_195 = arith.constant 0 : index
    %c0_196 = arith.constant 0 : index
    %361 = vector.load %arg8[%360, %c0_195, %c0_196] : memref<8x2x64xf32, #tpu.memory_space<vmem>>, vector<1x2x64xf32>
    %362 = vector.shape_cast %361 : vector<1x2x64xf32> to vector<2x64xf32>
    %363 = vector.shape_cast %357 : vector<2x64xf32> to vector<1x2x64xf32>
    tpu.vector_store %arg8[%360, %c0_195, %c0_196], %363 {strides = array<i32>} : memref<8x2x64xf32, #tpu.memory_space<vmem>>, vector<1x2x64xf32>,
    %c4_i32 = arith.constant 4 : i32
    %364 = arith.index_cast %c4_i32 : i32 to index
    %c0_197 = arith.constant 0 : index
    %c0_198 = arith.constant 0 : index
    %365 = vector.load %arg0[%364, %c0_197, %c0_198] : memref<8x2x4xf32, #tpu.memory_space<vmem>>, vector<1x2x4xf32>
    %366 = vector.shape_cast %365 : vector<1x2x4xf32> to vector<2x4xf32>
    %c0_199 = arith.constant 0 : index
    %c0_200 = arith.constant 0 : index
    %367 = vector.load %arg9[%c0_199, %c0_200] : memref<2x64xf32, #tpu.memory_space<vmem>>, vector<2x64xf32>
    %c0_201 = arith.constant 0 : index
    %c0_202 = arith.constant 0 : index
    %368 = vector.load %arg10[%c0_201, %c0_202] : memref<2x64xf32, #tpu.memory_space<vmem>>, vector<2x64xf32>
    %c0_203 = arith.constant 0 : index
    %c0_204 = arith.constant 0 : index
    %369 = vector.load %arg1[%c0_203, %c0_204] : memref<4x256xf32, #tpu.memory_space<vmem>>, vector<4x256xf32>
    %cst_205 = arith.constant dense<0.000000e+00> : vector<2x256xf32>
    %370 = tpu.matmul %366, %369, %cst_205 {dimension_numbers = #tpu.dot_dimension_numbers<[1], [0], [0], [1], [0, 0, 1, 1], [], []>} : vector<2x4xf32>, vector<4x256xf32>, vector<2x256xf32> -> vector<2x256xf32>
    %c0_206 = arith.constant 0 : index
    %c0_207 = arith.constant 0 : index
    %371 = vector.load %arg2[%c0_206, %c0_207] : memref<64x256xf32, #tpu.memory_space<vmem>>, vector<64x256xf32>
    %cst_208 = arith.constant dense<0.000000e+00> : vector<2x256xf32>
    %372 = tpu.matmul %367, %371, %cst_208 {dimension_numbers = #tpu.dot_dimension_numbers<[1], [0], [0], [1], [0, 0, 1, 1], [], []>} : vector<2x64xf32>, vector<64x256xf32>, vector<2x256xf32> -> vector<2x256xf32>
    %373 = arith.addf %370, %372 : vector<2x256xf32>
    %c0_209 = arith.constant 0 : index
    %c0_210 = arith.constant 0 : index
    %374 = vector.load %arg3[%c0_209, %c0_210] : memref<1x256xf32, #tpu.memory_space<vmem>>, vector<1x256xf32>
    %375 = vector.broadcast %374 : vector<1x256xf32> to vector<2x256xf32>
    %376 = arith.addf %373, %375 : vector<2x256xf32>
    %377 = vector.extract_strided_slice %376 {offsets = [0, 0], sizes = [2, 64], strides = [1, 1]} : vector<2x256xf32> to vector<2x64xf32>
    %378 = arith.negf %377 : vector<2x64xf32>
    %379 = math.exp %378 : vector<2x64xf32>
    %cst_211 = arith.constant 1.000000e+00 : f32
    %380 = vector.broadcast %cst_211 : f32 to vector<2x64xf32>
    %381 = arith.addf %380, %379 : vector<2x64xf32>
    %382 = arith.divf %380, %381 : vector<2x64xf32>
    %383 = vector.extract_strided_slice %376 {offsets = [0, 64], sizes = [2, 64], strides = [1, 1]} : vector<2x256xf32> to vector<2x64xf32>
    %384 = arith.negf %383 : vector<2x64xf32>
    %385 = math.exp %384 : vector<2x64xf32>
    %cst_212 = arith.constant 1.000000e+00 : f32
    %386 = vector.broadcast %cst_212 : f32 to vector<2x64xf32>
    %387 = arith.addf %386, %385 : vector<2x64xf32>
    %388 = arith.divf %386, %387 : vector<2x64xf32>
    %389 = vector.extract_strided_slice %376 {offsets = [0, 128], sizes = [2, 64], strides = [1, 1]} : vector<2x256xf32> to vector<2x64xf32>
    %390 = math.tanh %389 : vector<2x64xf32>
    %391 = vector.extract_strided_slice %376 {offsets = [0, 192], sizes = [2, 64], strides = [1, 1]} : vector<2x256xf32> to vector<2x64xf32>
    %392 = arith.negf %391 : vector<2x64xf32>
    %393 = math.exp %392 : vector<2x64xf32>
    %cst_213 = arith.constant 1.000000e+00 : f32
    %394 = vector.broadcast %cst_213 : f32 to vector<2x64xf32>
    %395 = arith.addf %394, %393 : vector<2x64xf32>
    %396 = arith.divf %394, %395 : vector<2x64xf32>
    %397 = arith.mulf %388, %368 : vector<2x64xf32>
    %398 = arith.mulf %382, %390 : vector<2x64xf32>
    %399 = arith.addf %397, %398 : vector<2x64xf32>
    %400 = math.tanh %399 : vector<2x64xf32>
    %401 = arith.mulf %396, %400 : vector<2x64xf32>
    %c0_214 = arith.constant 0 : index
    %c0_215 = arith.constant 0 : index
    %402 = vector.load %arg9[%c0_214, %c0_215] : memref<2x64xf32, #tpu.memory_space<vmem>>, vector<2x64xf32>
    tpu.vector_store %arg9[%c0_214, %c0_215], %401 {strides = array<i32>} : memref<2x64xf32, #tpu.memory_space<vmem>>, vector<2x64xf32>,
    %c0_216 = arith.constant 0 : index
    %c0_217 = arith.constant 0 : index
    %403 = vector.load %arg10[%c0_216, %c0_217] : memref<2x64xf32, #tpu.memory_space<vmem>>, vector<2x64xf32>
    tpu.vector_store %arg10[%c0_216, %c0_217], %399 {strides = array<i32>} : memref<2x64xf32, #tpu.memory_space<vmem>>, vector<2x64xf32>,
    %404 = arith.index_cast %c4_i32 : i32 to index
    %c0_218 = arith.constant 0 : index
    %c0_219 = arith.constant 0 : index
    %405 = vector.load %arg7[%404, %c0_218, %c0_219] : memref<8x2x64xf32, #tpu.memory_space<vmem>>, vector<1x2x64xf32>
    %406 = vector.shape_cast %405 : vector<1x2x64xf32> to vector<2x64xf32>
    %407 = vector.shape_cast %401 : vector<2x64xf32> to vector<1x2x64xf32>
    tpu.vector_store %arg7[%404, %c0_218, %c0_219], %407 {strides = array<i32>} : memref<8x2x64xf32, #tpu.memory_space<vmem>>, vector<1x2x64xf32>,
    %c7_i32_220 = arith.constant 7 : i32
    %408 = arith.subi %c7_i32_220, %c4_i32 : i32
    %409 = arith.index_cast %408 : i32 to index
    %c0_221 = arith.constant 0 : index
    %c0_222 = arith.constant 0 : index
    %410 = vector.load %arg0[%409, %c0_221, %c0_222] : memref<8x2x4xf32, #tpu.memory_space<vmem>>, vector<1x2x4xf32>
    %411 = vector.shape_cast %410 : vector<1x2x4xf32> to vector<2x4xf32>
    %c0_223 = arith.constant 0 : index
    %c0_224 = arith.constant 0 : index
    %412 = vector.load %arg11[%c0_223, %c0_224] : memref<2x64xf32, #tpu.memory_space<vmem>>, vector<2x64xf32>
    %c0_225 = arith.constant 0 : index
    %c0_226 = arith.constant 0 : index
    %413 = vector.load %arg12[%c0_225, %c0_226] : memref<2x64xf32, #tpu.memory_space<vmem>>, vector<2x64xf32>
    %c0_227 = arith.constant 0 : index
    %c0_228 = arith.constant 0 : index
    %414 = vector.load %arg4[%c0_227, %c0_228] : memref<4x256xf32, #tpu.memory_space<vmem>>, vector<4x256xf32>
    %cst_229 = arith.constant dense<0.000000e+00> : vector<2x256xf32>
    %415 = tpu.matmul %411, %414, %cst_229 {dimension_numbers = #tpu.dot_dimension_numbers<[1], [0], [0], [1], [0, 0, 1, 1], [], []>} : vector<2x4xf32>, vector<4x256xf32>, vector<2x256xf32> -> vector<2x256xf32>
    %c0_230 = arith.constant 0 : index
    %c0_231 = arith.constant 0 : index
    %416 = vector.load %arg5[%c0_230, %c0_231] : memref<64x256xf32, #tpu.memory_space<vmem>>, vector<64x256xf32>
    %cst_232 = arith.constant dense<0.000000e+00> : vector<2x256xf32>
    %417 = tpu.matmul %412, %416, %cst_232 {dimension_numbers = #tpu.dot_dimension_numbers<[1], [0], [0], [1], [0, 0, 1, 1], [], []>} : vector<2x64xf32>, vector<64x256xf32>, vector<2x256xf32> -> vector<2x256xf32>
    %418 = arith.addf %415, %417 : vector<2x256xf32>
    %c0_233 = arith.constant 0 : index
    %c0_234 = arith.constant 0 : index
    %419 = vector.load %arg6[%c0_233, %c0_234] : memref<1x256xf32, #tpu.memory_space<vmem>>, vector<1x256xf32>
    %420 = vector.broadcast %419 : vector<1x256xf32> to vector<2x256xf32>
    %421 = arith.addf %418, %420 : vector<2x256xf32>
    %422 = vector.extract_strided_slice %421 {offsets = [0, 0], sizes = [2, 64], strides = [1, 1]} : vector<2x256xf32> to vector<2x64xf32>
    %423 = arith.negf %422 : vector<2x64xf32>
    %424 = math.exp %423 : vector<2x64xf32>
    %cst_235 = arith.constant 1.000000e+00 : f32
    %425 = vector.broadcast %cst_235 : f32 to vector<2x64xf32>
    %426 = arith.addf %425, %424 : vector<2x64xf32>
    %427 = arith.divf %425, %426 : vector<2x64xf32>
    %428 = vector.extract_strided_slice %421 {offsets = [0, 64], sizes = [2, 64], strides = [1, 1]} : vector<2x256xf32> to vector<2x64xf32>
    %429 = arith.negf %428 : vector<2x64xf32>
    %430 = math.exp %429 : vector<2x64xf32>
    %cst_236 = arith.constant 1.000000e+00 : f32
    %431 = vector.broadcast %cst_236 : f32 to vector<2x64xf32>
    %432 = arith.addf %431, %430 : vector<2x64xf32>
    %433 = arith.divf %431, %432 : vector<2x64xf32>
    %434 = vector.extract_strided_slice %421 {offsets = [0, 128], sizes = [2, 64], strides = [1, 1]} : vector<2x256xf32> to vector<2x64xf32>
    %435 = math.tanh %434 : vector<2x64xf32>
    %436 = vector.extract_strided_slice %421 {offsets = [0, 192], sizes = [2, 64], strides = [1, 1]} : vector<2x256xf32> to vector<2x64xf32>
    %437 = arith.negf %436 : vector<2x64xf32>
    %438 = math.exp %437 : vector<2x64xf32>
    %cst_237 = arith.constant 1.000000e+00 : f32
    %439 = vector.broadcast %cst_237 : f32 to vector<2x64xf32>
    %440 = arith.addf %439, %438 : vector<2x64xf32>
    %441 = arith.divf %439, %440 : vector<2x64xf32>
    %442 = arith.mulf %433, %413 : vector<2x64xf32>
    %443 = arith.mulf %427, %435 : vector<2x64xf32>
    %444 = arith.addf %442, %443 : vector<2x64xf32>
    %445 = math.tanh %444 : vector<2x64xf32>
    %446 = arith.mulf %441, %445 : vector<2x64xf32>
    %c0_238 = arith.constant 0 : index
    %c0_239 = arith.constant 0 : index
    %447 = vector.load %arg11[%c0_238, %c0_239] : memref<2x64xf32, #tpu.memory_space<vmem>>, vector<2x64xf32>
    tpu.vector_store %arg11[%c0_238, %c0_239], %446 {strides = array<i32>} : memref<2x64xf32, #tpu.memory_space<vmem>>, vector<2x64xf32>,
    %c0_240 = arith.constant 0 : index
    %c0_241 = arith.constant 0 : index
    %448 = vector.load %arg12[%c0_240, %c0_241] : memref<2x64xf32, #tpu.memory_space<vmem>>, vector<2x64xf32>
    tpu.vector_store %arg12[%c0_240, %c0_241], %444 {strides = array<i32>} : memref<2x64xf32, #tpu.memory_space<vmem>>, vector<2x64xf32>,
    %449 = arith.index_cast %408 : i32 to index
    %c0_242 = arith.constant 0 : index
    %c0_243 = arith.constant 0 : index
    %450 = vector.load %arg8[%449, %c0_242, %c0_243] : memref<8x2x64xf32, #tpu.memory_space<vmem>>, vector<1x2x64xf32>
    %451 = vector.shape_cast %450 : vector<1x2x64xf32> to vector<2x64xf32>
    %452 = vector.shape_cast %446 : vector<2x64xf32> to vector<1x2x64xf32>
    tpu.vector_store %arg8[%449, %c0_242, %c0_243], %452 {strides = array<i32>} : memref<8x2x64xf32, #tpu.memory_space<vmem>>, vector<1x2x64xf32>,
    %c5_i32 = arith.constant 5 : i32
    %453 = arith.index_cast %c5_i32 : i32 to index
    %c0_244 = arith.constant 0 : index
    %c0_245 = arith.constant 0 : index
    %454 = vector.load %arg0[%453, %c0_244, %c0_245] : memref<8x2x4xf32, #tpu.memory_space<vmem>>, vector<1x2x4xf32>
    %455 = vector.shape_cast %454 : vector<1x2x4xf32> to vector<2x4xf32>
    %c0_246 = arith.constant 0 : index
    %c0_247 = arith.constant 0 : index
    %456 = vector.load %arg9[%c0_246, %c0_247] : memref<2x64xf32, #tpu.memory_space<vmem>>, vector<2x64xf32>
    %c0_248 = arith.constant 0 : index
    %c0_249 = arith.constant 0 : index
    %457 = vector.load %arg10[%c0_248, %c0_249] : memref<2x64xf32, #tpu.memory_space<vmem>>, vector<2x64xf32>
    %c0_250 = arith.constant 0 : index
    %c0_251 = arith.constant 0 : index
    %458 = vector.load %arg1[%c0_250, %c0_251] : memref<4x256xf32, #tpu.memory_space<vmem>>, vector<4x256xf32>
    %cst_252 = arith.constant dense<0.000000e+00> : vector<2x256xf32>
    %459 = tpu.matmul %455, %458, %cst_252 {dimension_numbers = #tpu.dot_dimension_numbers<[1], [0], [0], [1], [0, 0, 1, 1], [], []>} : vector<2x4xf32>, vector<4x256xf32>, vector<2x256xf32> -> vector<2x256xf32>
    %c0_253 = arith.constant 0 : index
    %c0_254 = arith.constant 0 : index
    %460 = vector.load %arg2[%c0_253, %c0_254] : memref<64x256xf32, #tpu.memory_space<vmem>>, vector<64x256xf32>
    %cst_255 = arith.constant dense<0.000000e+00> : vector<2x256xf32>
    %461 = tpu.matmul %456, %460, %cst_255 {dimension_numbers = #tpu.dot_dimension_numbers<[1], [0], [0], [1], [0, 0, 1, 1], [], []>} : vector<2x64xf32>, vector<64x256xf32>, vector<2x256xf32> -> vector<2x256xf32>
    %462 = arith.addf %459, %461 : vector<2x256xf32>
    %c0_256 = arith.constant 0 : index
    %c0_257 = arith.constant 0 : index
    %463 = vector.load %arg3[%c0_256, %c0_257] : memref<1x256xf32, #tpu.memory_space<vmem>>, vector<1x256xf32>
    %464 = vector.broadcast %463 : vector<1x256xf32> to vector<2x256xf32>
    %465 = arith.addf %462, %464 : vector<2x256xf32>
    %466 = vector.extract_strided_slice %465 {offsets = [0, 0], sizes = [2, 64], strides = [1, 1]} : vector<2x256xf32> to vector<2x64xf32>
    %467 = arith.negf %466 : vector<2x64xf32>
    %468 = math.exp %467 : vector<2x64xf32>
    %cst_258 = arith.constant 1.000000e+00 : f32
    %469 = vector.broadcast %cst_258 : f32 to vector<2x64xf32>
    %470 = arith.addf %469, %468 : vector<2x64xf32>
    %471 = arith.divf %469, %470 : vector<2x64xf32>
    %472 = vector.extract_strided_slice %465 {offsets = [0, 64], sizes = [2, 64], strides = [1, 1]} : vector<2x256xf32> to vector<2x64xf32>
    %473 = arith.negf %472 : vector<2x64xf32>
    %474 = math.exp %473 : vector<2x64xf32>
    %cst_259 = arith.constant 1.000000e+00 : f32
    %475 = vector.broadcast %cst_259 : f32 to vector<2x64xf32>
    %476 = arith.addf %475, %474 : vector<2x64xf32>
    %477 = arith.divf %475, %476 : vector<2x64xf32>
    %478 = vector.extract_strided_slice %465 {offsets = [0, 128], sizes = [2, 64], strides = [1, 1]} : vector<2x256xf32> to vector<2x64xf32>
    %479 = math.tanh %478 : vector<2x64xf32>
    %480 = vector.extract_strided_slice %465 {offsets = [0, 192], sizes = [2, 64], strides = [1, 1]} : vector<2x256xf32> to vector<2x64xf32>
    %481 = arith.negf %480 : vector<2x64xf32>
    %482 = math.exp %481 : vector<2x64xf32>
    %cst_260 = arith.constant 1.000000e+00 : f32
    %483 = vector.broadcast %cst_260 : f32 to vector<2x64xf32>
    %484 = arith.addf %483, %482 : vector<2x64xf32>
    %485 = arith.divf %483, %484 : vector<2x64xf32>
    %486 = arith.mulf %477, %457 : vector<2x64xf32>
    %487 = arith.mulf %471, %479 : vector<2x64xf32>
    %488 = arith.addf %486, %487 : vector<2x64xf32>
    %489 = math.tanh %488 : vector<2x64xf32>
    %490 = arith.mulf %485, %489 : vector<2x64xf32>
    %c0_261 = arith.constant 0 : index
    %c0_262 = arith.constant 0 : index
    %491 = vector.load %arg9[%c0_261, %c0_262] : memref<2x64xf32, #tpu.memory_space<vmem>>, vector<2x64xf32>
    tpu.vector_store %arg9[%c0_261, %c0_262], %490 {strides = array<i32>} : memref<2x64xf32, #tpu.memory_space<vmem>>, vector<2x64xf32>,
    %c0_263 = arith.constant 0 : index
    %c0_264 = arith.constant 0 : index
    %492 = vector.load %arg10[%c0_263, %c0_264] : memref<2x64xf32, #tpu.memory_space<vmem>>, vector<2x64xf32>
    tpu.vector_store %arg10[%c0_263, %c0_264], %488 {strides = array<i32>} : memref<2x64xf32, #tpu.memory_space<vmem>>, vector<2x64xf32>,
    %493 = arith.index_cast %c5_i32 : i32 to index
    %c0_265 = arith.constant 0 : index
    %c0_266 = arith.constant 0 : index
    %494 = vector.load %arg7[%493, %c0_265, %c0_266] : memref<8x2x64xf32, #tpu.memory_space<vmem>>, vector<1x2x64xf32>
    %495 = vector.shape_cast %494 : vector<1x2x64xf32> to vector<2x64xf32>
    %496 = vector.shape_cast %490 : vector<2x64xf32> to vector<1x2x64xf32>
    tpu.vector_store %arg7[%493, %c0_265, %c0_266], %496 {strides = array<i32>} : memref<8x2x64xf32, #tpu.memory_space<vmem>>, vector<1x2x64xf32>,
    %c7_i32_267 = arith.constant 7 : i32
    %497 = arith.subi %c7_i32_267, %c5_i32 : i32
    %498 = arith.index_cast %497 : i32 to index
    %c0_268 = arith.constant 0 : index
    %c0_269 = arith.constant 0 : index
    %499 = vector.load %arg0[%498, %c0_268, %c0_269] : memref<8x2x4xf32, #tpu.memory_space<vmem>>, vector<1x2x4xf32>
    %500 = vector.shape_cast %499 : vector<1x2x4xf32> to vector<2x4xf32>
    %c0_270 = arith.constant 0 : index
    %c0_271 = arith.constant 0 : index
    %501 = vector.load %arg11[%c0_270, %c0_271] : memref<2x64xf32, #tpu.memory_space<vmem>>, vector<2x64xf32>
    %c0_272 = arith.constant 0 : index
    %c0_273 = arith.constant 0 : index
    %502 = vector.load %arg12[%c0_272, %c0_273] : memref<2x64xf32, #tpu.memory_space<vmem>>, vector<2x64xf32>
    %c0_274 = arith.constant 0 : index
    %c0_275 = arith.constant 0 : index
    %503 = vector.load %arg4[%c0_274, %c0_275] : memref<4x256xf32, #tpu.memory_space<vmem>>, vector<4x256xf32>
    %cst_276 = arith.constant dense<0.000000e+00> : vector<2x256xf32>
    %504 = tpu.matmul %500, %503, %cst_276 {dimension_numbers = #tpu.dot_dimension_numbers<[1], [0], [0], [1], [0, 0, 1, 1], [], []>} : vector<2x4xf32>, vector<4x256xf32>, vector<2x256xf32> -> vector<2x256xf32>
    %c0_277 = arith.constant 0 : index
    %c0_278 = arith.constant 0 : index
    %505 = vector.load %arg5[%c0_277, %c0_278] : memref<64x256xf32, #tpu.memory_space<vmem>>, vector<64x256xf32>
    %cst_279 = arith.constant dense<0.000000e+00> : vector<2x256xf32>
    %506 = tpu.matmul %501, %505, %cst_279 {dimension_numbers = #tpu.dot_dimension_numbers<[1], [0], [0], [1], [0, 0, 1, 1], [], []>} : vector<2x64xf32>, vector<64x256xf32>, vector<2x256xf32> -> vector<2x256xf32>
    %507 = arith.addf %504, %506 : vector<2x256xf32>
    %c0_280 = arith.constant 0 : index
    %c0_281 = arith.constant 0 : index
    %508 = vector.load %arg6[%c0_280, %c0_281] : memref<1x256xf32, #tpu.memory_space<vmem>>, vector<1x256xf32>
    %509 = vector.broadcast %508 : vector<1x256xf32> to vector<2x256xf32>
    %510 = arith.addf %507, %509 : vector<2x256xf32>
    %511 = vector.extract_strided_slice %510 {offsets = [0, 0], sizes = [2, 64], strides = [1, 1]} : vector<2x256xf32> to vector<2x64xf32>
    %512 = arith.negf %511 : vector<2x64xf32>
    %513 = math.exp %512 : vector<2x64xf32>
    %cst_282 = arith.constant 1.000000e+00 : f32
    %514 = vector.broadcast %cst_282 : f32 to vector<2x64xf32>
    %515 = arith.addf %514, %513 : vector<2x64xf32>
    %516 = arith.divf %514, %515 : vector<2x64xf32>
    %517 = vector.extract_strided_slice %510 {offsets = [0, 64], sizes = [2, 64], strides = [1, 1]} : vector<2x256xf32> to vector<2x64xf32>
    %518 = arith.negf %517 : vector<2x64xf32>
    %519 = math.exp %518 : vector<2x64xf32>
    %cst_283 = arith.constant 1.000000e+00 : f32
    %520 = vector.broadcast %cst_283 : f32 to vector<2x64xf32>
    %521 = arith.addf %520, %519 : vector<2x64xf32>
    %522 = arith.divf %520, %521 : vector<2x64xf32>
    %523 = vector.extract_strided_slice %510 {offsets = [0, 128], sizes = [2, 64], strides = [1, 1]} : vector<2x256xf32> to vector<2x64xf32>
    %524 = math.tanh %523 : vector<2x64xf32>
    %525 = vector.extract_strided_slice %510 {offsets = [0, 192], sizes = [2, 64], strides = [1, 1]} : vector<2x256xf32> to vector<2x64xf32>
    %526 = arith.negf %525 : vector<2x64xf32>
    %527 = math.exp %526 : vector<2x64xf32>
    %cst_284 = arith.constant 1.000000e+00 : f32
    %528 = vector.broadcast %cst_284 : f32 to vector<2x64xf32>
    %529 = arith.addf %528, %527 : vector<2x64xf32>
    %530 = arith.divf %528, %529 : vector<2x64xf32>
    %531 = arith.mulf %522, %502 : vector<2x64xf32>
    %532 = arith.mulf %516, %524 : vector<2x64xf32>
    %533 = arith.addf %531, %532 : vector<2x64xf32>
    %534 = math.tanh %533 : vector<2x64xf32>
    %535 = arith.mulf %530, %534 : vector<2x64xf32>
    %c0_285 = arith.constant 0 : index
    %c0_286 = arith.constant 0 : index
    %536 = vector.load %arg11[%c0_285, %c0_286] : memref<2x64xf32, #tpu.memory_space<vmem>>, vector<2x64xf32>
    tpu.vector_store %arg11[%c0_285, %c0_286], %535 {strides = array<i32>} : memref<2x64xf32, #tpu.memory_space<vmem>>, vector<2x64xf32>,
    %c0_287 = arith.constant 0 : index
    %c0_288 = arith.constant 0 : index
    %537 = vector.load %arg12[%c0_287, %c0_288] : memref<2x64xf32, #tpu.memory_space<vmem>>, vector<2x64xf32>
    tpu.vector_store %arg12[%c0_287, %c0_288], %533 {strides = array<i32>} : memref<2x64xf32, #tpu.memory_space<vmem>>, vector<2x64xf32>,
    %538 = arith.index_cast %497 : i32 to index
    %c0_289 = arith.constant 0 : index
    %c0_290 = arith.constant 0 : index
    %539 = vector.load %arg8[%538, %c0_289, %c0_290] : memref<8x2x64xf32, #tpu.memory_space<vmem>>, vector<1x2x64xf32>
    %540 = vector.shape_cast %539 : vector<1x2x64xf32> to vector<2x64xf32>
    %541 = vector.shape_cast %535 : vector<2x64xf32> to vector<1x2x64xf32>
    tpu.vector_store %arg8[%538, %c0_289, %c0_290], %541 {strides = array<i32>} : memref<8x2x64xf32, #tpu.memory_space<vmem>>, vector<1x2x64xf32>,
    %c6_i32 = arith.constant 6 : i32
    %542 = arith.index_cast %c6_i32 : i32 to index
    %c0_291 = arith.constant 0 : index
    %c0_292 = arith.constant 0 : index
    %543 = vector.load %arg0[%542, %c0_291, %c0_292] : memref<8x2x4xf32, #tpu.memory_space<vmem>>, vector<1x2x4xf32>
    %544 = vector.shape_cast %543 : vector<1x2x4xf32> to vector<2x4xf32>
    %c0_293 = arith.constant 0 : index
    %c0_294 = arith.constant 0 : index
    %545 = vector.load %arg9[%c0_293, %c0_294] : memref<2x64xf32, #tpu.memory_space<vmem>>, vector<2x64xf32>
    %c0_295 = arith.constant 0 : index
    %c0_296 = arith.constant 0 : index
    %546 = vector.load %arg10[%c0_295, %c0_296] : memref<2x64xf32, #tpu.memory_space<vmem>>, vector<2x64xf32>
    %c0_297 = arith.constant 0 : index
    %c0_298 = arith.constant 0 : index
    %547 = vector.load %arg1[%c0_297, %c0_298] : memref<4x256xf32, #tpu.memory_space<vmem>>, vector<4x256xf32>
    %cst_299 = arith.constant dense<0.000000e+00> : vector<2x256xf32>
    %548 = tpu.matmul %544, %547, %cst_299 {dimension_numbers = #tpu.dot_dimension_numbers<[1], [0], [0], [1], [0, 0, 1, 1], [], []>} : vector<2x4xf32>, vector<4x256xf32>, vector<2x256xf32> -> vector<2x256xf32>
    %c0_300 = arith.constant 0 : index
    %c0_301 = arith.constant 0 : index
    %549 = vector.load %arg2[%c0_300, %c0_301] : memref<64x256xf32, #tpu.memory_space<vmem>>, vector<64x256xf32>
    %cst_302 = arith.constant dense<0.000000e+00> : vector<2x256xf32>
    %550 = tpu.matmul %545, %549, %cst_302 {dimension_numbers = #tpu.dot_dimension_numbers<[1], [0], [0], [1], [0, 0, 1, 1], [], []>} : vector<2x64xf32>, vector<64x256xf32>, vector<2x256xf32> -> vector<2x256xf32>
    %551 = arith.addf %548, %550 : vector<2x256xf32>
    %c0_303 = arith.constant 0 : index
    %c0_304 = arith.constant 0 : index
    %552 = vector.load %arg3[%c0_303, %c0_304] : memref<1x256xf32, #tpu.memory_space<vmem>>, vector<1x256xf32>
    %553 = vector.broadcast %552 : vector<1x256xf32> to vector<2x256xf32>
    %554 = arith.addf %551, %553 : vector<2x256xf32>
    %555 = vector.extract_strided_slice %554 {offsets = [0, 0], sizes = [2, 64], strides = [1, 1]} : vector<2x256xf32> to vector<2x64xf32>
    %556 = arith.negf %555 : vector<2x64xf32>
    %557 = math.exp %556 : vector<2x64xf32>
    %cst_305 = arith.constant 1.000000e+00 : f32
    %558 = vector.broadcast %cst_305 : f32 to vector<2x64xf32>
    %559 = arith.addf %558, %557 : vector<2x64xf32>
    %560 = arith.divf %558, %559 : vector<2x64xf32>
    %561 = vector.extract_strided_slice %554 {offsets = [0, 64], sizes = [2, 64], strides = [1, 1]} : vector<2x256xf32> to vector<2x64xf32>
    %562 = arith.negf %561 : vector<2x64xf32>
    %563 = math.exp %562 : vector<2x64xf32>
    %cst_306 = arith.constant 1.000000e+00 : f32
    %564 = vector.broadcast %cst_306 : f32 to vector<2x64xf32>
    %565 = arith.addf %564, %563 : vector<2x64xf32>
    %566 = arith.divf %564, %565 : vector<2x64xf32>
    %567 = vector.extract_strided_slice %554 {offsets = [0, 128], sizes = [2, 64], strides = [1, 1]} : vector<2x256xf32> to vector<2x64xf32>
    %568 = math.tanh %567 : vector<2x64xf32>
    %569 = vector.extract_strided_slice %554 {offsets = [0, 192], sizes = [2, 64], strides = [1, 1]} : vector<2x256xf32> to vector<2x64xf32>
    %570 = arith.negf %569 : vector<2x64xf32>
    %571 = math.exp %570 : vector<2x64xf32>
    %cst_307 = arith.constant 1.000000e+00 : f32
    %572 = vector.broadcast %cst_307 : f32 to vector<2x64xf32>
    %573 = arith.addf %572, %571 : vector<2x64xf32>
    %574 = arith.divf %572, %573 : vector<2x64xf32>
    %575 = arith.mulf %566, %546 : vector<2x64xf32>
    %576 = arith.mulf %560, %568 : vector<2x64xf32>
    %577 = arith.addf %575, %576 : vector<2x64xf32>
    %578 = math.tanh %577 : vector<2x64xf32>
    %579 = arith.mulf %574, %578 : vector<2x64xf32>
    %c0_308 = arith.constant 0 : index
    %c0_309 = arith.constant 0 : index
    %580 = vector.load %arg9[%c0_308, %c0_309] : memref<2x64xf32, #tpu.memory_space<vmem>>, vector<2x64xf32>
    tpu.vector_store %arg9[%c0_308, %c0_309], %579 {strides = array<i32>} : memref<2x64xf32, #tpu.memory_space<vmem>>, vector<2x64xf32>,
    %c0_310 = arith.constant 0 : index
    %c0_311 = arith.constant 0 : index
    %581 = vector.load %arg10[%c0_310, %c0_311] : memref<2x64xf32, #tpu.memory_space<vmem>>, vector<2x64xf32>
    tpu.vector_store %arg10[%c0_310, %c0_311], %577 {strides = array<i32>} : memref<2x64xf32, #tpu.memory_space<vmem>>, vector<2x64xf32>,
    %582 = arith.index_cast %c6_i32 : i32 to index
    %c0_312 = arith.constant 0 : index
    %c0_313 = arith.constant 0 : index
    %583 = vector.load %arg7[%582, %c0_312, %c0_313] : memref<8x2x64xf32, #tpu.memory_space<vmem>>, vector<1x2x64xf32>
    %584 = vector.shape_cast %583 : vector<1x2x64xf32> to vector<2x64xf32>
    %585 = vector.shape_cast %579 : vector<2x64xf32> to vector<1x2x64xf32>
    tpu.vector_store %arg7[%582, %c0_312, %c0_313], %585 {strides = array<i32>} : memref<8x2x64xf32, #tpu.memory_space<vmem>>, vector<1x2x64xf32>,
    %c7_i32_314 = arith.constant 7 : i32
    %586 = arith.subi %c7_i32_314, %c6_i32 : i32
    %587 = arith.index_cast %586 : i32 to index
    %c0_315 = arith.constant 0 : index
    %c0_316 = arith.constant 0 : index
    %588 = vector.load %arg0[%587, %c0_315, %c0_316] : memref<8x2x4xf32, #tpu.memory_space<vmem>>, vector<1x2x4xf32>
    %589 = vector.shape_cast %588 : vector<1x2x4xf32> to vector<2x4xf32>
    %c0_317 = arith.constant 0 : index
    %c0_318 = arith.constant 0 : index
    %590 = vector.load %arg11[%c0_317, %c0_318] : memref<2x64xf32, #tpu.memory_space<vmem>>, vector<2x64xf32>
    %c0_319 = arith.constant 0 : index
    %c0_320 = arith.constant 0 : index
    %591 = vector.load %arg12[%c0_319, %c0_320] : memref<2x64xf32, #tpu.memory_space<vmem>>, vector<2x64xf32>
    %c0_321 = arith.constant 0 : index
    %c0_322 = arith.constant 0 : index
    %592 = vector.load %arg4[%c0_321, %c0_322] : memref<4x256xf32, #tpu.memory_space<vmem>>, vector<4x256xf32>
    %cst_323 = arith.constant dense<0.000000e+00> : vector<2x256xf32>
    %593 = tpu.matmul %589, %592, %cst_323 {dimension_numbers = #tpu.dot_dimension_numbers<[1], [0], [0], [1], [0, 0, 1, 1], [], []>} : vector<2x4xf32>, vector<4x256xf32>, vector<2x256xf32> -> vector<2x256xf32>
    %c0_324 = arith.constant 0 : index
    %c0_325 = arith.constant 0 : index
    %594 = vector.load %arg5[%c0_324, %c0_325] : memref<64x256xf32, #tpu.memory_space<vmem>>, vector<64x256xf32>
    %cst_326 = arith.constant dense<0.000000e+00> : vector<2x256xf32>
    %595 = tpu.matmul %590, %594, %cst_326 {dimension_numbers = #tpu.dot_dimension_numbers<[1], [0], [0], [1], [0, 0, 1, 1], [], []>} : vector<2x64xf32>, vector<64x256xf32>, vector<2x256xf32> -> vector<2x256xf32>
    %596 = arith.addf %593, %595 : vector<2x256xf32>
    %c0_327 = arith.constant 0 : index
    %c0_328 = arith.constant 0 : index
    %597 = vector.load %arg6[%c0_327, %c0_328] : memref<1x256xf32, #tpu.memory_space<vmem>>, vector<1x256xf32>
    %598 = vector.broadcast %597 : vector<1x256xf32> to vector<2x256xf32>
    %599 = arith.addf %596, %598 : vector<2x256xf32>
    %600 = vector.extract_strided_slice %599 {offsets = [0, 0], sizes = [2, 64], strides = [1, 1]} : vector<2x256xf32> to vector<2x64xf32>
    %601 = arith.negf %600 : vector<2x64xf32>
    %602 = math.exp %601 : vector<2x64xf32>
    %cst_329 = arith.constant 1.000000e+00 : f32
    %603 = vector.broadcast %cst_329 : f32 to vector<2x64xf32>
    %604 = arith.addf %603, %602 : vector<2x64xf32>
    %605 = arith.divf %603, %604 : vector<2x64xf32>
    %606 = vector.extract_strided_slice %599 {offsets = [0, 64], sizes = [2, 64], strides = [1, 1]} : vector<2x256xf32> to vector<2x64xf32>
    %607 = arith.negf %606 : vector<2x64xf32>
    %608 = math.exp %607 : vector<2x64xf32>
    %cst_330 = arith.constant 1.000000e+00 : f32
    %609 = vector.broadcast %cst_330 : f32 to vector<2x64xf32>
    %610 = arith.addf %609, %608 : vector<2x64xf32>
    %611 = arith.divf %609, %610 : vector<2x64xf32>
    %612 = vector.extract_strided_slice %599 {offsets = [0, 128], sizes = [2, 64], strides = [1, 1]} : vector<2x256xf32> to vector<2x64xf32>
    %613 = math.tanh %612 : vector<2x64xf32>
    %614 = vector.extract_strided_slice %599 {offsets = [0, 192], sizes = [2, 64], strides = [1, 1]} : vector<2x256xf32> to vector<2x64xf32>
    %615 = arith.negf %614 : vector<2x64xf32>
    %616 = math.exp %615 : vector<2x64xf32>
    %cst_331 = arith.constant 1.000000e+00 : f32
    %617 = vector.broadcast %cst_331 : f32 to vector<2x64xf32>
    %618 = arith.addf %617, %616 : vector<2x64xf32>
    %619 = arith.divf %617, %618 : vector<2x64xf32>
    %620 = arith.mulf %611, %591 : vector<2x64xf32>
    %621 = arith.mulf %605, %613 : vector<2x64xf32>
    %622 = arith.addf %620, %621 : vector<2x64xf32>
    %623 = math.tanh %622 : vector<2x64xf32>
    %624 = arith.mulf %619, %623 : vector<2x64xf32>
    %c0_332 = arith.constant 0 : index
    %c0_333 = arith.constant 0 : index
    %625 = vector.load %arg11[%c0_332, %c0_333] : memref<2x64xf32, #tpu.memory_space<vmem>>, vector<2x64xf32>
    tpu.vector_store %arg11[%c0_332, %c0_333], %624 {strides = array<i32>} : memref<2x64xf32, #tpu.memory_space<vmem>>, vector<2x64xf32>,
    %c0_334 = arith.constant 0 : index
    %c0_335 = arith.constant 0 : index
    %626 = vector.load %arg12[%c0_334, %c0_335] : memref<2x64xf32, #tpu.memory_space<vmem>>, vector<2x64xf32>
    tpu.vector_store %arg12[%c0_334, %c0_335], %622 {strides = array<i32>} : memref<2x64xf32, #tpu.memory_space<vmem>>, vector<2x64xf32>,
    %627 = arith.index_cast %586 : i32 to index
    %c0_336 = arith.constant 0 : index
    %c0_337 = arith.constant 0 : index
    %628 = vector.load %arg8[%627, %c0_336, %c0_337] : memref<8x2x64xf32, #tpu.memory_space<vmem>>, vector<1x2x64xf32>
    %629 = vector.shape_cast %628 : vector<1x2x64xf32> to vector<2x64xf32>
    %630 = vector.shape_cast %624 : vector<2x64xf32> to vector<1x2x64xf32>
    tpu.vector_store %arg8[%627, %c0_336, %c0_337], %630 {strides = array<i32>} : memref<8x2x64xf32, #tpu.memory_space<vmem>>, vector<1x2x64xf32>,
    %c7_i32_338 = arith.constant 7 : i32
    %631 = arith.index_cast %c7_i32_338 : i32 to index
    %c0_339 = arith.constant 0 : index
    %c0_340 = arith.constant 0 : index
    %632 = vector.load %arg0[%631, %c0_339, %c0_340] : memref<8x2x4xf32, #tpu.memory_space<vmem>>, vector<1x2x4xf32>
    %633 = vector.shape_cast %632 : vector<1x2x4xf32> to vector<2x4xf32>
    %c0_341 = arith.constant 0 : index
    %c0_342 = arith.constant 0 : index
    %634 = vector.load %arg9[%c0_341, %c0_342] : memref<2x64xf32, #tpu.memory_space<vmem>>, vector<2x64xf32>
    %c0_343 = arith.constant 0 : index
    %c0_344 = arith.constant 0 : index
    %635 = vector.load %arg10[%c0_343, %c0_344] : memref<2x64xf32, #tpu.memory_space<vmem>>, vector<2x64xf32>
    %c0_345 = arith.constant 0 : index
    %c0_346 = arith.constant 0 : index
    %636 = vector.load %arg1[%c0_345, %c0_346] : memref<4x256xf32, #tpu.memory_space<vmem>>, vector<4x256xf32>
    %cst_347 = arith.constant dense<0.000000e+00> : vector<2x256xf32>
    %637 = tpu.matmul %633, %636, %cst_347 {dimension_numbers = #tpu.dot_dimension_numbers<[1], [0], [0], [1], [0, 0, 1, 1], [], []>} : vector<2x4xf32>, vector<4x256xf32>, vector<2x256xf32> -> vector<2x256xf32>
    %c0_348 = arith.constant 0 : index
    %c0_349 = arith.constant 0 : index
    %638 = vector.load %arg2[%c0_348, %c0_349] : memref<64x256xf32, #tpu.memory_space<vmem>>, vector<64x256xf32>
    %cst_350 = arith.constant dense<0.000000e+00> : vector<2x256xf32>
    %639 = tpu.matmul %634, %638, %cst_350 {dimension_numbers = #tpu.dot_dimension_numbers<[1], [0], [0], [1], [0, 0, 1, 1], [], []>} : vector<2x64xf32>, vector<64x256xf32>, vector<2x256xf32> -> vector<2x256xf32>
    %640 = arith.addf %637, %639 : vector<2x256xf32>
    %c0_351 = arith.constant 0 : index
    %c0_352 = arith.constant 0 : index
    %641 = vector.load %arg3[%c0_351, %c0_352] : memref<1x256xf32, #tpu.memory_space<vmem>>, vector<1x256xf32>
    %642 = vector.broadcast %641 : vector<1x256xf32> to vector<2x256xf32>
    %643 = arith.addf %640, %642 : vector<2x256xf32>
    %644 = vector.extract_strided_slice %643 {offsets = [0, 0], sizes = [2, 64], strides = [1, 1]} : vector<2x256xf32> to vector<2x64xf32>
    %645 = arith.negf %644 : vector<2x64xf32>
    %646 = math.exp %645 : vector<2x64xf32>
    %cst_353 = arith.constant 1.000000e+00 : f32
    %647 = vector.broadcast %cst_353 : f32 to vector<2x64xf32>
    %648 = arith.addf %647, %646 : vector<2x64xf32>
    %649 = arith.divf %647, %648 : vector<2x64xf32>
    %650 = vector.extract_strided_slice %643 {offsets = [0, 64], sizes = [2, 64], strides = [1, 1]} : vector<2x256xf32> to vector<2x64xf32>
    %651 = arith.negf %650 : vector<2x64xf32>
    %652 = math.exp %651 : vector<2x64xf32>
    %cst_354 = arith.constant 1.000000e+00 : f32
    %653 = vector.broadcast %cst_354 : f32 to vector<2x64xf32>
    %654 = arith.addf %653, %652 : vector<2x64xf32>
    %655 = arith.divf %653, %654 : vector<2x64xf32>
    %656 = vector.extract_strided_slice %643 {offsets = [0, 128], sizes = [2, 64], strides = [1, 1]} : vector<2x256xf32> to vector<2x64xf32>
    %657 = math.tanh %656 : vector<2x64xf32>
    %658 = vector.extract_strided_slice %643 {offsets = [0, 192], sizes = [2, 64], strides = [1, 1]} : vector<2x256xf32> to vector<2x64xf32>
    %659 = arith.negf %658 : vector<2x64xf32>
    %660 = math.exp %659 : vector<2x64xf32>
    %cst_355 = arith.constant 1.000000e+00 : f32
    %661 = vector.broadcast %cst_355 : f32 to vector<2x64xf32>
    %662 = arith.addf %661, %660 : vector<2x64xf32>
    %663 = arith.divf %661, %662 : vector<2x64xf32>
    %664 = arith.mulf %655, %635 : vector<2x64xf32>
    %665 = arith.mulf %649, %657 : vector<2x64xf32>
    %666 = arith.addf %664, %665 : vector<2x64xf32>
    %667 = math.tanh %666 : vector<2x64xf32>
    %668 = arith.mulf %663, %667 : vector<2x64xf32>
    %c0_356 = arith.constant 0 : index
    %c0_357 = arith.constant 0 : index
    %669 = vector.load %arg9[%c0_356, %c0_357] : memref<2x64xf32, #tpu.memory_space<vmem>>, vector<2x64xf32>
    tpu.vector_store %arg9[%c0_356, %c0_357], %668 {strides = array<i32>} : memref<2x64xf32, #tpu.memory_space<vmem>>, vector<2x64xf32>,
    %c0_358 = arith.constant 0 : index
    %c0_359 = arith.constant 0 : index
    %670 = vector.load %arg10[%c0_358, %c0_359] : memref<2x64xf32, #tpu.memory_space<vmem>>, vector<2x64xf32>
    tpu.vector_store %arg10[%c0_358, %c0_359], %666 {strides = array<i32>} : memref<2x64xf32, #tpu.memory_space<vmem>>, vector<2x64xf32>,
    %671 = arith.index_cast %c7_i32_338 : i32 to index
    %c0_360 = arith.constant 0 : index
    %c0_361 = arith.constant 0 : index
    %672 = vector.load %arg7[%671, %c0_360, %c0_361] : memref<8x2x64xf32, #tpu.memory_space<vmem>>, vector<1x2x64xf32>
    %673 = vector.shape_cast %672 : vector<1x2x64xf32> to vector<2x64xf32>
    %674 = vector.shape_cast %668 : vector<2x64xf32> to vector<1x2x64xf32>
    tpu.vector_store %arg7[%671, %c0_360, %c0_361], %674 {strides = array<i32>} : memref<8x2x64xf32, #tpu.memory_space<vmem>>, vector<1x2x64xf32>,
    %c7_i32_362 = arith.constant 7 : i32
    %675 = arith.subi %c7_i32_362, %c7_i32_338 : i32
    %676 = arith.index_cast %675 : i32 to index
    %c0_363 = arith.constant 0 : index
    %c0_364 = arith.constant 0 : index
    %677 = vector.load %arg0[%676, %c0_363, %c0_364] : memref<8x2x4xf32, #tpu.memory_space<vmem>>, vector<1x2x4xf32>
    %678 = vector.shape_cast %677 : vector<1x2x4xf32> to vector<2x4xf32>
    %c0_365 = arith.constant 0 : index
    %c0_366 = arith.constant 0 : index
    %679 = vector.load %arg11[%c0_365, %c0_366] : memref<2x64xf32, #tpu.memory_space<vmem>>, vector<2x64xf32>
    %c0_367 = arith.constant 0 : index
    %c0_368 = arith.constant 0 : index
    %680 = vector.load %arg12[%c0_367, %c0_368] : memref<2x64xf32, #tpu.memory_space<vmem>>, vector<2x64xf32>
    %c0_369 = arith.constant 0 : index
    %c0_370 = arith.constant 0 : index
    %681 = vector.load %arg4[%c0_369, %c0_370] : memref<4x256xf32, #tpu.memory_space<vmem>>, vector<4x256xf32>
    %cst_371 = arith.constant dense<0.000000e+00> : vector<2x256xf32>
    %682 = tpu.matmul %678, %681, %cst_371 {dimension_numbers = #tpu.dot_dimension_numbers<[1], [0], [0], [1], [0, 0, 1, 1], [], []>} : vector<2x4xf32>, vector<4x256xf32>, vector<2x256xf32> -> vector<2x256xf32>
    %c0_372 = arith.constant 0 : index
    %c0_373 = arith.constant 0 : index
    %683 = vector.load %arg5[%c0_372, %c0_373] : memref<64x256xf32, #tpu.memory_space<vmem>>, vector<64x256xf32>
    %cst_374 = arith.constant dense<0.000000e+00> : vector<2x256xf32>
    %684 = tpu.matmul %679, %683, %cst_374 {dimension_numbers = #tpu.dot_dimension_numbers<[1], [0], [0], [1], [0, 0, 1, 1], [], []>} : vector<2x64xf32>, vector<64x256xf32>, vector<2x256xf32> -> vector<2x256xf32>
    %685 = arith.addf %682, %684 : vector<2x256xf32>
    %c0_375 = arith.constant 0 : index
    %c0_376 = arith.constant 0 : index
    %686 = vector.load %arg6[%c0_375, %c0_376] : memref<1x256xf32, #tpu.memory_space<vmem>>, vector<1x256xf32>
    %687 = vector.broadcast %686 : vector<1x256xf32> to vector<2x256xf32>
    %688 = arith.addf %685, %687 : vector<2x256xf32>
    %689 = vector.extract_strided_slice %688 {offsets = [0, 0], sizes = [2, 64], strides = [1, 1]} : vector<2x256xf32> to vector<2x64xf32>
    %690 = arith.negf %689 : vector<2x64xf32>
    %691 = math.exp %690 : vector<2x64xf32>
    %cst_377 = arith.constant 1.000000e+00 : f32
    %692 = vector.broadcast %cst_377 : f32 to vector<2x64xf32>
    %693 = arith.addf %692, %691 : vector<2x64xf32>
    %694 = arith.divf %692, %693 : vector<2x64xf32>
    %695 = vector.extract_strided_slice %688 {offsets = [0, 64], sizes = [2, 64], strides = [1, 1]} : vector<2x256xf32> to vector<2x64xf32>
    %696 = arith.negf %695 : vector<2x64xf32>
    %697 = math.exp %696 : vector<2x64xf32>
    %cst_378 = arith.constant 1.000000e+00 : f32
    %698 = vector.broadcast %cst_378 : f32 to vector<2x64xf32>
    %699 = arith.addf %698, %697 : vector<2x64xf32>
    %700 = arith.divf %698, %699 : vector<2x64xf32>
    %701 = vector.extract_strided_slice %688 {offsets = [0, 128], sizes = [2, 64], strides = [1, 1]} : vector<2x256xf32> to vector<2x64xf32>
    %702 = math.tanh %701 : vector<2x64xf32>
    %703 = vector.extract_strided_slice %688 {offsets = [0, 192], sizes = [2, 64], strides = [1, 1]} : vector<2x256xf32> to vector<2x64xf32>
    %704 = arith.negf %703 : vector<2x64xf32>
    %705 = math.exp %704 : vector<2x64xf32>
    %cst_379 = arith.constant 1.000000e+00 : f32
    %706 = vector.broadcast %cst_379 : f32 to vector<2x64xf32>
    %707 = arith.addf %706, %705 : vector<2x64xf32>
    %708 = arith.divf %706, %707 : vector<2x64xf32>
    %709 = arith.mulf %700, %680 : vector<2x64xf32>
    %710 = arith.mulf %694, %702 : vector<2x64xf32>
    %711 = arith.addf %709, %710 : vector<2x64xf32>
    %712 = math.tanh %711 : vector<2x64xf32>
    %713 = arith.mulf %708, %712 : vector<2x64xf32>
    %c0_380 = arith.constant 0 : index
    %c0_381 = arith.constant 0 : index
    %714 = vector.load %arg11[%c0_380, %c0_381] : memref<2x64xf32, #tpu.memory_space<vmem>>, vector<2x64xf32>
    tpu.vector_store %arg11[%c0_380, %c0_381], %713 {strides = array<i32>} : memref<2x64xf32, #tpu.memory_space<vmem>>, vector<2x64xf32>,
    %c0_382 = arith.constant 0 : index
    %c0_383 = arith.constant 0 : index
    %715 = vector.load %arg12[%c0_382, %c0_383] : memref<2x64xf32, #tpu.memory_space<vmem>>, vector<2x64xf32>
    tpu.vector_store %arg12[%c0_382, %c0_383], %711 {strides = array<i32>} : memref<2x64xf32, #tpu.memory_space<vmem>>, vector<2x64xf32>,
    %716 = arith.index_cast %675 : i32 to index
    %c0_384 = arith.constant 0 : index
    %c0_385 = arith.constant 0 : index
    %717 = vector.load %arg8[%716, %c0_384, %c0_385] : memref<8x2x64xf32, #tpu.memory_space<vmem>>, vector<1x2x64xf32>
    %718 = vector.shape_cast %717 : vector<1x2x64xf32> to vector<2x64xf32>
    %719 = vector.shape_cast %713 : vector<2x64xf32> to vector<1x2x64xf32>
    tpu.vector_store %arg8[%716, %c0_384, %c0_385], %719 {strides = array<i32>} : memref<8x2x64xf32, #tpu.memory_space<vmem>>, vector<1x2x64xf32>,
    %c8_i32 = arith.constant 8 : i32
    return
  }
}

module attributes {stable_mosaic.version = 11 : i64} {
  func.func @bilstm_seq_kernel(%arg0: memref<8x2x128xf32, #tpu.memory_space<vmem>>, %arg1: memref<128x256xf32, #tpu.memory_space<vmem>>, %arg2: memref<64x256xf32, #tpu.memory_space<vmem>>, %arg3: memref<1x256xf32, #tpu.memory_space<vmem>>, %arg4: memref<128x256xf32, #tpu.memory_space<vmem>>, %arg5: memref<64x256xf32, #tpu.memory_space<vmem>>, %arg6: memref<1x256xf32, #tpu.memory_space<vmem>>, %arg7: memref<8x2x64xf32, #tpu.memory_space<vmem>>, %arg8: memref<8x2x64xf32, #tpu.memory_space<vmem>>, %arg9: memref<2x64xf32, #tpu.memory_space<vmem>>, %arg10: memref<2x64xf32, #tpu.memory_space<vmem>>, %arg11: memref<2x64xf32, #tpu.memory_space<vmem>>, %arg12: memref<2x64xf32, #tpu.memory_space<vmem>>) attributes {dimension_semantics = [], scalar_prefetch = 0 : i64, scratch_operands = 4 : i64, tpu.core_type = #tpu.core_type<tc>} {
    %cst = arith.constant 0.000000e+00 : f32
    %0 = vector.broadcast %cst : f32 to vector<2x64xf32>
    %c0 = arith.constant 0 : index
    %c0_0 = arith.constant 0 : index
    %1 = vector.load %arg9[%c0, %c0_0] : memref<2x64xf32, #tpu.memory_space<vmem>>, vector<2x64xf32>
    tpu.vector_store %arg9[%c0, %c0_0], %0 {strides = array<i32>} : memref<2x64xf32, #tpu.memory_space<vmem>>, vector<2x64xf32>,
    %cst_1 = arith.constant 0.000000e+00 : f32
    %2 = vector.broadcast %cst_1 : f32 to vector<2x64xf32>
    %c0_2 = arith.constant 0 : index
    %c0_3 = arith.constant 0 : index
    %3 = vector.load %arg10[%c0_2, %c0_3] : memref<2x64xf32, #tpu.memory_space<vmem>>, vector<2x64xf32>
    tpu.vector_store %arg10[%c0_2, %c0_3], %2 {strides = array<i32>} : memref<2x64xf32, #tpu.memory_space<vmem>>, vector<2x64xf32>,
    %cst_4 = arith.constant 0.000000e+00 : f32
    %4 = vector.broadcast %cst_4 : f32 to vector<2x64xf32>
    %c0_5 = arith.constant 0 : index
    %c0_6 = arith.constant 0 : index
    %5 = vector.load %arg11[%c0_5, %c0_6] : memref<2x64xf32, #tpu.memory_space<vmem>>, vector<2x64xf32>
    tpu.vector_store %arg11[%c0_5, %c0_6], %4 {strides = array<i32>} : memref<2x64xf32, #tpu.memory_space<vmem>>, vector<2x64xf32>,
    %cst_7 = arith.constant 0.000000e+00 : f32
    %6 = vector.broadcast %cst_7 : f32 to vector<2x64xf32>
    %c0_8 = arith.constant 0 : index
    %c0_9 = arith.constant 0 : index
    %7 = vector.load %arg12[%c0_8, %c0_9] : memref<2x64xf32, #tpu.memory_space<vmem>>, vector<2x64xf32>
    tpu.vector_store %arg12[%c0_8, %c0_9], %6 {strides = array<i32>} : memref<2x64xf32, #tpu.memory_space<vmem>>, vector<2x64xf32>,
    %c0_i32 = arith.constant 0 : i32
    %8 = arith.index_cast %c0_i32 : i32 to index
    %c0_10 = arith.constant 0 : index
    %c0_11 = arith.constant 0 : index
    %9 = vector.load %arg0[%8, %c0_10, %c0_11] : memref<8x2x128xf32, #tpu.memory_space<vmem>>, vector<1x2x128xf32>
    %10 = vector.shape_cast %9 : vector<1x2x128xf32> to vector<2x128xf32>
    %c0_12 = arith.constant 0 : index
    %c0_13 = arith.constant 0 : index
    %11 = vector.load %arg9[%c0_12, %c0_13] : memref<2x64xf32, #tpu.memory_space<vmem>>, vector<2x64xf32>
    %c0_14 = arith.constant 0 : index
    %c0_15 = arith.constant 0 : index
    %12 = vector.load %arg10[%c0_14, %c0_15] : memref<2x64xf32, #tpu.memory_space<vmem>>, vector<2x64xf32>
    %c0_16 = arith.constant 0 : index
    %c0_17 = arith.constant 0 : index
    %13 = vector.load %arg1[%c0_16, %c0_17] : memref<128x256xf32, #tpu.memory_space<vmem>>, vector<128x256xf32>
    %cst_18 = arith.constant dense<0.000000e+00> : vector<2x256xf32>
    %14 = tpu.matmul %10, %13, %cst_18 {dimension_numbers = #tpu.dot_dimension_numbers<[1], [0], [0], [1], [0, 0, 1, 1], [], []>} : vector<2x128xf32>, vector<128x256xf32>, vector<2x256xf32> -> vector<2x256xf32>
    %c0_19 = arith.constant 0 : index
    %c0_20 = arith.constant 0 : index
    %15 = vector.load %arg2[%c0_19, %c0_20] : memref<64x256xf32, #tpu.memory_space<vmem>>, vector<64x256xf32>
    %cst_21 = arith.constant dense<0.000000e+00> : vector<2x256xf32>
    %16 = tpu.matmul %11, %15, %cst_21 {dimension_numbers = #tpu.dot_dimension_numbers<[1], [0], [0], [1], [0, 0, 1, 1], [], []>} : vector<2x64xf32>, vector<64x256xf32>, vector<2x256xf32> -> vector<2x256xf32>
    %17 = arith.addf %14, %16 : vector<2x256xf32>
    %c0_22 = arith.constant 0 : index
    %c0_23 = arith.constant 0 : index
    %18 = vector.load %arg3[%c0_22, %c0_23] : memref<1x256xf32, #tpu.memory_space<vmem>>, vector<1x256xf32>
    %19 = vector.broadcast %18 : vector<1x256xf32> to vector<2x256xf32>
    %20 = arith.addf %17, %19 : vector<2x256xf32>
    %21 = vector.extract_strided_slice %20 {offsets = [0, 0], sizes = [2, 64], strides = [1, 1]} : vector<2x256xf32> to vector<2x64xf32>
    %22 = arith.negf %21 : vector<2x64xf32>
    %23 = math.exp %22 : vector<2x64xf32>
    %cst_24 = arith.constant 1.000000e+00 : f32
    %24 = vector.broadcast %cst_24 : f32 to vector<2x64xf32>
    %25 = arith.addf %24, %23 : vector<2x64xf32>
    %26 = arith.divf %24, %25 : vector<2x64xf32>
    %27 = vector.extract_strided_slice %20 {offsets = [0, 64], sizes = [2, 64], strides = [1, 1]} : vector<2x256xf32> to vector<2x64xf32>
    %28 = arith.negf %27 : vector<2x64xf32>
    %29 = math.exp %28 : vector<2x64xf32>
    %cst_25 = arith.constant 1.000000e+00 : f32
    %30 = vector.broadcast %cst_25 : f32 to vector<2x64xf32>
    %31 = arith.addf %30, %29 : vector<2x64xf32>
    %32 = arith.divf %30, %31 : vector<2x64xf32>
    %33 = vector.extract_strided_slice %20 {offsets = [0, 128], sizes = [2, 64], strides = [1, 1]} : vector<2x256xf32> to vector<2x64xf32>
    %34 = math.tanh %33 : vector<2x64xf32>
    %35 = vector.extract_strided_slice %20 {offsets = [0, 192], sizes = [2, 64], strides = [1, 1]} : vector<2x256xf32> to vector<2x64xf32>
    %36 = arith.negf %35 : vector<2x64xf32>
    %37 = math.exp %36 : vector<2x64xf32>
    %cst_26 = arith.constant 1.000000e+00 : f32
    %38 = vector.broadcast %cst_26 : f32 to vector<2x64xf32>
    %39 = arith.addf %38, %37 : vector<2x64xf32>
    %40 = arith.divf %38, %39 : vector<2x64xf32>
    %41 = arith.mulf %32, %12 : vector<2x64xf32>
    %42 = arith.mulf %26, %34 : vector<2x64xf32>
    %43 = arith.addf %41, %42 : vector<2x64xf32>
    %44 = math.tanh %43 : vector<2x64xf32>
    %45 = arith.mulf %40, %44 : vector<2x64xf32>
    %c0_27 = arith.constant 0 : index
    %c0_28 = arith.constant 0 : index
    %46 = vector.load %arg9[%c0_27, %c0_28] : memref<2x64xf32, #tpu.memory_space<vmem>>, vector<2x64xf32>
    tpu.vector_store %arg9[%c0_27, %c0_28], %45 {strides = array<i32>} : memref<2x64xf32, #tpu.memory_space<vmem>>, vector<2x64xf32>,
    %c0_29 = arith.constant 0 : index
    %c0_30 = arith.constant 0 : index
    %47 = vector.load %arg10[%c0_29, %c0_30] : memref<2x64xf32, #tpu.memory_space<vmem>>, vector<2x64xf32>
    tpu.vector_store %arg10[%c0_29, %c0_30], %43 {strides = array<i32>} : memref<2x64xf32, #tpu.memory_space<vmem>>, vector<2x64xf32>,
    %48 = arith.index_cast %c0_i32 : i32 to index
    %c0_31 = arith.constant 0 : index
    %c0_32 = arith.constant 0 : index
    %49 = vector.load %arg7[%48, %c0_31, %c0_32] : memref<8x2x64xf32, #tpu.memory_space<vmem>>, vector<1x2x64xf32>
    %50 = vector.shape_cast %49 : vector<1x2x64xf32> to vector<2x64xf32>
    %51 = vector.shape_cast %45 : vector<2x64xf32> to vector<1x2x64xf32>
    tpu.vector_store %arg7[%48, %c0_31, %c0_32], %51 {strides = array<i32>} : memref<8x2x64xf32, #tpu.memory_space<vmem>>, vector<1x2x64xf32>,
    %c7_i32 = arith.constant 7 : i32
    %52 = arith.subi %c7_i32, %c0_i32 : i32
    %53 = arith.index_cast %52 : i32 to index
    %c0_33 = arith.constant 0 : index
    %c0_34 = arith.constant 0 : index
    %54 = vector.load %arg0[%53, %c0_33, %c0_34] : memref<8x2x128xf32, #tpu.memory_space<vmem>>, vector<1x2x128xf32>
    %55 = vector.shape_cast %54 : vector<1x2x128xf32> to vector<2x128xf32>
    %c0_35 = arith.constant 0 : index
    %c0_36 = arith.constant 0 : index
    %56 = vector.load %arg11[%c0_35, %c0_36] : memref<2x64xf32, #tpu.memory_space<vmem>>, vector<2x64xf32>
    %c0_37 = arith.constant 0 : index
    %c0_38 = arith.constant 0 : index
    %57 = vector.load %arg12[%c0_37, %c0_38] : memref<2x64xf32, #tpu.memory_space<vmem>>, vector<2x64xf32>
    %c0_39 = arith.constant 0 : index
    %c0_40 = arith.constant 0 : index
    %58 = vector.load %arg4[%c0_39, %c0_40] : memref<128x256xf32, #tpu.memory_space<vmem>>, vector<128x256xf32>
    %cst_41 = arith.constant dense<0.000000e+00> : vector<2x256xf32>
    %59 = tpu.matmul %55, %58, %cst_41 {dimension_numbers = #tpu.dot_dimension_numbers<[1], [0], [0], [1], [0, 0, 1, 1], [], []>} : vector<2x128xf32>, vector<128x256xf32>, vector<2x256xf32> -> vector<2x256xf32>
    %c0_42 = arith.constant 0 : index
    %c0_43 = arith.constant 0 : index
    %60 = vector.load %arg5[%c0_42, %c0_43] : memref<64x256xf32, #tpu.memory_space<vmem>>, vector<64x256xf32>
    %cst_44 = arith.constant dense<0.000000e+00> : vector<2x256xf32>
    %61 = tpu.matmul %56, %60, %cst_44 {dimension_numbers = #tpu.dot_dimension_numbers<[1], [0], [0], [1], [0, 0, 1, 1], [], []>} : vector<2x64xf32>, vector<64x256xf32>, vector<2x256xf32> -> vector<2x256xf32>
    %62 = arith.addf %59, %61 : vector<2x256xf32>
    %c0_45 = arith.constant 0 : index
    %c0_46 = arith.constant 0 : index
    %63 = vector.load %arg6[%c0_45, %c0_46] : memref<1x256xf32, #tpu.memory_space<vmem>>, vector<1x256xf32>
    %64 = vector.broadcast %63 : vector<1x256xf32> to vector<2x256xf32>
    %65 = arith.addf %62, %64 : vector<2x256xf32>
    %66 = vector.extract_strided_slice %65 {offsets = [0, 0], sizes = [2, 64], strides = [1, 1]} : vector<2x256xf32> to vector<2x64xf32>
    %67 = arith.negf %66 : vector<2x64xf32>
    %68 = math.exp %67 : vector<2x64xf32>
    %cst_47 = arith.constant 1.000000e+00 : f32
    %69 = vector.broadcast %cst_47 : f32 to vector<2x64xf32>
    %70 = arith.addf %69, %68 : vector<2x64xf32>
    %71 = arith.divf %69, %70 : vector<2x64xf32>
    %72 = vector.extract_strided_slice %65 {offsets = [0, 64], sizes = [2, 64], strides = [1, 1]} : vector<2x256xf32> to vector<2x64xf32>
    %73 = arith.negf %72 : vector<2x64xf32>
    %74 = math.exp %73 : vector<2x64xf32>
    %cst_48 = arith.constant 1.000000e+00 : f32
    %75 = vector.broadcast %cst_48 : f32 to vector<2x64xf32>
    %76 = arith.addf %75, %74 : vector<2x64xf32>
    %77 = arith.divf %75, %76 : vector<2x64xf32>
    %78 = vector.extract_strided_slice %65 {offsets = [0, 128], sizes = [2, 64], strides = [1, 1]} : vector<2x256xf32> to vector<2x64xf32>
    %79 = math.tanh %78 : vector<2x64xf32>
    %80 = vector.extract_strided_slice %65 {offsets = [0, 192], sizes = [2, 64], strides = [1, 1]} : vector<2x256xf32> to vector<2x64xf32>
    %81 = arith.negf %80 : vector<2x64xf32>
    %82 = math.exp %81 : vector<2x64xf32>
    %cst_49 = arith.constant 1.000000e+00 : f32
    %83 = vector.broadcast %cst_49 : f32 to vector<2x64xf32>
    %84 = arith.addf %83, %82 : vector<2x64xf32>
    %85 = arith.divf %83, %84 : vector<2x64xf32>
    %86 = arith.mulf %77, %57 : vector<2x64xf32>
    %87 = arith.mulf %71, %79 : vector<2x64xf32>
    %88 = arith.addf %86, %87 : vector<2x64xf32>
    %89 = math.tanh %88 : vector<2x64xf32>
    %90 = arith.mulf %85, %89 : vector<2x64xf32>
    %c0_50 = arith.constant 0 : index
    %c0_51 = arith.constant 0 : index
    %91 = vector.load %arg11[%c0_50, %c0_51] : memref<2x64xf32, #tpu.memory_space<vmem>>, vector<2x64xf32>
    tpu.vector_store %arg11[%c0_50, %c0_51], %90 {strides = array<i32>} : memref<2x64xf32, #tpu.memory_space<vmem>>, vector<2x64xf32>,
    %c0_52 = arith.constant 0 : index
    %c0_53 = arith.constant 0 : index
    %92 = vector.load %arg12[%c0_52, %c0_53] : memref<2x64xf32, #tpu.memory_space<vmem>>, vector<2x64xf32>
    tpu.vector_store %arg12[%c0_52, %c0_53], %88 {strides = array<i32>} : memref<2x64xf32, #tpu.memory_space<vmem>>, vector<2x64xf32>,
    %93 = arith.index_cast %52 : i32 to index
    %c0_54 = arith.constant 0 : index
    %c0_55 = arith.constant 0 : index
    %94 = vector.load %arg8[%93, %c0_54, %c0_55] : memref<8x2x64xf32, #tpu.memory_space<vmem>>, vector<1x2x64xf32>
    %95 = vector.shape_cast %94 : vector<1x2x64xf32> to vector<2x64xf32>
    %96 = vector.shape_cast %90 : vector<2x64xf32> to vector<1x2x64xf32>
    tpu.vector_store %arg8[%93, %c0_54, %c0_55], %96 {strides = array<i32>} : memref<8x2x64xf32, #tpu.memory_space<vmem>>, vector<1x2x64xf32>,
    %c1_i32 = arith.constant 1 : i32
    %97 = arith.index_cast %c1_i32 : i32 to index
    %c0_56 = arith.constant 0 : index
    %c0_57 = arith.constant 0 : index
    %98 = vector.load %arg0[%97, %c0_56, %c0_57] : memref<8x2x128xf32, #tpu.memory_space<vmem>>, vector<1x2x128xf32>
    %99 = vector.shape_cast %98 : vector<1x2x128xf32> to vector<2x128xf32>
    %c0_58 = arith.constant 0 : index
    %c0_59 = arith.constant 0 : index
    %100 = vector.load %arg9[%c0_58, %c0_59] : memref<2x64xf32, #tpu.memory_space<vmem>>, vector<2x64xf32>
    %c0_60 = arith.constant 0 : index
    %c0_61 = arith.constant 0 : index
    %101 = vector.load %arg10[%c0_60, %c0_61] : memref<2x64xf32, #tpu.memory_space<vmem>>, vector<2x64xf32>
    %c0_62 = arith.constant 0 : index
    %c0_63 = arith.constant 0 : index
    %102 = vector.load %arg1[%c0_62, %c0_63] : memref<128x256xf32, #tpu.memory_space<vmem>>, vector<128x256xf32>
    %cst_64 = arith.constant dense<0.000000e+00> : vector<2x256xf32>
    %103 = tpu.matmul %99, %102, %cst_64 {dimension_numbers = #tpu.dot_dimension_numbers<[1], [0], [0], [1], [0, 0, 1, 1], [], []>} : vector<2x128xf32>, vector<128x256xf32>, vector<2x256xf32> -> vector<2x256xf32>
    %c0_65 = arith.constant 0 : index
    %c0_66 = arith.constant 0 : index
    %104 = vector.load %arg2[%c0_65, %c0_66] : memref<64x256xf32, #tpu.memory_space<vmem>>, vector<64x256xf32>
    %cst_67 = arith.constant dense<0.000000e+00> : vector<2x256xf32>
    %105 = tpu.matmul %100, %104, %cst_67 {dimension_numbers = #tpu.dot_dimension_numbers<[1], [0], [0], [1], [0, 0, 1, 1], [], []>} : vector<2x64xf32>, vector<64x256xf32>, vector<2x256xf32> -> vector<2x256xf32>
    %106 = arith.addf %103, %105 : vector<2x256xf32>
    %c0_68 = arith.constant 0 : index
    %c0_69 = arith.constant 0 : index
    %107 = vector.load %arg3[%c0_68, %c0_69] : memref<1x256xf32, #tpu.memory_space<vmem>>, vector<1x256xf32>
    %108 = vector.broadcast %107 : vector<1x256xf32> to vector<2x256xf32>
    %109 = arith.addf %106, %108 : vector<2x256xf32>
    %110 = vector.extract_strided_slice %109 {offsets = [0, 0], sizes = [2, 64], strides = [1, 1]} : vector<2x256xf32> to vector<2x64xf32>
    %111 = arith.negf %110 : vector<2x64xf32>
    %112 = math.exp %111 : vector<2x64xf32>
    %cst_70 = arith.constant 1.000000e+00 : f32
    %113 = vector.broadcast %cst_70 : f32 to vector<2x64xf32>
    %114 = arith.addf %113, %112 : vector<2x64xf32>
    %115 = arith.divf %113, %114 : vector<2x64xf32>
    %116 = vector.extract_strided_slice %109 {offsets = [0, 64], sizes = [2, 64], strides = [1, 1]} : vector<2x256xf32> to vector<2x64xf32>
    %117 = arith.negf %116 : vector<2x64xf32>
    %118 = math.exp %117 : vector<2x64xf32>
    %cst_71 = arith.constant 1.000000e+00 : f32
    %119 = vector.broadcast %cst_71 : f32 to vector<2x64xf32>
    %120 = arith.addf %119, %118 : vector<2x64xf32>
    %121 = arith.divf %119, %120 : vector<2x64xf32>
    %122 = vector.extract_strided_slice %109 {offsets = [0, 128], sizes = [2, 64], strides = [1, 1]} : vector<2x256xf32> to vector<2x64xf32>
    %123 = math.tanh %122 : vector<2x64xf32>
    %124 = vector.extract_strided_slice %109 {offsets = [0, 192], sizes = [2, 64], strides = [1, 1]} : vector<2x256xf32> to vector<2x64xf32>
    %125 = arith.negf %124 : vector<2x64xf32>
    %126 = math.exp %125 : vector<2x64xf32>
    %cst_72 = arith.constant 1.000000e+00 : f32
    %127 = vector.broadcast %cst_72 : f32 to vector<2x64xf32>
    %128 = arith.addf %127, %126 : vector<2x64xf32>
    %129 = arith.divf %127, %128 : vector<2x64xf32>
    %130 = arith.mulf %121, %101 : vector<2x64xf32>
    %131 = arith.mulf %115, %123 : vector<2x64xf32>
    %132 = arith.addf %130, %131 : vector<2x64xf32>
    %133 = math.tanh %132 : vector<2x64xf32>
    %134 = arith.mulf %129, %133 : vector<2x64xf32>
    %c0_73 = arith.constant 0 : index
    %c0_74 = arith.constant 0 : index
    %135 = vector.load %arg9[%c0_73, %c0_74] : memref<2x64xf32, #tpu.memory_space<vmem>>, vector<2x64xf32>
    tpu.vector_store %arg9[%c0_73, %c0_74], %134 {strides = array<i32>} : memref<2x64xf32, #tpu.memory_space<vmem>>, vector<2x64xf32>,
    %c0_75 = arith.constant 0 : index
    %c0_76 = arith.constant 0 : index
    %136 = vector.load %arg10[%c0_75, %c0_76] : memref<2x64xf32, #tpu.memory_space<vmem>>, vector<2x64xf32>
    tpu.vector_store %arg10[%c0_75, %c0_76], %132 {strides = array<i32>} : memref<2x64xf32, #tpu.memory_space<vmem>>, vector<2x64xf32>,
    %137 = arith.index_cast %c1_i32 : i32 to index
    %c0_77 = arith.constant 0 : index
    %c0_78 = arith.constant 0 : index
    %138 = vector.load %arg7[%137, %c0_77, %c0_78] : memref<8x2x64xf32, #tpu.memory_space<vmem>>, vector<1x2x64xf32>
    %139 = vector.shape_cast %138 : vector<1x2x64xf32> to vector<2x64xf32>
    %140 = vector.shape_cast %134 : vector<2x64xf32> to vector<1x2x64xf32>
    tpu.vector_store %arg7[%137, %c0_77, %c0_78], %140 {strides = array<i32>} : memref<8x2x64xf32, #tpu.memory_space<vmem>>, vector<1x2x64xf32>,
    %c7_i32_79 = arith.constant 7 : i32
    %141 = arith.subi %c7_i32_79, %c1_i32 : i32
    %142 = arith.index_cast %141 : i32 to index
    %c0_80 = arith.constant 0 : index
    %c0_81 = arith.constant 0 : index
    %143 = vector.load %arg0[%142, %c0_80, %c0_81] : memref<8x2x128xf32, #tpu.memory_space<vmem>>, vector<1x2x128xf32>
    %144 = vector.shape_cast %143 : vector<1x2x128xf32> to vector<2x128xf32>
    %c0_82 = arith.constant 0 : index
    %c0_83 = arith.constant 0 : index
    %145 = vector.load %arg11[%c0_82, %c0_83] : memref<2x64xf32, #tpu.memory_space<vmem>>, vector<2x64xf32>
    %c0_84 = arith.constant 0 : index
    %c0_85 = arith.constant 0 : index
    %146 = vector.load %arg12[%c0_84, %c0_85] : memref<2x64xf32, #tpu.memory_space<vmem>>, vector<2x64xf32>
    %c0_86 = arith.constant 0 : index
    %c0_87 = arith.constant 0 : index
    %147 = vector.load %arg4[%c0_86, %c0_87] : memref<128x256xf32, #tpu.memory_space<vmem>>, vector<128x256xf32>
    %cst_88 = arith.constant dense<0.000000e+00> : vector<2x256xf32>
    %148 = tpu.matmul %144, %147, %cst_88 {dimension_numbers = #tpu.dot_dimension_numbers<[1], [0], [0], [1], [0, 0, 1, 1], [], []>} : vector<2x128xf32>, vector<128x256xf32>, vector<2x256xf32> -> vector<2x256xf32>
    %c0_89 = arith.constant 0 : index
    %c0_90 = arith.constant 0 : index
    %149 = vector.load %arg5[%c0_89, %c0_90] : memref<64x256xf32, #tpu.memory_space<vmem>>, vector<64x256xf32>
    %cst_91 = arith.constant dense<0.000000e+00> : vector<2x256xf32>
    %150 = tpu.matmul %145, %149, %cst_91 {dimension_numbers = #tpu.dot_dimension_numbers<[1], [0], [0], [1], [0, 0, 1, 1], [], []>} : vector<2x64xf32>, vector<64x256xf32>, vector<2x256xf32> -> vector<2x256xf32>
    %151 = arith.addf %148, %150 : vector<2x256xf32>
    %c0_92 = arith.constant 0 : index
    %c0_93 = arith.constant 0 : index
    %152 = vector.load %arg6[%c0_92, %c0_93] : memref<1x256xf32, #tpu.memory_space<vmem>>, vector<1x256xf32>
    %153 = vector.broadcast %152 : vector<1x256xf32> to vector<2x256xf32>
    %154 = arith.addf %151, %153 : vector<2x256xf32>
    %155 = vector.extract_strided_slice %154 {offsets = [0, 0], sizes = [2, 64], strides = [1, 1]} : vector<2x256xf32> to vector<2x64xf32>
    %156 = arith.negf %155 : vector<2x64xf32>
    %157 = math.exp %156 : vector<2x64xf32>
    %cst_94 = arith.constant 1.000000e+00 : f32
    %158 = vector.broadcast %cst_94 : f32 to vector<2x64xf32>
    %159 = arith.addf %158, %157 : vector<2x64xf32>
    %160 = arith.divf %158, %159 : vector<2x64xf32>
    %161 = vector.extract_strided_slice %154 {offsets = [0, 64], sizes = [2, 64], strides = [1, 1]} : vector<2x256xf32> to vector<2x64xf32>
    %162 = arith.negf %161 : vector<2x64xf32>
    %163 = math.exp %162 : vector<2x64xf32>
    %cst_95 = arith.constant 1.000000e+00 : f32
    %164 = vector.broadcast %cst_95 : f32 to vector<2x64xf32>
    %165 = arith.addf %164, %163 : vector<2x64xf32>
    %166 = arith.divf %164, %165 : vector<2x64xf32>
    %167 = vector.extract_strided_slice %154 {offsets = [0, 128], sizes = [2, 64], strides = [1, 1]} : vector<2x256xf32> to vector<2x64xf32>
    %168 = math.tanh %167 : vector<2x64xf32>
    %169 = vector.extract_strided_slice %154 {offsets = [0, 192], sizes = [2, 64], strides = [1, 1]} : vector<2x256xf32> to vector<2x64xf32>
    %170 = arith.negf %169 : vector<2x64xf32>
    %171 = math.exp %170 : vector<2x64xf32>
    %cst_96 = arith.constant 1.000000e+00 : f32
    %172 = vector.broadcast %cst_96 : f32 to vector<2x64xf32>
    %173 = arith.addf %172, %171 : vector<2x64xf32>
    %174 = arith.divf %172, %173 : vector<2x64xf32>
    %175 = arith.mulf %166, %146 : vector<2x64xf32>
    %176 = arith.mulf %160, %168 : vector<2x64xf32>
    %177 = arith.addf %175, %176 : vector<2x64xf32>
    %178 = math.tanh %177 : vector<2x64xf32>
    %179 = arith.mulf %174, %178 : vector<2x64xf32>
    %c0_97 = arith.constant 0 : index
    %c0_98 = arith.constant 0 : index
    %180 = vector.load %arg11[%c0_97, %c0_98] : memref<2x64xf32, #tpu.memory_space<vmem>>, vector<2x64xf32>
    tpu.vector_store %arg11[%c0_97, %c0_98], %179 {strides = array<i32>} : memref<2x64xf32, #tpu.memory_space<vmem>>, vector<2x64xf32>,
    %c0_99 = arith.constant 0 : index
    %c0_100 = arith.constant 0 : index
    %181 = vector.load %arg12[%c0_99, %c0_100] : memref<2x64xf32, #tpu.memory_space<vmem>>, vector<2x64xf32>
    tpu.vector_store %arg12[%c0_99, %c0_100], %177 {strides = array<i32>} : memref<2x64xf32, #tpu.memory_space<vmem>>, vector<2x64xf32>,
    %182 = arith.index_cast %141 : i32 to index
    %c0_101 = arith.constant 0 : index
    %c0_102 = arith.constant 0 : index
    %183 = vector.load %arg8[%182, %c0_101, %c0_102] : memref<8x2x64xf32, #tpu.memory_space<vmem>>, vector<1x2x64xf32>
    %184 = vector.shape_cast %183 : vector<1x2x64xf32> to vector<2x64xf32>
    %185 = vector.shape_cast %179 : vector<2x64xf32> to vector<1x2x64xf32>
    tpu.vector_store %arg8[%182, %c0_101, %c0_102], %185 {strides = array<i32>} : memref<8x2x64xf32, #tpu.memory_space<vmem>>, vector<1x2x64xf32>,
    %c2_i32 = arith.constant 2 : i32
    %186 = arith.index_cast %c2_i32 : i32 to index
    %c0_103 = arith.constant 0 : index
    %c0_104 = arith.constant 0 : index
    %187 = vector.load %arg0[%186, %c0_103, %c0_104] : memref<8x2x128xf32, #tpu.memory_space<vmem>>, vector<1x2x128xf32>
    %188 = vector.shape_cast %187 : vector<1x2x128xf32> to vector<2x128xf32>
    %c0_105 = arith.constant 0 : index
    %c0_106 = arith.constant 0 : index
    %189 = vector.load %arg9[%c0_105, %c0_106] : memref<2x64xf32, #tpu.memory_space<vmem>>, vector<2x64xf32>
    %c0_107 = arith.constant 0 : index
    %c0_108 = arith.constant 0 : index
    %190 = vector.load %arg10[%c0_107, %c0_108] : memref<2x64xf32, #tpu.memory_space<vmem>>, vector<2x64xf32>
    %c0_109 = arith.constant 0 : index
    %c0_110 = arith.constant 0 : index
    %191 = vector.load %arg1[%c0_109, %c0_110] : memref<128x256xf32, #tpu.memory_space<vmem>>, vector<128x256xf32>
    %cst_111 = arith.constant dense<0.000000e+00> : vector<2x256xf32>
    %192 = tpu.matmul %188, %191, %cst_111 {dimension_numbers = #tpu.dot_dimension_numbers<[1], [0], [0], [1], [0, 0, 1, 1], [], []>} : vector<2x128xf32>, vector<128x256xf32>, vector<2x256xf32> -> vector<2x256xf32>
    %c0_112 = arith.constant 0 : index
    %c0_113 = arith.constant 0 : index
    %193 = vector.load %arg2[%c0_112, %c0_113] : memref<64x256xf32, #tpu.memory_space<vmem>>, vector<64x256xf32>
    %cst_114 = arith.constant dense<0.000000e+00> : vector<2x256xf32>
    %194 = tpu.matmul %189, %193, %cst_114 {dimension_numbers = #tpu.dot_dimension_numbers<[1], [0], [0], [1], [0, 0, 1, 1], [], []>} : vector<2x64xf32>, vector<64x256xf32>, vector<2x256xf32> -> vector<2x256xf32>
    %195 = arith.addf %192, %194 : vector<2x256xf32>
    %c0_115 = arith.constant 0 : index
    %c0_116 = arith.constant 0 : index
    %196 = vector.load %arg3[%c0_115, %c0_116] : memref<1x256xf32, #tpu.memory_space<vmem>>, vector<1x256xf32>
    %197 = vector.broadcast %196 : vector<1x256xf32> to vector<2x256xf32>
    %198 = arith.addf %195, %197 : vector<2x256xf32>
    %199 = vector.extract_strided_slice %198 {offsets = [0, 0], sizes = [2, 64], strides = [1, 1]} : vector<2x256xf32> to vector<2x64xf32>
    %200 = arith.negf %199 : vector<2x64xf32>
    %201 = math.exp %200 : vector<2x64xf32>
    %cst_117 = arith.constant 1.000000e+00 : f32
    %202 = vector.broadcast %cst_117 : f32 to vector<2x64xf32>
    %203 = arith.addf %202, %201 : vector<2x64xf32>
    %204 = arith.divf %202, %203 : vector<2x64xf32>
    %205 = vector.extract_strided_slice %198 {offsets = [0, 64], sizes = [2, 64], strides = [1, 1]} : vector<2x256xf32> to vector<2x64xf32>
    %206 = arith.negf %205 : vector<2x64xf32>
    %207 = math.exp %206 : vector<2x64xf32>
    %cst_118 = arith.constant 1.000000e+00 : f32
    %208 = vector.broadcast %cst_118 : f32 to vector<2x64xf32>
    %209 = arith.addf %208, %207 : vector<2x64xf32>
    %210 = arith.divf %208, %209 : vector<2x64xf32>
    %211 = vector.extract_strided_slice %198 {offsets = [0, 128], sizes = [2, 64], strides = [1, 1]} : vector<2x256xf32> to vector<2x64xf32>
    %212 = math.tanh %211 : vector<2x64xf32>
    %213 = vector.extract_strided_slice %198 {offsets = [0, 192], sizes = [2, 64], strides = [1, 1]} : vector<2x256xf32> to vector<2x64xf32>
    %214 = arith.negf %213 : vector<2x64xf32>
    %215 = math.exp %214 : vector<2x64xf32>
    %cst_119 = arith.constant 1.000000e+00 : f32
    %216 = vector.broadcast %cst_119 : f32 to vector<2x64xf32>
    %217 = arith.addf %216, %215 : vector<2x64xf32>
    %218 = arith.divf %216, %217 : vector<2x64xf32>
    %219 = arith.mulf %210, %190 : vector<2x64xf32>
    %220 = arith.mulf %204, %212 : vector<2x64xf32>
    %221 = arith.addf %219, %220 : vector<2x64xf32>
    %222 = math.tanh %221 : vector<2x64xf32>
    %223 = arith.mulf %218, %222 : vector<2x64xf32>
    %c0_120 = arith.constant 0 : index
    %c0_121 = arith.constant 0 : index
    %224 = vector.load %arg9[%c0_120, %c0_121] : memref<2x64xf32, #tpu.memory_space<vmem>>, vector<2x64xf32>
    tpu.vector_store %arg9[%c0_120, %c0_121], %223 {strides = array<i32>} : memref<2x64xf32, #tpu.memory_space<vmem>>, vector<2x64xf32>,
    %c0_122 = arith.constant 0 : index
    %c0_123 = arith.constant 0 : index
    %225 = vector.load %arg10[%c0_122, %c0_123] : memref<2x64xf32, #tpu.memory_space<vmem>>, vector<2x64xf32>
    tpu.vector_store %arg10[%c0_122, %c0_123], %221 {strides = array<i32>} : memref<2x64xf32, #tpu.memory_space<vmem>>, vector<2x64xf32>,
    %226 = arith.index_cast %c2_i32 : i32 to index
    %c0_124 = arith.constant 0 : index
    %c0_125 = arith.constant 0 : index
    %227 = vector.load %arg7[%226, %c0_124, %c0_125] : memref<8x2x64xf32, #tpu.memory_space<vmem>>, vector<1x2x64xf32>
    %228 = vector.shape_cast %227 : vector<1x2x64xf32> to vector<2x64xf32>
    %229 = vector.shape_cast %223 : vector<2x64xf32> to vector<1x2x64xf32>
    tpu.vector_store %arg7[%226, %c0_124, %c0_125], %229 {strides = array<i32>} : memref<8x2x64xf32, #tpu.memory_space<vmem>>, vector<1x2x64xf32>,
    %c7_i32_126 = arith.constant 7 : i32
    %230 = arith.subi %c7_i32_126, %c2_i32 : i32
    %231 = arith.index_cast %230 : i32 to index
    %c0_127 = arith.constant 0 : index
    %c0_128 = arith.constant 0 : index
    %232 = vector.load %arg0[%231, %c0_127, %c0_128] : memref<8x2x128xf32, #tpu.memory_space<vmem>>, vector<1x2x128xf32>
    %233 = vector.shape_cast %232 : vector<1x2x128xf32> to vector<2x128xf32>
    %c0_129 = arith.constant 0 : index
    %c0_130 = arith.constant 0 : index
    %234 = vector.load %arg11[%c0_129, %c0_130] : memref<2x64xf32, #tpu.memory_space<vmem>>, vector<2x64xf32>
    %c0_131 = arith.constant 0 : index
    %c0_132 = arith.constant 0 : index
    %235 = vector.load %arg12[%c0_131, %c0_132] : memref<2x64xf32, #tpu.memory_space<vmem>>, vector<2x64xf32>
    %c0_133 = arith.constant 0 : index
    %c0_134 = arith.constant 0 : index
    %236 = vector.load %arg4[%c0_133, %c0_134] : memref<128x256xf32, #tpu.memory_space<vmem>>, vector<128x256xf32>
    %cst_135 = arith.constant dense<0.000000e+00> : vector<2x256xf32>
    %237 = tpu.matmul %233, %236, %cst_135 {dimension_numbers = #tpu.dot_dimension_numbers<[1], [0], [0], [1], [0, 0, 1, 1], [], []>} : vector<2x128xf32>, vector<128x256xf32>, vector<2x256xf32> -> vector<2x256xf32>
    %c0_136 = arith.constant 0 : index
    %c0_137 = arith.constant 0 : index
    %238 = vector.load %arg5[%c0_136, %c0_137] : memref<64x256xf32, #tpu.memory_space<vmem>>, vector<64x256xf32>
    %cst_138 = arith.constant dense<0.000000e+00> : vector<2x256xf32>
    %239 = tpu.matmul %234, %238, %cst_138 {dimension_numbers = #tpu.dot_dimension_numbers<[1], [0], [0], [1], [0, 0, 1, 1], [], []>} : vector<2x64xf32>, vector<64x256xf32>, vector<2x256xf32> -> vector<2x256xf32>
    %240 = arith.addf %237, %239 : vector<2x256xf32>
    %c0_139 = arith.constant 0 : index
    %c0_140 = arith.constant 0 : index
    %241 = vector.load %arg6[%c0_139, %c0_140] : memref<1x256xf32, #tpu.memory_space<vmem>>, vector<1x256xf32>
    %242 = vector.broadcast %241 : vector<1x256xf32> to vector<2x256xf32>
    %243 = arith.addf %240, %242 : vector<2x256xf32>
    %244 = vector.extract_strided_slice %243 {offsets = [0, 0], sizes = [2, 64], strides = [1, 1]} : vector<2x256xf32> to vector<2x64xf32>
    %245 = arith.negf %244 : vector<2x64xf32>
    %246 = math.exp %245 : vector<2x64xf32>
    %cst_141 = arith.constant 1.000000e+00 : f32
    %247 = vector.broadcast %cst_141 : f32 to vector<2x64xf32>
    %248 = arith.addf %247, %246 : vector<2x64xf32>
    %249 = arith.divf %247, %248 : vector<2x64xf32>
    %250 = vector.extract_strided_slice %243 {offsets = [0, 64], sizes = [2, 64], strides = [1, 1]} : vector<2x256xf32> to vector<2x64xf32>
    %251 = arith.negf %250 : vector<2x64xf32>
    %252 = math.exp %251 : vector<2x64xf32>
    %cst_142 = arith.constant 1.000000e+00 : f32
    %253 = vector.broadcast %cst_142 : f32 to vector<2x64xf32>
    %254 = arith.addf %253, %252 : vector<2x64xf32>
    %255 = arith.divf %253, %254 : vector<2x64xf32>
    %256 = vector.extract_strided_slice %243 {offsets = [0, 128], sizes = [2, 64], strides = [1, 1]} : vector<2x256xf32> to vector<2x64xf32>
    %257 = math.tanh %256 : vector<2x64xf32>
    %258 = vector.extract_strided_slice %243 {offsets = [0, 192], sizes = [2, 64], strides = [1, 1]} : vector<2x256xf32> to vector<2x64xf32>
    %259 = arith.negf %258 : vector<2x64xf32>
    %260 = math.exp %259 : vector<2x64xf32>
    %cst_143 = arith.constant 1.000000e+00 : f32
    %261 = vector.broadcast %cst_143 : f32 to vector<2x64xf32>
    %262 = arith.addf %261, %260 : vector<2x64xf32>
    %263 = arith.divf %261, %262 : vector<2x64xf32>
    %264 = arith.mulf %255, %235 : vector<2x64xf32>
    %265 = arith.mulf %249, %257 : vector<2x64xf32>
    %266 = arith.addf %264, %265 : vector<2x64xf32>
    %267 = math.tanh %266 : vector<2x64xf32>
    %268 = arith.mulf %263, %267 : vector<2x64xf32>
    %c0_144 = arith.constant 0 : index
    %c0_145 = arith.constant 0 : index
    %269 = vector.load %arg11[%c0_144, %c0_145] : memref<2x64xf32, #tpu.memory_space<vmem>>, vector<2x64xf32>
    tpu.vector_store %arg11[%c0_144, %c0_145], %268 {strides = array<i32>} : memref<2x64xf32, #tpu.memory_space<vmem>>, vector<2x64xf32>,
    %c0_146 = arith.constant 0 : index
    %c0_147 = arith.constant 0 : index
    %270 = vector.load %arg12[%c0_146, %c0_147] : memref<2x64xf32, #tpu.memory_space<vmem>>, vector<2x64xf32>
    tpu.vector_store %arg12[%c0_146, %c0_147], %266 {strides = array<i32>} : memref<2x64xf32, #tpu.memory_space<vmem>>, vector<2x64xf32>,
    %271 = arith.index_cast %230 : i32 to index
    %c0_148 = arith.constant 0 : index
    %c0_149 = arith.constant 0 : index
    %272 = vector.load %arg8[%271, %c0_148, %c0_149] : memref<8x2x64xf32, #tpu.memory_space<vmem>>, vector<1x2x64xf32>
    %273 = vector.shape_cast %272 : vector<1x2x64xf32> to vector<2x64xf32>
    %274 = vector.shape_cast %268 : vector<2x64xf32> to vector<1x2x64xf32>
    tpu.vector_store %arg8[%271, %c0_148, %c0_149], %274 {strides = array<i32>} : memref<8x2x64xf32, #tpu.memory_space<vmem>>, vector<1x2x64xf32>,
    %c3_i32 = arith.constant 3 : i32
    %275 = arith.index_cast %c3_i32 : i32 to index
    %c0_150 = arith.constant 0 : index
    %c0_151 = arith.constant 0 : index
    %276 = vector.load %arg0[%275, %c0_150, %c0_151] : memref<8x2x128xf32, #tpu.memory_space<vmem>>, vector<1x2x128xf32>
    %277 = vector.shape_cast %276 : vector<1x2x128xf32> to vector<2x128xf32>
    %c0_152 = arith.constant 0 : index
    %c0_153 = arith.constant 0 : index
    %278 = vector.load %arg9[%c0_152, %c0_153] : memref<2x64xf32, #tpu.memory_space<vmem>>, vector<2x64xf32>
    %c0_154 = arith.constant 0 : index
    %c0_155 = arith.constant 0 : index
    %279 = vector.load %arg10[%c0_154, %c0_155] : memref<2x64xf32, #tpu.memory_space<vmem>>, vector<2x64xf32>
    %c0_156 = arith.constant 0 : index
    %c0_157 = arith.constant 0 : index
    %280 = vector.load %arg1[%c0_156, %c0_157] : memref<128x256xf32, #tpu.memory_space<vmem>>, vector<128x256xf32>
    %cst_158 = arith.constant dense<0.000000e+00> : vector<2x256xf32>
    %281 = tpu.matmul %277, %280, %cst_158 {dimension_numbers = #tpu.dot_dimension_numbers<[1], [0], [0], [1], [0, 0, 1, 1], [], []>} : vector<2x128xf32>, vector<128x256xf32>, vector<2x256xf32> -> vector<2x256xf32>
    %c0_159 = arith.constant 0 : index
    %c0_160 = arith.constant 0 : index
    %282 = vector.load %arg2[%c0_159, %c0_160] : memref<64x256xf32, #tpu.memory_space<vmem>>, vector<64x256xf32>
    %cst_161 = arith.constant dense<0.000000e+00> : vector<2x256xf32>
    %283 = tpu.matmul %278, %282, %cst_161 {dimension_numbers = #tpu.dot_dimension_numbers<[1], [0], [0], [1], [0, 0, 1, 1], [], []>} : vector<2x64xf32>, vector<64x256xf32>, vector<2x256xf32> -> vector<2x256xf32>
    %284 = arith.addf %281, %283 : vector<2x256xf32>
    %c0_162 = arith.constant 0 : index
    %c0_163 = arith.constant 0 : index
    %285 = vector.load %arg3[%c0_162, %c0_163] : memref<1x256xf32, #tpu.memory_space<vmem>>, vector<1x256xf32>
    %286 = vector.broadcast %285 : vector<1x256xf32> to vector<2x256xf32>
    %287 = arith.addf %284, %286 : vector<2x256xf32>
    %288 = vector.extract_strided_slice %287 {offsets = [0, 0], sizes = [2, 64], strides = [1, 1]} : vector<2x256xf32> to vector<2x64xf32>
    %289 = arith.negf %288 : vector<2x64xf32>
    %290 = math.exp %289 : vector<2x64xf32>
    %cst_164 = arith.constant 1.000000e+00 : f32
    %291 = vector.broadcast %cst_164 : f32 to vector<2x64xf32>
    %292 = arith.addf %291, %290 : vector<2x64xf32>
    %293 = arith.divf %291, %292 : vector<2x64xf32>
    %294 = vector.extract_strided_slice %287 {offsets = [0, 64], sizes = [2, 64], strides = [1, 1]} : vector<2x256xf32> to vector<2x64xf32>
    %295 = arith.negf %294 : vector<2x64xf32>
    %296 = math.exp %295 : vector<2x64xf32>
    %cst_165 = arith.constant 1.000000e+00 : f32
    %297 = vector.broadcast %cst_165 : f32 to vector<2x64xf32>
    %298 = arith.addf %297, %296 : vector<2x64xf32>
    %299 = arith.divf %297, %298 : vector<2x64xf32>
    %300 = vector.extract_strided_slice %287 {offsets = [0, 128], sizes = [2, 64], strides = [1, 1]} : vector<2x256xf32> to vector<2x64xf32>
    %301 = math.tanh %300 : vector<2x64xf32>
    %302 = vector.extract_strided_slice %287 {offsets = [0, 192], sizes = [2, 64], strides = [1, 1]} : vector<2x256xf32> to vector<2x64xf32>
    %303 = arith.negf %302 : vector<2x64xf32>
    %304 = math.exp %303 : vector<2x64xf32>
    %cst_166 = arith.constant 1.000000e+00 : f32
    %305 = vector.broadcast %cst_166 : f32 to vector<2x64xf32>
    %306 = arith.addf %305, %304 : vector<2x64xf32>
    %307 = arith.divf %305, %306 : vector<2x64xf32>
    %308 = arith.mulf %299, %279 : vector<2x64xf32>
    %309 = arith.mulf %293, %301 : vector<2x64xf32>
    %310 = arith.addf %308, %309 : vector<2x64xf32>
    %311 = math.tanh %310 : vector<2x64xf32>
    %312 = arith.mulf %307, %311 : vector<2x64xf32>
    %c0_167 = arith.constant 0 : index
    %c0_168 = arith.constant 0 : index
    %313 = vector.load %arg9[%c0_167, %c0_168] : memref<2x64xf32, #tpu.memory_space<vmem>>, vector<2x64xf32>
    tpu.vector_store %arg9[%c0_167, %c0_168], %312 {strides = array<i32>} : memref<2x64xf32, #tpu.memory_space<vmem>>, vector<2x64xf32>,
    %c0_169 = arith.constant 0 : index
    %c0_170 = arith.constant 0 : index
    %314 = vector.load %arg10[%c0_169, %c0_170] : memref<2x64xf32, #tpu.memory_space<vmem>>, vector<2x64xf32>
    tpu.vector_store %arg10[%c0_169, %c0_170], %310 {strides = array<i32>} : memref<2x64xf32, #tpu.memory_space<vmem>>, vector<2x64xf32>,
    %315 = arith.index_cast %c3_i32 : i32 to index
    %c0_171 = arith.constant 0 : index
    %c0_172 = arith.constant 0 : index
    %316 = vector.load %arg7[%315, %c0_171, %c0_172] : memref<8x2x64xf32, #tpu.memory_space<vmem>>, vector<1x2x64xf32>
    %317 = vector.shape_cast %316 : vector<1x2x64xf32> to vector<2x64xf32>
    %318 = vector.shape_cast %312 : vector<2x64xf32> to vector<1x2x64xf32>
    tpu.vector_store %arg7[%315, %c0_171, %c0_172], %318 {strides = array<i32>} : memref<8x2x64xf32, #tpu.memory_space<vmem>>, vector<1x2x64xf32>,
    %c7_i32_173 = arith.constant 7 : i32
    %319 = arith.subi %c7_i32_173, %c3_i32 : i32
    %320 = arith.index_cast %319 : i32 to index
    %c0_174 = arith.constant 0 : index
    %c0_175 = arith.constant 0 : index
    %321 = vector.load %arg0[%320, %c0_174, %c0_175] : memref<8x2x128xf32, #tpu.memory_space<vmem>>, vector<1x2x128xf32>
    %322 = vector.shape_cast %321 : vector<1x2x128xf32> to vector<2x128xf32>
    %c0_176 = arith.constant 0 : index
    %c0_177 = arith.constant 0 : index
    %323 = vector.load %arg11[%c0_176, %c0_177] : memref<2x64xf32, #tpu.memory_space<vmem>>, vector<2x64xf32>
    %c0_178 = arith.constant 0 : index
    %c0_179 = arith.constant 0 : index
    %324 = vector.load %arg12[%c0_178, %c0_179] : memref<2x64xf32, #tpu.memory_space<vmem>>, vector<2x64xf32>
    %c0_180 = arith.constant 0 : index
    %c0_181 = arith.constant 0 : index
    %325 = vector.load %arg4[%c0_180, %c0_181] : memref<128x256xf32, #tpu.memory_space<vmem>>, vector<128x256xf32>
    %cst_182 = arith.constant dense<0.000000e+00> : vector<2x256xf32>
    %326 = tpu.matmul %322, %325, %cst_182 {dimension_numbers = #tpu.dot_dimension_numbers<[1], [0], [0], [1], [0, 0, 1, 1], [], []>} : vector<2x128xf32>, vector<128x256xf32>, vector<2x256xf32> -> vector<2x256xf32>
    %c0_183 = arith.constant 0 : index
    %c0_184 = arith.constant 0 : index
    %327 = vector.load %arg5[%c0_183, %c0_184] : memref<64x256xf32, #tpu.memory_space<vmem>>, vector<64x256xf32>
    %cst_185 = arith.constant dense<0.000000e+00> : vector<2x256xf32>
    %328 = tpu.matmul %323, %327, %cst_185 {dimension_numbers = #tpu.dot_dimension_numbers<[1], [0], [0], [1], [0, 0, 1, 1], [], []>} : vector<2x64xf32>, vector<64x256xf32>, vector<2x256xf32> -> vector<2x256xf32>
    %329 = arith.addf %326, %328 : vector<2x256xf32>
    %c0_186 = arith.constant 0 : index
    %c0_187 = arith.constant 0 : index
    %330 = vector.load %arg6[%c0_186, %c0_187] : memref<1x256xf32, #tpu.memory_space<vmem>>, vector<1x256xf32>
    %331 = vector.broadcast %330 : vector<1x256xf32> to vector<2x256xf32>
    %332 = arith.addf %329, %331 : vector<2x256xf32>
    %333 = vector.extract_strided_slice %332 {offsets = [0, 0], sizes = [2, 64], strides = [1, 1]} : vector<2x256xf32> to vector<2x64xf32>
    %334 = arith.negf %333 : vector<2x64xf32>
    %335 = math.exp %334 : vector<2x64xf32>
    %cst_188 = arith.constant 1.000000e+00 : f32
    %336 = vector.broadcast %cst_188 : f32 to vector<2x64xf32>
    %337 = arith.addf %336, %335 : vector<2x64xf32>
    %338 = arith.divf %336, %337 : vector<2x64xf32>
    %339 = vector.extract_strided_slice %332 {offsets = [0, 64], sizes = [2, 64], strides = [1, 1]} : vector<2x256xf32> to vector<2x64xf32>
    %340 = arith.negf %339 : vector<2x64xf32>
    %341 = math.exp %340 : vector<2x64xf32>
    %cst_189 = arith.constant 1.000000e+00 : f32
    %342 = vector.broadcast %cst_189 : f32 to vector<2x64xf32>
    %343 = arith.addf %342, %341 : vector<2x64xf32>
    %344 = arith.divf %342, %343 : vector<2x64xf32>
    %345 = vector.extract_strided_slice %332 {offsets = [0, 128], sizes = [2, 64], strides = [1, 1]} : vector<2x256xf32> to vector<2x64xf32>
    %346 = math.tanh %345 : vector<2x64xf32>
    %347 = vector.extract_strided_slice %332 {offsets = [0, 192], sizes = [2, 64], strides = [1, 1]} : vector<2x256xf32> to vector<2x64xf32>
    %348 = arith.negf %347 : vector<2x64xf32>
    %349 = math.exp %348 : vector<2x64xf32>
    %cst_190 = arith.constant 1.000000e+00 : f32
    %350 = vector.broadcast %cst_190 : f32 to vector<2x64xf32>
    %351 = arith.addf %350, %349 : vector<2x64xf32>
    %352 = arith.divf %350, %351 : vector<2x64xf32>
    %353 = arith.mulf %344, %324 : vector<2x64xf32>
    %354 = arith.mulf %338, %346 : vector<2x64xf32>
    %355 = arith.addf %353, %354 : vector<2x64xf32>
    %356 = math.tanh %355 : vector<2x64xf32>
    %357 = arith.mulf %352, %356 : vector<2x64xf32>
    %c0_191 = arith.constant 0 : index
    %c0_192 = arith.constant 0 : index
    %358 = vector.load %arg11[%c0_191, %c0_192] : memref<2x64xf32, #tpu.memory_space<vmem>>, vector<2x64xf32>
    tpu.vector_store %arg11[%c0_191, %c0_192], %357 {strides = array<i32>} : memref<2x64xf32, #tpu.memory_space<vmem>>, vector<2x64xf32>,
    %c0_193 = arith.constant 0 : index
    %c0_194 = arith.constant 0 : index
    %359 = vector.load %arg12[%c0_193, %c0_194] : memref<2x64xf32, #tpu.memory_space<vmem>>, vector<2x64xf32>
    tpu.vector_store %arg12[%c0_193, %c0_194], %355 {strides = array<i32>} : memref<2x64xf32, #tpu.memory_space<vmem>>, vector<2x64xf32>,
    %360 = arith.index_cast %319 : i32 to index
    %c0_195 = arith.constant 0 : index
    %c0_196 = arith.constant 0 : index
    %361 = vector.load %arg8[%360, %c0_195, %c0_196] : memref<8x2x64xf32, #tpu.memory_space<vmem>>, vector<1x2x64xf32>
    %362 = vector.shape_cast %361 : vector<1x2x64xf32> to vector<2x64xf32>
    %363 = vector.shape_cast %357 : vector<2x64xf32> to vector<1x2x64xf32>
    tpu.vector_store %arg8[%360, %c0_195, %c0_196], %363 {strides = array<i32>} : memref<8x2x64xf32, #tpu.memory_space<vmem>>, vector<1x2x64xf32>,
    %c4_i32 = arith.constant 4 : i32
    %364 = arith.index_cast %c4_i32 : i32 to index
    %c0_197 = arith.constant 0 : index
    %c0_198 = arith.constant 0 : index
    %365 = vector.load %arg0[%364, %c0_197, %c0_198] : memref<8x2x128xf32, #tpu.memory_space<vmem>>, vector<1x2x128xf32>
    %366 = vector.shape_cast %365 : vector<1x2x128xf32> to vector<2x128xf32>
    %c0_199 = arith.constant 0 : index
    %c0_200 = arith.constant 0 : index
    %367 = vector.load %arg9[%c0_199, %c0_200] : memref<2x64xf32, #tpu.memory_space<vmem>>, vector<2x64xf32>
    %c0_201 = arith.constant 0 : index
    %c0_202 = arith.constant 0 : index
    %368 = vector.load %arg10[%c0_201, %c0_202] : memref<2x64xf32, #tpu.memory_space<vmem>>, vector<2x64xf32>
    %c0_203 = arith.constant 0 : index
    %c0_204 = arith.constant 0 : index
    %369 = vector.load %arg1[%c0_203, %c0_204] : memref<128x256xf32, #tpu.memory_space<vmem>>, vector<128x256xf32>
    %cst_205 = arith.constant dense<0.000000e+00> : vector<2x256xf32>
    %370 = tpu.matmul %366, %369, %cst_205 {dimension_numbers = #tpu.dot_dimension_numbers<[1], [0], [0], [1], [0, 0, 1, 1], [], []>} : vector<2x128xf32>, vector<128x256xf32>, vector<2x256xf32> -> vector<2x256xf32>
    %c0_206 = arith.constant 0 : index
    %c0_207 = arith.constant 0 : index
    %371 = vector.load %arg2[%c0_206, %c0_207] : memref<64x256xf32, #tpu.memory_space<vmem>>, vector<64x256xf32>
    %cst_208 = arith.constant dense<0.000000e+00> : vector<2x256xf32>
    %372 = tpu.matmul %367, %371, %cst_208 {dimension_numbers = #tpu.dot_dimension_numbers<[1], [0], [0], [1], [0, 0, 1, 1], [], []>} : vector<2x64xf32>, vector<64x256xf32>, vector<2x256xf32> -> vector<2x256xf32>
    %373 = arith.addf %370, %372 : vector<2x256xf32>
    %c0_209 = arith.constant 0 : index
    %c0_210 = arith.constant 0 : index
    %374 = vector.load %arg3[%c0_209, %c0_210] : memref<1x256xf32, #tpu.memory_space<vmem>>, vector<1x256xf32>
    %375 = vector.broadcast %374 : vector<1x256xf32> to vector<2x256xf32>
    %376 = arith.addf %373, %375 : vector<2x256xf32>
    %377 = vector.extract_strided_slice %376 {offsets = [0, 0], sizes = [2, 64], strides = [1, 1]} : vector<2x256xf32> to vector<2x64xf32>
    %378 = arith.negf %377 : vector<2x64xf32>
    %379 = math.exp %378 : vector<2x64xf32>
    %cst_211 = arith.constant 1.000000e+00 : f32
    %380 = vector.broadcast %cst_211 : f32 to vector<2x64xf32>
    %381 = arith.addf %380, %379 : vector<2x64xf32>
    %382 = arith.divf %380, %381 : vector<2x64xf32>
    %383 = vector.extract_strided_slice %376 {offsets = [0, 64], sizes = [2, 64], strides = [1, 1]} : vector<2x256xf32> to vector<2x64xf32>
    %384 = arith.negf %383 : vector<2x64xf32>
    %385 = math.exp %384 : vector<2x64xf32>
    %cst_212 = arith.constant 1.000000e+00 : f32
    %386 = vector.broadcast %cst_212 : f32 to vector<2x64xf32>
    %387 = arith.addf %386, %385 : vector<2x64xf32>
    %388 = arith.divf %386, %387 : vector<2x64xf32>
    %389 = vector.extract_strided_slice %376 {offsets = [0, 128], sizes = [2, 64], strides = [1, 1]} : vector<2x256xf32> to vector<2x64xf32>
    %390 = math.tanh %389 : vector<2x64xf32>
    %391 = vector.extract_strided_slice %376 {offsets = [0, 192], sizes = [2, 64], strides = [1, 1]} : vector<2x256xf32> to vector<2x64xf32>
    %392 = arith.negf %391 : vector<2x64xf32>
    %393 = math.exp %392 : vector<2x64xf32>
    %cst_213 = arith.constant 1.000000e+00 : f32
    %394 = vector.broadcast %cst_213 : f32 to vector<2x64xf32>
    %395 = arith.addf %394, %393 : vector<2x64xf32>
    %396 = arith.divf %394, %395 : vector<2x64xf32>
    %397 = arith.mulf %388, %368 : vector<2x64xf32>
    %398 = arith.mulf %382, %390 : vector<2x64xf32>
    %399 = arith.addf %397, %398 : vector<2x64xf32>
    %400 = math.tanh %399 : vector<2x64xf32>
    %401 = arith.mulf %396, %400 : vector<2x64xf32>
    %c0_214 = arith.constant 0 : index
    %c0_215 = arith.constant 0 : index
    %402 = vector.load %arg9[%c0_214, %c0_215] : memref<2x64xf32, #tpu.memory_space<vmem>>, vector<2x64xf32>
    tpu.vector_store %arg9[%c0_214, %c0_215], %401 {strides = array<i32>} : memref<2x64xf32, #tpu.memory_space<vmem>>, vector<2x64xf32>,
    %c0_216 = arith.constant 0 : index
    %c0_217 = arith.constant 0 : index
    %403 = vector.load %arg10[%c0_216, %c0_217] : memref<2x64xf32, #tpu.memory_space<vmem>>, vector<2x64xf32>
    tpu.vector_store %arg10[%c0_216, %c0_217], %399 {strides = array<i32>} : memref<2x64xf32, #tpu.memory_space<vmem>>, vector<2x64xf32>,
    %404 = arith.index_cast %c4_i32 : i32 to index
    %c0_218 = arith.constant 0 : index
    %c0_219 = arith.constant 0 : index
    %405 = vector.load %arg7[%404, %c0_218, %c0_219] : memref<8x2x64xf32, #tpu.memory_space<vmem>>, vector<1x2x64xf32>
    %406 = vector.shape_cast %405 : vector<1x2x64xf32> to vector<2x64xf32>
    %407 = vector.shape_cast %401 : vector<2x64xf32> to vector<1x2x64xf32>
    tpu.vector_store %arg7[%404, %c0_218, %c0_219], %407 {strides = array<i32>} : memref<8x2x64xf32, #tpu.memory_space<vmem>>, vector<1x2x64xf32>,
    %c7_i32_220 = arith.constant 7 : i32
    %408 = arith.subi %c7_i32_220, %c4_i32 : i32
    %409 = arith.index_cast %408 : i32 to index
    %c0_221 = arith.constant 0 : index
    %c0_222 = arith.constant 0 : index
    %410 = vector.load %arg0[%409, %c0_221, %c0_222] : memref<8x2x128xf32, #tpu.memory_space<vmem>>, vector<1x2x128xf32>
    %411 = vector.shape_cast %410 : vector<1x2x128xf32> to vector<2x128xf32>
    %c0_223 = arith.constant 0 : index
    %c0_224 = arith.constant 0 : index
    %412 = vector.load %arg11[%c0_223, %c0_224] : memref<2x64xf32, #tpu.memory_space<vmem>>, vector<2x64xf32>
    %c0_225 = arith.constant 0 : index
    %c0_226 = arith.constant 0 : index
    %413 = vector.load %arg12[%c0_225, %c0_226] : memref<2x64xf32, #tpu.memory_space<vmem>>, vector<2x64xf32>
    %c0_227 = arith.constant 0 : index
    %c0_228 = arith.constant 0 : index
    %414 = vector.load %arg4[%c0_227, %c0_228] : memref<128x256xf32, #tpu.memory_space<vmem>>, vector<128x256xf32>
    %cst_229 = arith.constant dense<0.000000e+00> : vector<2x256xf32>
    %415 = tpu.matmul %411, %414, %cst_229 {dimension_numbers = #tpu.dot_dimension_numbers<[1], [0], [0], [1], [0, 0, 1, 1], [], []>} : vector<2x128xf32>, vector<128x256xf32>, vector<2x256xf32> -> vector<2x256xf32>
    %c0_230 = arith.constant 0 : index
    %c0_231 = arith.constant 0 : index
    %416 = vector.load %arg5[%c0_230, %c0_231] : memref<64x256xf32, #tpu.memory_space<vmem>>, vector<64x256xf32>
    %cst_232 = arith.constant dense<0.000000e+00> : vector<2x256xf32>
    %417 = tpu.matmul %412, %416, %cst_232 {dimension_numbers = #tpu.dot_dimension_numbers<[1], [0], [0], [1], [0, 0, 1, 1], [], []>} : vector<2x64xf32>, vector<64x256xf32>, vector<2x256xf32> -> vector<2x256xf32>
    %418 = arith.addf %415, %417 : vector<2x256xf32>
    %c0_233 = arith.constant 0 : index
    %c0_234 = arith.constant 0 : index
    %419 = vector.load %arg6[%c0_233, %c0_234] : memref<1x256xf32, #tpu.memory_space<vmem>>, vector<1x256xf32>
    %420 = vector.broadcast %419 : vector<1x256xf32> to vector<2x256xf32>
    %421 = arith.addf %418, %420 : vector<2x256xf32>
    %422 = vector.extract_strided_slice %421 {offsets = [0, 0], sizes = [2, 64], strides = [1, 1]} : vector<2x256xf32> to vector<2x64xf32>
    %423 = arith.negf %422 : vector<2x64xf32>
    %424 = math.exp %423 : vector<2x64xf32>
    %cst_235 = arith.constant 1.000000e+00 : f32
    %425 = vector.broadcast %cst_235 : f32 to vector<2x64xf32>
    %426 = arith.addf %425, %424 : vector<2x64xf32>
    %427 = arith.divf %425, %426 : vector<2x64xf32>
    %428 = vector.extract_strided_slice %421 {offsets = [0, 64], sizes = [2, 64], strides = [1, 1]} : vector<2x256xf32> to vector<2x64xf32>
    %429 = arith.negf %428 : vector<2x64xf32>
    %430 = math.exp %429 : vector<2x64xf32>
    %cst_236 = arith.constant 1.000000e+00 : f32
    %431 = vector.broadcast %cst_236 : f32 to vector<2x64xf32>
    %432 = arith.addf %431, %430 : vector<2x64xf32>
    %433 = arith.divf %431, %432 : vector<2x64xf32>
    %434 = vector.extract_strided_slice %421 {offsets = [0, 128], sizes = [2, 64], strides = [1, 1]} : vector<2x256xf32> to vector<2x64xf32>
    %435 = math.tanh %434 : vector<2x64xf32>
    %436 = vector.extract_strided_slice %421 {offsets = [0, 192], sizes = [2, 64], strides = [1, 1]} : vector<2x256xf32> to vector<2x64xf32>
    %437 = arith.negf %436 : vector<2x64xf32>
    %438 = math.exp %437 : vector<2x64xf32>
    %cst_237 = arith.constant 1.000000e+00 : f32
    %439 = vector.broadcast %cst_237 : f32 to vector<2x64xf32>
    %440 = arith.addf %439, %438 : vector<2x64xf32>
    %441 = arith.divf %439, %440 : vector<2x64xf32>
    %442 = arith.mulf %433, %413 : vector<2x64xf32>
    %443 = arith.mulf %427, %435 : vector<2x64xf32>
    %444 = arith.addf %442, %443 : vector<2x64xf32>
    %445 = math.tanh %444 : vector<2x64xf32>
    %446 = arith.mulf %441, %445 : vector<2x64xf32>
    %c0_238 = arith.constant 0 : index
    %c0_239 = arith.constant 0 : index
    %447 = vector.load %arg11[%c0_238, %c0_239] : memref<2x64xf32, #tpu.memory_space<vmem>>, vector<2x64xf32>
    tpu.vector_store %arg11[%c0_238, %c0_239], %446 {strides = array<i32>} : memref<2x64xf32, #tpu.memory_space<vmem>>, vector<2x64xf32>,
    %c0_240 = arith.constant 0 : index
    %c0_241 = arith.constant 0 : index
    %448 = vector.load %arg12[%c0_240, %c0_241] : memref<2x64xf32, #tpu.memory_space<vmem>>, vector<2x64xf32>
    tpu.vector_store %arg12[%c0_240, %c0_241], %444 {strides = array<i32>} : memref<2x64xf32, #tpu.memory_space<vmem>>, vector<2x64xf32>,
    %449 = arith.index_cast %408 : i32 to index
    %c0_242 = arith.constant 0 : index
    %c0_243 = arith.constant 0 : index
    %450 = vector.load %arg8[%449, %c0_242, %c0_243] : memref<8x2x64xf32, #tpu.memory_space<vmem>>, vector<1x2x64xf32>
    %451 = vector.shape_cast %450 : vector<1x2x64xf32> to vector<2x64xf32>
    %452 = vector.shape_cast %446 : vector<2x64xf32> to vector<1x2x64xf32>
    tpu.vector_store %arg8[%449, %c0_242, %c0_243], %452 {strides = array<i32>} : memref<8x2x64xf32, #tpu.memory_space<vmem>>, vector<1x2x64xf32>,
    %c5_i32 = arith.constant 5 : i32
    %453 = arith.index_cast %c5_i32 : i32 to index
    %c0_244 = arith.constant 0 : index
    %c0_245 = arith.constant 0 : index
    %454 = vector.load %arg0[%453, %c0_244, %c0_245] : memref<8x2x128xf32, #tpu.memory_space<vmem>>, vector<1x2x128xf32>
    %455 = vector.shape_cast %454 : vector<1x2x128xf32> to vector<2x128xf32>
    %c0_246 = arith.constant 0 : index
    %c0_247 = arith.constant 0 : index
    %456 = vector.load %arg9[%c0_246, %c0_247] : memref<2x64xf32, #tpu.memory_space<vmem>>, vector<2x64xf32>
    %c0_248 = arith.constant 0 : index
    %c0_249 = arith.constant 0 : index
    %457 = vector.load %arg10[%c0_248, %c0_249] : memref<2x64xf32, #tpu.memory_space<vmem>>, vector<2x64xf32>
    %c0_250 = arith.constant 0 : index
    %c0_251 = arith.constant 0 : index
    %458 = vector.load %arg1[%c0_250, %c0_251] : memref<128x256xf32, #tpu.memory_space<vmem>>, vector<128x256xf32>
    %cst_252 = arith.constant dense<0.000000e+00> : vector<2x256xf32>
    %459 = tpu.matmul %455, %458, %cst_252 {dimension_numbers = #tpu.dot_dimension_numbers<[1], [0], [0], [1], [0, 0, 1, 1], [], []>} : vector<2x128xf32>, vector<128x256xf32>, vector<2x256xf32> -> vector<2x256xf32>
    %c0_253 = arith.constant 0 : index
    %c0_254 = arith.constant 0 : index
    %460 = vector.load %arg2[%c0_253, %c0_254] : memref<64x256xf32, #tpu.memory_space<vmem>>, vector<64x256xf32>
    %cst_255 = arith.constant dense<0.000000e+00> : vector<2x256xf32>
    %461 = tpu.matmul %456, %460, %cst_255 {dimension_numbers = #tpu.dot_dimension_numbers<[1], [0], [0], [1], [0, 0, 1, 1], [], []>} : vector<2x64xf32>, vector<64x256xf32>, vector<2x256xf32> -> vector<2x256xf32>
    %462 = arith.addf %459, %461 : vector<2x256xf32>
    %c0_256 = arith.constant 0 : index
    %c0_257 = arith.constant 0 : index
    %463 = vector.load %arg3[%c0_256, %c0_257] : memref<1x256xf32, #tpu.memory_space<vmem>>, vector<1x256xf32>
    %464 = vector.broadcast %463 : vector<1x256xf32> to vector<2x256xf32>
    %465 = arith.addf %462, %464 : vector<2x256xf32>
    %466 = vector.extract_strided_slice %465 {offsets = [0, 0], sizes = [2, 64], strides = [1, 1]} : vector<2x256xf32> to vector<2x64xf32>
    %467 = arith.negf %466 : vector<2x64xf32>
    %468 = math.exp %467 : vector<2x64xf32>
    %cst_258 = arith.constant 1.000000e+00 : f32
    %469 = vector.broadcast %cst_258 : f32 to vector<2x64xf32>
    %470 = arith.addf %469, %468 : vector<2x64xf32>
    %471 = arith.divf %469, %470 : vector<2x64xf32>
    %472 = vector.extract_strided_slice %465 {offsets = [0, 64], sizes = [2, 64], strides = [1, 1]} : vector<2x256xf32> to vector<2x64xf32>
    %473 = arith.negf %472 : vector<2x64xf32>
    %474 = math.exp %473 : vector<2x64xf32>
    %cst_259 = arith.constant 1.000000e+00 : f32
    %475 = vector.broadcast %cst_259 : f32 to vector<2x64xf32>
    %476 = arith.addf %475, %474 : vector<2x64xf32>
    %477 = arith.divf %475, %476 : vector<2x64xf32>
    %478 = vector.extract_strided_slice %465 {offsets = [0, 128], sizes = [2, 64], strides = [1, 1]} : vector<2x256xf32> to vector<2x64xf32>
    %479 = math.tanh %478 : vector<2x64xf32>
    %480 = vector.extract_strided_slice %465 {offsets = [0, 192], sizes = [2, 64], strides = [1, 1]} : vector<2x256xf32> to vector<2x64xf32>
    %481 = arith.negf %480 : vector<2x64xf32>
    %482 = math.exp %481 : vector<2x64xf32>
    %cst_260 = arith.constant 1.000000e+00 : f32
    %483 = vector.broadcast %cst_260 : f32 to vector<2x64xf32>
    %484 = arith.addf %483, %482 : vector<2x64xf32>
    %485 = arith.divf %483, %484 : vector<2x64xf32>
    %486 = arith.mulf %477, %457 : vector<2x64xf32>
    %487 = arith.mulf %471, %479 : vector<2x64xf32>
    %488 = arith.addf %486, %487 : vector<2x64xf32>
    %489 = math.tanh %488 : vector<2x64xf32>
    %490 = arith.mulf %485, %489 : vector<2x64xf32>
    %c0_261 = arith.constant 0 : index
    %c0_262 = arith.constant 0 : index
    %491 = vector.load %arg9[%c0_261, %c0_262] : memref<2x64xf32, #tpu.memory_space<vmem>>, vector<2x64xf32>
    tpu.vector_store %arg9[%c0_261, %c0_262], %490 {strides = array<i32>} : memref<2x64xf32, #tpu.memory_space<vmem>>, vector<2x64xf32>,
    %c0_263 = arith.constant 0 : index
    %c0_264 = arith.constant 0 : index
    %492 = vector.load %arg10[%c0_263, %c0_264] : memref<2x64xf32, #tpu.memory_space<vmem>>, vector<2x64xf32>
    tpu.vector_store %arg10[%c0_263, %c0_264], %488 {strides = array<i32>} : memref<2x64xf32, #tpu.memory_space<vmem>>, vector<2x64xf32>,
    %493 = arith.index_cast %c5_i32 : i32 to index
    %c0_265 = arith.constant 0 : index
    %c0_266 = arith.constant 0 : index
    %494 = vector.load %arg7[%493, %c0_265, %c0_266] : memref<8x2x64xf32, #tpu.memory_space<vmem>>, vector<1x2x64xf32>
    %495 = vector.shape_cast %494 : vector<1x2x64xf32> to vector<2x64xf32>
    %496 = vector.shape_cast %490 : vector<2x64xf32> to vector<1x2x64xf32>
    tpu.vector_store %arg7[%493, %c0_265, %c0_266], %496 {strides = array<i32>} : memref<8x2x64xf32, #tpu.memory_space<vmem>>, vector<1x2x64xf32>,
    %c7_i32_267 = arith.constant 7 : i32
    %497 = arith.subi %c7_i32_267, %c5_i32 : i32
    %498 = arith.index_cast %497 : i32 to index
    %c0_268 = arith.constant 0 : index
    %c0_269 = arith.constant 0 : index
    %499 = vector.load %arg0[%498, %c0_268, %c0_269] : memref<8x2x128xf32, #tpu.memory_space<vmem>>, vector<1x2x128xf32>
    %500 = vector.shape_cast %499 : vector<1x2x128xf32> to vector<2x128xf32>
    %c0_270 = arith.constant 0 : index
    %c0_271 = arith.constant 0 : index
    %501 = vector.load %arg11[%c0_270, %c0_271] : memref<2x64xf32, #tpu.memory_space<vmem>>, vector<2x64xf32>
    %c0_272 = arith.constant 0 : index
    %c0_273 = arith.constant 0 : index
    %502 = vector.load %arg12[%c0_272, %c0_273] : memref<2x64xf32, #tpu.memory_space<vmem>>, vector<2x64xf32>
    %c0_274 = arith.constant 0 : index
    %c0_275 = arith.constant 0 : index
    %503 = vector.load %arg4[%c0_274, %c0_275] : memref<128x256xf32, #tpu.memory_space<vmem>>, vector<128x256xf32>
    %cst_276 = arith.constant dense<0.000000e+00> : vector<2x256xf32>
    %504 = tpu.matmul %500, %503, %cst_276 {dimension_numbers = #tpu.dot_dimension_numbers<[1], [0], [0], [1], [0, 0, 1, 1], [], []>} : vector<2x128xf32>, vector<128x256xf32>, vector<2x256xf32> -> vector<2x256xf32>
    %c0_277 = arith.constant 0 : index
    %c0_278 = arith.constant 0 : index
    %505 = vector.load %arg5[%c0_277, %c0_278] : memref<64x256xf32, #tpu.memory_space<vmem>>, vector<64x256xf32>
    %cst_279 = arith.constant dense<0.000000e+00> : vector<2x256xf32>
    %506 = tpu.matmul %501, %505, %cst_279 {dimension_numbers = #tpu.dot_dimension_numbers<[1], [0], [0], [1], [0, 0, 1, 1], [], []>} : vector<2x64xf32>, vector<64x256xf32>, vector<2x256xf32> -> vector<2x256xf32>
    %507 = arith.addf %504, %506 : vector<2x256xf32>
    %c0_280 = arith.constant 0 : index
    %c0_281 = arith.constant 0 : index
    %508 = vector.load %arg6[%c0_280, %c0_281] : memref<1x256xf32, #tpu.memory_space<vmem>>, vector<1x256xf32>
    %509 = vector.broadcast %508 : vector<1x256xf32> to vector<2x256xf32>
    %510 = arith.addf %507, %509 : vector<2x256xf32>
    %511 = vector.extract_strided_slice %510 {offsets = [0, 0], sizes = [2, 64], strides = [1, 1]} : vector<2x256xf32> to vector<2x64xf32>
    %512 = arith.negf %511 : vector<2x64xf32>
    %513 = math.exp %512 : vector<2x64xf32>
    %cst_282 = arith.constant 1.000000e+00 : f32
    %514 = vector.broadcast %cst_282 : f32 to vector<2x64xf32>
    %515 = arith.addf %514, %513 : vector<2x64xf32>
    %516 = arith.divf %514, %515 : vector<2x64xf32>
    %517 = vector.extract_strided_slice %510 {offsets = [0, 64], sizes = [2, 64], strides = [1, 1]} : vector<2x256xf32> to vector<2x64xf32>
    %518 = arith.negf %517 : vector<2x64xf32>
    %519 = math.exp %518 : vector<2x64xf32>
    %cst_283 = arith.constant 1.000000e+00 : f32
    %520 = vector.broadcast %cst_283 : f32 to vector<2x64xf32>
    %521 = arith.addf %520, %519 : vector<2x64xf32>
    %522 = arith.divf %520, %521 : vector<2x64xf32>
    %523 = vector.extract_strided_slice %510 {offsets = [0, 128], sizes = [2, 64], strides = [1, 1]} : vector<2x256xf32> to vector<2x64xf32>
    %524 = math.tanh %523 : vector<2x64xf32>
    %525 = vector.extract_strided_slice %510 {offsets = [0, 192], sizes = [2, 64], strides = [1, 1]} : vector<2x256xf32> to vector<2x64xf32>
    %526 = arith.negf %525 : vector<2x64xf32>
    %527 = math.exp %526 : vector<2x64xf32>
    %cst_284 = arith.constant 1.000000e+00 : f32
    %528 = vector.broadcast %cst_284 : f32 to vector<2x64xf32>
    %529 = arith.addf %528, %527 : vector<2x64xf32>
    %530 = arith.divf %528, %529 : vector<2x64xf32>
    %531 = arith.mulf %522, %502 : vector<2x64xf32>
    %532 = arith.mulf %516, %524 : vector<2x64xf32>
    %533 = arith.addf %531, %532 : vector<2x64xf32>
    %534 = math.tanh %533 : vector<2x64xf32>
    %535 = arith.mulf %530, %534 : vector<2x64xf32>
    %c0_285 = arith.constant 0 : index
    %c0_286 = arith.constant 0 : index
    %536 = vector.load %arg11[%c0_285, %c0_286] : memref<2x64xf32, #tpu.memory_space<vmem>>, vector<2x64xf32>
    tpu.vector_store %arg11[%c0_285, %c0_286], %535 {strides = array<i32>} : memref<2x64xf32, #tpu.memory_space<vmem>>, vector<2x64xf32>,
    %c0_287 = arith.constant 0 : index
    %c0_288 = arith.constant 0 : index
    %537 = vector.load %arg12[%c0_287, %c0_288] : memref<2x64xf32, #tpu.memory_space<vmem>>, vector<2x64xf32>
    tpu.vector_store %arg12[%c0_287, %c0_288], %533 {strides = array<i32>} : memref<2x64xf32, #tpu.memory_space<vmem>>, vector<2x64xf32>,
    %538 = arith.index_cast %497 : i32 to index
    %c0_289 = arith.constant 0 : index
    %c0_290 = arith.constant 0 : index
    %539 = vector.load %arg8[%538, %c0_289, %c0_290] : memref<8x2x64xf32, #tpu.memory_space<vmem>>, vector<1x2x64xf32>
    %540 = vector.shape_cast %539 : vector<1x2x64xf32> to vector<2x64xf32>
    %541 = vector.shape_cast %535 : vector<2x64xf32> to vector<1x2x64xf32>
    tpu.vector_store %arg8[%538, %c0_289, %c0_290], %541 {strides = array<i32>} : memref<8x2x64xf32, #tpu.memory_space<vmem>>, vector<1x2x64xf32>,
    %c6_i32 = arith.constant 6 : i32
    %542 = arith.index_cast %c6_i32 : i32 to index
    %c0_291 = arith.constant 0 : index
    %c0_292 = arith.constant 0 : index
    %543 = vector.load %arg0[%542, %c0_291, %c0_292] : memref<8x2x128xf32, #tpu.memory_space<vmem>>, vector<1x2x128xf32>
    %544 = vector.shape_cast %543 : vector<1x2x128xf32> to vector<2x128xf32>
    %c0_293 = arith.constant 0 : index
    %c0_294 = arith.constant 0 : index
    %545 = vector.load %arg9[%c0_293, %c0_294] : memref<2x64xf32, #tpu.memory_space<vmem>>, vector<2x64xf32>
    %c0_295 = arith.constant 0 : index
    %c0_296 = arith.constant 0 : index
    %546 = vector.load %arg10[%c0_295, %c0_296] : memref<2x64xf32, #tpu.memory_space<vmem>>, vector<2x64xf32>
    %c0_297 = arith.constant 0 : index
    %c0_298 = arith.constant 0 : index
    %547 = vector.load %arg1[%c0_297, %c0_298] : memref<128x256xf32, #tpu.memory_space<vmem>>, vector<128x256xf32>
    %cst_299 = arith.constant dense<0.000000e+00> : vector<2x256xf32>
    %548 = tpu.matmul %544, %547, %cst_299 {dimension_numbers = #tpu.dot_dimension_numbers<[1], [0], [0], [1], [0, 0, 1, 1], [], []>} : vector<2x128xf32>, vector<128x256xf32>, vector<2x256xf32> -> vector<2x256xf32>
    %c0_300 = arith.constant 0 : index
    %c0_301 = arith.constant 0 : index
    %549 = vector.load %arg2[%c0_300, %c0_301] : memref<64x256xf32, #tpu.memory_space<vmem>>, vector<64x256xf32>
    %cst_302 = arith.constant dense<0.000000e+00> : vector<2x256xf32>
    %550 = tpu.matmul %545, %549, %cst_302 {dimension_numbers = #tpu.dot_dimension_numbers<[1], [0], [0], [1], [0, 0, 1, 1], [], []>} : vector<2x64xf32>, vector<64x256xf32>, vector<2x256xf32> -> vector<2x256xf32>
    %551 = arith.addf %548, %550 : vector<2x256xf32>
    %c0_303 = arith.constant 0 : index
    %c0_304 = arith.constant 0 : index
    %552 = vector.load %arg3[%c0_303, %c0_304] : memref<1x256xf32, #tpu.memory_space<vmem>>, vector<1x256xf32>
    %553 = vector.broadcast %552 : vector<1x256xf32> to vector<2x256xf32>
    %554 = arith.addf %551, %553 : vector<2x256xf32>
    %555 = vector.extract_strided_slice %554 {offsets = [0, 0], sizes = [2, 64], strides = [1, 1]} : vector<2x256xf32> to vector<2x64xf32>
    %556 = arith.negf %555 : vector<2x64xf32>
    %557 = math.exp %556 : vector<2x64xf32>
    %cst_305 = arith.constant 1.000000e+00 : f32
    %558 = vector.broadcast %cst_305 : f32 to vector<2x64xf32>
    %559 = arith.addf %558, %557 : vector<2x64xf32>
    %560 = arith.divf %558, %559 : vector<2x64xf32>
    %561 = vector.extract_strided_slice %554 {offsets = [0, 64], sizes = [2, 64], strides = [1, 1]} : vector<2x256xf32> to vector<2x64xf32>
    %562 = arith.negf %561 : vector<2x64xf32>
    %563 = math.exp %562 : vector<2x64xf32>
    %cst_306 = arith.constant 1.000000e+00 : f32
    %564 = vector.broadcast %cst_306 : f32 to vector<2x64xf32>
    %565 = arith.addf %564, %563 : vector<2x64xf32>
    %566 = arith.divf %564, %565 : vector<2x64xf32>
    %567 = vector.extract_strided_slice %554 {offsets = [0, 128], sizes = [2, 64], strides = [1, 1]} : vector<2x256xf32> to vector<2x64xf32>
    %568 = math.tanh %567 : vector<2x64xf32>
    %569 = vector.extract_strided_slice %554 {offsets = [0, 192], sizes = [2, 64], strides = [1, 1]} : vector<2x256xf32> to vector<2x64xf32>
    %570 = arith.negf %569 : vector<2x64xf32>
    %571 = math.exp %570 : vector<2x64xf32>
    %cst_307 = arith.constant 1.000000e+00 : f32
    %572 = vector.broadcast %cst_307 : f32 to vector<2x64xf32>
    %573 = arith.addf %572, %571 : vector<2x64xf32>
    %574 = arith.divf %572, %573 : vector<2x64xf32>
    %575 = arith.mulf %566, %546 : vector<2x64xf32>
    %576 = arith.mulf %560, %568 : vector<2x64xf32>
    %577 = arith.addf %575, %576 : vector<2x64xf32>
    %578 = math.tanh %577 : vector<2x64xf32>
    %579 = arith.mulf %574, %578 : vector<2x64xf32>
    %c0_308 = arith.constant 0 : index
    %c0_309 = arith.constant 0 : index
    %580 = vector.load %arg9[%c0_308, %c0_309] : memref<2x64xf32, #tpu.memory_space<vmem>>, vector<2x64xf32>
    tpu.vector_store %arg9[%c0_308, %c0_309], %579 {strides = array<i32>} : memref<2x64xf32, #tpu.memory_space<vmem>>, vector<2x64xf32>,
    %c0_310 = arith.constant 0 : index
    %c0_311 = arith.constant 0 : index
    %581 = vector.load %arg10[%c0_310, %c0_311] : memref<2x64xf32, #tpu.memory_space<vmem>>, vector<2x64xf32>
    tpu.vector_store %arg10[%c0_310, %c0_311], %577 {strides = array<i32>} : memref<2x64xf32, #tpu.memory_space<vmem>>, vector<2x64xf32>,
    %582 = arith.index_cast %c6_i32 : i32 to index
    %c0_312 = arith.constant 0 : index
    %c0_313 = arith.constant 0 : index
    %583 = vector.load %arg7[%582, %c0_312, %c0_313] : memref<8x2x64xf32, #tpu.memory_space<vmem>>, vector<1x2x64xf32>
    %584 = vector.shape_cast %583 : vector<1x2x64xf32> to vector<2x64xf32>
    %585 = vector.shape_cast %579 : vector<2x64xf32> to vector<1x2x64xf32>
    tpu.vector_store %arg7[%582, %c0_312, %c0_313], %585 {strides = array<i32>} : memref<8x2x64xf32, #tpu.memory_space<vmem>>, vector<1x2x64xf32>,
    %c7_i32_314 = arith.constant 7 : i32
    %586 = arith.subi %c7_i32_314, %c6_i32 : i32
    %587 = arith.index_cast %586 : i32 to index
    %c0_315 = arith.constant 0 : index
    %c0_316 = arith.constant 0 : index
    %588 = vector.load %arg0[%587, %c0_315, %c0_316] : memref<8x2x128xf32, #tpu.memory_space<vmem>>, vector<1x2x128xf32>
    %589 = vector.shape_cast %588 : vector<1x2x128xf32> to vector<2x128xf32>
    %c0_317 = arith.constant 0 : index
    %c0_318 = arith.constant 0 : index
    %590 = vector.load %arg11[%c0_317, %c0_318] : memref<2x64xf32, #tpu.memory_space<vmem>>, vector<2x64xf32>
    %c0_319 = arith.constant 0 : index
    %c0_320 = arith.constant 0 : index
    %591 = vector.load %arg12[%c0_319, %c0_320] : memref<2x64xf32, #tpu.memory_space<vmem>>, vector<2x64xf32>
    %c0_321 = arith.constant 0 : index
    %c0_322 = arith.constant 0 : index
    %592 = vector.load %arg4[%c0_321, %c0_322] : memref<128x256xf32, #tpu.memory_space<vmem>>, vector<128x256xf32>
    %cst_323 = arith.constant dense<0.000000e+00> : vector<2x256xf32>
    %593 = tpu.matmul %589, %592, %cst_323 {dimension_numbers = #tpu.dot_dimension_numbers<[1], [0], [0], [1], [0, 0, 1, 1], [], []>} : vector<2x128xf32>, vector<128x256xf32>, vector<2x256xf32> -> vector<2x256xf32>
    %c0_324 = arith.constant 0 : index
    %c0_325 = arith.constant 0 : index
    %594 = vector.load %arg5[%c0_324, %c0_325] : memref<64x256xf32, #tpu.memory_space<vmem>>, vector<64x256xf32>
    %cst_326 = arith.constant dense<0.000000e+00> : vector<2x256xf32>
    %595 = tpu.matmul %590, %594, %cst_326 {dimension_numbers = #tpu.dot_dimension_numbers<[1], [0], [0], [1], [0, 0, 1, 1], [], []>} : vector<2x64xf32>, vector<64x256xf32>, vector<2x256xf32> -> vector<2x256xf32>
    %596 = arith.addf %593, %595 : vector<2x256xf32>
    %c0_327 = arith.constant 0 : index
    %c0_328 = arith.constant 0 : index
    %597 = vector.load %arg6[%c0_327, %c0_328] : memref<1x256xf32, #tpu.memory_space<vmem>>, vector<1x256xf32>
    %598 = vector.broadcast %597 : vector<1x256xf32> to vector<2x256xf32>
    %599 = arith.addf %596, %598 : vector<2x256xf32>
    %600 = vector.extract_strided_slice %599 {offsets = [0, 0], sizes = [2, 64], strides = [1, 1]} : vector<2x256xf32> to vector<2x64xf32>
    %601 = arith.negf %600 : vector<2x64xf32>
    %602 = math.exp %601 : vector<2x64xf32>
    %cst_329 = arith.constant 1.000000e+00 : f32
    %603 = vector.broadcast %cst_329 : f32 to vector<2x64xf32>
    %604 = arith.addf %603, %602 : vector<2x64xf32>
    %605 = arith.divf %603, %604 : vector<2x64xf32>
    %606 = vector.extract_strided_slice %599 {offsets = [0, 64], sizes = [2, 64], strides = [1, 1]} : vector<2x256xf32> to vector<2x64xf32>
    %607 = arith.negf %606 : vector<2x64xf32>
    %608 = math.exp %607 : vector<2x64xf32>
    %cst_330 = arith.constant 1.000000e+00 : f32
    %609 = vector.broadcast %cst_330 : f32 to vector<2x64xf32>
    %610 = arith.addf %609, %608 : vector<2x64xf32>
    %611 = arith.divf %609, %610 : vector<2x64xf32>
    %612 = vector.extract_strided_slice %599 {offsets = [0, 128], sizes = [2, 64], strides = [1, 1]} : vector<2x256xf32> to vector<2x64xf32>
    %613 = math.tanh %612 : vector<2x64xf32>
    %614 = vector.extract_strided_slice %599 {offsets = [0, 192], sizes = [2, 64], strides = [1, 1]} : vector<2x256xf32> to vector<2x64xf32>
    %615 = arith.negf %614 : vector<2x64xf32>
    %616 = math.exp %615 : vector<2x64xf32>
    %cst_331 = arith.constant 1.000000e+00 : f32
    %617 = vector.broadcast %cst_331 : f32 to vector<2x64xf32>
    %618 = arith.addf %617, %616 : vector<2x64xf32>
    %619 = arith.divf %617, %618 : vector<2x64xf32>
    %620 = arith.mulf %611, %591 : vector<2x64xf32>
    %621 = arith.mulf %605, %613 : vector<2x64xf32>
    %622 = arith.addf %620, %621 : vector<2x64xf32>
    %623 = math.tanh %622 : vector<2x64xf32>
    %624 = arith.mulf %619, %623 : vector<2x64xf32>
    %c0_332 = arith.constant 0 : index
    %c0_333 = arith.constant 0 : index
    %625 = vector.load %arg11[%c0_332, %c0_333] : memref<2x64xf32, #tpu.memory_space<vmem>>, vector<2x64xf32>
    tpu.vector_store %arg11[%c0_332, %c0_333], %624 {strides = array<i32>} : memref<2x64xf32, #tpu.memory_space<vmem>>, vector<2x64xf32>,
    %c0_334 = arith.constant 0 : index
    %c0_335 = arith.constant 0 : index
    %626 = vector.load %arg12[%c0_334, %c0_335] : memref<2x64xf32, #tpu.memory_space<vmem>>, vector<2x64xf32>
    tpu.vector_store %arg12[%c0_334, %c0_335], %622 {strides = array<i32>} : memref<2x64xf32, #tpu.memory_space<vmem>>, vector<2x64xf32>,
    %627 = arith.index_cast %586 : i32 to index
    %c0_336 = arith.constant 0 : index
    %c0_337 = arith.constant 0 : index
    %628 = vector.load %arg8[%627, %c0_336, %c0_337] : memref<8x2x64xf32, #tpu.memory_space<vmem>>, vector<1x2x64xf32>
    %629 = vector.shape_cast %628 : vector<1x2x64xf32> to vector<2x64xf32>
    %630 = vector.shape_cast %624 : vector<2x64xf32> to vector<1x2x64xf32>
    tpu.vector_store %arg8[%627, %c0_336, %c0_337], %630 {strides = array<i32>} : memref<8x2x64xf32, #tpu.memory_space<vmem>>, vector<1x2x64xf32>,
    %c7_i32_338 = arith.constant 7 : i32
    %631 = arith.index_cast %c7_i32_338 : i32 to index
    %c0_339 = arith.constant 0 : index
    %c0_340 = arith.constant 0 : index
    %632 = vector.load %arg0[%631, %c0_339, %c0_340] : memref<8x2x128xf32, #tpu.memory_space<vmem>>, vector<1x2x128xf32>
    %633 = vector.shape_cast %632 : vector<1x2x128xf32> to vector<2x128xf32>
    %c0_341 = arith.constant 0 : index
    %c0_342 = arith.constant 0 : index
    %634 = vector.load %arg9[%c0_341, %c0_342] : memref<2x64xf32, #tpu.memory_space<vmem>>, vector<2x64xf32>
    %c0_343 = arith.constant 0 : index
    %c0_344 = arith.constant 0 : index
    %635 = vector.load %arg10[%c0_343, %c0_344] : memref<2x64xf32, #tpu.memory_space<vmem>>, vector<2x64xf32>
    %c0_345 = arith.constant 0 : index
    %c0_346 = arith.constant 0 : index
    %636 = vector.load %arg1[%c0_345, %c0_346] : memref<128x256xf32, #tpu.memory_space<vmem>>, vector<128x256xf32>
    %cst_347 = arith.constant dense<0.000000e+00> : vector<2x256xf32>
    %637 = tpu.matmul %633, %636, %cst_347 {dimension_numbers = #tpu.dot_dimension_numbers<[1], [0], [0], [1], [0, 0, 1, 1], [], []>} : vector<2x128xf32>, vector<128x256xf32>, vector<2x256xf32> -> vector<2x256xf32>
    %c0_348 = arith.constant 0 : index
    %c0_349 = arith.constant 0 : index
    %638 = vector.load %arg2[%c0_348, %c0_349] : memref<64x256xf32, #tpu.memory_space<vmem>>, vector<64x256xf32>
    %cst_350 = arith.constant dense<0.000000e+00> : vector<2x256xf32>
    %639 = tpu.matmul %634, %638, %cst_350 {dimension_numbers = #tpu.dot_dimension_numbers<[1], [0], [0], [1], [0, 0, 1, 1], [], []>} : vector<2x64xf32>, vector<64x256xf32>, vector<2x256xf32> -> vector<2x256xf32>
    %640 = arith.addf %637, %639 : vector<2x256xf32>
    %c0_351 = arith.constant 0 : index
    %c0_352 = arith.constant 0 : index
    %641 = vector.load %arg3[%c0_351, %c0_352] : memref<1x256xf32, #tpu.memory_space<vmem>>, vector<1x256xf32>
    %642 = vector.broadcast %641 : vector<1x256xf32> to vector<2x256xf32>
    %643 = arith.addf %640, %642 : vector<2x256xf32>
    %644 = vector.extract_strided_slice %643 {offsets = [0, 0], sizes = [2, 64], strides = [1, 1]} : vector<2x256xf32> to vector<2x64xf32>
    %645 = arith.negf %644 : vector<2x64xf32>
    %646 = math.exp %645 : vector<2x64xf32>
    %cst_353 = arith.constant 1.000000e+00 : f32
    %647 = vector.broadcast %cst_353 : f32 to vector<2x64xf32>
    %648 = arith.addf %647, %646 : vector<2x64xf32>
    %649 = arith.divf %647, %648 : vector<2x64xf32>
    %650 = vector.extract_strided_slice %643 {offsets = [0, 64], sizes = [2, 64], strides = [1, 1]} : vector<2x256xf32> to vector<2x64xf32>
    %651 = arith.negf %650 : vector<2x64xf32>
    %652 = math.exp %651 : vector<2x64xf32>
    %cst_354 = arith.constant 1.000000e+00 : f32
    %653 = vector.broadcast %cst_354 : f32 to vector<2x64xf32>
    %654 = arith.addf %653, %652 : vector<2x64xf32>
    %655 = arith.divf %653, %654 : vector<2x64xf32>
    %656 = vector.extract_strided_slice %643 {offsets = [0, 128], sizes = [2, 64], strides = [1, 1]} : vector<2x256xf32> to vector<2x64xf32>
    %657 = math.tanh %656 : vector<2x64xf32>
    %658 = vector.extract_strided_slice %643 {offsets = [0, 192], sizes = [2, 64], strides = [1, 1]} : vector<2x256xf32> to vector<2x64xf32>
    %659 = arith.negf %658 : vector<2x64xf32>
    %660 = math.exp %659 : vector<2x64xf32>
    %cst_355 = arith.constant 1.000000e+00 : f32
    %661 = vector.broadcast %cst_355 : f32 to vector<2x64xf32>
    %662 = arith.addf %661, %660 : vector<2x64xf32>
    %663 = arith.divf %661, %662 : vector<2x64xf32>
    %664 = arith.mulf %655, %635 : vector<2x64xf32>
    %665 = arith.mulf %649, %657 : vector<2x64xf32>
    %666 = arith.addf %664, %665 : vector<2x64xf32>
    %667 = math.tanh %666 : vector<2x64xf32>
    %668 = arith.mulf %663, %667 : vector<2x64xf32>
    %c0_356 = arith.constant 0 : index
    %c0_357 = arith.constant 0 : index
    %669 = vector.load %arg9[%c0_356, %c0_357] : memref<2x64xf32, #tpu.memory_space<vmem>>, vector<2x64xf32>
    tpu.vector_store %arg9[%c0_356, %c0_357], %668 {strides = array<i32>} : memref<2x64xf32, #tpu.memory_space<vmem>>, vector<2x64xf32>,
    %c0_358 = arith.constant 0 : index
    %c0_359 = arith.constant 0 : index
    %670 = vector.load %arg10[%c0_358, %c0_359] : memref<2x64xf32, #tpu.memory_space<vmem>>, vector<2x64xf32>
    tpu.vector_store %arg10[%c0_358, %c0_359], %666 {strides = array<i32>} : memref<2x64xf32, #tpu.memory_space<vmem>>, vector<2x64xf32>,
    %671 = arith.index_cast %c7_i32_338 : i32 to index
    %c0_360 = arith.constant 0 : index
    %c0_361 = arith.constant 0 : index
    %672 = vector.load %arg7[%671, %c0_360, %c0_361] : memref<8x2x64xf32, #tpu.memory_space<vmem>>, vector<1x2x64xf32>
    %673 = vector.shape_cast %672 : vector<1x2x64xf32> to vector<2x64xf32>
    %674 = vector.shape_cast %668 : vector<2x64xf32> to vector<1x2x64xf32>
    tpu.vector_store %arg7[%671, %c0_360, %c0_361], %674 {strides = array<i32>} : memref<8x2x64xf32, #tpu.memory_space<vmem>>, vector<1x2x64xf32>,
    %c7_i32_362 = arith.constant 7 : i32
    %675 = arith.subi %c7_i32_362, %c7_i32_338 : i32
    %676 = arith.index_cast %675 : i32 to index
    %c0_363 = arith.constant 0 : index
    %c0_364 = arith.constant 0 : index
    %677 = vector.load %arg0[%676, %c0_363, %c0_364] : memref<8x2x128xf32, #tpu.memory_space<vmem>>, vector<1x2x128xf32>
    %678 = vector.shape_cast %677 : vector<1x2x128xf32> to vector<2x128xf32>
    %c0_365 = arith.constant 0 : index
    %c0_366 = arith.constant 0 : index
    %679 = vector.load %arg11[%c0_365, %c0_366] : memref<2x64xf32, #tpu.memory_space<vmem>>, vector<2x64xf32>
    %c0_367 = arith.constant 0 : index
    %c0_368 = arith.constant 0 : index
    %680 = vector.load %arg12[%c0_367, %c0_368] : memref<2x64xf32, #tpu.memory_space<vmem>>, vector<2x64xf32>
    %c0_369 = arith.constant 0 : index
    %c0_370 = arith.constant 0 : index
    %681 = vector.load %arg4[%c0_369, %c0_370] : memref<128x256xf32, #tpu.memory_space<vmem>>, vector<128x256xf32>
    %cst_371 = arith.constant dense<0.000000e+00> : vector<2x256xf32>
    %682 = tpu.matmul %678, %681, %cst_371 {dimension_numbers = #tpu.dot_dimension_numbers<[1], [0], [0], [1], [0, 0, 1, 1], [], []>} : vector<2x128xf32>, vector<128x256xf32>, vector<2x256xf32> -> vector<2x256xf32>
    %c0_372 = arith.constant 0 : index
    %c0_373 = arith.constant 0 : index
    %683 = vector.load %arg5[%c0_372, %c0_373] : memref<64x256xf32, #tpu.memory_space<vmem>>, vector<64x256xf32>
    %cst_374 = arith.constant dense<0.000000e+00> : vector<2x256xf32>
    %684 = tpu.matmul %679, %683, %cst_374 {dimension_numbers = #tpu.dot_dimension_numbers<[1], [0], [0], [1], [0, 0, 1, 1], [], []>} : vector<2x64xf32>, vector<64x256xf32>, vector<2x256xf32> -> vector<2x256xf32>
    %685 = arith.addf %682, %684 : vector<2x256xf32>
    %c0_375 = arith.constant 0 : index
    %c0_376 = arith.constant 0 : index
    %686 = vector.load %arg6[%c0_375, %c0_376] : memref<1x256xf32, #tpu.memory_space<vmem>>, vector<1x256xf32>
    %687 = vector.broadcast %686 : vector<1x256xf32> to vector<2x256xf32>
    %688 = arith.addf %685, %687 : vector<2x256xf32>
    %689 = vector.extract_strided_slice %688 {offsets = [0, 0], sizes = [2, 64], strides = [1, 1]} : vector<2x256xf32> to vector<2x64xf32>
    %690 = arith.negf %689 : vector<2x64xf32>
    %691 = math.exp %690 : vector<2x64xf32>
    %cst_377 = arith.constant 1.000000e+00 : f32
    %692 = vector.broadcast %cst_377 : f32 to vector<2x64xf32>
    %693 = arith.addf %692, %691 : vector<2x64xf32>
    %694 = arith.divf %692, %693 : vector<2x64xf32>
    %695 = vector.extract_strided_slice %688 {offsets = [0, 64], sizes = [2, 64], strides = [1, 1]} : vector<2x256xf32> to vector<2x64xf32>
    %696 = arith.negf %695 : vector<2x64xf32>
    %697 = math.exp %696 : vector<2x64xf32>
    %cst_378 = arith.constant 1.000000e+00 : f32
    %698 = vector.broadcast %cst_378 : f32 to vector<2x64xf32>
    %699 = arith.addf %698, %697 : vector<2x64xf32>
    %700 = arith.divf %698, %699 : vector<2x64xf32>
    %701 = vector.extract_strided_slice %688 {offsets = [0, 128], sizes = [2, 64], strides = [1, 1]} : vector<2x256xf32> to vector<2x64xf32>
    %702 = math.tanh %701 : vector<2x64xf32>
    %703 = vector.extract_strided_slice %688 {offsets = [0, 192], sizes = [2, 64], strides = [1, 1]} : vector<2x256xf32> to vector<2x64xf32>
    %704 = arith.negf %703 : vector<2x64xf32>
    %705 = math.exp %704 : vector<2x64xf32>
    %cst_379 = arith.constant 1.000000e+00 : f32
    %706 = vector.broadcast %cst_379 : f32 to vector<2x64xf32>
    %707 = arith.addf %706, %705 : vector<2x64xf32>
    %708 = arith.divf %706, %707 : vector<2x64xf32>
    %709 = arith.mulf %700, %680 : vector<2x64xf32>
    %710 = arith.mulf %694, %702 : vector<2x64xf32>
    %711 = arith.addf %709, %710 : vector<2x64xf32>
    %712 = math.tanh %711 : vector<2x64xf32>
    %713 = arith.mulf %708, %712 : vector<2x64xf32>
    %c0_380 = arith.constant 0 : index
    %c0_381 = arith.constant 0 : index
    %714 = vector.load %arg11[%c0_380, %c0_381] : memref<2x64xf32, #tpu.memory_space<vmem>>, vector<2x64xf32>
    tpu.vector_store %arg11[%c0_380, %c0_381], %713 {strides = array<i32>} : memref<2x64xf32, #tpu.memory_space<vmem>>, vector<2x64xf32>,
    %c0_382 = arith.constant 0 : index
    %c0_383 = arith.constant 0 : index
    %715 = vector.load %arg12[%c0_382, %c0_383] : memref<2x64xf32, #tpu.memory_space<vmem>>, vector<2x64xf32>
    tpu.vector_store %arg12[%c0_382, %c0_383], %711 {strides = array<i32>} : memref<2x64xf32, #tpu.memory_space<vmem>>, vector<2x64xf32>,
    %716 = arith.index_cast %675 : i32 to index
    %c0_384 = arith.constant 0 : index
    %c0_385 = arith.constant 0 : index
    %717 = vector.load %arg8[%716, %c0_384, %c0_385] : memref<8x2x64xf32, #tpu.memory_space<vmem>>, vector<1x2x64xf32>
    %718 = vector.shape_cast %717 : vector<1x2x64xf32> to vector<2x64xf32>
    %719 = vector.shape_cast %713 : vector<2x64xf32> to vector<1x2x64xf32>
    tpu.vector_store %arg8[%716, %c0_384, %c0_385], %719 {strides = array<i32>} : memref<8x2x64xf32, #tpu.memory_space<vmem>>, vector<1x2x64xf32>,
    %c8_i32 = arith.constant 8 : i32
    return
  }
}

</mosaic_0001>

<bundles_post_ra>
// kernel: lstm_ae_forward.2
= control target key start
LH: loop header
LB: loop body
LE: loop exit
PB: predicated region body
PF: predicated region fallthrough
CT: control target
= control target key end

     0   :  { %14 = vsyncpa [#allocation7], 0  ;;  %s5230_s0 = inlined_call_operand.vmem [shape: f32[8,2,4], index: 0, kind: input, shape index: {}]   ;;  %s5231_s1 = inlined_call_operand.hbm [shape: f32[4,256], index: 1, kind: input, shape index: {}]   ;;  %s5232_s2 = inlined_call_operand.hbm [shape: f32[64,256], index: 2, kind: input, shape index: {}]   ;;  %s5233_s3 = inlined_call_operand.hbm [shape: f32[1,256], index: 3, kind: input, shape index: {}]   ;;  %s5234_s4 = inlined_call_operand.hbm [shape: f32[4,256], index: 4, kind: input, shape index: {}]   ;;  %s5235_s5 = inlined_call_operand.hbm [shape: f32[64,256], index: 5, kind: input, shape index: {}]   ;;  %s5236_s6 = inlined_call_operand.hbm [shape: f32[1,256], index: 6, kind: input, shape index: {}]   ;;  %s5237_s7 = inlined_call_operand.vmem [shape: f32[8,2,64], index: 7, kind: output, shape index: {0}]   ;;  %s5238_s8 = inlined_call_operand.vmem [shape: f32[8,2,64], index: 8, kind: output, shape index: {1}]  }
   0x1   :  { %15 = vsyncpa [#allocation9], 0 }
   0x2   :  { %16 = vsyncpa [#allocation12], 0 }
   0x3   :  { %17 = vsyncpa [#allocation15], 0  ;;  %s4501_s27 = smov [#allocation8]   ;;  %s4361_s9 = scalar_lea.hbm %s5232_s2, 2048 }
   0x4   :  { %s35_s28 = sshll.u32 %s4501_s27, 4  ;;  %p4362_p0 = scmp.ne.s32.totalorder %s5232_s2, %s4361_s9  ;;  %s36_s28 = int_to_ptr.vmem [resolvable:$true] %s35_s28 }
   0x5   :  { %p4365_p1 = scmp.lt.u32.totalorder %s4361_s9, %s5232_s2 }
   0x7   :  { %p4367_p2 = pnand %p4365_p1, %p4362_p0 }
   0x9   :  { %4370 = shalt.err (!%p4367_p2)
}
   0xa   :  { %s4371_s14 = scalar_lea.vmem %s36_s28, 2048  ;;  %p4376_p4 = scmp.lt.s32.totalorder %s36_s28, %s36_s28 }
   0xb   :  { %p4372_p3 = scmp.ne.s32.totalorder %s36_s28, %s4371_s14  ;;  %p4377_p5 = scmp.lt.s32.totalorder %s4371_s14, %s4371_s14 }
   0xd   :  { %p4378_p6 = por %p4377_p5, %p4376_p4 }
   0xf   :  { %p4379_p7 = pnand %p4378_p6, %p4372_p3 }
  0x11   :  { %4382 = shalt.err (!%p4379_p7)
}
  0x12   :  { %s4502_s15 = smov 256   ;;  %s4503_s16 = smov 16  }
  0x13   :  { %41 = dma.hbm_to_vmem [thread:$0]  %s5232_s2, 2048, %s36_s28, [#allocation9], %s4502_s15, %s4502_s15, %s4503_s16  }
  0x14   :  { %s4504_s19 = smov [#allocation11]   ;;  %s4505_s21 = smov [#allocation6]  }
  0x15   :  { %s58_s20 = sshll.u32 %s4504_s19, 4  ;;  %s26_s22 = sshll.u32 %s4505_s21, 4  ;;  %s59_s20 = int_to_ptr.vmem [resolvable:$true] %s58_s20  ;;  %s27_s22 = int_to_ptr.vmem [resolvable:$true] %s26_s22 }
  0x16   :  { %s4383_s25 = scalar_lea.hbm %s5234_s4, 128 }
  0x17   :  { %p4384_p8 = scmp.ne.s32.totalorder %s5234_s4, %s4383_s25  ;;  %p4387_p9 = scmp.lt.u32.totalorder %s4383_s25, %s5234_s4 }
  0x19   :  { %p4389_p10 = pnand %p4387_p9, %p4384_p8 }
  0x1b   :  { %4392 = shalt.err (!%p4389_p10)
}
  0x1c   :  { %s4393_s2 = scalar_lea.vmem %s59_s20, 128  ;;  %p4398_p12 = scmp.lt.s32.totalorder %s59_s20, %s59_s20 }
  0x1d   :  { %p4394_p11 = scmp.ne.s32.totalorder %s59_s20, %s4393_s2  ;;  %p4399_p13 = scmp.lt.s32.totalorder %s4393_s2, %s4393_s2 }
  0x1f   :  { %p4400_p0 = por %p4399_p13, %p4398_p12 }
  0x21   :  { %p4401_p1 = pnand %p4400_p0, %p4394_p11 }
  0x23   :  { %4404 = shalt.err (!%p4401_p1)
}
  0x24   :  { %61 = dma.hbm_to_vmem [thread:$0]  %s5234_s4, 128, %s59_s20, [#allocation12]  }
  0x25   :  { %s4405_s12 = scalar_lea.hbm %s5231_s1, 128 }
  0x26   :  { %p4406_p2 = scmp.ne.s32.totalorder %s5231_s1, %s4405_s12  ;;  %p4409_p3 = scmp.lt.u32.totalorder %s4405_s12, %s5231_s1 }
  0x28   :  { %p4411_p4 = pnand %p4409_p3, %p4406_p2 }
  0x2a   :  { %4414 = shalt.err (!%p4411_p4)
}
  0x2b   :  { %s4415_s19 = scalar_lea.vmem %s27_s22, 128  ;;  %p4420_p6 = scmp.lt.s32.totalorder %s27_s22, %s27_s22 }
  0x2c   :  { %p4416_p5 = scmp.ne.s32.totalorder %s27_s22, %s4415_s19  ;;  %p4421_p7 = scmp.lt.s32.totalorder %s4415_s19, %s4415_s19 }
  0x2e   :  { %p4422_p8 = por %p4421_p7, %p4420_p6 }
  0x30   :  { %p4423_p9 = pnand %p4422_p8, %p4416_p5 }
  0x32   :  { %4426 = shalt.err (!%p4423_p9)
}
  0x33   :  { %29 = dma.hbm_to_vmem [thread:$0]  %s5231_s1, 128, %s27_s22, [#allocation7]  }
  0x34   :  { %s4506_s21 = smov [#allocation10]   ;;  %s4507_s24 = smov [#allocation13]  }
  0x35   :  { %s48_s23 = sshll.u32 %s4506_s21, 4  ;;  %s67_s25 = sshll.u32 %s4507_s24, 4  ;;  %s49_s23 = int_to_ptr.vmem [resolvable:$true] %s48_s23  ;;  %s68_s25 = int_to_ptr.vmem [resolvable:$true] %s67_s25 }
  0x36   :  { %s4427_s29 = scalar_lea.hbm %s5233_s3, 32 }
  0x37   :  { %p4428_p10 = scmp.ne.s32.totalorder %s5233_s3, %s4427_s29  ;;  %p4431_p11 = scmp.lt.u32.totalorder %s4427_s29, %s5233_s3 }
  0x39   :  { %p4433_p12 = pnand %p4431_p11, %p4428_p10 }
  0x3b   :  { %4436 = shalt.err (!%p4433_p12)
}
  0x3c   :  { %s4437_s1 = scalar_lea.vmem %s49_s23, 32  ;;  %p4442_p0 = scmp.lt.s32.totalorder %s49_s23, %s49_s23 }
  0x3d   :  { %p4438_p13 = scmp.ne.s32.totalorder %s49_s23, %s4437_s1  ;;  %p4443_p1 = scmp.lt.s32.totalorder %s4437_s1, %s4437_s1 }
  0x3f   :  { %p4444_p2 = por %p4443_p1, %p4442_p0 }
  0x41   :  { %p4445_p3 = pnand %p4444_p2, %p4438_p13 }
  0x43   :  { %4448 = shalt.err (!%p4445_p3)
}
  0x44   :  { %51 = dma.hbm_to_vmem [thread:$0]  %s5233_s3, 32, %s49_s23, [#allocation9]  }
  0x45   :  { %s4449_s13 = scalar_lea.hbm %s5235_s5, 2048 }
  0x46   :  { %p4450_p4 = scmp.ne.s32.totalorder %s5235_s5, %s4449_s13  ;;  %p4453_p5 = scmp.lt.u32.totalorder %s4449_s13, %s5235_s5 }
  0x48   :  { %p4455_p6 = pnand %p4453_p5, %p4450_p4 }
  0x4a   :  { %4458 = shalt.err (!%p4455_p6)
}
  0x4b   :  { %s4459_s4 = scalar_lea.vmem %s68_s25, 2048  ;;  %p4464_p8 = scmp.lt.s32.totalorder %s68_s25, %s68_s25 }
  0x4c   :  { %p4460_p7 = scmp.ne.s32.totalorder %s68_s25, %s4459_s4  ;;  %p4465_p9 = scmp.lt.s32.totalorder %s4459_s4, %s4459_s4 }
  0x4e   :  { %p4466_p10 = por %p4465_p9, %p4464_p8 }
  0x50   :  { %p4467_p11 = pnand %p4466_p10, %p4460_p7 }
  0x52   :  { %4470 = shalt.err (!%p4467_p11)
}
  0x53   :  { %73 = dma.hbm_to_vmem [thread:$0]  %s5235_s5, 2048, %s68_s25, [#allocation12], %s4502_s15, %s4502_s15, %s4503_s16  }
  0x54   :  { %s4508_s21 = smov [#allocation14]   ;;  %s4471_s27 = scalar_lea.hbm %s5236_s6, 32 }
  0x55   :  { %s80_s23 = sshll.u32 %s4508_s21, 4  ;;  %p4472_p12 = scmp.ne.s32.totalorder %s5236_s6, %s4471_s27  ;;  %s81_s23 = int_to_ptr.vmem [resolvable:$true] %s80_s23 }
  0x56   :  { %p4475_p13 = scmp.lt.u32.totalorder %s4471_s27, %s5236_s6 }
  0x58   :  { %p4477_p0 = pnand %p4475_p13, %p4472_p12 }
  0x5a   :  { %4480 = shalt.err (!%p4477_p0)
}
  0x5b   :  { %s4481_s9 = scalar_lea.vmem %s81_s23, 32  ;;  %p4486_p2 = scmp.lt.s32.totalorder %s81_s23, %s81_s23 }
  0x5c   :  { %p4482_p1 = scmp.ne.s32.totalorder %s81_s23, %s4481_s9  ;;  %p4487_p3 = scmp.lt.s32.totalorder %s4481_s9, %s4481_s9 }
  0x5e   :  { %p4488_p4 = por %p4487_p3, %p4486_p2 }
  0x60   :  { %p4489_p5 = pnand %p4488_p4, %p4482_p1 }
  0x62   :  { %4492 = shalt.err (!%p4489_p5)
}
  0x63   :  { %83 = dma.hbm_to_vmem [thread:$0]  %s5236_s6, 32, %s81_s23, [#allocation15]  }
  0x64   :  { %4493 = dma.done.wait [#allocation7], 128  }
  0x65   :  { %4494 = vsyncadd [#allocation7], 4294967168 }
  0x66   :  { %4495 = dma.done.wait [#allocation9], 2080  }
  0x67   :  { %4496 = vsyncadd [#allocation9], 4294965216 }
  0x68   :  { %4497 = dma.done.wait [#allocation12], 2176  }
  0x69   :  { %4498 = vsyncadd [#allocation12], 4294965120 }
  0x6a   :  { %4499 = dma.done.wait [#allocation15], 32  }
  0x6b   :  { %4500 = vsyncadd [#allocation15], 4294967264  ;;  %vm102_vm0 = vcmask 517120   ;;  %v4509_v0 = vmov 0.0   ;;  %v112_v1 = vld [vmem:[#allocation8 + $0x8] sm:$0xff]  ;;  %v114_v2 = vld [vmem:[#allocation8 + $0x18] sm:$0xff]  ;;  %v286_v59 = vlaneseq }
  0x6c   :  { %195 = vmatprep.mubr.f32.mxu0 %v4509_v0  ;;  %423 = vmatprep.mubr.f32.mxu1 %v4509_v0  ;;  %103 = vst.msk [vmem:[#allocation2] sm:$0x3] %vm102_vm0, %v4509_v0  ;;  %104 = vst.msk [vmem:[#allocation3] sm:$0x3] %vm102_vm0, %v4509_v0  ;;  %v341_v3 = vld [vmem:[#allocation13 + $0x8] sm:$0xff]  ;;  %v4644_v4 = vpack.c.bf16 %v114_v2, %v112_v1  ;;  %v343_v5 = vld [vmem:[#allocation13 + $0x18] sm:$0xff] }
  0x6d   :  { %105 = vst.msk [vmem:[#allocation4] sm:$0x3] %vm102_vm0, %v4509_v0  ;;  %106 = vst.msk [vmem:[#allocation5] sm:$0x3] %vm102_vm0, %v4509_v0  ;;  %v111_v6 = vld [vmem:[#allocation8] sm:$0xff]  ;;  %v113_v7 = vld [vmem:[#allocation8 + $0x10] sm:$0xff]  ;;  %v4646_v8 = vpack.c.bf16 %v343_v5, %v341_v3 }
  0x6e   :  { %v4648_v9 = vpack.c.bf16 %v113_v7, %v111_v6  ;;  %v340_v10 = vld [vmem:[#allocation13] sm:$0xff]  ;;  %v342_v11 = vld [vmem:[#allocation13 + $0x10] sm:$0xff]  ;;  %3868 = vmatprep.subr.bf16.mxu0 %v4644_v4  ;;  %v345_v15 = vld [vmem:[#allocation13 + $0x28] sm:$0xff]  ;;  %vm208_vm1 = vcmask 1043456   ;;  %s4510_s6 = smov 64   ;;  %vm127_vm2 = vcmask 523264  }
  0x6f   :  { %v116_v12 = vld [vmem:[#allocation8 + $0x28] sm:$0xff]  ;;  %v4651_v13 = vpack.c.bf16 %v342_v11, %v340_v10  ;;  %v118_v14 = vld [vmem:[#allocation8 + $0x38] sm:$0xff]  ;;  %3884 = vmatprep.subr.bf16.mxu1 %v4646_v8  ;;  %v115_v19 = vld [vmem:[#allocation8 + $0x20] sm:$0xff]  ;;  %vm204_vm3 = vcmask 31744   ;;  %v287_v60 = vshrl.u32 %v286_v59, 7 }
  0x70   :  { %v347_v16 = vld [vmem:[#allocation13 + $0x38] sm:$0xff]  ;;  %3870 = vmatpush1.bf16.msra.mxu0 %v4648_v9  ;;  %v4655_v17 = vpack.c.bf16 %v118_v14, %v116_v12  ;;  %v117_v20 = vld [vmem:[#allocation8 + $0x30] sm:$0xff]  ;;  %v346_v23 = vld [vmem:[#allocation13 + $0x30] sm:$0xff] }
  0x71   :  { %v4657_v18 = vpack.c.bf16 %v347_v16, %v345_v15  ;;  %v344_v21 = vld [vmem:[#allocation13 + $0x20] sm:$0xff]  ;;  %3886 = vmatpush1.bf16.msra.mxu1 %v4651_v13  ;;  %v4660_v22 = vpack.c.bf16 %v117_v20, %v115_v19  ;;  %v122_v25 = vld [vmem:[#allocation8 + $0x58] sm:$0xff]  ;;  %v351_v29 = vld [vmem:[#allocation13 + $0x58] sm:$0xff]  ;;  %v4748_v61 = vsub.s32 0, %v287_v60  ;;  %v4752_v15 = vsub.s32 1, %v287_v60 }
  0x72   :  { %v120_v24 = vld [vmem:[#allocation8 + $0x48] sm:$0xff]  ;;  %3872 = vmatprep.subr.bf16.mxu0 %v4655_v17  ;;  %v4664_v26 = vpack.c.bf16 %v346_v23, %v344_v21  ;;  %v349_v28 = vld [vmem:[#allocation13 + $0x48] sm:$0xff]  ;;  %v119_v30 = vld [vmem:[#allocation8 + $0x40] sm:$0xff] }
  0x73   :  { %3888 = vmatprep.subr.bf16.mxu1 %v4657_v18  ;;  %v4666_v27 = vpack.c.bf16 %v122_v25, %v120_v24  ;;  %v4668_v31 = vpack.c.bf16 %v351_v29, %v349_v28  ;;  %v121_v32 = vld [vmem:[#allocation8 + $0x50] sm:$0xff]  ;;  %v350_v34 = vld [vmem:[#allocation13 + $0x50] sm:$0xff]  ;;  %v124_v36 = vld [vmem:[#allocation8 + $0x68] sm:$0xff] }
  0x74   :  { %v348_v33 = vld [vmem:[#allocation13 + $0x40] sm:$0xff]  ;;  %3874 = vmatpush1.bf16.msra.mxu0 %v4660_v22  ;;  %v4671_v35 = vpack.c.bf16 %v121_v32, %v119_v30  ;;  %v126_v37 = vld [vmem:[#allocation8 + $0x78] sm:$0xff]  ;;  %v355_v41 = vld [vmem:[#allocation13 + $0x78] sm:$0xff] }
  0x75   :  { %v353_v38 = vld [vmem:[#allocation13 + $0x68] sm:$0xff]  ;;  %3890 = vmatpush1.bf16.msra.mxu1 %v4664_v26  ;;  %3876 = vmatprep.subr.bf16.mxu0 %v4666_v27  ;;  %v4675_v39 = vpack.c.bf16 %v350_v34, %v348_v33  ;;  %v4677_v40 = vpack.c.bf16 %v126_v37, %v124_v36  ;;  %v123_v42 = vld [vmem:[#allocation8 + $0x60] sm:$0xff]  ;;  %v352_v45 = vld [vmem:[#allocation13 + $0x60] sm:$0xff] }
  0x76   :  { %v125_v43 = vld [vmem:[#allocation8 + $0x70] sm:$0xff]  ;;  %3892 = vmatprep.subr.bf16.mxu1 %v4668_v31  ;;  %v4680_v44 = vpack.c.bf16 %v355_v41, %v353_v38  ;;  %v354_v46 = vld [vmem:[#allocation13 + $0x70] sm:$0xff]  ;;  %v4684_v48 = vld [vmem:[#allocation11] sm:$0xff] }
  0x77   :  { %v4682_v47 = vld [vmem:[#allocation6] sm:$0xff]  ;;  %v4687_v49 = vpack.c.bf16 %v125_v43, %v123_v42  ;;  %v109_v50 = vld [vmem:[#allocation3] sm:$0x3]  ;;  %v4691_v51 = vpack.c.bf16 %v354_v46, %v352_v45  ;;  %v4700_v53 = vcombine.high %v4684_v48, %v4684_v48  ;;  %v338_v54 = vld [vmem:[#allocation5] sm:$0x3] }
  0x78   :  { %3878 = vmatpush1.bf16.msra.mxu0 %v4671_v35  ;;  %v4695_v52 = vcombine.high %v4682_v47, %v4682_v47  ;;  %312 = vrot.lane.b32.xlu0 %v109_v50, %s4510_s6  ;;  %v108_v55 = vld [vmem:[#allocation2] sm:$0x3]  ;;  %v337_v56 = vld [vmem:[#allocation4] sm:$0x3]  ;;  %v107_v57 = vld [vmem:[%s5230_s0] sm:$0x3] }
  0x79   :  { %3894 = vmatpush1.bf16.msra.mxu1 %v4675_v39  ;;  %3880 = vmatprep.subr.bf16.mxu0 %v4677_v40  ;;  %v3749_v58 = vld [vmem:[%s5230_s0 + $0xe] sm:$0x3]  ;;  %v284_v62 = vld [vmem:[#allocation10] sm:$0x3]  ;;  %v510_v63 = vld [vmem:[#allocation14] sm:$0x3] }
  0x7a   :  { %3896 = vmatprep.subr.bf16.mxu1 %v4680_v44  ;;  %v289_v1 = vrot.slane %v284_v62, %v4748_v61  ;;  %v515_v2 = vrot.slane %v510_v63, %v4748_v61  ;;  %v293_v16 = vrot.slane %v284_v62, %v4752_v15  ;;  %v519_v19 = vrot.slane %v510_v63, %v4752_v15 }
  0x7c   :  { %3882 = vmatpush1.bf16.msra.mxu0 %v4687_v49  ;;  %538 = vrot.lane.b32.xlu0 %v338_v54, %s4510_s6 }
  0x7d   :  { %3898 = vmatpush1.bf16.msra.mxu1 %v4691_v51  ;;  %3744 = vmatprep.subr.msk.mxu0 %vm208_vm1, %v4695_v52 }
  0x7e   :  { %3751 = vmatprep.subr.msk.mxu1 %vm208_vm1, %v4700_v53 }
  0x7f   :  { %3743 = vmatmul.mubr.msk.f32.vlgmr.msra.gmra.mrb[0].mxu0 %vm127_vm2, %v108_v55 }
  0x80   :  { %3750 = vmatmul.mubr.msk.f32.vlgmr.msra.gmra.mrb[0].mxu1 %vm127_vm2, %v337_v56  ;;  %3745 = vmatpush1.msk.msra.mxu0 %vm208_vm1, %v4682_v47 }
  0x81   :  { %3752 = vmatpush1.msk.msra.mxu1 %vm208_vm1, %v4684_v48  ;;  %277 = vmatprep.mubr.f32.mxu0 %v4509_v0 }
  0x82   :  { %503 = vmatprep.mubr.f32.mxu1 %v4509_v0  ;;  %3900 = vmatprep.subr.bf16.mxu0 %v4644_v4 }
  0x83   :  { %3916 = vmatprep.subr.bf16.mxu1 %v4646_v8 }
  0x87   :  { %3746 = vmatmul.mubr.msk.f32.vlgmr.msra.gmra.mrb[0].mxu0 %vm204_vm3, %v107_v57 }
  0x88   :  { %3753 = vmatmul.mubr.msk.f32.vlgmr.msra.gmra.mrb[0].mxu1 %vm204_vm3, %v3749_v58  ;;  %3902 = vmatpush1.bf16.msra.mxu0 %v4648_v9 }
  0x89   :  { %3904 = vmatprep.subr.bf16.mxu0 %v4655_v17  ;;  %3918 = vmatpush1.bf16.msra.mxu1 %v4651_v13 }
  0x8a   :  { %3920 = vmatprep.subr.bf16.mxu1 %v4657_v18  ;;  %650 = vmatprep.mubr.f32.mxu0 %v4509_v0 }
  0x8b   :  { %877 = vmatprep.mubr.f32.mxu1 %v4509_v0 }
  0x8c   :  { %3906 = vmatpush1.bf16.msra.mxu0 %v4660_v22 }
  0x8d   :  { %3908 = vmatprep.subr.bf16.mxu0 %v4666_v27  ;;  %3922 = vmatpush1.bf16.msra.mxu1 %v4664_v26 }
  0x8e   :  { %3924 = vmatprep.subr.bf16.mxu1 %v4668_v31 }
  0x90   :  { %3910 = vmatpush1.bf16.msra.mxu0 %v4671_v35 }
  0x91   :  { %3912 = vmatprep.subr.bf16.mxu0 %v4677_v40  ;;  %3926 = vmatpush1.bf16.msra.mxu1 %v4675_v39 }
  0x92   :  { %3928 = vmatprep.subr.bf16.mxu1 %v4680_v44 }
  0x94   :  { %3914 = vmatpush1.bf16.msra.mxu0 %v4687_v49 }
  0x95   :  { %3759 = vmatprep.subr.msk.mxu0 %vm208_vm1, %v4695_v52  ;;  %3930 = vmatpush1.bf16.msra.mxu1 %v4691_v51 }
  0x96   :  { %3767 = vmatprep.subr.msk.mxu1 %vm208_vm1, %v4700_v53 }
  0xea   :  { %v313_v41 = vpop.permute.xlu0 %312 }
  0xee   :  { %v539_v50 = vpop.permute.xlu0 %538 }
 0x15a   :  { %v279_v3 = vpop.f32.mrb[0].mxu0 }
 0x15b   :  { %v296_v5 = vadd.f32 %v289_v1, %v279_v3  ;;  %v505_v6 = vpop.f32.mrb[0].mxu1  ;;  %v281_v7 = vpop.f32.mrb[1].mxu0 }
 0x15c   :  { %v522_v10 = vadd.f32 %v515_v2, %v505_v6  ;;  %v507_v11 = vpop.f32.mrb[1].mxu1  ;;  %v297_v20 = vadd.f32 %v293_v16, %v281_v7  ;;  %v3757_v16 = vld [vmem:[%s5230_s0 + $0x2] sm:$0x3] }
 0x15d   :  { %v3747_v12 = vmul.f32 -1.442695, %v296_v5  ;;  %v523_v21 = vadd.f32 %v519_v19, %v507_v11 }
 0x15e   :  { %v3754_v14 = vmul.f32 -1.442695, %v522_v10  ;;  %v3748_v37 = vmul.f32 -1.442695, %v297_v20 }
 0x15f   :  { %4169 = vpow2.f32 %v3747_v12  ;;  %v3755_v38 = vmul.f32 -1.442695, %v523_v21 }
 0x160   :  { %4171 = vpow2.f32 %v3754_v14 }
 0x161   :  { %4173 = vtanh.f32 %v297_v20  ;;  %v3765_v20 = vld [vmem:[%s5230_s0 + $0xc] sm:$0x3] }
 0x162   :  { %4175 = vtanh.f32 %v523_v21  ;;  %v737_v21 = vld [vmem:[#allocation10] sm:$0x3] }
 0x169   :  { %v4170_v23 = vpop.eup %4169 }
 0x16a   :  { %v4172_v24 = vpop.eup %4171  ;;  %v301_v25 = vadd.f32 1.0, %v4170_v23  ;;  %v742_v23 = vrot.slane %v737_v21, %v4748_v61 }
 0x16b   :  { %v527_v28 = vadd.f32 1.0, %v4172_v24  ;;  %v4174_v29 = vpop.eup %4173  ;;  %v964_v24 = vld [vmem:[#allocation14] sm:$0x3] }
 0x16c   :  { %4177 = vrcp.f32 %v301_v25  ;;  %v4176_v30 = vpop.eup %4175 }
 0x16d   :  { %4179 = vrcp.f32 %v527_v28 }
 0x16e   :  { %4181 = vpow2.f32 %v3748_v37 }
 0x16f   :  { %4183 = vpow2.f32 %v3755_v38  ;;  %v746_v38 = vrot.slane %v737_v21, %v4752_v15 }
 0x176   :  { %v4178_v32 = vpop.eup %4177 }
 0x177   :  { %v4180_v33 = vpop.eup %4179  ;;  %v316_v34 = vmul.f32 %v4178_v32, %v4174_v29  ;;  %v315_v46 = vmul.f32 %v4178_v32, %v313_v41 }
 0x178   :  { %v542_v36 = vmul.f32 %v4180_v33, %v4176_v30  ;;  %v4182_v42 = vpop.eup %4181  ;;  %v541_v57 = vmul.f32 %v4180_v33, %v539_v50  ;;  %v969_v30 = vrot.slane %v964_v24, %v4748_v61 }
 0x179   :  { %318 = vrot.lane.b32.xlu1 %v316_v34, %s4510_s6  ;;  %v308_v43 = vadd.f32 1.0, %v4182_v42  ;;  %v4184_v45 = vpop.eup %4183  ;;  %v973_v42 = vrot.slane %v964_v24, %v4752_v15 }
 0x17a   :  { %v534_v56 = vadd.f32 1.0, %v4184_v45 }
 0x17b   :  { %4185 = vrcp.f32 %v308_v43 }
 0x17d   :  { %544 = vrot.lane.b32.xlu1 %v542_v36, %s4510_s6 }
 0x185   :  { %v4186_v60 = vpop.eup %4185 }
 0x1eb   :  { %v319_v54 = vpop.permute.xlu1 %318 }
 0x1ec   :  { %v321_v55 = vadd.f32 %v319_v54, %v315_v46 }
 0x1ee   :  { %4187 = vtanh.f32 %v321_v55 }
 0x1ef   :  { %v545_v58 = vpop.permute.xlu1 %544  ;;  %4189 = vrcp.f32 %v534_v56 }
 0x1f0   :  { %v547_v59 = vadd.f32 %v545_v58, %v541_v57 }
 0x1f2   :  { %4191 = vtanh.f32 %v547_v59 }
 0x1f8   :  { %v4188_v62 = vpop.eup %4187 }
 0x1f9   :  { %v323_v63 = vmul.f32 %v4188_v62, %v4186_v60  ;;  %v4190_v1 = vpop.eup %4189 }
 0x1fb   :  { %325 = vrot.lane.b32.xlu0 %v323_v63, %s4510_s6 }
 0x1fc   :  { %v4192_v2 = vpop.eup %4191 }
 0x1fd   :  { %v549_v3 = vmul.f32 %v4192_v2, %v4190_v1 }
 0x1ff   :  { %330 = vrot.lane.b32.xlu0 %v321_v55, %s4510_s6  ;;  %551 = vrot.lane.b32.xlu1 %v549_v3, %s4510_s6 }
 0x203   :  { %556 = vrot.lane.b32.xlu1 %v547_v59, %s4510_s6 }
 0x26d   :  { %v326_v5 = vpop.permute.xlu0 %325 }
 0x26e   :  { %328 = vst.msk [vmem:[#allocation2] sm:$0x3] %vm102_vm0, %v326_v5  ;;  %334 = vst.msk [vmem:[%s5237_s7] sm:$0x3] %vm102_vm0, %v326_v5 }
 0x271   :  { %v331_v6 = vpop.permute.xlu0 %330  ;;  %v552_v7 = vpop.permute.xlu1 %551 }
 0x272   :  { %333 = vst.msk [vmem:[#allocation3] sm:$0x3] %vm102_vm0, %v331_v6  ;;  %554 = vst.msk [vmem:[#allocation4] sm:$0x3] %vm102_vm0, %v552_v7 }
 0x273   :  { %3756 = vst.msk [vmem:[%s5238_s8 + $0xe] sm:$0x3] %vm102_vm0, %v552_v7 }
 0x275   :  { %v557_v10 = vpop.permute.xlu1 %556  ;;  %v564_v11 = vld [vmem:[#allocation2] sm:$0x3] }
 0x276   :  { %559 = vst.msk [vmem:[#allocation5] sm:$0x3] %vm102_vm0, %v557_v10  ;;  %3758 = vmatmul.mubr.msk.f32.vlgmr.msra.gmra.mrb[2].mxu0 %vm127_vm2, %v564_v11 }
 0x277   :  { %3760 = vmatpush1.msk.msra.mxu0 %vm208_vm1, %v4682_v47  ;;  %730 = vmatprep.mubr.f32.mxu0 %v4509_v0 }
 0x278   :  { %3932 = vmatprep.subr.bf16.mxu0 %v4644_v4 }
 0x279   :  { %v565_v12 = vld [vmem:[#allocation3] sm:$0x3]  ;;  %v791_v14 = vld [vmem:[#allocation4] sm:$0x3] }
 0x27a   :  { %765 = vrot.lane.b32.xlu0 %v565_v12, %s4510_s6  ;;  %3766 = vmatmul.mubr.msk.f32.vlgmr.msra.gmra.mrb[2].mxu1 %vm127_vm2, %v791_v14 }
 0x27b   :  { %3768 = vmatpush1.msk.msra.mxu1 %vm208_vm1, %v4684_v48  ;;  %957 = vmatprep.mubr.f32.mxu1 %v4509_v0 }
 0x27c   :  { %3948 = vmatprep.subr.bf16.mxu1 %v4646_v8 }
 0x27d   :  { %v792_v19 = vld [vmem:[#allocation5] sm:$0x3] }
 0x27e   :  { %3761 = vmatmul.mubr.msk.f32.vlgmr.msra.gmra.mrb[2].mxu0 %vm204_vm3, %v3757_v16  ;;  %992 = vrot.lane.b32.xlu1 %v792_v19, %s4510_s6 }
 0x27f   :  { %3934 = vmatpush1.bf16.msra.mxu0 %v4648_v9  ;;  %1104 = vmatprep.mubr.f32.mxu0 %v4509_v0 }
 0x280   :  { %3936 = vmatprep.subr.bf16.mxu0 %v4655_v17 }
 0x282   :  { %3769 = vmatmul.mubr.msk.f32.vlgmr.msra.gmra.mrb[2].mxu1 %vm204_vm3, %v3765_v20 }
 0x283   :  { %3938 = vmatpush1.bf16.msra.mxu0 %v4660_v22  ;;  %3950 = vmatpush1.bf16.msra.mxu1 %v4651_v13 }
 0x284   :  { %3940 = vmatprep.subr.bf16.mxu0 %v4666_v27  ;;  %3952 = vmatprep.subr.bf16.mxu1 %v4657_v18 }
 0x285   :  { %1331 = vmatprep.mubr.f32.mxu1 %v4509_v0 }
 0x287   :  { %3942 = vmatpush1.bf16.msra.mxu0 %v4671_v35  ;;  %3954 = vmatpush1.bf16.msra.mxu1 %v4664_v26 }
 0x288   :  { %3944 = vmatprep.subr.bf16.mxu0 %v4677_v40  ;;  %3956 = vmatprep.subr.bf16.mxu1 %v4668_v31 }
 0x28b   :  { %3946 = vmatpush1.bf16.msra.mxu0 %v4687_v49  ;;  %3958 = vmatpush1.bf16.msra.mxu1 %v4675_v39 }
 0x28c   :  { %3775 = vmatprep.subr.msk.mxu0 %vm208_vm1, %v4695_v52  ;;  %3960 = vmatprep.subr.bf16.mxu1 %v4680_v44 }
 0x28f   :  { %3962 = vmatpush1.bf16.msra.mxu1 %v4691_v51 }
 0x290   :  { %3783 = vmatprep.subr.msk.mxu1 %vm208_vm1, %v4700_v53 }
 0x2ec   :  { %v766_v2 = vpop.permute.xlu0 %765 }
 0x2f0   :  { %v993_v7 = vpop.permute.xlu1 %992 }
 0x351   :  { %v732_v25 = vpop.f32.mrb[2].mxu0 }
 0x352   :  { %v749_v28 = vadd.f32 %v742_v23, %v732_v25  ;;  %v734_v29 = vpop.f32.mrb[3].mxu0 }
 0x353   :  { %v750_v41 = vadd.f32 %v746_v38, %v734_v29  ;;  %v3773_v38 = vld [vmem:[%s5230_s0 + $0x4] sm:$0x3] }
 0x354   :  { %v3762_v32 = vmul.f32 -1.442695, %v749_v28 }
 0x355   :  { %v959_v33 = vpop.f32.mrb[2].mxu1  ;;  %v3763_v62 = vmul.f32 -1.442695, %v750_v41 }
 0x356   :  { %4193 = vpow2.f32 %v3762_v32  ;;  %v976_v34 = vadd.f32 %v969_v30, %v959_v33  ;;  %v961_v36 = vpop.f32.mrb[3].mxu1 }
 0x357   :  { %v977_v46 = vadd.f32 %v973_v42, %v961_v36 }
 0x358   :  { %v3770_v37 = vmul.f32 -1.442695, %v976_v34 }
 0x359   :  { %v3771_v63 = vmul.f32 -1.442695, %v977_v46 }
 0x35a   :  { %4195 = vpow2.f32 %v3770_v37 }
 0x35b   :  { %4197 = vtanh.f32 %v750_v41 }
 0x360   :  { %v4194_v43 = vpop.eup %4193 }
 0x361   :  { %v754_v45 = vadd.f32 1.0, %v4194_v43 }
 0x363   :  { %4199 = vrcp.f32 %v754_v45 }
 0x364   :  { %v4196_v50 = vpop.eup %4195  ;;  %4201 = vtanh.f32 %v977_v46 }
 0x365   :  { %v981_v54 = vadd.f32 1.0, %v4196_v50  ;;  %v4198_v55 = vpop.eup %4197 }
 0x367   :  { %4203 = vrcp.f32 %v981_v54 }
 0x368   :  { %4205 = vpow2.f32 %v3763_v62 }
 0x369   :  { %4207 = vpow2.f32 %v3771_v63 }
 0x36d   :  { %v4200_v56 = vpop.eup %4199 }
 0x36e   :  { %v769_v57 = vmul.f32 %v4200_v56, %v4198_v55  ;;  %v4202_v58 = vpop.eup %4201  ;;  %v768_v6 = vmul.f32 %v4200_v56, %v766_v2 }
 0x370   :  { %771 = vrot.lane.b32.xlu0 %v769_v57, %s4510_s6 }
 0x371   :  { %v4204_v59 = vpop.eup %4203 }
 0x372   :  { %v996_v60 = vmul.f32 %v4204_v59, %v4202_v58  ;;  %v4206_v1 = vpop.eup %4205  ;;  %v995_v14 = vmul.f32 %v4204_v59, %v993_v7 }
 0x373   :  { %v761_v3 = vadd.f32 1.0, %v4206_v1  ;;  %v4208_v5 = vpop.eup %4207 }
 0x374   :  { %998 = vrot.lane.b32.xlu1 %v996_v60, %s4510_s6  ;;  %v988_v12 = vadd.f32 1.0, %v4208_v5 }
 0x375   :  { %4209 = vrcp.f32 %v761_v3 }
 0x37f   :  { %v4210_v20 = vpop.eup %4209 }
 0x3e2   :  { %v772_v10 = vpop.permute.xlu0 %771 }
 0x3e3   :  { %v774_v11 = vadd.f32 %v772_v10, %v768_v6 }
 0x3e5   :  { %4211 = vtanh.f32 %v774_v11 }
 0x3e6   :  { %v999_v16 = vpop.permute.xlu1 %998  ;;  %4213 = vrcp.f32 %v988_v12 }
 0x3e7   :  { %v1001_v19 = vadd.f32 %v999_v16, %v995_v14 }
 0x3e9   :  { %4215 = vtanh.f32 %v1001_v19 }
 0x3ef   :  { %v4212_v21 = vpop.eup %4211 }
 0x3f0   :  { %v776_v23 = vmul.f32 %v4212_v21, %v4210_v20  ;;  %v4214_v24 = vpop.eup %4213 }
 0x3f2   :  { %778 = vrot.lane.b32.xlu0 %v776_v23, %s4510_s6 }
 0x3f3   :  { %v4216_v25 = vpop.eup %4215 }
 0x3f4   :  { %v1003_v28 = vmul.f32 %v4216_v25, %v4214_v24 }
 0x3f6   :  { %783 = vrot.lane.b32.xlu0 %v774_v11, %s4510_s6  ;;  %1005 = vrot.lane.b32.xlu1 %v1003_v28, %s4510_s6 }
 0x3fa   :  { %1010 = vrot.lane.b32.xlu1 %v1001_v19, %s4510_s6 }
 0x464   :  { %v779_v29 = vpop.permute.xlu0 %778 }
 0x465   :  { %781 = vst.msk [vmem:[#allocation2] sm:$0x3] %vm102_vm0, %v779_v29  ;;  %3764 = vst.msk [vmem:[%s5237_s7 + $0x2] sm:$0x3] %vm102_vm0, %v779_v29 }
 0x468   :  { %v784_v30 = vpop.permute.xlu0 %783  ;;  %v1006_v32 = vpop.permute.xlu1 %1005 }
 0x469   :  { %786 = vst.msk [vmem:[#allocation3] sm:$0x3] %vm102_vm0, %v784_v30  ;;  %1008 = vst.msk [vmem:[#allocation4] sm:$0x3] %vm102_vm0, %v1006_v32 }
 0x46a   :  { %3772 = vst.msk [vmem:[%s5238_s8 + $0xc] sm:$0x3] %vm102_vm0, %v1006_v32 }
 0x46c   :  { %v1011_v33 = vpop.permute.xlu1 %1010  ;;  %v1018_v34 = vld [vmem:[#allocation2] sm:$0x3] }
 0x46d   :  { %1013 = vst.msk [vmem:[#allocation5] sm:$0x3] %vm102_vm0, %v1011_v33  ;;  %3774 = vmatmul.mubr.msk.f32.vlgmr.msra.gmra.mrb[4].mxu0 %vm127_vm2, %v1018_v34  ;;  %v3789_v34 = vld [vmem:[%s5230_s0 + $0x6] sm:$0x3] }
 0x46e   :  { %3776 = vmatpush1.msk.msra.mxu0 %vm208_vm1, %v4682_v47  ;;  %1184 = vmatprep.mubr.f32.mxu0 %v4509_v0 }
 0x46f   :  { %3964 = vmatprep.subr.bf16.mxu0 %v4644_v4  ;;  %v3781_v4 = vld [vmem:[%s5230_s0 + $0xa] sm:$0x3] }
 0x470   :  { %v1019_v36 = vld [vmem:[#allocation3] sm:$0x3]  ;;  %v1245_v37 = vld [vmem:[#allocation4] sm:$0x3] }
 0x471   :  { %1219 = vrot.lane.b32.xlu0 %v1019_v36, %s4510_s6  ;;  %3782 = vmatmul.mubr.msk.f32.vlgmr.msra.gmra.mrb[4].mxu1 %vm127_vm2, %v1245_v37 }
 0x472   :  { %3784 = vmatpush1.msk.msra.mxu1 %vm208_vm1, %v4684_v48  ;;  %1411 = vmatprep.mubr.f32.mxu1 %v4509_v0 }
 0x473   :  { %3980 = vmatprep.subr.bf16.mxu1 %v4646_v8  ;;  %v1191_v8 = vld [vmem:[#allocation10] sm:$0x3] }
 0x474   :  { %v1246_v41 = vld [vmem:[#allocation5] sm:$0x3] }
 0x475   :  { %3777 = vmatmul.mubr.msk.f32.vlgmr.msra.gmra.mrb[4].mxu0 %vm204_vm3, %v3773_v38  ;;  %1446 = vrot.lane.b32.xlu1 %v1246_v41, %s4510_s6  ;;  %v1872_v38 = vld [vmem:[#allocation14] sm:$0x3] }
 0x476   :  { %3966 = vmatpush1.bf16.msra.mxu0 %v4648_v9  ;;  %1558 = vmatprep.mubr.f32.mxu0 %v4509_v0  ;;  %v1196_v9 = vrot.slane %v1191_v8, %v4748_v61 }
 0x477   :  { %3968 = vmatprep.subr.bf16.mxu0 %v4655_v17 }
 0x479   :  { %3785 = vmatmul.mubr.msk.f32.vlgmr.msra.gmra.mrb[4].mxu1 %vm204_vm3, %v3781_v4 }
 0x47a   :  { %3970 = vmatpush1.bf16.msra.mxu0 %v4660_v22  ;;  %3982 = vmatpush1.bf16.msra.mxu1 %v4651_v13  ;;  %v1418_v13 = vld [vmem:[#allocation14] sm:$0x3] }
 0x47b   :  { %3972 = vmatprep.subr.bf16.mxu0 %v4666_v27  ;;  %3984 = vmatprep.subr.bf16.mxu1 %v4657_v18 }
 0x47c   :  { %1785 = vmatprep.mubr.f32.mxu1 %v4509_v0 }
 0x47e   :  { %3974 = vmatpush1.bf16.msra.mxu0 %v4671_v35  ;;  %3986 = vmatpush1.bf16.msra.mxu1 %v4664_v26  ;;  %v1423_v26 = vrot.slane %v1418_v13, %v4748_v61 }
 0x47f   :  { %3976 = vmatprep.subr.bf16.mxu0 %v4677_v40  ;;  %3988 = vmatprep.subr.bf16.mxu1 %v4668_v31 }
 0x482   :  { %3978 = vmatpush1.bf16.msra.mxu0 %v4687_v49  ;;  %3990 = vmatpush1.bf16.msra.mxu1 %v4675_v39 }
 0x483   :  { %3791 = vmatprep.subr.msk.mxu0 %vm208_vm1, %v4695_v52  ;;  %3992 = vmatprep.subr.bf16.mxu1 %v4680_v44  ;;  %v1200_v44 = vrot.slane %v1191_v8, %v4752_v15 }
 0x486   :  { %3994 = vmatpush1.bf16.msra.mxu1 %v4691_v51  ;;  %v1427_v51 = vrot.slane %v1418_v13, %v4752_v15 }
 0x487   :  { %3799 = vmatprep.subr.msk.mxu1 %vm208_vm1, %v4700_v53 }
 0x4e3   :  { %v1220_v62 = vpop.permute.xlu0 %1219 }
 0x4e7   :  { %v1447_v3 = vpop.permute.xlu1 %1446 }
 0x548   :  { %v1186_v17 = vpop.f32.mrb[4].mxu0 }
 0x549   :  { %v1203_v18 = vadd.f32 %v1196_v9, %v1186_v17  ;;  %v1188_v22 = vpop.f32.mrb[5].mxu0  ;;  %v1877_v9 = vrot.slane %v1872_v38, %v4748_v61 }
 0x54a   :  { %v1204_v49 = vadd.f32 %v1200_v44, %v1188_v22 }
 0x54b   :  { %v3778_v27 = vmul.f32 -1.442695, %v1203_v18 }
 0x54c   :  { %v1413_v31 = vpop.f32.mrb[4].mxu1  ;;  %v3779_v58 = vmul.f32 -1.442695, %v1204_v49 }
 0x54d   :  { %4217 = vpow2.f32 %v3778_v27  ;;  %v1430_v35 = vadd.f32 %v1423_v26, %v1413_v31  ;;  %v1415_v39 = vpop.f32.mrb[5].mxu1 }
 0x54e   :  { %v1431_v42 = vadd.f32 %v1427_v51, %v1415_v39 }
 0x54f   :  { %v3786_v40 = vmul.f32 -1.442695, %v1430_v35  ;;  %v1881_v35 = vrot.slane %v1872_v38, %v4752_v15  ;;  %v1938_v38 = vld [vmem:[#allocation8 + $0x50] sm:$0xff] }
 0x550   :  { %v3787_v59 = vmul.f32 -1.442695, %v1431_v42 }
 0x551   :  { %4219 = vpow2.f32 %v3786_v40 }
 0x552   :  { %4221 = vtanh.f32 %v1204_v49 }
 0x557   :  { %v4218_v52 = vpop.eup %4217 }
 0x558   :  { %v1208_v53 = vadd.f32 1.0, %v4218_v52 }
 0x55a   :  { %4223 = vrcp.f32 %v1208_v53 }
 0x55b   :  { %v4220_v43 = vpop.eup %4219  ;;  %4225 = vtanh.f32 %v1431_v42 }
 0x55c   :  { %v1435_v45 = vadd.f32 1.0, %v4220_v43  ;;  %v4222_v46 = vpop.eup %4221 }
 0x55e   :  { %4227 = vrcp.f32 %v1435_v45 }
 0x55f   :  { %4229 = vpow2.f32 %v3779_v58  ;;  %v1933_v58 = vld [vmem:[#allocation8 + $0x28] sm:$0xff] }
 0x560   :  { %4231 = vpow2.f32 %v3787_v59  ;;  %v1935_v59 = vld [vmem:[#allocation8 + $0x38] sm:$0xff] }
 0x564   :  { %v4224_v50 = vpop.eup %4223 }
 0x565   :  { %v1223_v54 = vmul.f32 %v4224_v50, %v4222_v46  ;;  %v4226_v55 = vpop.eup %4225  ;;  %v1222_v2 = vmul.f32 %v4224_v50, %v1220_v62  ;;  %v1929_v50 = vld [vmem:[#allocation8 + $0x8] sm:$0xff]  ;;  %v4928_v62 = vpack.c.bf16 %v1935_v59, %v1933_v58 }
 0x567   :  { %1225 = vrot.lane.b32.xlu0 %v1223_v54, %s4510_s6  ;;  %v1931_v54 = vld [vmem:[#allocation8 + $0x18] sm:$0xff] }
 0x568   :  { %v4228_v56 = vpop.eup %4227 }
 0x569   :  { %v1450_v57 = vmul.f32 %v4228_v56, %v4226_v55  ;;  %v4230_v60 = vpop.eup %4229  ;;  %v1449_v10 = vmul.f32 %v4228_v56, %v1447_v3  ;;  %v1928_v55 = vld [vmem:[#allocation8] sm:$0xff]  ;;  %v4924_v56 = vpack.c.bf16 %v1931_v54, %v1929_v50  ;;  %v2166_v54 = vld [vmem:[#allocation13 + $0x60] sm:$0xff] }
 0x56a   :  { %v1215_v63 = vadd.f32 1.0, %v4230_v60  ;;  %v4232_v1 = vpop.eup %4231 }
 0x56b   :  { %1452 = vrot.lane.b32.xlu1 %v1450_v57, %s4510_s6  ;;  %v1442_v7 = vadd.f32 1.0, %v4232_v1  ;;  %v1930_v57 = vld [vmem:[#allocation8 + $0x10] sm:$0xff]  ;;  %v2157_v1 = vld [vmem:[#allocation13 + $0x18] sm:$0xff] }
 0x56c   :  { %4233 = vrcp.f32 %v1215_v63  ;;  %v4926_v60 = vpack.c.bf16 %v1930_v57, %v1928_v55  ;;  %v2155_v63 = vld [vmem:[#allocation13 + $0x8] sm:$0xff]  ;;  %v2168_v55 = vld [vmem:[#allocation13 + $0x70] sm:$0xff] }
 0x56d   :  { %v4931_v3 = vpack.c.bf16 %v2157_v1, %v2155_v63  ;;  %v4974_v58 = vpack.c.bf16 %v2168_v55, %v2166_v54  ;;  %v4979_v63 = vld [vmem:[#allocation11] sm:$0xff] }
 0x576   :  { %v4234_v14 = vpop.eup %4233 }
 0x5d9   :  { %v1226_v5 = vpop.permute.xlu0 %1225 }
 0x5da   :  { %v1228_v6 = vadd.f32 %v1226_v5, %v1222_v2  ;;  %v1932_v2 = vld [vmem:[#allocation8 + $0x20] sm:$0xff]  ;;  %v1934_v5 = vld [vmem:[#allocation8 + $0x30] sm:$0xff] }
 0x5dc   :  { %4235 = vtanh.f32 %v1228_v6 }
 0x5dd   :  { %v1453_v11 = vpop.permute.xlu1 %1452  ;;  %4237 = vrcp.f32 %v1442_v7  ;;  %v2156_v7 = vld [vmem:[#allocation13 + $0x10] sm:$0xff] }
 0x5de   :  { %v1455_v12 = vadd.f32 %v1453_v11, %v1449_v10  ;;  %v4934_v10 = vpack.c.bf16 %v1934_v5, %v1932_v2  ;;  %v4985_v2 = vcombine.high %v4979_v63, %v4979_v63 }
 0x5e0   :  { %4239 = vtanh.f32 %v1455_v12 }
 0x5e6   :  { %v4236_v16 = vpop.eup %4235 }
 0x5e7   :  { %v1230_v19 = vmul.f32 %v4236_v16, %v4234_v14  ;;  %v4238_v20 = vpop.eup %4237 }
 0x5e9   :  { %1232 = vrot.lane.b32.xlu0 %v1230_v19, %s4510_s6 }
 0x5ea   :  { %v4240_v21 = vpop.eup %4239 }
 0x5eb   :  { %v1457_v23 = vmul.f32 %v4240_v21, %v4238_v20 }
 0x5ed   :  { %1237 = vrot.lane.b32.xlu0 %v1228_v6, %s4510_s6  ;;  %1459 = vrot.lane.b32.xlu1 %v1457_v23, %s4510_s6  ;;  %v2154_v6 = vld [vmem:[#allocation13] sm:$0xff] }
 0x5ee   :  { %v4936_v11 = vpack.c.bf16 %v2156_v7, %v2154_v6 }
 0x5f1   :  { %1464 = vrot.lane.b32.xlu1 %v1455_v12, %s4510_s6 }
 0x65b   :  { %v1233_v24 = vpop.permute.xlu0 %1232 }
 0x65c   :  { %1235 = vst.msk [vmem:[#allocation2] sm:$0x3] %vm102_vm0, %v1233_v24  ;;  %3780 = vst.msk [vmem:[%s5237_s7 + $0x4] sm:$0x3] %vm102_vm0, %v1233_v24 }
 0x65f   :  { %v1238_v25 = vpop.permute.xlu0 %1237  ;;  %v1460_v28 = vpop.permute.xlu1 %1459 }
 0x660   :  { %1240 = vst.msk [vmem:[#allocation3] sm:$0x3] %vm102_vm0, %v1238_v25  ;;  %1462 = vst.msk [vmem:[#allocation4] sm:$0x3] %vm102_vm0, %v1460_v28 }
 0x661   :  { %3788 = vst.msk [vmem:[%s5238_s8 + $0xa] sm:$0x3] %vm102_vm0, %v1460_v28 }
 0x663   :  { %v1465_v29 = vpop.permute.xlu1 %1464  ;;  %v1472_v30 = vld [vmem:[#allocation2] sm:$0x3] }
 0x664   :  { %1467 = vst.msk [vmem:[#allocation5] sm:$0x3] %vm102_vm0, %v1465_v29  ;;  %3790 = vmatmul.mubr.msk.f32.vlgmr.msra.gmra.mrb[6].mxu0 %vm127_vm2, %v1472_v30 }
 0x665   :  { %3792 = vmatpush1.msk.msra.mxu0 %vm208_vm1, %v4682_v47  ;;  %1638 = vmatprep.mubr.f32.mxu0 %v4509_v0  ;;  %v3797_v47 = vld [vmem:[%s5230_s0 + $0x8] sm:$0x3] }
 0x666   :  { %3996 = vmatprep.subr.bf16.mxu0 %v4924_v56 }
 0x667   :  { %v1473_v32 = vld [vmem:[#allocation3] sm:$0x3]  ;;  %v1699_v33 = vld [vmem:[#allocation4] sm:$0x3] }
 0x668   :  { %1673 = vrot.lane.b32.xlu0 %v1473_v32, %s4510_s6  ;;  %3798 = vmatmul.mubr.msk.f32.vlgmr.msra.gmra.mrb[6].mxu1 %vm127_vm2, %v1699_v33  ;;  %v1937_v32 = vld [vmem:[#allocation8 + $0x48] sm:$0xff]  ;;  %v1939_v33 = vld [vmem:[#allocation8 + $0x58] sm:$0xff] }
 0x669   :  { %3800 = vmatpush1.msk.msra.mxu1 %vm208_vm1, %v4684_v48  ;;  %1865 = vmatprep.mubr.f32.mxu1 %v4509_v0  ;;  %v1645_v48 = vld [vmem:[#allocation10] sm:$0x3] }
 0x66a   :  { %v1650_v37 = vrot.slane %v1645_v48, %v4748_v61  ;;  %v1654_v27 = vrot.slane %v1645_v48, %v4752_v15  ;;  %4012 = vmatprep.subr.bf16.mxu1 %v4931_v3  ;;  %v2161_v48 = vld [vmem:[#allocation13 + $0x38] sm:$0xff] }
 0x66b   :  { %v1700_v36 = vld [vmem:[#allocation5] sm:$0x3] }
 0x66c   :  { %3793 = vmatmul.mubr.msk.f32.vlgmr.msra.gmra.mrb[6].mxu0 %vm204_vm3, %v3789_v34  ;;  %1900 = vrot.lane.b32.xlu1 %v1700_v36, %s4510_s6  ;;  %v2159_v34 = vld [vmem:[#allocation13 + $0x28] sm:$0xff] }
 0x66d   :  { %2011 = vmatprep.mubr.f32.mxu0 %v4509_v0  ;;  %3998 = vmatpush1.bf16.msra.mxu0 %v4926_v60 }
 0x66e   :  { %4000 = vmatprep.subr.bf16.mxu0 %v4928_v62 }
 0x670   :  { %3801 = vmatmul.mubr.msk.f32.vlgmr.msra.gmra.mrb[6].mxu1 %vm204_vm3, %v3797_v47  ;;  %v4942_v47 = vpack.c.bf16 %v1939_v33, %v1937_v32 }
 0x671   :  { %2237 = vmatprep.mubr.f32.mxu1 %v4509_v0  ;;  %4014 = vmatpush1.bf16.msra.mxu1 %v4936_v11 }
 0x672   :  { %4002 = vmatpush1.bf16.msra.mxu0 %v4934_v10 }
 0x673   :  { %4004 = vmatprep.subr.bf16.mxu0 %v4942_v47 }
 0x6da   :  { %v1674_v19 = vpop.permute.xlu0 %1673 }
 0x6de   :  { %v1901_v24 = vpop.permute.xlu1 %1900 }
 0x73f   :  { %v1640_v41 = vpop.f32.mrb[6].mxu0 }
 0x740   :  { %v1657_v4 = vadd.f32 %v1650_v37, %v1640_v41  ;;  %v1642_v8 = vpop.f32.mrb[7].mxu0  ;;  %v1936_v37 = vld [vmem:[#allocation8 + $0x40] sm:$0xff] }
 0x741   :  { %v1658_v31 = vadd.f32 %v1654_v27, %v1642_v8  ;;  %v4946_v8 = vpack.c.bf16 %v1938_v38, %v1936_v37 }
 0x742   :  { %v3794_v13 = vmul.f32 -1.442695, %v1657_v4  ;;  %v4944_v4 = vpack.c.bf16 %v2161_v48, %v2159_v34 }
 0x743   :  { %v1867_v17 = vpop.f32.mrb[6].mxu1  ;;  %v3795_v12 = vmul.f32 -1.442695, %v1658_v31  ;;  %4006 = vmatpush1.bf16.msra.mxu0 %v4946_v8 }
 0x744   :  { %4241 = vpow2.f32 %v3794_v13  ;;  %v1884_v18 = vadd.f32 %v1877_v9, %v1867_v17  ;;  %v1869_v22 = vpop.f32.mrb[7].mxu1  ;;  %v2158_v9 = vld [vmem:[#allocation13 + $0x20] sm:$0xff]  ;;  %v2160_v13 = vld [vmem:[#allocation13 + $0x30] sm:$0xff]  ;;  %4016 = vmatprep.subr.bf16.mxu1 %v4944_v4 }
 0x745   :  { %v1885_v44 = vadd.f32 %v1881_v35, %v1869_v22  ;;  %v4949_v17 = vpack.c.bf16 %v2160_v13, %v2158_v9  ;;  %v1943_v22 = vld [vmem:[#allocation8 + $0x78] sm:$0xff]  ;;  %v1940_v35 = vld [vmem:[#allocation8 + $0x60] sm:$0xff] }
 0x746   :  { %v3802_v26 = vmul.f32 -1.442695, %v1884_v18  ;;  %v1941_v18 = vld [vmem:[#allocation8 + $0x68] sm:$0xff] }
 0x747   :  { %v3803_v14 = vmul.f32 -1.442695, %v1885_v44  ;;  %4018 = vmatpush1.bf16.msra.mxu1 %v4949_v17  ;;  %v4954_v27 = vpack.c.bf16 %v1943_v22, %v1941_v18 }
 0x748   :  { %4243 = vpow2.f32 %v3802_v26  ;;  %v2163_v26 = vld [vmem:[#allocation13 + $0x48] sm:$0xff] }
 0x749   :  { %4245 = vtanh.f32 %v1658_v31  ;;  %v2165_v31 = vld [vmem:[#allocation13 + $0x58] sm:$0xff]  ;;  %4008 = vmatprep.subr.bf16.mxu0 %v4954_v27 }
 0x74e   :  { %v4242_v39 = vpop.eup %4241 }
 0x74f   :  { %v1662_v40 = vadd.f32 1.0, %v4242_v39  ;;  %v1942_v39 = vld [vmem:[#allocation8 + $0x70] sm:$0xff] }
 0x751   :  { %4247 = vrcp.f32 %v1662_v40  ;;  %v4956_v40 = vpack.c.bf16 %v2165_v31, %v2163_v26 }
 0x752   :  { %v4244_v49 = vpop.eup %4243  ;;  %4249 = vtanh.f32 %v1885_v44  ;;  %v4958_v44 = vpack.c.bf16 %v1942_v39, %v1940_v35 }
 0x753   :  { %v1889_v51 = vadd.f32 1.0, %v4244_v49  ;;  %v4246_v52 = vpop.eup %4245  ;;  %v2162_v49 = vld [vmem:[#allocation13 + $0x40] sm:$0xff]  ;;  %4020 = vmatprep.subr.bf16.mxu1 %v4956_v40 }
 0x754   :  { %4010 = vmatpush1.bf16.msra.mxu0 %v4958_v44 }
 0x755   :  { %4251 = vrcp.f32 %v1889_v51  ;;  %v2164_v51 = vld [vmem:[#allocation13 + $0x50] sm:$0xff] }
 0x756   :  { %4253 = vpow2.f32 %v3795_v12 }
 0x757   :  { %4255 = vpow2.f32 %v3803_v14 }
 0x75b   :  { %v4248_v53 = vpop.eup %4247 }
 0x75c   :  { %v1677_v42 = vmul.f32 %v4248_v53, %v4246_v52  ;;  %v4250_v43 = vpop.eup %4249  ;;  %v1676_v23 = vmul.f32 %v4248_v53, %v1674_v19  ;;  %v4961_v52 = vpack.c.bf16 %v2164_v51, %v2162_v49  ;;  %v4965_v53 = vld [vmem:[#allocation6] sm:$0xff] }
 0x75e   :  { %1679 = vrot.lane.b32.xlu0 %v1677_v42, %s4510_s6  ;;  %v2167_v42 = vld [vmem:[#allocation13 + $0x68] sm:$0xff]  ;;  %4022 = vmatpush1.bf16.msra.mxu1 %v4961_v52 }
 0x75f   :  { %v4252_v45 = vpop.eup %4251 }
 0x760   :  { %v1904_v46 = vmul.f32 %v4252_v45, %v4250_v43  ;;  %v4254_v16 = vpop.eup %4253  ;;  %v1903_v30 = vmul.f32 %v4252_v45, %v1901_v24  ;;  %v2169_v43 = vld [vmem:[#allocation13 + $0x78] sm:$0xff] }
 0x761   :  { %v1669_v20 = vadd.f32 1.0, %v4254_v16  ;;  %v4256_v21 = vpop.eup %4255  ;;  %v4972_v50 = vpack.c.bf16 %v2169_v43, %v2167_v42 }
 0x762   :  { %1906 = vrot.lane.b32.xlu1 %v1904_v46, %s4510_s6  ;;  %v1896_v29 = vadd.f32 1.0, %v4256_v21  ;;  %v4970_v46 = vcombine.high %v4965_v53, %v4965_v53 }
 0x763   :  { %4257 = vrcp.f32 %v1669_v20  ;;  %4024 = vmatprep.subr.bf16.mxu1 %v4972_v50 }
 0x764   :  { %3807 = vmatprep.subr.msk.mxu0 %vm208_vm1, %v4970_v46  ;;  %4026 = vmatpush1.bf16.msra.mxu1 %v4974_v58 }
 0x765   :  { %3815 = vmatprep.subr.msk.mxu1 %vm208_vm1, %v4985_v2 }
 0x76d   :  { %v4258_v45 = vpop.eup %4257 }
 0x7d0   :  { %v1680_v25 = vpop.permute.xlu0 %1679 }
 0x7d1   :  { %v1682_v28 = vadd.f32 %v1680_v25, %v1676_v23  ;;  %v3805_v23 = vld [vmem:[%s5230_s0 + $0x8] sm:$0x3]  ;;  %v3813_v25 = vld [vmem:[%s5230_s0 + $0x6] sm:$0x3] }
 0x7d3   :  { %4259 = vtanh.f32 %v1682_v28 }
 0x7d4   :  { %v1907_v36 = vpop.permute.xlu1 %1906  ;;  %4261 = vrcp.f32 %v1896_v29 }
 0x7d5   :  { %v1909_v41 = vadd.f32 %v1907_v36, %v1903_v30  ;;  %v2324_v30 = vld [vmem:[#allocation14] sm:$0x3] }
 0x7d6   :  { %v2329_v36 = vrot.slane %v2324_v30, %v4748_v61  ;;  %v2333_v22 = vrot.slane %v2324_v30, %v4752_v15 }
 0x7d7   :  { %4263 = vtanh.f32 %v1909_v41 }
 0x7dd   :  { %v4260_v57 = vpop.eup %4259 }
 0x7de   :  { %v1684_v59 = vmul.f32 %v4260_v57, %v4258_v45  ;;  %v4262_v1 = vpop.eup %4261 }
 0x7e0   :  { %1686 = vrot.lane.b32.xlu0 %v1684_v59, %s4510_s6 }
 0x7e1   :  { %v4264_v5 = vpop.eup %4263 }
 0x7e2   :  { %v1911_v6 = vmul.f32 %v4264_v5, %v4262_v1 }
 0x7e4   :  { %1691 = vrot.lane.b32.xlu0 %v1682_v28, %s4510_s6  ;;  %1913 = vrot.lane.b32.xlu1 %v1911_v6, %s4510_s6  ;;  %v2098_v28 = vld [vmem:[#allocation10] sm:$0x3] }
 0x7e5   :  { %v2103_v29 = vrot.slane %v2098_v28, %v4748_v61  ;;  %v2107_v13 = vrot.slane %v2098_v28, %v4752_v15 }
 0x7e8   :  { %1918 = vrot.lane.b32.xlu1 %v1909_v41, %s4510_s6 }
 0x852   :  { %v1687_v7 = vpop.permute.xlu0 %1686 }
 0x853   :  { %1689 = vst.msk [vmem:[#allocation2] sm:$0x3] %vm102_vm0, %v1687_v7  ;;  %3796 = vst.msk [vmem:[%s5237_s7 + $0x6] sm:$0x3] %vm102_vm0, %v1687_v7 }
 0x856   :  { %v1692_v12 = vpop.permute.xlu0 %1691  ;;  %v1914_v14 = vpop.permute.xlu1 %1913 }
 0x857   :  { %1694 = vst.msk [vmem:[#allocation3] sm:$0x3] %vm102_vm0, %v1692_v12  ;;  %1916 = vst.msk [vmem:[#allocation4] sm:$0x3] %vm102_vm0, %v1914_v14 }
 0x858   :  { %3804 = vst.msk [vmem:[%s5238_s8 + $0x8] sm:$0x3] %vm102_vm0, %v1914_v14 }
 0x85a   :  { %v1919_v16 = vpop.permute.xlu1 %1918  ;;  %v1925_v19 = vld [vmem:[#allocation2] sm:$0x3] }
 0x85b   :  { %1921 = vst.msk [vmem:[#allocation5] sm:$0x3] %vm102_vm0, %v1919_v16  ;;  %3806 = vmatmul.mubr.msk.f32.vlgmr.msra.gmra.mrb[8].mxu0 %vm127_vm2, %v1925_v19 }
 0x85c   :  { %3808 = vmatpush1.msk.msra.mxu0 %vm208_vm1, %v4965_v53  ;;  %2091 = vmatprep.mubr.f32.mxu0 %v4509_v0 }
 0x85d   :  { %4028 = vmatprep.subr.bf16.mxu0 %v4924_v56 }
 0x85e   :  { %v1926_v20 = vld [vmem:[#allocation3] sm:$0x3]  ;;  %v2151_v21 = vld [vmem:[#allocation4] sm:$0x3] }
 0x85f   :  { %2126 = vrot.lane.b32.xlu0 %v1926_v20, %s4510_s6  ;;  %3814 = vmatmul.mubr.msk.f32.vlgmr.msra.gmra.mrb[8].mxu1 %vm127_vm2, %v2151_v21 }
 0x860   :  { %3816 = vmatpush1.msk.msra.mxu1 %vm208_vm1, %v4979_v63  ;;  %2317 = vmatprep.mubr.f32.mxu1 %v4509_v0 }
 0x861   :  { %4044 = vmatprep.subr.bf16.mxu1 %v4931_v3 }
 0x862   :  { %v2152_v24 = vld [vmem:[#allocation5] sm:$0x3] }
 0x863   :  { %3809 = vmatmul.mubr.msk.f32.vlgmr.msra.gmra.mrb[8].mxu0 %vm204_vm3, %v3805_v23  ;;  %2352 = vrot.lane.b32.xlu1 %v2152_v24, %s4510_s6 }
 0x864   :  { %4030 = vmatpush1.bf16.msra.mxu0 %v4926_v60  ;;  %2463 = vmatprep.mubr.f32.mxu0 %v4509_v0 }
 0x865   :  { %4032 = vmatprep.subr.bf16.mxu0 %v4928_v62 }
 0x867   :  { %3817 = vmatmul.mubr.msk.f32.vlgmr.msra.gmra.mrb[8].mxu1 %vm204_vm3, %v3813_v25 }
 0x868   :  { %4034 = vmatpush1.bf16.msra.mxu0 %v4934_v10  ;;  %4046 = vmatpush1.bf16.msra.mxu1 %v4936_v11 }
 0x869   :  { %4036 = vmatprep.subr.bf16.mxu0 %v4942_v47  ;;  %4048 = vmatprep.subr.bf16.mxu1 %v4944_v4 }
 0x86a   :  { %2689 = vmatprep.mubr.f32.mxu1 %v4509_v0 }
 0x86c   :  { %4038 = vmatpush1.bf16.msra.mxu0 %v4946_v8  ;;  %4050 = vmatpush1.bf16.msra.mxu1 %v4949_v17 }
 0x86d   :  { %4040 = vmatprep.subr.bf16.mxu0 %v4954_v27  ;;  %4052 = vmatprep.subr.bf16.mxu1 %v4956_v40 }
 0x870   :  { %4042 = vmatpush1.bf16.msra.mxu0 %v4958_v44  ;;  %4054 = vmatpush1.bf16.msra.mxu1 %v4961_v52 }
 0x871   :  { %3823 = vmatprep.subr.msk.mxu0 %vm208_vm1, %v4970_v46  ;;  %4056 = vmatprep.subr.bf16.mxu1 %v4972_v50 }
 0x874   :  { %4058 = vmatpush1.bf16.msra.mxu1 %v4974_v58 }
 0x875   :  { %3831 = vmatprep.subr.msk.mxu1 %vm208_vm1, %v4985_v2 }
 0x8d1   :  { %v2127_v5 = vpop.permute.xlu0 %2126 }
 0x8d5   :  { %v2353_v14 = vpop.permute.xlu1 %2352 }
 0x936   :  { %v2093_v32 = vpop.f32.mrb[8].mxu0 }
 0x937   :  { %v2110_v33 = vadd.f32 %v2103_v29, %v2093_v32  ;;  %v2095_v34 = vpop.f32.mrb[9].mxu0 }
 0x938   :  { %v2111_v18 = vadd.f32 %v2107_v13, %v2095_v34  ;;  %v3821_v13 = vld [vmem:[%s5230_s0 + $0xa] sm:$0x3] }
 0x939   :  { %v3810_v48 = vmul.f32 -1.442695, %v2110_v33 }
 0x93a   :  { %v2319_v37 = vpop.f32.mrb[8].mxu1  ;;  %v3811_v57 = vmul.f32 -1.442695, %v2111_v18 }
 0x93b   :  { %4265 = vpow2.f32 %v3810_v48  ;;  %v2336_v38 = vadd.f32 %v2329_v36, %v2319_v37  ;;  %v2321_v41 = vpop.f32.mrb[9].mxu1 }
 0x93c   :  { %v2337_v35 = vadd.f32 %v2333_v22, %v2321_v41  ;;  %v3829_v22 = vld [vmem:[%s5230_s0 + $0x4] sm:$0x3] }
 0x93d   :  { %v3818_v9 = vmul.f32 -1.442695, %v2336_v38 }
 0x93e   :  { %v3819_v59 = vmul.f32 -1.442695, %v2337_v35 }
 0x93f   :  { %4267 = vpow2.f32 %v3818_v9 }
 0x940   :  { %4269 = vtanh.f32 %v2111_v18 }
 0x945   :  { %v4266_v26 = vpop.eup %4265 }
 0x946   :  { %v2115_v31 = vadd.f32 1.0, %v4266_v26  ;;  %v2550_v26 = vld [vmem:[#allocation10] sm:$0x3] }
 0x948   :  { %4271 = vrcp.f32 %v2115_v31  ;;  %v2555_v31 = vrot.slane %v2550_v26, %v4748_v61 }
 0x949   :  { %v4268_v39 = vpop.eup %4267  ;;  %4273 = vtanh.f32 %v2337_v35  ;;  %v2776_v35 = vld [vmem:[#allocation14] sm:$0x3] }
 0x94a   :  { %v2341_v49 = vadd.f32 1.0, %v4268_v39  ;;  %v4270_v51 = vpop.eup %4269 }
 0x94c   :  { %4275 = vrcp.f32 %v2341_v49 }
 0x94d   :  { %4277 = vpow2.f32 %v3811_v57 }
 0x94e   :  { %4279 = vpow2.f32 %v3819_v59  ;;  %v2559_v59 = vrot.slane %v2550_v26, %v4752_v15 }
 0x952   :  { %v4272_v42 = vpop.eup %4271 }
 0x953   :  { %v2130_v43 = vmul.f32 %v4272_v42, %v4270_v51  ;;  %v4274_v45 = vpop.eup %4273  ;;  %v2129_v12 = vmul.f32 %v4272_v42, %v2127_v5  ;;  %v2781_v42 = vrot.slane %v2776_v35, %v4748_v61  ;;  %v2785_v5 = vrot.slane %v2776_v35, %v4752_v15 }
 0x955   :  { %2132 = vrot.lane.b32.xlu0 %v2130_v43, %s4510_s6 }
 0x956   :  { %v4276_v54 = vpop.eup %4275 }
 0x957   :  { %v2356_v55 = vmul.f32 %v4276_v54, %v4274_v45  ;;  %v4278_v1 = vpop.eup %4277  ;;  %v2355_v21 = vmul.f32 %v4276_v54, %v2353_v14 }
 0x958   :  { %v2122_v6 = vadd.f32 1.0, %v4278_v1  ;;  %v4280_v7 = vpop.eup %4279 }
 0x959   :  { %2358 = vrot.lane.b32.xlu1 %v2356_v55, %s4510_s6  ;;  %v2348_v20 = vadd.f32 1.0, %v4280_v7 }
 0x95a   :  { %4281 = vrcp.f32 %v2122_v6 }
 0x964   :  { %v4282_v25 = vpop.eup %4281 }
 0x9c7   :  { %v2133_v16 = vpop.permute.xlu0 %2132 }
 0x9c8   :  { %v2135_v19 = vadd.f32 %v2133_v16, %v2129_v12 }
 0x9ca   :  { %4283 = vtanh.f32 %v2135_v19 }
 0x9cb   :  { %v2359_v23 = vpop.permute.xlu1 %2358  ;;  %4285 = vrcp.f32 %v2348_v20 }
 0x9cc   :  { %v2361_v24 = vadd.f32 %v2359_v23, %v2355_v21 }
 0x9ce   :  { %4287 = vtanh.f32 %v2361_v24 }
 0x9d4   :  { %v4284_v28 = vpop.eup %4283 }
 0x9d5   :  { %v2137_v29 = vmul.f32 %v4284_v28, %v4282_v25  ;;  %v4286_v30 = vpop.eup %4285 }
 0x9d7   :  { %2139 = vrot.lane.b32.xlu0 %v2137_v29, %s4510_s6 }
 0x9d8   :  { %v4288_v32 = vpop.eup %4287 }
 0x9d9   :  { %v2363_v33 = vmul.f32 %v4288_v32, %v4286_v30 }
 0x9db   :  { %2144 = vrot.lane.b32.xlu0 %v2135_v19, %s4510_s6  ;;  %2365 = vrot.lane.b32.xlu1 %v2363_v33, %s4510_s6 }
 0x9df   :  { %2370 = vrot.lane.b32.xlu1 %v2361_v24, %s4510_s6 }
 0xa49   :  { %v2140_v34 = vpop.permute.xlu0 %2139 }
 0xa4a   :  { %2142 = vst.msk [vmem:[#allocation2] sm:$0x3] %vm102_vm0, %v2140_v34  ;;  %3812 = vst.msk [vmem:[%s5237_s7 + $0x8] sm:$0x3] %vm102_vm0, %v2140_v34 }
 0xa4d   :  { %v2145_v36 = vpop.permute.xlu0 %2144  ;;  %v2366_v48 = vpop.permute.xlu1 %2365 }
 0xa4e   :  { %2147 = vst.msk [vmem:[#allocation3] sm:$0x3] %vm102_vm0, %v2145_v36  ;;  %2368 = vst.msk [vmem:[#allocation4] sm:$0x3] %vm102_vm0, %v2366_v48 }
 0xa4f   :  { %3820 = vst.msk [vmem:[%s5238_s8 + $0x6] sm:$0x3] %vm102_vm0, %v2366_v48 }
 0xa51   :  { %v2371_v37 = vpop.permute.xlu1 %2370  ;;  %v2377_v38 = vld [vmem:[#allocation2] sm:$0x3] }
 0xa52   :  { %2373 = vst.msk [vmem:[#allocation5] sm:$0x3] %vm102_vm0, %v2371_v37  ;;  %3822 = vmatmul.mubr.msk.f32.vlgmr.msra.gmra.mrb[10].mxu0 %vm127_vm2, %v2377_v38 }
 0xa53   :  { %3824 = vmatpush1.msk.msra.mxu0 %vm208_vm1, %v4965_v53  ;;  %2543 = vmatprep.mubr.f32.mxu0 %v4509_v0 }
 0xa54   :  { %4060 = vmatprep.subr.bf16.mxu0 %v4924_v56 }
 0xa55   :  { %v2378_v41 = vld [vmem:[#allocation3] sm:$0x3]  ;;  %v2603_v9 = vld [vmem:[#allocation4] sm:$0x3] }
 0xa56   :  { %2578 = vrot.lane.b32.xlu0 %v2378_v41, %s4510_s6  ;;  %3830 = vmatmul.mubr.msk.f32.vlgmr.msra.gmra.mrb[10].mxu1 %vm127_vm2, %v2603_v9 }
 0xa57   :  { %3832 = vmatpush1.msk.msra.mxu1 %vm208_vm1, %v4979_v63  ;;  %2769 = vmatprep.mubr.f32.mxu1 %v4509_v0 }
 0xa58   :  { %4076 = vmatprep.subr.bf16.mxu1 %v4931_v3 }
 0xa59   :  { %v2604_v18 = vld [vmem:[#allocation5] sm:$0x3] }
 0xa5a   :  { %3825 = vmatmul.mubr.msk.f32.vlgmr.msra.gmra.mrb[10].mxu0 %vm204_vm3, %v3821_v13  ;;  %2804 = vrot.lane.b32.xlu1 %v2604_v18, %s4510_s6 }
 0xa5b   :  { %4062 = vmatpush1.bf16.msra.mxu0 %v4926_v60  ;;  %2915 = vmatprep.mubr.f32.mxu0 %v4509_v0 }
 0xa5c   :  { %4064 = vmatprep.subr.bf16.mxu0 %v4928_v62 }
 0xa5e   :  { %3833 = vmatmul.mubr.msk.f32.vlgmr.msra.gmra.mrb[10].mxu1 %vm204_vm3, %v3829_v22 }
 0xa5f   :  { %4066 = vmatpush1.bf16.msra.mxu0 %v4934_v10  ;;  %4078 = vmatpush1.bf16.msra.mxu1 %v4936_v11 }
 0xa60   :  { %4068 = vmatprep.subr.bf16.mxu0 %v4942_v47  ;;  %4080 = vmatprep.subr.bf16.mxu1 %v4944_v4 }
 0xa61   :  { %3141 = vmatprep.mubr.f32.mxu1 %v4509_v0 }
 0xa63   :  { %4070 = vmatpush1.bf16.msra.mxu0 %v4946_v8  ;;  %4082 = vmatpush1.bf16.msra.mxu1 %v4949_v17 }
 0xa64   :  { %4072 = vmatprep.subr.bf16.mxu0 %v4954_v27  ;;  %4084 = vmatprep.subr.bf16.mxu1 %v4956_v40 }
 0xa67   :  { %4074 = vmatpush1.bf16.msra.mxu0 %v4958_v44  ;;  %4086 = vmatpush1.bf16.msra.mxu1 %v4961_v52 }
 0xa68   :  { %3839 = vmatprep.subr.msk.mxu0 %vm208_vm1, %v4970_v46  ;;  %4088 = vmatprep.subr.bf16.mxu1 %v4972_v50 }
 0xa6b   :  { %4090 = vmatpush1.bf16.msra.mxu1 %v4974_v58 }
 0xa6c   :  { %3847 = vmatprep.subr.msk.mxu1 %vm208_vm1, %v4985_v2 }
 0xac8   :  { %v2579_v32 = vpop.permute.xlu0 %2578 }
 0xacc   :  { %v2805_v48 = vpop.permute.xlu1 %2804 }
 0xb2d   :  { %v2545_v39 = vpop.f32.mrb[10].mxu0 }
 0xb2e   :  { %v2562_v49 = vadd.f32 %v2555_v31, %v2545_v39  ;;  %v2547_v51 = vpop.f32.mrb[11].mxu0 }
 0xb2f   :  { %v2563_v1 = vadd.f32 %v2559_v59, %v2547_v51  ;;  %v3837_v59 = vld [vmem:[%s5230_s0 + $0xc] sm:$0x3] }
 0xb30   :  { %v3826_v43 = vmul.f32 -1.442695, %v2562_v49 }
 0xb31   :  { %v2771_v45 = vpop.f32.mrb[10].mxu1  ;;  %v3827_v28 = vmul.f32 -1.442695, %v2563_v1 }
 0xb32   :  { %4289 = vpow2.f32 %v3826_v43  ;;  %v2788_v54 = vadd.f32 %v2781_v42, %v2771_v45  ;;  %v2773_v55 = vpop.f32.mrb[11].mxu1 }
 0xb33   :  { %v2789_v12 = vadd.f32 %v2785_v5, %v2773_v55 }
 0xb34   :  { %v3834_v57 = vmul.f32 -1.442695, %v2788_v54 }
 0xb35   :  { %v3835_v29 = vmul.f32 -1.442695, %v2789_v12 }
 0xb36   :  { %4291 = vpow2.f32 %v3834_v57 }
 0xb37   :  { %4293 = vtanh.f32 %v2563_v1 }
 0xb3c   :  { %v4290_v6 = vpop.eup %4289 }
 0xb3d   :  { %v2567_v7 = vadd.f32 1.0, %v4290_v6 }
 0xb3f   :  { %4295 = vrcp.f32 %v2567_v7 }
 0xb40   :  { %v4292_v14 = vpop.eup %4291  ;;  %4297 = vtanh.f32 %v2789_v12 }
 0xb41   :  { %v2793_v16 = vadd.f32 1.0, %v4292_v14  ;;  %v4294_v19 = vpop.eup %4293 }
 0xb43   :  { %4299 = vrcp.f32 %v2793_v16 }
 0xb44   :  { %4301 = vpow2.f32 %v3827_v28 }
 0xb45   :  { %4303 = vpow2.f32 %v3835_v29 }
 0xb49   :  { %v4296_v20 = vpop.eup %4295 }
 0xb4a   :  { %v2582_v21 = vmul.f32 %v4296_v20, %v4294_v19  ;;  %v4298_v23 = vpop.eup %4297  ;;  %v2581_v36 = vmul.f32 %v4296_v20, %v2579_v32 }
 0xb4c   :  { %2584 = vrot.lane.b32.xlu0 %v2582_v21, %s4510_s6 }
 0xb4d   :  { %v4300_v24 = vpop.eup %4299 }
 0xb4e   :  { %v2808_v25 = vmul.f32 %v4300_v24, %v4298_v23  ;;  %v4302_v30 = vpop.eup %4301  ;;  %v2807_v9 = vmul.f32 %v4300_v24, %v2805_v48 }
 0xb4f   :  { %v2574_v33 = vadd.f32 1.0, %v4302_v30  ;;  %v4304_v34 = vpop.eup %4303 }
 0xb50   :  { %2810 = vrot.lane.b32.xlu1 %v2808_v25, %s4510_s6  ;;  %v2800_v41 = vadd.f32 1.0, %v4304_v34 }
 0xb51   :  { %4305 = vrcp.f32 %v2574_v33 }
 0xb5b   :  { %v4306_v22 = vpop.eup %4305 }
 0xbbe   :  { %v2585_v37 = vpop.permute.xlu0 %2584 }
 0xbbf   :  { %v2587_v38 = vadd.f32 %v2585_v37, %v2581_v36 }
 0xbc1   :  { %4307 = vtanh.f32 %v2587_v38 }
 0xbc2   :  { %v2811_v13 = vpop.permute.xlu1 %2810  ;;  %4309 = vrcp.f32 %v2800_v41 }
 0xbc3   :  { %v2813_v18 = vadd.f32 %v2811_v13, %v2807_v9 }
 0xbc5   :  { %4311 = vtanh.f32 %v2813_v18 }
 0xbcb   :  { %v4308_v26 = vpop.eup %4307 }
 0xbcc   :  { %v2589_v31 = vmul.f32 %v4308_v26, %v4306_v22  ;;  %v4310_v35 = vpop.eup %4309 }
 0xbce   :  { %2591 = vrot.lane.b32.xlu0 %v2589_v31, %s4510_s6 }
 0xbcf   :  { %v4312_v39 = vpop.eup %4311 }
 0xbd0   :  { %v2815_v49 = vmul.f32 %v4312_v39, %v4310_v35 }
 0xbd2   :  { %2596 = vrot.lane.b32.xlu0 %v2587_v38, %s4510_s6  ;;  %2817 = vrot.lane.b32.xlu1 %v2815_v49, %s4510_s6 }
 0xbd6   :  { %2822 = vrot.lane.b32.xlu1 %v2813_v18, %s4510_s6 }
 0xc40   :  { %v2592_v51 = vpop.permute.xlu0 %2591 }
 0xc41   :  { %2594 = vst.msk [vmem:[#allocation2] sm:$0x3] %vm102_vm0, %v2592_v51  ;;  %3828 = vst.msk [vmem:[%s5237_s7 + $0xa] sm:$0x3] %vm102_vm0, %v2592_v51 }
 0xc44   :  { %v2597_v42 = vpop.permute.xlu0 %2596  ;;  %v2818_v43 = vpop.permute.xlu1 %2817 }
 0xc45   :  { %2599 = vst.msk [vmem:[#allocation3] sm:$0x3] %vm102_vm0, %v2597_v42  ;;  %2820 = vst.msk [vmem:[#allocation4] sm:$0x3] %vm102_vm0, %v2818_v43 }
 0xc46   :  { %3836 = vst.msk [vmem:[%s5238_s8 + $0x4] sm:$0x3] %vm102_vm0, %v2818_v43 }
 0xc48   :  { %v2823_v45 = vpop.permute.xlu1 %2822  ;;  %v2829_v54 = vld [vmem:[#allocation2] sm:$0x3] }
 0xc49   :  { %2825 = vst.msk [vmem:[#allocation5] sm:$0x3] %vm102_vm0, %v2823_v45  ;;  %3838 = vmatmul.mubr.msk.f32.vlgmr.msra.gmra.mrb[12].mxu0 %vm127_vm2, %v2829_v54  ;;  %v3853_v54 = vld [vmem:[%s5230_s0 + $0xe] sm:$0x3] }
 0xc4a   :  { %3840 = vmatpush1.msk.msra.mxu0 %vm208_vm1, %v4965_v53  ;;  %2995 = vmatprep.mubr.f32.mxu0 %v4509_v0 }
 0xc4b   :  { %4092 = vmatprep.subr.bf16.mxu0 %v4924_v56  ;;  %v3845_v56 = vld [vmem:[%s5230_s0 + $0x2] sm:$0x3] }
 0xc4c   :  { %v2830_v55 = vld [vmem:[#allocation3] sm:$0x3]  ;;  %v3055_v57 = vld [vmem:[#allocation4] sm:$0x3] }
 0xc4d   :  { %3030 = vrot.lane.b32.xlu0 %v2830_v55, %s4510_s6  ;;  %3846 = vmatmul.mubr.msk.f32.vlgmr.msra.gmra.mrb[12].mxu1 %vm127_vm2, %v3055_v57  ;;  %v3454_v57 = vld [vmem:[#allocation10] sm:$0x3] }
 0xc4e   :  { %3848 = vmatpush1.msk.msra.mxu1 %vm208_vm1, %v4979_v63  ;;  %3221 = vmatprep.mubr.f32.mxu1 %v4509_v0 }
 0xc4f   :  { %4108 = vmatprep.subr.bf16.mxu1 %v4931_v3  ;;  %v3228_v3 = vld [vmem:[#allocation14] sm:$0x3] }
 0xc50   :  { %v3056_v1 = vld [vmem:[#allocation5] sm:$0x3] }
 0xc51   :  { %3841 = vmatmul.mubr.msk.f32.vlgmr.msra.gmra.mrb[12].mxu0 %vm204_vm3, %v3837_v59  ;;  %3256 = vrot.lane.b32.xlu1 %v3056_v1, %s4510_s6  ;;  %v3680_v59 = vld [vmem:[#allocation14] sm:$0x3] }
 0xc52   :  { %4094 = vmatpush1.bf16.msra.mxu0 %v4926_v60  ;;  %3367 = vmatprep.mubr.f32.mxu0 %v4509_v0  ;;  %v3002_v60 = vld [vmem:[#allocation10] sm:$0x3] }
 0xc53   :  { %4096 = vmatprep.subr.bf16.mxu0 %v4928_v62  ;;  %v3007_v62 = vrot.slane %v3002_v60, %v4748_v61 }
 0xc55   :  { %3849 = vmatmul.mubr.msk.f32.vlgmr.msra.gmra.mrb[12].mxu1 %vm204_vm3, %v3845_v56 }
 0xc56   :  { %4098 = vmatpush1.bf16.msra.mxu0 %v4934_v10  ;;  %4110 = vmatpush1.bf16.msra.mxu1 %v4936_v11 }
 0xc57   :  { %4100 = vmatprep.subr.bf16.mxu0 %v4942_v47  ;;  %4112 = vmatprep.subr.bf16.mxu1 %v4944_v4  ;;  %v3233_v4 = vrot.slane %v3228_v3, %v4748_v61 }
 0xc58   :  { %3593 = vmatprep.mubr.f32.mxu1 %v4509_v0 }
 0xc5a   :  { %4102 = vmatpush1.bf16.msra.mxu0 %v4946_v8  ;;  %4114 = vmatpush1.bf16.msra.mxu1 %v4949_v17 }
 0xc5b   :  { %4104 = vmatprep.subr.bf16.mxu0 %v4954_v27  ;;  %4116 = vmatprep.subr.bf16.mxu1 %v4956_v40 }
 0xc5e   :  { %4106 = vmatpush1.bf16.msra.mxu0 %v4958_v44  ;;  %4118 = vmatpush1.bf16.msra.mxu1 %v4961_v52  ;;  %v3011_v52 = vrot.slane %v3002_v60, %v4752_v15 }
 0xc5f   :  { %3855 = vmatprep.subr.msk.mxu0 %vm208_vm1, %v4970_v46  ;;  %4120 = vmatprep.subr.bf16.mxu1 %v4972_v50  ;;  %v3237_v50 = vrot.slane %v3228_v3, %v4752_v15 }
 0xc62   :  { %4122 = vmatpush1.bf16.msra.mxu1 %v4974_v58 }
 0xc63   :  { %3862 = vmatprep.subr.msk.mxu1 %vm208_vm1, %v4985_v2 }
 0xcbf   :  { %v3031_v28 = vpop.permute.xlu0 %3030 }
 0xcc3   :  { %v3257_v33 = vpop.permute.xlu1 %3256 }
 0xd24   :  { %v2997_v10 = vpop.f32.mrb[12].mxu0 }
 0xd25   :  { %v3014_v11 = vadd.f32 %v3007_v62, %v2997_v10  ;;  %v2999_v47 = vpop.f32.mrb[13].mxu0 }
 0xd26   :  { %v3015_v46 = vadd.f32 %v3011_v52, %v2999_v47 }
 0xd27   :  { %v3842_v8 = vmul.f32 -1.442695, %v3014_v11 }
 0xd28   :  { %v3223_v17 = vpop.f32.mrb[12].mxu1  ;;  %v3843_v23 = vmul.f32 -1.442695, %v3015_v46 }
 0xd29   :  { %4313 = vpow2.f32 %v3842_v8  ;;  %v3240_v27 = vadd.f32 %v3233_v4, %v3223_v17  ;;  %v3225_v40 = vpop.f32.mrb[13].mxu1  ;;  %v3463_v4 = vrot.slane %v3454_v57, %v4752_v15  ;;  %v3689_v17 = vrot.slane %v3680_v59, %v4752_v15 }
 0xd2a   :  { %v3241_v5 = vadd.f32 %v3237_v50, %v3225_v40 }
 0xd2b   :  { %v3850_v44 = vmul.f32 -1.442695, %v3240_v27 }
 0xd2c   :  { %v3851_v24 = vmul.f32 -1.442695, %v3241_v5 }
 0xd2d   :  { %4315 = vpow2.f32 %v3850_v44 }
 0xd2e   :  { %4317 = vtanh.f32 %v3015_v46 }
 0xd33   :  { %v4314_v58 = vpop.eup %4313 }
 0xd34   :  { %v3019_v2 = vadd.f32 1.0, %v4314_v58 }
 0xd36   :  { %4319 = vrcp.f32 %v3019_v2 }
 0xd37   :  { %v4316_v6 = vpop.eup %4315  ;;  %4321 = vtanh.f32 %v3241_v5 }
 0xd38   :  { %v3245_v7 = vadd.f32 1.0, %v4316_v6  ;;  %v4318_v12 = vpop.eup %4317 }
 0xd3a   :  { %4323 = vrcp.f32 %v3245_v7 }
 0xd3b   :  { %4325 = vpow2.f32 %v3843_v23 }
 0xd3c   :  { %4327 = vpow2.f32 %v3851_v24 }
 0xd40   :  { %v4320_v14 = vpop.eup %4319 }
 0xd41   :  { %v3034_v16 = vmul.f32 %v4320_v14, %v4318_v12  ;;  %v4322_v19 = vpop.eup %4321  ;;  %v3033_v32 = vmul.f32 %v4320_v14, %v3031_v28 }
 0xd43   :  { %3036 = vrot.lane.b32.xlu0 %v3034_v16, %s4510_s6 }
 0xd44   :  { %v4324_v20 = vpop.eup %4323 }
 0xd45   :  { %v3260_v21 = vmul.f32 %v4324_v20, %v4322_v19  ;;  %v4326_v25 = vpop.eup %4325  ;;  %v3259_v37 = vmul.f32 %v4324_v20, %v3257_v33 }
 0xd46   :  { %v3026_v29 = vadd.f32 1.0, %v4326_v25  ;;  %v4328_v30 = vpop.eup %4327 }
 0xd47   :  { %3262 = vrot.lane.b32.xlu1 %v3260_v21, %s4510_s6  ;;  %v3252_v48 = vadd.f32 1.0, %v4328_v30 }
 0xd48   :  { %4329 = vrcp.f32 %v3026_v29 }
 0xd52   :  { %v4330_v9 = vpop.eup %4329 }
 0xdb5   :  { %v3037_v34 = vpop.permute.xlu0 %3036 }
 0xdb6   :  { %v3039_v36 = vadd.f32 %v3037_v34, %v3033_v32 }
 0xdb8   :  { %4331 = vtanh.f32 %v3039_v36 }
 0xdb9   :  { %v3263_v38 = vpop.permute.xlu1 %3262  ;;  %4333 = vrcp.f32 %v3252_v48 }
 0xdba   :  { %v3265_v41 = vadd.f32 %v3263_v38, %v3259_v37 }
 0xdbc   :  { %4335 = vtanh.f32 %v3265_v41 }
 0xdc2   :  { %v4332_v13 = vpop.eup %4331 }
 0xdc3   :  { %v3041_v18 = vmul.f32 %v4332_v13, %v4330_v9  ;;  %v4334_v22 = vpop.eup %4333 }
 0xdc5   :  { %3043 = vrot.lane.b32.xlu0 %v3041_v18, %s4510_s6 }
 0xdc6   :  { %v4336_v26 = vpop.eup %4335 }
 0xdc7   :  { %v3267_v31 = vmul.f32 %v4336_v26, %v4334_v22 }
 0xdc9   :  { %3048 = vrot.lane.b32.xlu0 %v3039_v36, %s4510_s6  ;;  %3269 = vrot.lane.b32.xlu1 %v3267_v31, %s4510_s6 }
 0xdcd   :  { %3274 = vrot.lane.b32.xlu1 %v3265_v41, %s4510_s6 }
 0xe37   :  { %v3044_v35 = vpop.permute.xlu0 %3043 }
 0xe38   :  { %3046 = vst.msk [vmem:[#allocation2] sm:$0x3] %vm102_vm0, %v3044_v35  ;;  %3844 = vst.msk [vmem:[%s5237_s7 + $0xc] sm:$0x3] %vm102_vm0, %v3044_v35 }
 0xe3b   :  { %v3049_v39 = vpop.permute.xlu0 %3048  ;;  %v3270_v49 = vpop.permute.xlu1 %3269 }
 0xe3c   :  { %3051 = vst.msk [vmem:[#allocation3] sm:$0x3] %vm102_vm0, %v3049_v39  ;;  %3272 = vst.msk [vmem:[#allocation4] sm:$0x3] %vm102_vm0, %v3270_v49 }
 0xe3d   :  { %3852 = vst.msk [vmem:[%s5238_s8 + $0x2] sm:$0x3] %vm102_vm0, %v3270_v49 }
 0xe3f   :  { %v3275_v51 = vpop.permute.xlu1 %3274  ;;  %v3281_v42 = vld [vmem:[#allocation2] sm:$0x3] }
 0xe40   :  { %3277 = vst.msk [vmem:[#allocation5] sm:$0x3] %vm102_vm0, %v3275_v51  ;;  %3854 = vmatmul.mubr.msk.f32.vlgmr.msra.gmra.mrb[14].mxu0 %vm127_vm2, %v3281_v42 }
 0xe41   :  { %3856 = vmatpush1.msk.msra.mxu0 %vm208_vm1, %v4965_v53  ;;  %3447 = vmatprep.mubr.f32.mxu0 %v4509_v0  ;;  %v3506_v53 = vld [vmem:[%s5230_s0] sm:$0x3] }
 0xe43   :  { %v3282_v43 = vld [vmem:[#allocation3] sm:$0x3]  ;;  %v3507_v45 = vld [vmem:[#allocation4] sm:$0x3] }
 0xe44   :  { %3482 = vrot.lane.b32.xlu0 %v3282_v43, %s4510_s6  ;;  %3861 = vmatmul.mubr.msk.f32.vlgmr.msra.gmra.mrb[14].mxu1 %vm127_vm2, %v3507_v45 }
 0xe45   :  { %3863 = vmatpush1.msk.msra.mxu1 %vm208_vm1, %v4979_v63  ;;  %3673 = vmatprep.mubr.f32.mxu1 %v4509_v0  ;;  %v3459_v63 = vrot.slane %v3454_v57, %v4748_v61  ;;  %v3685_v0 = vrot.slane %v3680_v59, %v4748_v61 }
 0xe47   :  { %v3508_v55 = vld [vmem:[#allocation5] sm:$0x3] }
 0xe48   :  { %3857 = vmatmul.mubr.msk.f32.vlgmr.msra.gmra.mrb[14].mxu0 %vm204_vm3, %v3853_v54  ;;  %3708 = vrot.lane.b32.xlu1 %v3508_v55, %s4510_s6 }
 0xe4c   :  { %3864 = vmatmul.mubr.msk.f32.vlgmr.msra.gmra.mrb[14].mxu1 %vm204_vm3, %v3506_v53 }
 0xeb6   :  { %v3483_v14 = vpop.permute.xlu0 %3482 }
 0xeba   :  { %v3709_v21 = vpop.permute.xlu1 %3708 }
 0xf1b   :  { %v3449_v1 = vpop.f32.mrb[14].mxu0 }
 0xf1c   :  { %v3466_v56 = vadd.f32 %v3459_v63, %v3449_v1  ;;  %v3451_v60 = vpop.f32.mrb[15].mxu0 }
 0xf1d   :  { %v3467_v8 = vadd.f32 %v3463_v4, %v3451_v60 }
 0xf1e   :  { %v3858_v62 = vmul.f32 -1.442695, %v3466_v56 }
 0xf1f   :  { %v3675_v3 = vpop.f32.mrb[14].mxu1  ;;  %v3859_v15 = vmul.f32 -1.442695, %v3467_v8 }
 0xf20   :  { %4337 = vpow2.f32 %v3858_v62  ;;  %v3692_v10 = vadd.f32 %v3685_v0, %v3675_v3  ;;  %v3677_v11 = vpop.f32.mrb[15].mxu1 }
 0xf21   :  { %v3693_v44 = vadd.f32 %v3689_v17, %v3677_v11 }
 0xf22   :  { %v3865_v47 = vmul.f32 -1.442695, %v3692_v10 }
 0xf23   :  { %v3866_v7 = vmul.f32 -1.442695, %v3693_v44 }
 0xf24   :  { %4339 = vpow2.f32 %v3865_v47 }
 0xf25   :  { %4341 = vtanh.f32 %v3467_v8 }
 0xf2a   :  { %v4338_v27 = vpop.eup %4337 }
 0xf2b   :  { %v3471_v40 = vadd.f32 1.0, %v4338_v27 }
 0xf2d   :  { %4343 = vrcp.f32 %v3471_v40 }
 0xf2e   :  { %v4340_v52 = vpop.eup %4339  ;;  %4345 = vtanh.f32 %v3693_v44 }
 0xf2f   :  { %v3697_v46 = vadd.f32 1.0, %v4340_v52  ;;  %v4342_v61 = vpop.eup %4341 }
 0xf31   :  { %4347 = vrcp.f32 %v3697_v46 }
 0xf32   :  { %4349 = vpow2.f32 %v3859_v15 }
 0xf33   :  { %4351 = vpow2.f32 %v3866_v7 }
 0xf37   :  { %v4344_v50 = vpop.eup %4343 }
 0xf38   :  { %v3486_v58 = vmul.f32 %v4344_v50, %v4342_v61  ;;  %v4346_v2 = vpop.eup %4345  ;;  %v3485_v20 = vmul.f32 %v4344_v50, %v3483_v14 }
 0xf3a   :  { %3488 = vrot.lane.b32.xlu0 %v3486_v58, %s4510_s6 }
 0xf3b   :  { %v4348_v5 = vpop.eup %4347 }
 0xf3c   :  { %v3712_v6 = vmul.f32 %v4348_v5, %v4346_v2  ;;  %v4350_v12 = vpop.eup %4349  ;;  %v3711_v28 = vmul.f32 %v4348_v5, %v3709_v21 }
 0xf3d   :  { %v3478_v16 = vadd.f32 1.0, %v4350_v12  ;;  %v4352_v19 = vpop.eup %4351 }
 0xf3e   :  { %3714 = vrot.lane.b32.xlu1 %v3712_v6, %s4510_s6  ;;  %v3704_v25 = vadd.f32 1.0, %v4352_v19 }
 0xf3f   :  { %4353 = vrcp.f32 %v3478_v16 }
 0xf49   :  { %v4354_v32 = vpop.eup %4353 }
 0xfac   :  { %v3489_v23 = vpop.permute.xlu0 %3488 }
 0xfad   :  { %v3491_v24 = vadd.f32 %v3489_v23, %v3485_v20 }
 0xfaf   :  { %4355 = vtanh.f32 %v3491_v24  ;;  %3500 = vrot.lane.b32.xlu1 %v3491_v24, %s4510_s6 }
 0xfb0   :  { %v3715_v29 = vpop.permute.xlu1 %3714  ;;  %4357 = vrcp.f32 %v3704_v25 }
 0xfb1   :  { %v3717_v30 = vadd.f32 %v3715_v29, %v3711_v28 }
 0xfb3   :  { %4359 = vtanh.f32 %v3717_v30  ;;  %3726 = vrot.lane.b32.xlu1 %v3717_v30, %s4510_s6 }
 0xfb9   :  { %v4356_v33 = vpop.eup %4355 }
 0xfba   :  { %v3493_v34 = vmul.f32 %v4356_v33, %v4354_v32  ;;  %v4358_v36 = vpop.eup %4357 }
 0xfbc   :  { %3495 = vrot.lane.b32.xlu0 %v3493_v34, %s4510_s6 }
 0xfbd   :  { %v4360_v48 = vpop.eup %4359 }
 0xfbe   :  { %v3719_v37 = vmul.f32 %v4360_v48, %v4358_v36 }
 0xfc0   :  { %3721 = vrot.lane.b32.xlu0 %v3719_v37, %s4510_s6 }
0x1021   :  { %v3501_v38 = vpop.permute.xlu1 %3500 }
0x1022   :  { %3503 = vst.msk [vmem:[#allocation3] sm:$0x3] %vm102_vm0, %v3501_v38 }
0x1025   :  { %v3727_v41 = vpop.permute.xlu1 %3726 }
0x1026   :  { %3729 = vst.msk [vmem:[#allocation5] sm:$0x3] %vm102_vm0, %v3727_v41 }
0x102e   :  { %v3496_v9 = vpop.permute.xlu0 %3495 }
0x102f   :  { %3498 = vst.msk [vmem:[#allocation2] sm:$0x3] %vm102_vm0, %v3496_v9  ;;  %3860 = vst.msk [vmem:[%s5237_s7 + $0xe] sm:$0x3] %vm102_vm0, %v3496_v9 }
0x1032   :  { %v3722_v13 = vpop.permute.xlu0 %3721 }
0x1033   :  { %3724 = vst.msk [vmem:[#allocation4] sm:$0x3] %vm102_vm0, %v3722_v13  ;;  %3730 = vst.msk [vmem:[%s5238_s8] sm:$0x3] %vm102_vm0, %v3722_v13 }
0x1034   :  { %3739 = vsyncpa [#allocation7], 1 }
0x1035   :  { %3740 = vsyncpa [#allocation9], 1 }
0x1036   :  { %3741 = vsyncpa [#allocation12], 1 }
0x1037   :  { %3742 = vsyncpa [#allocation15], 1 }

// kernel: lstm_ae_forward.3
= control target key start
LH: loop header
LB: loop body
LE: loop exit
PB: predicated region body
PF: predicated region fallthrough
CT: control target
= control target key end

     0   :  { %14 = vsyncpa [#allocation7], 0  ;;  %s6934_s0 = inlined_call_operand.vmem [shape: f32[8,2,128], index: 0, kind: input, shape index: {}]   ;;  %s6935_s1 = inlined_call_operand.vmem [shape: f32[128,256], index: 1, kind: input, shape index: {}]   ;;  %s6936_s2 = inlined_call_operand.vmem [shape: f32[64,256], index: 2, kind: input, shape index: {}]   ;;  %s6937_s3 = inlined_call_operand.vmem [shape: f32[1,256], index: 3, kind: input, shape index: {}]   ;;  %s6938_s4 = inlined_call_operand.hbm [shape: f32[128,256], index: 4, kind: input, shape index: {}]   ;;  %s6939_s5 = inlined_call_operand.hbm [shape: f32[64,256], index: 5, kind: input, shape index: {}]   ;;  %s6940_s6 = inlined_call_operand.vmem [shape: f32[1,256], index: 6, kind: input, shape index: {}]   ;;  %s6941_s7 = inlined_call_operand.vmem [shape: f32[8,2,64], index: 7, kind: output, shape index: {0}]   ;;  %s6942_s8 = inlined_call_operand.vmem [shape: f32[8,2,64], index: 8, kind: output, shape index: {1}]  }
   0x1   :  { %15 = vsyncpa [#allocation9], 0  ;;  %s5167_s27 = smov [#allocation6]   ;;  %s5119_s9 = scalar_lea.hbm %s6938_s4, 4096 }
   0x2   :  { %s29_s28 = sshll.u32 %s5167_s27, 4  ;;  %p5120_p0 = scmp.ne.s32.totalorder %s6938_s4, %s5119_s9  ;;  %s30_s28 = int_to_ptr.vmem [resolvable:$true] %s29_s28 }
   0x3   :  { %p5123_p1 = scmp.lt.u32.totalorder %s5119_s9, %s6938_s4 }
   0x5   :  { %p5125_p2 = pnand %p5123_p1, %p5120_p0 }
   0x7   :  { %5128 = shalt.err (!%p5125_p2)
}
   0x8   :  { %s5129_s14 = scalar_lea.vmem %s30_s28, 4096  ;;  %p5134_p4 = scmp.lt.s32.totalorder %s30_s28, %s30_s28 }
   0x9   :  { %p5130_p3 = scmp.ne.s32.totalorder %s30_s28, %s5129_s14  ;;  %p5135_p5 = scmp.lt.s32.totalorder %s5129_s14, %s5129_s14 }
   0xb   :  { %p5136_p6 = por %p5135_p5, %p5134_p4 }
   0xd   :  { %p5137_p7 = pnand %p5136_p6, %p5130_p3 }
   0xf   :  { %5140 = shalt.err (!%p5137_p7)
}
  0x10   :  { %s5168_s15 = smov 256   ;;  %s5169_s16 = smov 16  }
  0x11   :  { %35 = dma.hbm_to_vmem [thread:$0]  %s6938_s4, 4096, %s30_s28, [#allocation7], %s5168_s15, %s5168_s15, %s5169_s16  }
  0x12   :  { %s5170_s19 = smov [#allocation8]   ;;  %s5141_s23 = scalar_lea.hbm %s6939_s5, 2048 }
  0x13   :  { %s41_s20 = sshll.u32 %s5170_s19, 4  ;;  %p5142_p8 = scmp.ne.s32.totalorder %s6939_s5, %s5141_s23  ;;  %s42_s20 = int_to_ptr.vmem [resolvable:$true] %s41_s20 }
  0x14   :  { %p5145_p9 = scmp.lt.u32.totalorder %s5141_s23, %s6939_s5 }
  0x16   :  { %p5147_p10 = pnand %p5145_p9, %p5142_p8 }
  0x18   :  { %5150 = shalt.err (!%p5147_p10)
}
  0x19   :  { %s5151_s29 = scalar_lea.vmem %s42_s20, 2048  ;;  %p5156_p12 = scmp.lt.s32.totalorder %s42_s20, %s42_s20 }
  0x1a   :  { %p5152_p11 = scmp.ne.s32.totalorder %s42_s20, %s5151_s29  ;;  %p5157_p13 = scmp.lt.s32.totalorder %s5151_s29, %s5151_s29 }
  0x1c   :  { %p5158_p0 = por %p5157_p13, %p5156_p12 }
  0x1e   :  { %p5159_p1 = pnand %p5158_p0, %p5152_p11 }
  0x20   :  { %5162 = shalt.err (!%p5159_p1)
}
  0x21   :  { %47 = dma.hbm_to_vmem [thread:$0]  %s6939_s5, 2048, %s42_s20, [#allocation9], %s5168_s15, %s5168_s15, %s5169_s16  }
  0x22   :  { %5163 = dma.done.wait [#allocation7], 4096  }
  0x23   :  { %5164 = vsyncadd [#allocation7], 4294963200 }
  0x24   :  { %5165 = dma.done.wait [#allocation9], 2048  }
  0x25   :  { %5166 = vsyncadd [#allocation9], 4294965248  ;;  %vm56_vm0 = vcmask 517120   ;;  %v5171_v0 = vmov 0.0   ;;  %v97_v1 = vld [vmem:[%s6936_s2 + $0x8] sm:$0xff]  ;;  %v99_v2 = vld [vmem:[%s6936_s2 + $0x18] sm:$0xff] }
  0x26   :  { %180 = vmatprep.mubr.f32.mxu0 %v5171_v0  ;;  %428 = vmatprep.mubr.f32.mxu1 %v5171_v0  ;;  %57 = vst.msk [vmem:[#allocation2] sm:$0x3] %vm56_vm0, %v5171_v0  ;;  %58 = vst.msk [vmem:[#allocation3] sm:$0x3] %vm56_vm0, %v5171_v0  ;;  %v346_v3 = vld [vmem:[#allocation8 + $0x8] sm:$0xff]  ;;  %v5258_v4 = vpack.c.bf16 %v99_v2, %v97_v1  ;;  %v348_v5 = vld [vmem:[#allocation8 + $0x18] sm:$0xff] }
  0x27   :  { %59 = vst.msk [vmem:[#allocation4] sm:$0x3] %vm56_vm0, %v5171_v0  ;;  %60 = vst.msk [vmem:[#allocation5] sm:$0x3] %vm56_vm0, %v5171_v0  ;;  %v96_v6 = vld [vmem:[%s6936_s2] sm:$0xff]  ;;  %v98_v7 = vld [vmem:[%s6936_s2 + $0x10] sm:$0xff]  ;;  %v5266_v8 = vpack.c.bf16 %v348_v5, %v346_v3 }
  0x28   :  { %v5268_v9 = vpack.c.bf16 %v98_v7, %v96_v6  ;;  %v345_v10 = vld [vmem:[#allocation8] sm:$0xff]  ;;  %v347_v11 = vld [vmem:[#allocation8 + $0x10] sm:$0xff]  ;;  %v101_v12 = vld [vmem:[%s6936_s2 + $0x28] sm:$0xff]  ;;  %4122 = vmatprep.subr.bf16.mxu0 %v5258_v4  ;;  %vm112_vm1 = vcmask 523264   ;;  %s5172_s19 = smov 64  }
  0x29   :  { %v5274_v13 = vpack.c.bf16 %v347_v11, %v345_v10  ;;  %v103_v14 = vld [vmem:[%s6936_s2 + $0x38] sm:$0xff]  ;;  %v352_v16 = vld [vmem:[#allocation8 + $0x38] sm:$0xff]  ;;  %4170 = vmatprep.subr.bf16.mxu1 %v5266_v8  ;;  %v100_v19 = vld [vmem:[%s6936_s2 + $0x20] sm:$0xff] }
  0x2a   :  { %v350_v15 = vld [vmem:[#allocation8 + $0x28] sm:$0xff]  ;;  %4124 = vmatpush1.bf16.msra.mxu0 %v5268_v9  ;;  %v5281_v17 = vpack.c.bf16 %v103_v14, %v101_v12  ;;  %v102_v20 = vld [vmem:[%s6936_s2 + $0x30] sm:$0xff]  ;;  %v351_v23 = vld [vmem:[#allocation8 + $0x30] sm:$0xff] }
  0x2b   :  { %v5283_v18 = vpack.c.bf16 %v352_v16, %v350_v15  ;;  %v349_v21 = vld [vmem:[#allocation8 + $0x20] sm:$0xff]  ;;  %4172 = vmatpush1.bf16.msra.mxu1 %v5274_v13  ;;  %v5292_v22 = vpack.c.bf16 %v102_v20, %v100_v19  ;;  %v105_v24 = vld [vmem:[%s6936_s2 + $0x48] sm:$0xff]  ;;  %v107_v25 = vld [vmem:[%s6936_s2 + $0x58] sm:$0xff] }
  0x2c   :  { %4126 = vmatprep.subr.bf16.mxu0 %v5281_v17  ;;  %v5302_v26 = vpack.c.bf16 %v351_v23, %v349_v21  ;;  %v5304_v27 = vpack.c.bf16 %v107_v25, %v105_v24  ;;  %v354_v28 = vld [vmem:[#allocation8 + $0x48] sm:$0xff]  ;;  %v356_v29 = vld [vmem:[#allocation8 + $0x58] sm:$0xff]  ;;  %v104_v30 = vld [vmem:[%s6936_s2 + $0x40] sm:$0xff] }
  0x2d   :  { %4174 = vmatprep.subr.bf16.mxu1 %v5283_v18  ;;  %v5309_v31 = vpack.c.bf16 %v356_v29, %v354_v28  ;;  %v106_v32 = vld [vmem:[%s6936_s2 + $0x50] sm:$0xff]  ;;  %v355_v34 = vld [vmem:[#allocation8 + $0x50] sm:$0xff]  ;;  %v109_v36 = vld [vmem:[%s6936_s2 + $0x68] sm:$0xff] }
  0x2e   :  { %v353_v33 = vld [vmem:[#allocation8 + $0x40] sm:$0xff]  ;;  %4128 = vmatpush1.bf16.msra.mxu0 %v5292_v22  ;;  %v5315_v35 = vpack.c.bf16 %v106_v32, %v104_v30  ;;  %v111_v37 = vld [vmem:[%s6936_s2 + $0x78] sm:$0xff]  ;;  %v360_v41 = vld [vmem:[#allocation8 + $0x78] sm:$0xff] }
  0x2f   :  { %v358_v38 = vld [vmem:[#allocation8 + $0x68] sm:$0xff]  ;;  %4176 = vmatpush1.bf16.msra.mxu1 %v5302_v26  ;;  %4130 = vmatprep.subr.bf16.mxu0 %v5304_v27  ;;  %v5325_v39 = vpack.c.bf16 %v355_v34, %v353_v33  ;;  %v5327_v40 = vpack.c.bf16 %v111_v37, %v109_v36  ;;  %v108_v42 = vld [vmem:[%s6936_s2 + $0x60] sm:$0xff]  ;;  %v110_v43 = vld [vmem:[%s6936_s2 + $0x70] sm:$0xff] }
  0x30   :  { %4178 = vmatprep.subr.bf16.mxu1 %v5309_v31  ;;  %v5336_v44 = vpack.c.bf16 %v360_v41, %v358_v38  ;;  %v357_v45 = vld [vmem:[#allocation8 + $0x60] sm:$0xff]  ;;  %v359_v46 = vld [vmem:[#allocation8 + $0x70] sm:$0xff]  ;;  %v65_v47 = vld [vmem:[%s6935_s1 + $0x8] sm:$0xff]  ;;  %v5345_v51 = vpack.c.bf16 %v110_v43, %v108_v42 }
  0x31   :  { %v67_v48 = vld [vmem:[%s6935_s1 + $0x18] sm:$0xff]  ;;  %v316_v50 = vld [vmem:[#allocation6 + $0x18] sm:$0xff]  ;;  %v5349_v52 = vpack.c.bf16 %v359_v46, %v357_v45  ;;  %v64_v54 = vld [vmem:[%s6935_s1] sm:$0xff] }
  0x32   :  { %v314_v49 = vld [vmem:[#allocation6 + $0x8] sm:$0xff]  ;;  %4132 = vmatpush1.bf16.msra.mxu0 %v5315_v35  ;;  %v5351_v53 = vpack.c.bf16 %v67_v48, %v65_v47  ;;  %v66_v55 = vld [vmem:[%s6935_s1 + $0x10] sm:$0xff]  ;;  %v315_v58 = vld [vmem:[#allocation6 + $0x10] sm:$0xff] }
  0x33   :  { %4180 = vmatpush1.bf16.msra.mxu1 %v5325_v39  ;;  %4134 = vmatprep.subr.bf16.mxu0 %v5327_v40  ;;  %v313_v56 = vld [vmem:[#allocation6] sm:$0xff]  ;;  %v5360_v57 = vpack.c.bf16 %v316_v50, %v314_v49  ;;  %v69_v59 = vld [vmem:[%s6935_s1 + $0x28] sm:$0xff]  ;;  %v71_v60 = vld [vmem:[%s6935_s1 + $0x38] sm:$0xff]  ;;  %v5369_v1 = vpack.c.bf16 %v66_v55, %v64_v54 }
  0x34   :  { %4182 = vmatprep.subr.bf16.mxu1 %v5336_v44  ;;  %v318_v61 = vld [vmem:[#allocation6 + $0x28] sm:$0xff]  ;;  %v320_v62 = vld [vmem:[#allocation6 + $0x38] sm:$0xff]  ;;  %v5373_v3 = vpack.c.bf16 %v315_v58, %v313_v56  ;;  %v5375_v5 = vpack.c.bf16 %v71_v60, %v69_v59  ;;  %v68_v6 = vld [vmem:[%s6935_s1 + $0x20] sm:$0xff] }
  0x35   :  { %v62_v63 = vld [vmem:[#allocation2] sm:$0x3]  ;;  %v311_v2 = vld [vmem:[#allocation4] sm:$0x3]  ;;  %v70_v7 = vld [vmem:[%s6935_s1 + $0x30] sm:$0xff]  ;;  %v5384_v11 = vpack.c.bf16 %v320_v62, %v318_v61 }
  0x36   :  { %4136 = vmatpush1.bf16.msra.mxu0 %v5345_v51  ;;  %v317_v10 = vld [vmem:[#allocation6 + $0x20] sm:$0xff]  ;;  %v319_v12 = vld [vmem:[#allocation6 + $0x30] sm:$0xff]  ;;  %v73_v14 = vld [vmem:[%s6935_s1 + $0x48] sm:$0xff]  ;;  %v5395_v20 = vpack.c.bf16 %v70_v7, %v68_v6 }
  0x37   :  { %4184 = vmatpush1.bf16.msra.mxu1 %v5349_v52  ;;  %4138 = vmatprep.subr.bf16.mxu0 %v5351_v53  ;;  %v75_v15 = vld [vmem:[%s6935_s1 + $0x58] sm:$0xff]  ;;  %v324_v19 = vld [vmem:[#allocation6 + $0x58] sm:$0xff]  ;;  %v5399_v21 = vpack.c.bf16 %v319_v12, %v317_v10  ;;  %v72_v24 = vld [vmem:[%s6935_s1 + $0x40] sm:$0xff] }
  0x38   :  { %4186 = vmatprep.subr.bf16.mxu1 %v5360_v57  ;;  %v322_v16 = vld [vmem:[#allocation6 + $0x48] sm:$0xff]  ;;  %v5401_v23 = vpack.c.bf16 %v75_v15, %v73_v14  ;;  %v74_v25 = vld [vmem:[%s6935_s1 + $0x50] sm:$0xff]  ;;  %v323_v30 = vld [vmem:[#allocation6 + $0x50] sm:$0xff] }
  0x39   :  { %4045 = vmatmul.mubr.msk.f32.vlgmr.msra.gmra.mrb[0].mxu0 %vm112_vm1, %v62_v63  ;;  %v321_v28 = vld [vmem:[#allocation6 + $0x40] sm:$0xff]  ;;  %v5410_v29 = vpack.c.bf16 %v324_v19, %v322_v16  ;;  %v77_v32 = vld [vmem:[%s6935_s1 + $0x68] sm:$0xff]  ;;  %v79_v33 = vld [vmem:[%s6935_s1 + $0x78] sm:$0xff]  ;;  %v5421_v37 = vpack.c.bf16 %v74_v25, %v72_v24 }
  0x3a   :  { %4140 = vmatpush1.bf16.msra.mxu0 %v5369_v1  ;;  %4049 = vmatmul.mubr.msk.f32.vlgmr.msra.gmra.mrb[0].mxu1 %vm112_vm1, %v311_v2  ;;  %v326_v34 = vld [vmem:[#allocation6 + $0x68] sm:$0xff]  ;;  %v328_v36 = vld [vmem:[#allocation6 + $0x78] sm:$0xff]  ;;  %v5425_v38 = vpack.c.bf16 %v323_v30, %v321_v28  ;;  %v5427_v41 = vpack.c.bf16 %v79_v33, %v77_v32  ;;  %v76_v42 = vld [vmem:[%s6935_s1 + $0x60] sm:$0xff] }
  0x3b   :  { %4188 = vmatpush1.bf16.msra.mxu1 %v5373_v3  ;;  %4142 = vmatprep.subr.bf16.mxu0 %v5375_v5  ;;  %v78_v43 = vld [vmem:[%s6935_s1 + $0x70] sm:$0xff]  ;;  %v5436_v46 = vpack.c.bf16 %v328_v36, %v326_v34  ;;  %v327_v47 = vld [vmem:[#allocation6 + $0x70] sm:$0xff]  ;;  %v81_v48 = vld [vmem:[%s6935_s1 + $0x88] sm:$0xff] }
  0x3c   :  { %4190 = vmatprep.subr.bf16.mxu1 %v5384_v11  ;;  %251 = vmatprep.mubr.f32.mxu0 %v5171_v0  ;;  %v325_v45 = vld [vmem:[#allocation6 + $0x60] sm:$0xff]  ;;  %v83_v49 = vld [vmem:[%s6935_s1 + $0x98] sm:$0xff]  ;;  %v332_v54 = vld [vmem:[#allocation6 + $0x98] sm:$0xff]  ;;  %v5445_v55 = vpack.c.bf16 %v78_v43, %v76_v42 }
  0x3d   :  { %499 = vmatprep.mubr.f32.mxu1 %v5171_v0  ;;  %v330_v50 = vld [vmem:[#allocation6 + $0x88] sm:$0xff]  ;;  %v5449_v56 = vpack.c.bf16 %v327_v47, %v325_v45  ;;  %v5451_v58 = vpack.c.bf16 %v83_v49, %v81_v48  ;;  %v80_v59 = vld [vmem:[%s6935_s1 + $0x80] sm:$0xff]  ;;  %v82_v60 = vld [vmem:[%s6935_s1 + $0x90] sm:$0xff] }
  0x3e   :  { %4144 = vmatpush1.bf16.msra.mxu0 %v5395_v20  ;;  %v329_v61 = vld [vmem:[#allocation6 + $0x80] sm:$0xff]  ;;  %v5460_v62 = vpack.c.bf16 %v332_v54, %v330_v50  ;;  %v331_v63 = vld [vmem:[#allocation6 + $0x90] sm:$0xff]  ;;  %v85_v2 = vld [vmem:[%s6935_s1 + $0xa8] sm:$0xff]  ;;  %v5469_v12 = vpack.c.bf16 %v82_v60, %v80_v59 }
  0x3f   :  { %4192 = vmatpush1.bf16.msra.mxu1 %v5399_v21  ;;  %4146 = vmatprep.subr.bf16.mxu0 %v5401_v23  ;;  %v87_v6 = vld [vmem:[%s6935_s1 + $0xb8] sm:$0xff]  ;;  %v336_v10 = vld [vmem:[#allocation6 + $0xb8] sm:$0xff]  ;;  %v84_v14 = vld [vmem:[%s6935_s1 + $0xa0] sm:$0xff]  ;;  %v5476_v15 = vpack.c.bf16 %v331_v63, %v329_v61 }
  0x40   :  { %4194 = vmatprep.subr.bf16.mxu1 %v5410_v29  ;;  %v334_v7 = vld [vmem:[#allocation6 + $0xa8] sm:$0xff]  ;;  %v5478_v16 = vpack.c.bf16 %v87_v6, %v85_v2  ;;  %v86_v19 = vld [vmem:[%s6935_s1 + $0xb0] sm:$0xff]  ;;  %v63_v25 = vld [vmem:[#allocation3] sm:$0x3] }
  0x41   :  { %v333_v24 = vld [vmem:[#allocation6 + $0xa0] sm:$0xff]  ;;  %v5484_v28 = vpack.c.bf16 %v336_v10, %v334_v7  ;;  %v335_v30 = vld [vmem:[#allocation6 + $0xb0] sm:$0xff]  ;;  %v89_v32 = vld [vmem:[%s6935_s1 + $0xc8] sm:$0xff]  ;;  %286 = vrot.lane.b32.xlu0 %v63_v25, %s5172_s19  ;;  %v5494_v43 = vpack.c.bf16 %v86_v19, %v84_v14 }
  0x42   :  { %4148 = vmatpush1.bf16.msra.mxu0 %v5421_v37  ;;  %v91_v33 = vld [vmem:[%s6935_s1 + $0xd8] sm:$0xff]  ;;  %v340_v36 = vld [vmem:[#allocation6 + $0xd8] sm:$0xff]  ;;  %v5498_v45 = vpack.c.bf16 %v335_v30, %v333_v24  ;;  %v88_v48 = vld [vmem:[%s6935_s1 + $0xc0] sm:$0xff] }
  0x43   :  { %4196 = vmatpush1.bf16.msra.mxu1 %v5425_v38  ;;  %4150 = vmatprep.subr.bf16.mxu0 %v5427_v41  ;;  %v338_v34 = vld [vmem:[#allocation6 + $0xc8] sm:$0xff]  ;;  %v312_v42 = vld [vmem:[#allocation5] sm:$0x3]  ;;  %v5500_v47 = vpack.c.bf16 %v91_v33, %v89_v32  ;;  %v90_v49 = vld [vmem:[%s6935_s1 + $0xd0] sm:$0xff] }
  0x44   :  { %4198 = vmatprep.subr.bf16.mxu1 %v5436_v46  ;;  %v337_v50 = vld [vmem:[#allocation6 + $0xc0] sm:$0xff]  ;;  %v5509_v54 = vpack.c.bf16 %v340_v36, %v338_v34  ;;  %v339_v59 = vld [vmem:[#allocation6 + $0xd0] sm:$0xff]  ;;  %v93_v60 = vld [vmem:[%s6935_s1 + $0xe8] sm:$0xff]  ;;  %v5519_v6 = vpack.c.bf16 %v90_v49, %v88_v48 }
  0x45   :  { %v95_v61 = vld [vmem:[%s6935_s1 + $0xf8] sm:$0xff]  ;;  %534 = vrot.lane.b32.xlu0 %v312_v42, %s5172_s19  ;;  %v344_v2 = vld [vmem:[#allocation6 + $0xf8] sm:$0xff]  ;;  %v5523_v7 = vpack.c.bf16 %v339_v59, %v337_v50  ;;  %v92_v14 = vld [vmem:[%s6935_s1 + $0xe0] sm:$0xff] }
  0x46   :  { %4152 = vmatpush1.bf16.msra.mxu0 %v5445_v55  ;;  %v342_v63 = vld [vmem:[#allocation6 + $0xe8] sm:$0xff]  ;;  %v5525_v10 = vpack.c.bf16 %v95_v61, %v93_v60  ;;  %v94_v19 = vld [vmem:[%s6935_s1 + $0xf0] sm:$0xff]  ;;  %v343_v30 = vld [vmem:[#allocation6 + $0xf0] sm:$0xff] }
  0x47   :  { %4200 = vmatpush1.bf16.msra.mxu1 %v5449_v56  ;;  %4154 = vmatprep.subr.bf16.mxu0 %v5451_v58  ;;  %v5534_v24 = vpack.c.bf16 %v344_v2, %v342_v63  ;;  %v341_v25 = vld [vmem:[#allocation6 + $0xe0] sm:$0xff]  ;;  %v5537_v32 = vpack.c.bf16 %v94_v19, %v92_v14  ;;  %v61_v34 = vld [vmem:[%s6934_s0] sm:$0x3]  ;;  %v4048_v36 = vld [vmem:[%s6934_s0 + $0xe] sm:$0x3] }
  0x48   :  { %4202 = vmatprep.subr.bf16.mxu1 %v5460_v62  ;;  %v5541_v33 = vpack.c.bf16 %v343_v30, %v341_v25 }
  0x4a   :  { %4156 = vmatpush1.bf16.msra.mxu0 %v5469_v12 }
  0x4b   :  { %4204 = vmatpush1.bf16.msra.mxu1 %v5476_v15  ;;  %4158 = vmatprep.subr.bf16.mxu0 %v5478_v16 }
  0x4c   :  { %4206 = vmatprep.subr.bf16.mxu1 %v5484_v28 }
  0x4e   :  { %4160 = vmatpush1.bf16.msra.mxu0 %v5494_v43 }
  0x4f   :  { %4208 = vmatpush1.bf16.msra.mxu1 %v5498_v45  ;;  %4162 = vmatprep.subr.bf16.mxu0 %v5500_v47 }
  0x50   :  { %4210 = vmatprep.subr.bf16.mxu1 %v5509_v54 }
  0x52   :  { %4164 = vmatpush1.bf16.msra.mxu0 %v5519_v6 }
  0x53   :  { %4212 = vmatpush1.bf16.msra.mxu1 %v5523_v7  ;;  %4166 = vmatprep.subr.bf16.mxu0 %v5525_v10 }
  0x54   :  { %4214 = vmatprep.subr.bf16.mxu1 %v5534_v24 }
  0x56   :  { %4168 = vmatpush1.bf16.msra.mxu0 %v5537_v32 }
  0x57   :  { %4216 = vmatpush1.bf16.msra.mxu1 %v5541_v33  ;;  %4218 = vmatprep.subr.bf16.mxu0 %v5258_v4  ;;  %v260_v4 = vlaneseq }
  0x58   :  { %4266 = vmatprep.subr.bf16.mxu1 %v5266_v8 }
  0x59   :  { %252 = vmatmul.mubr.f32.vlgmr.msra.gmra.mrb[0].mxu0 %v61_v34  ;;  %v261_v8 = vshrl.u32 %v260_v4, 7 }
  0x5a   :  { %500 = vmatmul.mubr.f32.vlgmr.msra.gmra.mrb[0].mxu1 %v4048_v36  ;;  %4220 = vmatpush1.bf16.msra.mxu0 %v5268_v9 }
  0x5b   :  { %4222 = vmatprep.subr.bf16.mxu0 %v5281_v17  ;;  %4268 = vmatpush1.bf16.msra.mxu1 %v5274_v13  ;;  %v5572_v9 = vsub.s32 0, %v261_v8  ;;  %v258_v13 = vld [vmem:[%s6937_s3] sm:$0x3] }
  0x5c   :  { %4270 = vmatprep.subr.bf16.mxu1 %v5283_v18  ;;  %677 = vmatprep.mubr.f32.mxu0 %v5171_v0  ;;  %v506_v17 = vld [vmem:[%s6940_s6] sm:$0x3] }
  0x5d   :  { %926 = vmatprep.mubr.f32.mxu1 %v5171_v0  ;;  %v263_v18 = vrot.slane %v258_v13, %v5572_v9 }
  0x5e   :  { %4224 = vmatpush1.bf16.msra.mxu0 %v5292_v22  ;;  %v511_v22 = vrot.slane %v506_v17, %v5572_v9 }
  0x5f   :  { %4226 = vmatprep.subr.bf16.mxu0 %v5304_v27  ;;  %4272 = vmatpush1.bf16.msra.mxu1 %v5302_v26 }
  0x60   :  { %4274 = vmatprep.subr.bf16.mxu1 %v5309_v31 }
  0x62   :  { %4228 = vmatpush1.bf16.msra.mxu0 %v5315_v35 }
  0x63   :  { %4230 = vmatprep.subr.bf16.mxu0 %v5327_v40  ;;  %4276 = vmatpush1.bf16.msra.mxu1 %v5325_v39 }
  0x64   :  { %4278 = vmatprep.subr.bf16.mxu1 %v5336_v44 }
  0x66   :  { %4232 = vmatpush1.bf16.msra.mxu0 %v5345_v51 }
  0x67   :  { %4234 = vmatprep.subr.bf16.mxu0 %v5351_v53  ;;  %4280 = vmatpush1.bf16.msra.mxu1 %v5349_v52  ;;  %v5582_v52 = vsub.s32 1, %v261_v8 }
  0x68   :  { %4282 = vmatprep.subr.bf16.mxu1 %v5360_v57 }
  0x69   :  { %v267_v53 = vrot.slane %v258_v13, %v5582_v52  ;;  %v515_v57 = vrot.slane %v506_v17, %v5582_v52 }
  0xb3   :  { %v287_v36 = vpop.permute.xlu0 %286 }
 0x12c   :  { %v253_v26 = vpop.f32.mrb[0].mxu0 }
 0x12d   :  { %v270_v27 = vadd.f32 %v263_v18, %v253_v26  ;;  %v501_v31 = vpop.f32.mrb[0].mxu1  ;;  %v255_v35 = vpop.f32.mrb[1].mxu0 }
 0x12e   :  { %v518_v39 = vadd.f32 %v511_v22, %v501_v31  ;;  %v503_v40 = vpop.f32.mrb[1].mxu1  ;;  %v271_v42 = vadd.f32 %v267_v53, %v255_v35  ;;  %v535_v18 = vpop.permute.xlu0 %534 }
 0x12f   :  { %v4046_v44 = vmul.f32 -1.442695, %v270_v27  ;;  %v519_v48 = vadd.f32 %v515_v57, %v503_v40 }
 0x130   :  { %v4050_v51 = vmul.f32 -1.442695, %v518_v39  ;;  %v4047_v30 = vmul.f32 -1.442695, %v271_v42 }
 0x131   :  { %4927 = vpow2.f32 %v4046_v44  ;;  %v4051_v34 = vmul.f32 -1.442695, %v519_v48 }
 0x132   :  { %4929 = vpow2.f32 %v4050_v51 }
 0x133   :  { %4931 = vtanh.f32 %v271_v42 }
 0x134   :  { %4933 = vtanh.f32 %v519_v48 }
 0x13b   :  { %v4928_v49 = vpop.eup %4927 }
 0x13c   :  { %v4930_v50 = vpop.eup %4929  ;;  %v275_v59 = vadd.f32 1.0, %v4928_v49 }
 0x13d   :  { %v523_v60 = vadd.f32 1.0, %v4930_v50  ;;  %v4932_v61 = vpop.eup %4931 }
 0x13e   :  { %4935 = vrcp.f32 %v275_v59  ;;  %v4934_v63 = vpop.eup %4933 }
 0x13f   :  { %4937 = vrcp.f32 %v523_v60 }
 0x140   :  { %4939 = vpow2.f32 %v4047_v30  ;;  %v1097_v30 = vld [vmem:[%s6936_s2 + $0x28] sm:$0xff] }
 0x141   :  { %4941 = vpow2.f32 %v4051_v34  ;;  %v1099_v34 = vld [vmem:[%s6936_s2 + $0x38] sm:$0xff] }
 0x148   :  { %v4936_v2 = vpop.eup %4935 }
 0x149   :  { %v4938_v14 = vpop.eup %4937  ;;  %v290_v19 = vmul.f32 %v4936_v2, %v4932_v61  ;;  %v289_v17 = vmul.f32 %v4936_v2, %v287_v36 }
 0x14a   :  { %v538_v25 = vmul.f32 %v4938_v14, %v4934_v63  ;;  %v4940_v4 = vpop.eup %4939  ;;  %v537_v31 = vmul.f32 %v4938_v14, %v535_v18  ;;  %v1092_v14 = vld [vmem:[%s6936_s2] sm:$0xff] }
 0x14b   :  { %292 = vrot.lane.b32.xlu1 %v290_v19, %s5172_s19  ;;  %v282_v8 = vadd.f32 1.0, %v4940_v4  ;;  %v4942_v13 = vpop.eup %4941  ;;  %v5682_v4 = vpack.c.bf16 %v1099_v34, %v1097_v30 }
 0x14c   :  { %v530_v27 = vadd.f32 1.0, %v4942_v13  ;;  %v1344_v13 = vld [vmem:[#allocation8 + $0x18] sm:$0xff] }
 0x14d   :  { %4943 = vrcp.f32 %v282_v8  ;;  %v1342_v8 = vld [vmem:[#allocation8 + $0x8] sm:$0xff] }
 0x14e   :  { %v5688_v18 = vpack.c.bf16 %v1344_v13, %v1342_v8  ;;  %v1310_v8 = vld [vmem:[#allocation6 + $0x8] sm:$0xff]  ;;  %v1312_v13 = vld [vmem:[#allocation6 + $0x18] sm:$0xff] }
 0x14f   :  { %540 = vrot.lane.b32.xlu1 %v538_v25, %s5172_s19  ;;  %v1094_v25 = vld [vmem:[%s6936_s2 + $0x10] sm:$0xff] }
 0x150   :  { %v5680_v36 = vpack.c.bf16 %v1094_v25, %v1092_v14  ;;  %v1355_v25 = vld [vmem:[#allocation8 + $0x70] sm:$0xff] }
 0x157   :  { %v4944_v40 = vpop.eup %4943 }
 0x1bd   :  { %v293_v22 = vpop.permute.xlu1 %292 }
 0x1be   :  { %v295_v26 = vadd.f32 %v293_v22, %v289_v17  ;;  %v1096_v17 = vld [vmem:[%s6936_s2 + $0x20] sm:$0xff]  ;;  %v1098_v22 = vld [vmem:[%s6936_s2 + $0x30] sm:$0xff] }
 0x1c0   :  { %4945 = vtanh.f32 %v295_v26 }
 0x1c1   :  { %v541_v35 = vpop.permute.xlu1 %540  ;;  %4947 = vrcp.f32 %v530_v27  ;;  %v1343_v27 = vld [vmem:[#allocation8 + $0x10] sm:$0xff] }
 0x1c2   :  { %v543_v39 = vadd.f32 %v541_v35, %v537_v31  ;;  %v5694_v31 = vpack.c.bf16 %v1098_v22, %v1096_v17  ;;  %v5764_v22 = vpack.c.bf16 %v1312_v13, %v1310_v8  ;;  %v1317_v8 = vld [vmem:[#allocation6 + $0x40] sm:$0xff] }
 0x1c4   :  { %4949 = vtanh.f32 %v543_v39 }
 0x1ca   :  { %v4946_v44 = vpop.eup %4945 }
 0x1cb   :  { %v297_v51 = vmul.f32 %v4946_v44, %v4944_v40  ;;  %v4948_v53 = vpop.eup %4947  ;;  %v1103_v40 = vld [vmem:[%s6936_s2 + $0x58] sm:$0xff] }
 0x1cd   :  { %299 = vrot.lane.b32.xlu0 %v297_v51, %s5172_s19 }
 0x1ce   :  { %v4950_v57 = vpop.eup %4949 }
 0x1cf   :  { %v545_v42 = vmul.f32 %v4950_v57, %v4948_v53 }
 0x1d1   :  { %304 = vrot.lane.b32.xlu0 %v295_v26, %s5172_s19  ;;  %547 = vrot.lane.b32.xlu1 %v545_v42, %s5172_s19  ;;  %v1341_v26 = vld [vmem:[#allocation8] sm:$0xff] }
 0x1d2   :  { %v5696_v35 = vpack.c.bf16 %v1343_v27, %v1341_v26 }
 0x1d5   :  { %552 = vrot.lane.b32.xlu1 %v543_v39, %s5172_s19  ;;  %v1101_v39 = vld [vmem:[%s6936_s2 + $0x48] sm:$0xff] }
 0x1d6   :  { %v5706_v44 = vpack.c.bf16 %v1103_v40, %v1101_v39 }
 0x23f   :  { %v300_v48 = vpop.permute.xlu0 %299 }
 0x240   :  { %302 = vst.msk [vmem:[#allocation2] sm:$0x3] %vm56_vm0, %v300_v48  ;;  %308 = vst.msk [vmem:[%s6941_s7] sm:$0x3] %vm56_vm0, %v300_v48 }
 0x243   :  { %v305_v49 = vpop.permute.xlu0 %304  ;;  %v548_v50 = vpop.permute.xlu1 %547 }
 0x244   :  { %307 = vst.msk [vmem:[#allocation3] sm:$0x3] %vm56_vm0, %v305_v49  ;;  %550 = vst.msk [vmem:[#allocation4] sm:$0x3] %vm56_vm0, %v548_v50 }
 0x245   :  { %4052 = vst.msk [vmem:[%s6942_s8 + $0xe] sm:$0x3] %vm56_vm0, %v548_v50 }
 0x247   :  { %v553_v59 = vpop.permute.xlu1 %552  ;;  %v560_v60 = vld [vmem:[#allocation2] sm:$0x3] }
 0x248   :  { %555 = vst.msk [vmem:[#allocation5] sm:$0x3] %vm56_vm0, %v553_v59  ;;  %4054 = vmatmul.mubr.msk.f32.vlgmr.msra.gmra.mrb[2].mxu0 %vm112_vm1, %v560_v60 }
 0x249   :  { %4236 = vmatpush1.bf16.msra.mxu0 %v5369_v1  ;;  %748 = vmatprep.mubr.f32.mxu0 %v5171_v0  ;;  %v4053_v1 = vld [vmem:[%s6934_s0 + $0x2] sm:$0x3] }
 0x24a   :  { %4238 = vmatprep.subr.bf16.mxu0 %v5375_v5  ;;  %v755_v5 = vld [vmem:[%s6937_s3] sm:$0x3] }
 0x24b   :  { %v561_v61 = vld [vmem:[#allocation3] sm:$0x3]  ;;  %v809_v63 = vld [vmem:[#allocation4] sm:$0x3] }
 0x24c   :  { %783 = vrot.lane.b32.xlu0 %v561_v61, %s5172_s19  ;;  %4059 = vmatmul.mubr.msk.f32.vlgmr.msra.gmra.mrb[2].mxu1 %vm112_vm1, %v809_v63 }
 0x24d   :  { %4240 = vmatpush1.bf16.msra.mxu0 %v5395_v20  ;;  %4284 = vmatpush1.bf16.msra.mxu1 %v5373_v3  ;;  %v4058_v3 = vld [vmem:[%s6934_s0 + $0xc] sm:$0x3]  ;;  %v1004_v20 = vld [vmem:[%s6940_s6] sm:$0x3] }
 0x24e   :  { %4242 = vmatprep.subr.bf16.mxu0 %v5401_v23  ;;  %4286 = vmatprep.subr.bf16.mxu1 %v5384_v11  ;;  %v760_v11 = vrot.slane %v755_v5, %v5572_v9 }
 0x24f   :  { %v810_v2 = vld [vmem:[#allocation5] sm:$0x3]  ;;  %997 = vmatprep.mubr.f32.mxu1 %v5171_v0 }
 0x250   :  { %1032 = vrot.lane.b32.xlu1 %v810_v2, %s5172_s19  ;;  %v1346_v2 = vld [vmem:[#allocation8 + $0x28] sm:$0xff] }
 0x251   :  { %4244 = vmatpush1.bf16.msra.mxu0 %v5421_v37  ;;  %4288 = vmatpush1.bf16.msra.mxu1 %v5399_v21  ;;  %v1009_v37 = vrot.slane %v1004_v20, %v5572_v9 }
 0x252   :  { %4246 = vmatprep.subr.bf16.mxu0 %v5427_v41  ;;  %4290 = vmatprep.subr.bf16.mxu1 %v5410_v29 }
 0x255   :  { %4248 = vmatpush1.bf16.msra.mxu0 %v5445_v55  ;;  %4292 = vmatpush1.bf16.msra.mxu1 %v5425_v38 }
 0x256   :  { %4250 = vmatprep.subr.bf16.mxu0 %v5451_v58  ;;  %4294 = vmatprep.subr.bf16.mxu1 %v5436_v46  ;;  %v764_v58 = vrot.slane %v755_v5, %v5582_v52 }
 0x259   :  { %4252 = vmatpush1.bf16.msra.mxu0 %v5469_v12  ;;  %4296 = vmatpush1.bf16.msra.mxu1 %v5449_v56  ;;  %v1013_v12 = vrot.slane %v1004_v20, %v5582_v52  ;;  %v1102_v20 = vld [vmem:[%s6936_s2 + $0x50] sm:$0xff] }
 0x25a   :  { %4254 = vmatprep.subr.bf16.mxu0 %v5478_v16  ;;  %4298 = vmatprep.subr.bf16.mxu1 %v5460_v62 }
 0x25d   :  { %4256 = vmatpush1.bf16.msra.mxu0 %v5494_v43  ;;  %4300 = vmatpush1.bf16.msra.mxu1 %v5476_v15 }
 0x25e   :  { %4258 = vmatprep.subr.bf16.mxu0 %v5500_v47  ;;  %4302 = vmatprep.subr.bf16.mxu1 %v5484_v28 }
 0x261   :  { %4260 = vmatpush1.bf16.msra.mxu0 %v5519_v6  ;;  %4304 = vmatpush1.bf16.msra.mxu1 %v5498_v45 }
 0x262   :  { %4262 = vmatprep.subr.bf16.mxu0 %v5525_v10  ;;  %4306 = vmatprep.subr.bf16.mxu1 %v5509_v54 }
 0x265   :  { %4264 = vmatpush1.bf16.msra.mxu0 %v5537_v32  ;;  %4308 = vmatpush1.bf16.msra.mxu1 %v5523_v7  ;;  %v1093_v32 = vld [vmem:[%s6936_s2 + $0x8] sm:$0xff] }
 0x266   :  { %4310 = vmatprep.subr.bf16.mxu1 %v5534_v24 }
 0x268   :  { %749 = vmatmul.mubr.f32.vlgmr.msra.gmra.mrb[2].mxu0 %v4053_v1  ;;  %v1348_v1 = vld [vmem:[#allocation8 + $0x38] sm:$0xff] }
 0x269   :  { %4312 = vmatpush1.bf16.msra.mxu1 %v5541_v33  ;;  %1175 = vmatprep.mubr.f32.mxu0 %v5171_v0  ;;  %v1095_v33 = vld [vmem:[%s6936_s2 + $0x18] sm:$0xff]  ;;  %v5711_v5 = vpack.c.bf16 %v1348_v1, %v1346_v2  ;;  %v1311_v2 = vld [vmem:[#allocation6 + $0x10] sm:$0xff]  ;;  %v1069_v1 = vld [vmem:[%s6935_s1 + $0x48] sm:$0xff] }
 0x26a   :  { %v5669_v19 = vpack.c.bf16 %v1095_v33, %v1093_v32  ;;  %4362 = vmatprep.subr.bf16.mxu1 %v5688_v18  ;;  %v1353_v33 = vld [vmem:[#allocation8 + $0x60] sm:$0xff] }
 0x26b   :  { %v5762_v34 = vpack.c.bf16 %v1355_v25, %v1353_v33  ;;  %v1072_v25 = vld [vmem:[%s6935_s1 + $0x60] sm:$0xff] }
 0x26c   :  { %998 = vmatmul.mubr.f32.vlgmr.msra.gmra.mrb[2].mxu1 %v4058_v3  ;;  %4314 = vmatprep.subr.bf16.mxu0 %v5669_v19 }
 0x26d   :  { %1424 = vmatprep.mubr.f32.mxu1 %v5171_v0  ;;  %4316 = vmatpush1.bf16.msra.mxu0 %v5680_v36 }
 0x26e   :  { %4318 = vmatprep.subr.bf16.mxu0 %v5682_v4  ;;  %4364 = vmatpush1.bf16.msra.mxu1 %v5696_v35 }
 0x26f   :  { %4366 = vmatprep.subr.bf16.mxu1 %v5711_v5 }
 0x271   :  { %4320 = vmatpush1.bf16.msra.mxu0 %v5694_v31 }
 0x272   :  { %4322 = vmatprep.subr.bf16.mxu0 %v5706_v44 }
 0x2be   :  { %v784_v42 = vpop.permute.xlu0 %783 }
 0x2c2   :  { %v1033_v59 = vpop.permute.xlu1 %1032 }
 0x33b   :  { %v750_v21 = vpop.f32.mrb[2].mxu0 }
 0x33c   :  { %v767_v23 = vadd.f32 %v760_v11, %v750_v21  ;;  %v752_v29 = vpop.f32.mrb[3].mxu0  ;;  %v1100_v11 = vld [vmem:[%s6936_s2 + $0x40] sm:$0xff]  ;;  %v1345_v21 = vld [vmem:[#allocation8 + $0x20] sm:$0xff] }
 0x33d   :  { %v768_v62 = vadd.f32 %v764_v58, %v752_v29  ;;  %v5719_v29 = vpack.c.bf16 %v1102_v20, %v1100_v11  ;;  %v1350_v58 = vld [vmem:[#allocation8 + $0x48] sm:$0xff] }
 0x33e   :  { %v4055_v38 = vmul.f32 -1.442695, %v767_v23 }
 0x33f   :  { %v999_v41 = vpop.f32.mrb[2].mxu1  ;;  %v4056_v51 = vmul.f32 -1.442695, %v768_v62  ;;  %4324 = vmatpush1.bf16.msra.mxu0 %v5719_v29 }
 0x340   :  { %4951 = vpow2.f32 %v4055_v38  ;;  %v1016_v46 = vadd.f32 %v1009_v37, %v999_v41  ;;  %v1001_v55 = vpop.f32.mrb[3].mxu1  ;;  %v1347_v37 = vld [vmem:[#allocation8 + $0x30] sm:$0xff]  ;;  %v1105_v38 = vld [vmem:[%s6936_s2 + $0x68] sm:$0xff]  ;;  %v1107_v41 = vld [vmem:[%s6936_s2 + $0x78] sm:$0xff] }
 0x341   :  { %v1017_v28 = vadd.f32 %v1013_v12, %v1001_v55  ;;  %v5728_v55 = vpack.c.bf16 %v1347_v37, %v1345_v21  ;;  %v1314_v21 = vld [vmem:[#allocation6 + $0x28] sm:$0xff]  ;;  %v1068_v37 = vld [vmem:[%s6935_s1 + $0x40] sm:$0xff] }
 0x342   :  { %v4060_v56 = vmul.f32 -1.442695, %v1016_v46 }
 0x343   :  { %v4061_v53 = vmul.f32 -1.442695, %v1017_v28  ;;  %4368 = vmatpush1.bf16.msra.mxu1 %v5728_v55 }
 0x344   :  { %4953 = vpow2.f32 %v4060_v56  ;;  %v5730_v56 = vpack.c.bf16 %v1107_v41, %v1105_v38 }
 0x345   :  { %4955 = vtanh.f32 %v768_v62  ;;  %v1352_v62 = vld [vmem:[#allocation8 + $0x58] sm:$0xff] }
 0x346   :  { %4326 = vmatprep.subr.bf16.mxu0 %v5730_v56  ;;  %v5735_v12 = vpack.c.bf16 %v1352_v62, %v1350_v58  ;;  %v1313_v58 = vld [vmem:[#allocation6 + $0x20] sm:$0xff]  ;;  %v1315_v62 = vld [vmem:[#allocation6 + $0x30] sm:$0xff] }
 0x348   :  { %4370 = vmatprep.subr.bf16.mxu1 %v5735_v12 }
 0x34a   :  { %v4952_v15 = vpop.eup %4951 }
 0x34b   :  { %v772_v16 = vadd.f32 1.0, %v4952_v15  ;;  %v1104_v15 = vld [vmem:[%s6936_s2 + $0x60] sm:$0xff] }
 0x34d   :  { %4957 = vrcp.f32 %v772_v16  ;;  %v1106_v16 = vld [vmem:[%s6936_s2 + $0x70] sm:$0xff] }
 0x34e   :  { %v4954_v43 = vpop.eup %4953  ;;  %4959 = vtanh.f32 %v1017_v28  ;;  %v1349_v28 = vld [vmem:[#allocation8 + $0x40] sm:$0xff] }
 0x34f   :  { %v1021_v45 = vadd.f32 1.0, %v4954_v43  ;;  %v4956_v47 = vpop.eup %4955  ;;  %v5743_v43 = vpack.c.bf16 %v1106_v16, %v1104_v15 }
 0x351   :  { %4961 = vrcp.f32 %v1021_v45  ;;  %v1351_v45 = vld [vmem:[#allocation8 + $0x50] sm:$0xff]  ;;  %4328 = vmatpush1.bf16.msra.mxu0 %v5743_v43 }
 0x352   :  { %4963 = vpow2.f32 %v4056_v51  ;;  %v1060_v51 = vld [vmem:[%s6935_s1] sm:$0xff] }
 0x353   :  { %4965 = vpow2.f32 %v4061_v53  ;;  %v1062_v53 = vld [vmem:[%s6935_s1 + $0x10] sm:$0xff] }
 0x357   :  { %v4958_v54 = vpop.eup %4957 }
 0x358   :  { %v787_v6 = vmul.f32 %v4958_v54, %v4956_v47  ;;  %v4960_v7 = vpop.eup %4959  ;;  %v786_v50 = vmul.f32 %v4958_v54, %v784_v42  ;;  %v1061_v47 = vld [vmem:[%s6935_s1 + $0x8] sm:$0xff]  ;;  %v1063_v54 = vld [vmem:[%s6935_s1 + $0x18] sm:$0xff] }
 0x35a   :  { %789 = vrot.lane.b32.xlu0 %v787_v6, %s5172_s19  ;;  %v5752_v6 = vpack.c.bf16 %v1351_v45, %v1349_v28  ;;  %v1073_v28 = vld [vmem:[%s6935_s1 + $0x68] sm:$0xff]  ;;  %v1075_v45 = vld [vmem:[%s6935_s1 + $0x78] sm:$0xff] }
 0x35b   :  { %v4962_v10 = vpop.eup %4961  ;;  %v5852_v13 = vpack.c.bf16 %v1075_v45, %v1073_v28  ;;  %v1325_v28 = vld [vmem:[#allocation6 + $0x80] sm:$0xff]  ;;  %v1327_v45 = vld [vmem:[#allocation6 + $0x90] sm:$0xff] }
 0x35c   :  { %v1036_v24 = vmul.f32 %v4962_v10, %v4960_v7  ;;  %v4964_v57 = vpop.eup %4963  ;;  %v1035_v3 = vmul.f32 %v4962_v10, %v1033_v59  ;;  %v5754_v7 = vpack.c.bf16 %v1063_v54, %v1061_v47  ;;  %v1354_v10 = vld [vmem:[#allocation8 + $0x68] sm:$0xff]  ;;  %4372 = vmatpush1.bf16.msra.mxu1 %v5752_v6  ;;  %v1064_v59 = vld [vmem:[%s6935_s1 + $0x20] sm:$0xff] }
 0x35d   :  { %v779_v48 = vadd.f32 1.0, %v4964_v57  ;;  %v4966_v49 = vpop.eup %4965  ;;  %v1318_v47 = vld [vmem:[#allocation6 + $0x48] sm:$0xff] }
 0x35e   :  { %1038 = vrot.lane.b32.xlu1 %v1036_v24, %s5172_s19  ;;  %v1028_v63 = vadd.f32 1.0, %v4966_v49  ;;  %v1356_v24 = vld [vmem:[#allocation8 + $0x78] sm:$0xff]  ;;  %4330 = vmatprep.subr.bf16.mxu0 %v5754_v7  ;;  %v1067_v49 = vld [vmem:[%s6935_s1 + $0x38] sm:$0xff] }
 0x35f   :  { %4967 = vrcp.f32 %v779_v48  ;;  %v5757_v32 = vpack.c.bf16 %v1356_v24, %v1354_v10  ;;  %v1065_v48 = vld [vmem:[%s6935_s1 + $0x28] sm:$0xff] }
 0x360   :  { %v1320_v24 = vld [vmem:[#allocation6 + $0x58] sm:$0xff] }
 0x361   :  { %4374 = vmatprep.subr.bf16.mxu1 %v5757_v32 }
 0x362   :  { %4376 = vmatpush1.bf16.msra.mxu1 %v5762_v34 }
 0x363   :  { %4378 = vmatprep.subr.bf16.mxu1 %v5764_v22 }
 0x369   :  { %v4968_v14 = vpop.eup %4967 }
 0x3cc   :  { %v790_v60 = vpop.permute.xlu0 %789 }
 0x3cd   :  { %v792_v61 = vadd.f32 %v790_v60, %v786_v50  ;;  %v5795_v50 = vpack.c.bf16 %v1062_v53, %v1060_v51  ;;  %v1066_v60 = vld [vmem:[%s6935_s1 + $0x30] sm:$0xff]  ;;  %v1322_v51 = vld [vmem:[#allocation6 + $0x68] sm:$0xff]  ;;  %v1324_v53 = vld [vmem:[#allocation6 + $0x78] sm:$0xff] }
 0x3ce   :  { %v5817_v38 = vpack.c.bf16 %v1066_v60, %v1064_v59  ;;  %v5880_v60 = vpack.c.bf16 %v1324_v53, %v1322_v51  ;;  %v1331_v51 = vld [vmem:[#allocation6 + $0xb0] sm:$0xff]  ;;  %v1089_v53 = vld [vmem:[%s6935_s1 + $0xe8] sm:$0xff] }
 0x3cf   :  { %4969 = vtanh.f32 %v792_v61 }
 0x3d0   :  { %v1039_v23 = vpop.permute.xlu1 %1038  ;;  %4971 = vrcp.f32 %v1028_v63  ;;  %v5803_v63 = vpack.c.bf16 %v1067_v49, %v1065_v48  ;;  %v1076_v48 = vld [vmem:[%s6935_s1 + $0x80] sm:$0xff]  ;;  %v1078_v49 = vld [vmem:[%s6935_s1 + $0x90] sm:$0xff] }
 0x3d1   :  { %v1041_v46 = vadd.f32 %v1039_v23, %v1035_v3  ;;  %v1071_v3 = vld [vmem:[%s6935_s1 + $0x58] sm:$0xff]  ;;  %v1316_v23 = vld [vmem:[#allocation6 + $0x38] sm:$0xff] }
 0x3d2   :  { %v5826_v15 = vpack.c.bf16 %v1071_v3, %v1069_v1  ;;  %v5828_v16 = vpack.c.bf16 %v1316_v23, %v1314_v21  ;;  %v1081_v1 = vld [vmem:[%s6935_s1 + $0xa8] sm:$0xff]  ;;  %v1083_v3 = vld [vmem:[%s6935_s1 + $0xb8] sm:$0xff]  ;;  %v5890_v21 = vpack.c.bf16 %v1078_v49, %v1076_v48 }
 0x3d3   :  { %4973 = vtanh.f32 %v1041_v46  ;;  %v1091_v48 = vld [vmem:[%s6935_s1 + $0xf8] sm:$0xff] }
 0x3d4   :  { %v1334_v49 = vld [vmem:[#allocation6 + $0xc8] sm:$0xff] }
 0x3d9   :  { %v4970_v30 = vpop.eup %4969 }
 0x3da   :  { %v794_v17 = vmul.f32 %v4970_v30, %v4968_v14  ;;  %v4972_v26 = vpop.eup %4971  ;;  %v5842_v14 = vpack.c.bf16 %v1315_v62, %v1313_v58  ;;  %v1074_v30 = vld [vmem:[%s6935_s1 + $0x70] sm:$0xff]  ;;  %v5902_v58 = vpack.c.bf16 %v1083_v3, %v1081_v1  ;;  %v1088_v3 = vld [vmem:[%s6935_s1 + $0xe0] sm:$0xff] }
 0x3dc   :  { %796 = vrot.lane.b32.xlu0 %v794_v17, %s5172_s19  ;;  %v5854_v17 = vpack.c.bf16 %v1320_v24, %v1318_v47  ;;  %v1085_v47 = vld [vmem:[%s6935_s1 + $0xc8] sm:$0xff] }
 0x3dd   :  { %v4974_v27 = vpop.eup %4973  ;;  %v1332_v24 = vld [vmem:[#allocation6 + $0xb8] sm:$0xff] }
 0x3de   :  { %v1043_v39 = vmul.f32 %v4974_v27, %v4972_v26  ;;  %v1319_v26 = vld [vmem:[#allocation6 + $0x50] sm:$0xff]  ;;  %v1077_v27 = vld [vmem:[%s6935_s1 + $0x88] sm:$0xff] }
 0x3e0   :  { %801 = vrot.lane.b32.xlu0 %v792_v61, %s5172_s19  ;;  %1045 = vrot.lane.b32.xlu1 %v1043_v39, %s5172_s19  ;;  %v1309_v61 = vld [vmem:[#allocation6] sm:$0xff]  ;;  %v1079_v39 = vld [vmem:[%s6935_s1 + $0x98] sm:$0xff] }
 0x3e1   :  { %v5819_v41 = vpack.c.bf16 %v1311_v2, %v1309_v61  ;;  %v5878_v59 = vpack.c.bf16 %v1079_v39, %v1077_v27  ;;  %v1321_v61 = vld [vmem:[#allocation6 + $0x60] sm:$0xff]  ;;  %v1323_v2 = vld [vmem:[#allocation6 + $0x70] sm:$0xff] }
 0x3e2   :  { %v5892_v23 = vpack.c.bf16 %v1323_v2, %v1321_v61  ;;  %v1336_v61 = vld [vmem:[#allocation6 + $0xd8] sm:$0xff] }
 0x3e4   :  { %1050 = vrot.lane.b32.xlu1 %v1041_v46, %s5172_s19  ;;  %v1070_v46 = vld [vmem:[%s6935_s1 + $0x50] sm:$0xff] }
 0x3e5   :  { %v5840_v33 = vpack.c.bf16 %v1070_v46, %v1068_v37  ;;  %v1080_v37 = vld [vmem:[%s6935_s1 + $0xa0] sm:$0xff]  ;;  %v1082_v46 = vld [vmem:[%s6935_s1 + $0xb0] sm:$0xff] }
 0x44e   :  { %v797_v40 = vpop.permute.xlu0 %796 }
 0x44f   :  { %799 = vst.msk [vmem:[#allocation2] sm:$0x3] %vm56_vm0, %v797_v40  ;;  %4057 = vst.msk [vmem:[%s6941_s7 + $0x2] sm:$0x3] %vm56_vm0, %v797_v40 }
 0x452   :  { %v802_v57 = vpop.permute.xlu0 %801  ;;  %v1046_v42 = vpop.permute.xlu1 %1045 }
 0x453   :  { %804 = vst.msk [vmem:[#allocation3] sm:$0x3] %vm56_vm0, %v802_v57  ;;  %1048 = vst.msk [vmem:[#allocation4] sm:$0x3] %vm56_vm0, %v1046_v42  ;;  %v5866_v57 = vpack.c.bf16 %v1074_v30, %v1072_v25  ;;  %v5914_v25 = vpack.c.bf16 %v1082_v46, %v1080_v37  ;;  %v5916_v30 = vpack.c.bf16 %v1327_v45, %v1325_v28  ;;  %v1090_v37 = vld [vmem:[%s6935_s1 + $0xf0] sm:$0xff]  ;;  %v1335_v28 = vld [vmem:[#allocation6 + $0xd0] sm:$0xff] }
 0x454   :  { %4062 = vst.msk [vmem:[%s6942_s8 + $0xc] sm:$0x3] %vm56_vm0, %v1046_v42  ;;  %v5868_v42 = vpack.c.bf16 %v1319_v26, %v1317_v8  ;;  %v1084_v8 = vld [vmem:[%s6935_s1 + $0xc0] sm:$0xff]  ;;  %v1086_v26 = vld [vmem:[%s6935_s1 + $0xd0] sm:$0xff]  ;;  %v1338_v45 = vld [vmem:[#allocation6 + $0xe8] sm:$0xff] }
 0x455   :  { %v5938_v2 = vpack.c.bf16 %v1086_v26, %v1084_v8  ;;  %v1333_v46 = vld [vmem:[#allocation6 + $0xc0] sm:$0xff]  ;;  %v1339_v26 = vld [vmem:[#allocation6 + $0xf0] sm:$0xff] }
 0x456   :  { %v1051_v11 = vpop.permute.xlu1 %1050  ;;  %v1058_v20 = vld [vmem:[#allocation2] sm:$0x3]  ;;  %v1337_v8 = vld [vmem:[#allocation6 + $0xe0] sm:$0xff] }
 0x457   :  { %1053 = vst.msk [vmem:[#allocation5] sm:$0x3] %vm56_vm0, %v1051_v11  ;;  %4064 = vmatmul.mubr.msk.f32.vlgmr.msra.gmra.mrb[4].mxu0 %vm112_vm1, %v1058_v20  ;;  %v1326_v11 = vld [vmem:[#allocation6 + $0x88] sm:$0xff]  ;;  %v1328_v20 = vld [vmem:[#allocation6 + $0x98] sm:$0xff] }
 0x458   :  { %4332 = vmatpush1.bf16.msra.mxu0 %v5795_v50  ;;  %1246 = vmatprep.mubr.f32.mxu0 %v5171_v0  ;;  %v5904_v62 = vpack.c.bf16 %v1328_v20, %v1326_v11  ;;  %v5947_v11 = vpack.c.bf16 %v1091_v48, %v1089_v53  ;;  %v5949_v20 = vpack.c.bf16 %v1336_v61, %v1334_v49  ;;  %v4068_v53 = vld [vmem:[%s6934_s0 + $0xa] sm:$0x3] }
 0x459   :  { %4334 = vmatprep.subr.bf16.mxu0 %v5803_v63 }
 0x45a   :  { %v1059_v54 = vld [vmem:[#allocation3] sm:$0x3]  ;;  %v1307_v10 = vld [vmem:[#allocation4] sm:$0x3] }
 0x45b   :  { %1281 = vrot.lane.b32.xlu0 %v1059_v54, %s5172_s19  ;;  %4069 = vmatmul.mubr.msk.f32.vlgmr.msra.gmra.mrb[4].mxu1 %vm112_vm1, %v1307_v10  ;;  %v1087_v54 = vld [vmem:[%s6935_s1 + $0xd8] sm:$0xff] }
 0x45c   :  { %4336 = vmatpush1.bf16.msra.mxu0 %v5817_v38  ;;  %4380 = vmatpush1.bf16.msra.mxu1 %v5819_v41  ;;  %v1330_v10 = vld [vmem:[#allocation6 + $0xa8] sm:$0xff]  ;;  %v5926_v27 = vpack.c.bf16 %v1087_v54, %v1085_v47  ;;  %v1340_v47 = vld [vmem:[#allocation6 + $0xf8] sm:$0xff]  ;;  %v5956_v54 = vpack.c.bf16 %v1090_v37, %v1088_v3 }
 0x45d   :  { %4338 = vmatprep.subr.bf16.mxu0 %v5826_v15  ;;  %4382 = vmatprep.subr.bf16.mxu1 %v5828_v16  ;;  %v5928_v39 = vpack.c.bf16 %v1332_v24, %v1330_v10  ;;  %v5958_v10 = vpack.c.bf16 %v1335_v28, %v1333_v46  ;;  %v5962_v24 = vpack.c.bf16 %v1340_v47, %v1338_v45 }
 0x45e   :  { %v1308_v40 = vld [vmem:[#allocation5] sm:$0x3]  ;;  %1495 = vmatprep.mubr.f32.mxu1 %v5171_v0 }
 0x45f   :  { %1530 = vrot.lane.b32.xlu1 %v1308_v40, %s5172_s19  ;;  %v1329_v40 = vld [vmem:[#allocation6 + $0xa0] sm:$0xff] }
 0x460   :  { %4340 = vmatpush1.bf16.msra.mxu0 %v5840_v33  ;;  %4384 = vmatpush1.bf16.msra.mxu1 %v5842_v14  ;;  %v5940_v1 = vpack.c.bf16 %v1331_v51, %v1329_v40  ;;  %v4063_v40 = vld [vmem:[%s6934_s0 + $0x4] sm:$0x3]  ;;  %v5969_v51 = vpack.c.bf16 %v1339_v26, %v1337_v8 }
 0x461   :  { %4342 = vmatprep.subr.bf16.mxu0 %v5852_v13  ;;  %4386 = vmatprep.subr.bf16.mxu1 %v5854_v17 }
 0x464   :  { %4344 = vmatpush1.bf16.msra.mxu0 %v5866_v57  ;;  %4388 = vmatpush1.bf16.msra.mxu1 %v5868_v42 }
 0x465   :  { %4346 = vmatprep.subr.bf16.mxu0 %v5878_v59  ;;  %4390 = vmatprep.subr.bf16.mxu1 %v5880_v60 }
 0x468   :  { %4348 = vmatpush1.bf16.msra.mxu0 %v5890_v21  ;;  %4392 = vmatpush1.bf16.msra.mxu1 %v5892_v23 }
 0x469   :  { %4350 = vmatprep.subr.bf16.mxu0 %v5902_v58  ;;  %4394 = vmatprep.subr.bf16.mxu1 %v5904_v62 }
 0x46c   :  { %4352 = vmatpush1.bf16.msra.mxu0 %v5914_v25  ;;  %4396 = vmatpush1.bf16.msra.mxu1 %v5916_v30 }
 0x46d   :  { %4354 = vmatprep.subr.bf16.mxu0 %v5926_v27  ;;  %4398 = vmatprep.subr.bf16.mxu1 %v5928_v39 }
 0x470   :  { %4356 = vmatpush1.bf16.msra.mxu0 %v5938_v2  ;;  %4400 = vmatpush1.bf16.msra.mxu1 %v5940_v1 }
 0x471   :  { %4358 = vmatprep.subr.bf16.mxu0 %v5947_v11  ;;  %4402 = vmatprep.subr.bf16.mxu1 %v5949_v20 }
 0x474   :  { %4360 = vmatpush1.bf16.msra.mxu0 %v5956_v54  ;;  %4404 = vmatpush1.bf16.msra.mxu1 %v5958_v10 }
 0x475   :  { %4406 = vmatprep.subr.bf16.mxu1 %v5962_v24  ;;  %4410 = vmatprep.subr.bf16.mxu0 %v5669_v19  ;;  %v1253_v19 = vld [vmem:[%s6937_s3] sm:$0x3] }
 0x477   :  { %1247 = vmatmul.mubr.f32.vlgmr.msra.gmra.mrb[4].mxu0 %v4063_v40 }
 0x478   :  { %4408 = vmatpush1.bf16.msra.mxu1 %v5969_v51  ;;  %4412 = vmatpush1.bf16.msra.mxu0 %v5680_v36  ;;  %v1258_v36 = vrot.slane %v1253_v19, %v5572_v9 }
 0x479   :  { %4414 = vmatprep.subr.bf16.mxu0 %v5682_v4  ;;  %4458 = vmatprep.subr.bf16.mxu1 %v5688_v18  ;;  %v1502_v4 = vld [vmem:[%s6940_s6] sm:$0x3] }
 0x47a   :  { %1673 = vmatprep.mubr.f32.mxu0 %v5171_v0 }
 0x47b   :  { %1496 = vmatmul.mubr.f32.vlgmr.msra.gmra.mrb[4].mxu1 %v4068_v53 }
 0x47c   :  { %4416 = vmatpush1.bf16.msra.mxu0 %v5694_v31  ;;  %4460 = vmatpush1.bf16.msra.mxu1 %v5696_v35 }
 0x47d   :  { %4418 = vmatprep.subr.bf16.mxu0 %v5706_v44  ;;  %4462 = vmatprep.subr.bf16.mxu1 %v5711_v5  ;;  %v1507_v44 = vrot.slane %v1502_v4, %v5572_v9 }
 0x47e   :  { %1922 = vmatprep.mubr.f32.mxu1 %v5171_v0 }
 0x480   :  { %4420 = vmatpush1.bf16.msra.mxu0 %v5719_v29  ;;  %4464 = vmatpush1.bf16.msra.mxu1 %v5728_v55 }
 0x481   :  { %4422 = vmatprep.subr.bf16.mxu0 %v5730_v56  ;;  %4466 = vmatprep.subr.bf16.mxu1 %v5735_v12 }
 0x484   :  { %4424 = vmatpush1.bf16.msra.mxu0 %v5743_v43  ;;  %4468 = vmatpush1.bf16.msra.mxu1 %v5752_v6  ;;  %v1262_v43 = vrot.slane %v1253_v19, %v5582_v52 }
 0x485   :  { %4426 = vmatprep.subr.bf16.mxu0 %v5754_v7  ;;  %4470 = vmatprep.subr.bf16.mxu1 %v5757_v32  ;;  %v1511_v7 = vrot.slane %v1502_v4, %v5582_v52 }
 0x488   :  { %4472 = vmatpush1.bf16.msra.mxu1 %v5762_v34 }
 0x489   :  { %4474 = vmatprep.subr.bf16.mxu1 %v5764_v22 }
 0x4cd   :  { %v1282_v40 = vpop.permute.xlu0 %1281 }
 0x4d1   :  { %v1531_v4 = vpop.permute.xlu1 %1530 }
 0x54a   :  { %v1248_v18 = vpop.f32.mrb[4].mxu0 }
 0x54b   :  { %v1265_v31 = vadd.f32 %v1258_v36, %v1248_v18  ;;  %v1250_v35 = vpop.f32.mrb[5].mxu0 }
 0x54c   :  { %v1266_v6 = vadd.f32 %v1262_v43, %v1250_v35 }
 0x54d   :  { %v4065_v5 = vmul.f32 -1.442695, %v1265_v31 }
 0x54e   :  { %v1497_v29 = vpop.f32.mrb[4].mxu1  ;;  %v4066_v47 = vmul.f32 -1.442695, %v1266_v6 }
 0x54f   :  { %4975 = vpow2.f32 %v4065_v5  ;;  %v1514_v55 = vadd.f32 %v1507_v44, %v1497_v29  ;;  %v1499_v56 = vpop.f32.mrb[5].mxu1 }
 0x550   :  { %v1515_v22 = vadd.f32 %v1511_v7, %v1499_v56 }
 0x551   :  { %v4070_v12 = vmul.f32 -1.442695, %v1514_v55 }
 0x552   :  { %v4071_v8 = vmul.f32 -1.442695, %v1515_v22 }
 0x553   :  { %4977 = vpow2.f32 %v4070_v12 }
 0x554   :  { %4979 = vtanh.f32 %v1266_v6 }
 0x559   :  { %v4976_v32 = vpop.eup %4975 }
 0x55a   :  { %v1270_v34 = vadd.f32 1.0, %v4976_v32 }
 0x55c   :  { %4981 = vrcp.f32 %v1270_v34 }
 0x55d   :  { %v4978_v48 = vpop.eup %4977  ;;  %4983 = vtanh.f32 %v1515_v22 }
 0x55e   :  { %v1519_v49 = vadd.f32 1.0, %v4978_v48  ;;  %v4980_v61 = vpop.eup %4979 }
 0x560   :  { %4985 = vrcp.f32 %v1519_v49 }
 0x561   :  { %4987 = vpow2.f32 %v4066_v47  ;;  %v2092_v47 = vld [vmem:[%s6936_s2 + $0x28] sm:$0xff] }
 0x562   :  { %4989 = vpow2.f32 %v4071_v8  ;;  %v2094_v8 = vld [vmem:[%s6936_s2 + $0x38] sm:$0xff] }
 0x566   :  { %v4982_v3 = vpop.eup %4981 }
 0x567   :  { %v1285_v37 = vmul.f32 %v4982_v3, %v4980_v61  ;;  %v4984_v46 = vpop.eup %4983  ;;  %v1284_v36 = vmul.f32 %v4982_v3, %v1282_v40  ;;  %v6102_v40 = vpack.c.bf16 %v2094_v8, %v2092_v47  ;;  %v2304_v8 = vld [vmem:[#allocation6 + $0x8] sm:$0xff] }
 0x569   :  { %1287 = vrot.lane.b32.xlu0 %v1285_v37, %s5172_s19 }
 0x56a   :  { %v4986_v28 = vpop.eup %4985 }
 0x56b   :  { %v1534_v45 = vmul.f32 %v4986_v28, %v4984_v46  ;;  %v4988_v26 = vpop.eup %4987  ;;  %v1533_v44 = vmul.f32 %v4986_v28, %v1531_v4  ;;  %v2087_v46 = vld [vmem:[%s6936_s2] sm:$0xff] }
 0x56c   :  { %v1277_v53 = vadd.f32 1.0, %v4988_v26  ;;  %v4990_v19 = vpop.eup %4989 }
 0x56d   :  { %1536 = vrot.lane.b32.xlu1 %v1534_v45, %s5172_s19  ;;  %v1526_v35 = vadd.f32 1.0, %v4990_v19  ;;  %v2089_v45 = vld [vmem:[%s6936_s2 + $0x10] sm:$0xff]  ;;  %v2338_v19 = vld [vmem:[#allocation8 + $0x18] sm:$0xff] }
 0x56e   :  { %4991 = vrcp.f32 %v1277_v53  ;;  %v6100_v26 = vpack.c.bf16 %v2089_v45, %v2087_v46  ;;  %v2336_v53 = vld [vmem:[#allocation8 + $0x8] sm:$0xff]  ;;  %v2349_v46 = vld [vmem:[#allocation8 + $0x70] sm:$0xff] }
 0x56f   :  { %v6108_v4 = vpack.c.bf16 %v2338_v19, %v2336_v53  ;;  %v2306_v19 = vld [vmem:[#allocation6 + $0x18] sm:$0xff] }
 0x578   :  { %v4992_v55 = vpop.eup %4991 }
 0x5db   :  { %v1288_v18 = vpop.permute.xlu0 %1287 }
 0x5dc   :  { %v1290_v31 = vadd.f32 %v1288_v18, %v1284_v36  ;;  %v2091_v36 = vld [vmem:[%s6936_s2 + $0x20] sm:$0xff]  ;;  %v2093_v18 = vld [vmem:[%s6936_s2 + $0x30] sm:$0xff] }
 0x5de   :  { %4993 = vtanh.f32 %v1290_v31 }
 0x5df   :  { %v1537_v5 = vpop.permute.xlu1 %1536  ;;  %4995 = vrcp.f32 %v1526_v35  ;;  %v2337_v35 = vld [vmem:[#allocation8 + $0x10] sm:$0xff] }
 0x5e0   :  { %v1539_v29 = vadd.f32 %v1537_v5, %v1533_v44  ;;  %v6114_v44 = vpack.c.bf16 %v2093_v18, %v2091_v36  ;;  %v6185_v18 = vpack.c.bf16 %v2306_v19, %v2304_v8  ;;  %v2069_v8 = vld [vmem:[%s6935_s1 + $0x70] sm:$0xff] }
 0x5e2   :  { %4997 = vtanh.f32 %v1539_v29 }
 0x5e8   :  { %v4994_v56 = vpop.eup %4993 }
 0x5e9   :  { %v1292_v12 = vmul.f32 %v4994_v56, %v4992_v55  ;;  %v4996_v43 = vpop.eup %4995  ;;  %v2098_v55 = vld [vmem:[%s6936_s2 + $0x58] sm:$0xff] }
 0x5eb   :  { %1294 = vrot.lane.b32.xlu0 %v1292_v12, %s5172_s19 }
 0x5ec   :  { %v4998_v6 = vpop.eup %4997 }
 0x5ed   :  { %v1541_v7 = vmul.f32 %v4998_v6, %v4996_v43 }
 0x5ef   :  { %1299 = vrot.lane.b32.xlu0 %v1290_v31, %s5172_s19  ;;  %1543 = vrot.lane.b32.xlu1 %v1541_v7, %s5172_s19  ;;  %v2335_v31 = vld [vmem:[#allocation8] sm:$0xff] }
 0x5f0   :  { %v6116_v5 = vpack.c.bf16 %v2337_v35, %v2335_v31 }
 0x5f3   :  { %1548 = vrot.lane.b32.xlu1 %v1539_v29, %s5172_s19  ;;  %v2096_v29 = vld [vmem:[%s6936_s2 + $0x48] sm:$0xff] }
 0x5f4   :  { %v6126_v56 = vpack.c.bf16 %v2098_v55, %v2096_v29 }
 0x65d   :  { %v1295_v32 = vpop.permute.xlu0 %1294 }
 0x65e   :  { %1297 = vst.msk [vmem:[#allocation2] sm:$0x3] %vm56_vm0, %v1295_v32  ;;  %4067 = vst.msk [vmem:[%s6941_s7 + $0x4] sm:$0x3] %vm56_vm0, %v1295_v32 }
 0x661   :  { %v1300_v34 = vpop.permute.xlu0 %1299  ;;  %v1544_v22 = vpop.permute.xlu1 %1543 }
 0x662   :  { %1302 = vst.msk [vmem:[#allocation3] sm:$0x3] %vm56_vm0, %v1300_v34  ;;  %1546 = vst.msk [vmem:[#allocation4] sm:$0x3] %vm56_vm0, %v1544_v22 }
 0x663   :  { %4072 = vst.msk [vmem:[%s6942_s8 + $0xa] sm:$0x3] %vm56_vm0, %v1544_v22 }
 0x665   :  { %v1549_v48 = vpop.permute.xlu1 %1548  ;;  %v1556_v49 = vld [vmem:[#allocation2] sm:$0x3] }
 0x666   :  { %1551 = vst.msk [vmem:[#allocation5] sm:$0x3] %vm56_vm0, %v1549_v48  ;;  %4074 = vmatmul.mubr.msk.f32.vlgmr.msra.gmra.mrb[6].mxu0 %vm112_vm1, %v1556_v49 }
 0x667   :  { %4428 = vmatpush1.bf16.msra.mxu0 %v5795_v50  ;;  %1744 = vmatprep.mubr.f32.mxu0 %v5171_v0  ;;  %v4073_v50 = vld [vmem:[%s6934_s0 + $0x6] sm:$0x3] }
 0x668   :  { %4430 = vmatprep.subr.bf16.mxu0 %v5803_v63  ;;  %v4078_v63 = vld [vmem:[%s6934_s0 + $0x8] sm:$0x3] }
 0x669   :  { %v1557_v61 = vld [vmem:[#allocation3] sm:$0x3]  ;;  %v1805_v3 = vld [vmem:[#allocation4] sm:$0x3] }
 0x66a   :  { %1779 = vrot.lane.b32.xlu0 %v1557_v61, %s5172_s19  ;;  %4079 = vmatmul.mubr.msk.f32.vlgmr.msra.gmra.mrb[6].mxu1 %vm112_vm1, %v1805_v3  ;;  %v2340_v61 = vld [vmem:[#allocation8 + $0x28] sm:$0xff]  ;;  %v2342_v3 = vld [vmem:[#allocation8 + $0x38] sm:$0xff] }
 0x66b   :  { %4432 = vmatpush1.bf16.msra.mxu0 %v5817_v38  ;;  %4476 = vmatpush1.bf16.msra.mxu1 %v5819_v41  ;;  %v1751_v38 = vld [vmem:[%s6937_s3] sm:$0x3] }
 0x66c   :  { %4434 = vmatprep.subr.bf16.mxu0 %v5826_v15  ;;  %4478 = vmatprep.subr.bf16.mxu1 %v5828_v16  ;;  %v1756_v41 = vrot.slane %v1751_v38, %v5572_v9  ;;  %v2000_v15 = vld [vmem:[%s6940_s6] sm:$0x3] }
 0x66d   :  { %v1806_v37 = vld [vmem:[#allocation5] sm:$0x3]  ;;  %1993 = vmatprep.mubr.f32.mxu1 %v5171_v0 }
 0x66e   :  { %2028 = vrot.lane.b32.xlu1 %v1806_v37, %s5172_s19 }
 0x66f   :  { %4436 = vmatpush1.bf16.msra.mxu0 %v5840_v33  ;;  %4480 = vmatpush1.bf16.msra.mxu1 %v5842_v14 }
 0x670   :  { %4438 = vmatprep.subr.bf16.mxu0 %v5852_v13  ;;  %4482 = vmatprep.subr.bf16.mxu1 %v5854_v17  ;;  %v2005_v13 = vrot.slane %v2000_v15, %v5572_v9 }
 0x673   :  { %4440 = vmatpush1.bf16.msra.mxu0 %v5866_v57  ;;  %4484 = vmatpush1.bf16.msra.mxu1 %v5868_v42 }
 0x674   :  { %4442 = vmatprep.subr.bf16.mxu0 %v5878_v59  ;;  %4486 = vmatprep.subr.bf16.mxu1 %v5880_v60 }
 0x677   :  { %4444 = vmatpush1.bf16.msra.mxu0 %v5890_v21  ;;  %4488 = vmatpush1.bf16.msra.mxu1 %v5892_v23  ;;  %v1760_v21 = vrot.slane %v1751_v38, %v5582_v52  ;;  %v2097_v38 = vld [vmem:[%s6936_s2 + $0x50] sm:$0xff] }
 0x678   :  { %4446 = vmatprep.subr.bf16.mxu0 %v5902_v58  ;;  %4490 = vmatprep.subr.bf16.mxu1 %v5904_v62  ;;  %v2009_v58 = vrot.slane %v2000_v15, %v5582_v52 }
 0x67b   :  { %4448 = vmatpush1.bf16.msra.mxu0 %v5914_v25  ;;  %4492 = vmatpush1.bf16.msra.mxu1 %v5916_v30 }
 0x67c   :  { %4450 = vmatprep.subr.bf16.mxu0 %v5926_v27  ;;  %4494 = vmatprep.subr.bf16.mxu1 %v5928_v39 }
 0x67f   :  { %4452 = vmatpush1.bf16.msra.mxu0 %v5938_v2  ;;  %4496 = vmatpush1.bf16.msra.mxu1 %v5940_v1 }
 0x680   :  { %4454 = vmatprep.subr.bf16.mxu0 %v5947_v11  ;;  %4498 = vmatprep.subr.bf16.mxu1 %v5949_v20 }
 0x683   :  { %4456 = vmatpush1.bf16.msra.mxu0 %v5956_v54  ;;  %4500 = vmatpush1.bf16.msra.mxu1 %v5958_v10 }
 0x684   :  { %4502 = vmatprep.subr.bf16.mxu1 %v5962_v24  ;;  %v2088_v24 = vld [vmem:[%s6936_s2 + $0x8] sm:$0xff] }
 0x686   :  { %1745 = vmatmul.mubr.f32.vlgmr.msra.gmra.mrb[6].mxu0 %v4073_v50  ;;  %v6131_v50 = vpack.c.bf16 %v2342_v3, %v2340_v61  ;;  %v2303_v61 = vld [vmem:[#allocation6] sm:$0xff] }
 0x687   :  { %4504 = vmatpush1.bf16.msra.mxu1 %v5969_v51  ;;  %2170 = vmatprep.mubr.f32.mxu0 %v5171_v0  ;;  %v2090_v51 = vld [vmem:[%s6936_s2 + $0x18] sm:$0xff] }
 0x688   :  { %v6089_v28 = vpack.c.bf16 %v2090_v51, %v2088_v24  ;;  %4554 = vmatprep.subr.bf16.mxu1 %v6108_v4  ;;  %v2347_v51 = vld [vmem:[#allocation8 + $0x60] sm:$0xff] }
 0x689   :  { %v6182_v45 = vpack.c.bf16 %v2349_v46, %v2347_v51 }
 0x68a   :  { %1994 = vmatmul.mubr.f32.vlgmr.msra.gmra.mrb[6].mxu1 %v4078_v63  ;;  %4506 = vmatprep.subr.bf16.mxu0 %v6089_v28  ;;  %v2095_v63 = vld [vmem:[%s6936_s2 + $0x40] sm:$0xff] }
 0x68b   :  { %2418 = vmatprep.mubr.f32.mxu1 %v5171_v0  ;;  %4508 = vmatpush1.bf16.msra.mxu0 %v6100_v26 }
 0x68c   :  { %4510 = vmatprep.subr.bf16.mxu0 %v6102_v40  ;;  %4556 = vmatpush1.bf16.msra.mxu1 %v6116_v5 }
 0x68d   :  { %4558 = vmatprep.subr.bf16.mxu1 %v6131_v50 }
 0x68f   :  { %4512 = vmatpush1.bf16.msra.mxu0 %v6114_v44 }
 0x690   :  { %4514 = vmatprep.subr.bf16.mxu0 %v6126_v56 }
 0x6dc   :  { %v1780_v7 = vpop.permute.xlu0 %1779 }
 0x6e0   :  { %v2029_v48 = vpop.permute.xlu1 %2028 }
 0x759   :  { %v1746_v16 = vpop.f32.mrb[6].mxu0 }
 0x75a   :  { %v1763_v33 = vadd.f32 %v1756_v41, %v1746_v16  ;;  %v1748_v14 = vpop.f32.mrb[7].mxu0  ;;  %v2339_v41 = vld [vmem:[#allocation8 + $0x20] sm:$0xff]  ;;  %v6139_v16 = vpack.c.bf16 %v2097_v38, %v2095_v63  ;;  %v2064_v63 = vld [vmem:[%s6935_s1 + $0x48] sm:$0xff]  ;;  %v2066_v38 = vld [vmem:[%s6935_s1 + $0x58] sm:$0xff] }
 0x75b   :  { %v1764_v23 = vadd.f32 %v1760_v21, %v1748_v14  ;;  %v2346_v21 = vld [vmem:[#allocation8 + $0x58] sm:$0xff] }
 0x75c   :  { %v4075_v17 = vmul.f32 -1.442695, %v1763_v33  ;;  %v2341_v33 = vld [vmem:[#allocation8 + $0x30] sm:$0xff]  ;;  %4516 = vmatpush1.bf16.msra.mxu0 %v6139_v16 }
 0x75d   :  { %v1995_v57 = vpop.f32.mrb[6].mxu1  ;;  %v4076_v12 = vmul.f32 -1.442695, %v1764_v23 }
 0x75e   :  { %4999 = vpow2.f32 %v4075_v17  ;;  %v2012_v42 = vadd.f32 %v2005_v13, %v1995_v57  ;;  %v1997_v59 = vpop.f32.mrb[7].mxu1  ;;  %v6142_v13 = vpack.c.bf16 %v2341_v33, %v2339_v41  ;;  %v2100_v17 = vld [vmem:[%s6936_s2 + $0x68] sm:$0xff]  ;;  %v2102_v57 = vld [vmem:[%s6936_s2 + $0x78] sm:$0xff] }
 0x75f   :  { %v2013_v30 = vadd.f32 %v2009_v58, %v1997_v59  ;;  %v6151_v59 = vpack.c.bf16 %v2102_v57, %v2100_v17  ;;  %v2308_v33 = vld [vmem:[#allocation6 + $0x28] sm:$0xff]  ;;  %v2063_v17 = vld [vmem:[%s6935_s1 + $0x40] sm:$0xff] }
 0x760   :  { %v4080_v60 = vmul.f32 -1.442695, %v2012_v42  ;;  %4560 = vmatpush1.bf16.msra.mxu1 %v6142_v13 }
 0x761   :  { %v4081_v43 = vmul.f32 -1.442695, %v2013_v30  ;;  %4518 = vmatprep.subr.bf16.mxu0 %v6151_v59 }
 0x762   :  { %5001 = vpow2.f32 %v4080_v60  ;;  %v2344_v60 = vld [vmem:[#allocation8 + $0x48] sm:$0xff] }
 0x763   :  { %5003 = vtanh.f32 %v1764_v23  ;;  %v6154_v58 = vpack.c.bf16 %v2346_v21, %v2344_v60  ;;  %v2065_v60 = vld [vmem:[%s6935_s1 + $0x50] sm:$0xff] }
 0x764   :  { %v2307_v21 = vld [vmem:[#allocation6 + $0x20] sm:$0xff]  ;;  %v6260_v51 = vpack.c.bf16 %v2065_v60, %v2063_v17  ;;  %v2075_v17 = vld [vmem:[%s6935_s1 + $0xa0] sm:$0xff] }
 0x765   :  { %4562 = vmatprep.subr.bf16.mxu1 %v6154_v58  ;;  %v2077_v60 = vld [vmem:[%s6935_s1 + $0xb0] sm:$0xff] }
 0x768   :  { %v5000_v62 = vpop.eup %4999 }
 0x769   :  { %v1768_v25 = vadd.f32 1.0, %v5000_v62  ;;  %v2099_v62 = vld [vmem:[%s6936_s2 + $0x60] sm:$0xff] }
 0x76b   :  { %5005 = vrcp.f32 %v1768_v25  ;;  %v2101_v25 = vld [vmem:[%s6936_s2 + $0x70] sm:$0xff] }
 0x76c   :  { %v5002_v27 = vpop.eup %5001  ;;  %5007 = vtanh.f32 %v2013_v30  ;;  %v2343_v30 = vld [vmem:[#allocation8 + $0x40] sm:$0xff] }
 0x76d   :  { %v2017_v39 = vadd.f32 1.0, %v5002_v27  ;;  %v5004_v2 = vpop.eup %5003  ;;  %v6163_v27 = vpack.c.bf16 %v2101_v25, %v2099_v62  ;;  %v6246_v62 = vpack.c.bf16 %v2066_v38, %v2064_v63  ;;  %v2076_v63 = vld [vmem:[%s6935_s1 + $0xa8] sm:$0xff]  ;;  %v2078_v38 = vld [vmem:[%s6935_s1 + $0xb8] sm:$0xff] }
 0x76f   :  { %5009 = vrcp.f32 %v2017_v39  ;;  %v2345_v39 = vld [vmem:[#allocation8 + $0x50] sm:$0xff]  ;;  %4520 = vmatpush1.bf16.msra.mxu0 %v6163_v27 }
 0x770   :  { %5011 = vpow2.f32 %v4076_v12  ;;  %v2055_v12 = vld [vmem:[%s6935_s1] sm:$0xff] }
 0x771   :  { %5013 = vpow2.f32 %v4081_v43  ;;  %v2057_v43 = vld [vmem:[%s6935_s1 + $0x10] sm:$0xff] }
 0x775   :  { %v5006_v1 = vpop.eup %5005 }
 0x776   :  { %v1783_v11 = vmul.f32 %v5006_v1, %v5004_v2  ;;  %v5008_v20 = vpop.eup %5007  ;;  %v1782_v22 = vmul.f32 %v5006_v1, %v1780_v7  ;;  %v6166_v2 = vpack.c.bf16 %v2345_v39, %v2343_v30  ;;  %v2056_v1 = vld [vmem:[%s6935_s1 + $0x8] sm:$0xff]  ;;  %v2070_v39 = vld [vmem:[%s6935_s1 + $0x78] sm:$0xff] }
 0x777   :  { %v2068_v30 = vld [vmem:[%s6935_s1 + $0x68] sm:$0xff] }
 0x778   :  { %1785 = vrot.lane.b32.xlu0 %v1783_v11, %s5172_s19  ;;  %v2058_v11 = vld [vmem:[%s6935_s1 + $0x18] sm:$0xff]  ;;  %4564 = vmatpush1.bf16.msra.mxu1 %v6166_v2  ;;  %v6272_v19 = vpack.c.bf16 %v2070_v39, %v2068_v30  ;;  %v2319_v30 = vld [vmem:[#allocation6 + $0x80] sm:$0xff]  ;;  %v2321_v39 = vld [vmem:[#allocation6 + $0x90] sm:$0xff] }
 0x779   :  { %v5010_v54 = vpop.eup %5009 }
 0x77a   :  { %v2032_v10 = vmul.f32 %v5010_v54, %v5008_v20  ;;  %v5012_v6 = vpop.eup %5011  ;;  %v2031_v14 = vmul.f32 %v5010_v54, %v2029_v48  ;;  %v2348_v20 = vld [vmem:[#allocation8 + $0x68] sm:$0xff]  ;;  %v6175_v54 = vpack.c.bf16 %v2058_v11, %v2056_v1  ;;  %v2059_v48 = vld [vmem:[%s6935_s1 + $0x20] sm:$0xff] }
 0x77b   :  { %v1775_v32 = vadd.f32 1.0, %v5012_v6  ;;  %v5014_v34 = vpop.eup %5013  ;;  %v2312_v1 = vld [vmem:[#allocation6 + $0x48] sm:$0xff] }
 0x77c   :  { %2034 = vrot.lane.b32.xlu1 %v2032_v10, %s5172_s19  ;;  %v2024_v15 = vadd.f32 1.0, %v5014_v34  ;;  %v2350_v10 = vld [vmem:[#allocation8 + $0x78] sm:$0xff]  ;;  %4522 = vmatprep.subr.bf16.mxu0 %v6175_v54  ;;  %v2062_v34 = vld [vmem:[%s6935_s1 + $0x38] sm:$0xff] }
 0x77d   :  { %5015 = vrcp.f32 %v1775_v32  ;;  %v6178_v24 = vpack.c.bf16 %v2350_v10, %v2348_v20  ;;  %v2060_v32 = vld [vmem:[%s6935_s1 + $0x28] sm:$0xff] }
 0x77e   :  { %v6223_v3 = vpack.c.bf16 %v2062_v34, %v2060_v32  ;;  %v2314_v10 = vld [vmem:[#allocation6 + $0x58] sm:$0xff]  ;;  %v2071_v32 = vld [vmem:[%s6935_s1 + $0x80] sm:$0xff]  ;;  %v2073_v34 = vld [vmem:[%s6935_s1 + $0x90] sm:$0xff] }
 0x77f   :  { %4566 = vmatprep.subr.bf16.mxu1 %v6178_v24 }
 0x780   :  { %4568 = vmatpush1.bf16.msra.mxu1 %v6182_v45 }
 0x781   :  { %4570 = vmatprep.subr.bf16.mxu1 %v6185_v18 }
 0x787   :  { %v5016_v47 = vpop.eup %5015 }
 0x7ea   :  { %v1786_v49 = vpop.permute.xlu0 %1785 }
 0x7eb   :  { %v1788_v37 = vadd.f32 %v1786_v49, %v1782_v22  ;;  %v6215_v22 = vpack.c.bf16 %v2057_v43, %v2055_v12  ;;  %v2061_v49 = vld [vmem:[%s6935_s1 + $0x30] sm:$0xff]  ;;  %v2316_v12 = vld [vmem:[#allocation6 + $0x68] sm:$0xff]  ;;  %v2318_v43 = vld [vmem:[#allocation6 + $0x78] sm:$0xff] }
 0x7ec   :  { %v6237_v57 = vpack.c.bf16 %v2061_v49, %v2059_v48  ;;  %v6300_v49 = vpack.c.bf16 %v2318_v43, %v2316_v12  ;;  %v2325_v12 = vld [vmem:[#allocation6 + $0xb0] sm:$0xff]  ;;  %v2084_v43 = vld [vmem:[%s6935_s1 + $0xe8] sm:$0xff] }
 0x7ed   :  { %5017 = vtanh.f32 %v1788_v37 }
 0x7ee   :  { %v2035_v42 = vpop.permute.xlu1 %2034  ;;  %5019 = vrcp.f32 %v2024_v15 }
 0x7ef   :  { %v2037_v23 = vadd.f32 %v2035_v42, %v2031_v14  ;;  %v2310_v14 = vld [vmem:[#allocation6 + $0x38] sm:$0xff] }
 0x7f0   :  { %v6248_v25 = vpack.c.bf16 %v2310_v14, %v2308_v33  ;;  %v6310_v33 = vpack.c.bf16 %v2073_v34, %v2071_v32  ;;  %v2086_v32 = vld [vmem:[%s6935_s1 + $0xf8] sm:$0xff] }
 0x7f1   :  { %5021 = vtanh.f32 %v2037_v23  ;;  %v2328_v34 = vld [vmem:[#allocation6 + $0xc8] sm:$0xff] }
 0x7f7   :  { %v5018_v53 = vpop.eup %5017 }
 0x7f8   :  { %v1790_v36 = vmul.f32 %v5018_v53, %v5016_v47  ;;  %v5020_v31 = vpop.eup %5019  ;;  %v2067_v47 = vld [vmem:[%s6935_s1 + $0x60] sm:$0xff]  ;;  %v2311_v53 = vld [vmem:[#allocation6 + $0x40] sm:$0xff] }
 0x7fa   :  { %1792 = vrot.lane.b32.xlu0 %v1790_v36, %s5172_s19  ;;  %v6274_v36 = vpack.c.bf16 %v2314_v10, %v2312_v1  ;;  %v2080_v1 = vld [vmem:[%s6935_s1 + $0xc8] sm:$0xff] }
 0x7fb   :  { %v5022_v35 = vpop.eup %5021  ;;  %v2326_v10 = vld [vmem:[#allocation6 + $0xb8] sm:$0xff] }
 0x7fc   :  { %v2039_v29 = vmul.f32 %v5022_v35, %v5020_v31  ;;  %v2313_v31 = vld [vmem:[#allocation6 + $0x50] sm:$0xff]  ;;  %v2072_v35 = vld [vmem:[%s6935_s1 + $0x88] sm:$0xff] }
 0x7fe   :  { %1797 = vrot.lane.b32.xlu0 %v1788_v37, %s5172_s19  ;;  %2041 = vrot.lane.b32.xlu1 %v2039_v29, %s5172_s19  ;;  %v2305_v37 = vld [vmem:[#allocation6 + $0x10] sm:$0xff]  ;;  %v2074_v29 = vld [vmem:[%s6935_s1 + $0x98] sm:$0xff] }
 0x7ff   :  { %v6239_v42 = vpack.c.bf16 %v2305_v37, %v2303_v61  ;;  %v6298_v48 = vpack.c.bf16 %v2074_v29, %v2072_v35  ;;  %v2315_v61 = vld [vmem:[#allocation6 + $0x60] sm:$0xff]  ;;  %v2317_v37 = vld [vmem:[#allocation6 + $0x70] sm:$0xff] }
 0x800   :  { %v6312_v14 = vpack.c.bf16 %v2317_v37, %v2315_v61  ;;  %v2330_v61 = vld [vmem:[#allocation6 + $0xd8] sm:$0xff] }
 0x802   :  { %2046 = vrot.lane.b32.xlu1 %v2037_v23, %s5172_s19  ;;  %v2309_v23 = vld [vmem:[#allocation6 + $0x30] sm:$0xff] }
 0x803   :  { %v6262_v46 = vpack.c.bf16 %v2309_v23, %v2307_v21  ;;  %v6322_v21 = vpack.c.bf16 %v2078_v38, %v2076_v63  ;;  %v2083_v38 = vld [vmem:[%s6935_s1 + $0xe0] sm:$0xff] }
 0x86c   :  { %v1793_v55 = vpop.permute.xlu0 %1792 }
 0x86d   :  { %1795 = vst.msk [vmem:[#allocation2] sm:$0x3] %vm56_vm0, %v1793_v55  ;;  %4077 = vst.msk [vmem:[%s6941_s7 + $0x6] sm:$0x3] %vm56_vm0, %v1793_v55 }
 0x870   :  { %v1798_v6 = vpop.permute.xlu0 %1797  ;;  %v2042_v7 = vpop.permute.xlu1 %2041 }
 0x871   :  { %1800 = vst.msk [vmem:[#allocation3] sm:$0x3] %vm56_vm0, %v1798_v6  ;;  %2044 = vst.msk [vmem:[#allocation4] sm:$0x3] %vm56_vm0, %v2042_v7  ;;  %v6286_v6 = vpack.c.bf16 %v2069_v8, %v2067_v47  ;;  %v6334_v47 = vpack.c.bf16 %v2077_v60, %v2075_v17  ;;  %v6336_v8 = vpack.c.bf16 %v2321_v39, %v2319_v30  ;;  %v2085_v17 = vld [vmem:[%s6935_s1 + $0xf0] sm:$0xff]  ;;  %v2329_v30 = vld [vmem:[#allocation6 + $0xd0] sm:$0xff] }
 0x872   :  { %4082 = vst.msk [vmem:[%s6942_s8 + $0x8] sm:$0x3] %vm56_vm0, %v2042_v7  ;;  %v6288_v7 = vpack.c.bf16 %v2313_v31, %v2311_v53  ;;  %v2079_v53 = vld [vmem:[%s6935_s1 + $0xc0] sm:$0xff]  ;;  %v2081_v31 = vld [vmem:[%s6935_s1 + $0xd0] sm:$0xff]  ;;  %v2332_v39 = vld [vmem:[#allocation6 + $0xe8] sm:$0xff] }
 0x873   :  { %v6358_v37 = vpack.c.bf16 %v2081_v31, %v2079_v53  ;;  %v2327_v60 = vld [vmem:[#allocation6 + $0xc0] sm:$0xff]  ;;  %v2333_v31 = vld [vmem:[#allocation6 + $0xf0] sm:$0xff] }
 0x874   :  { %v2047_v41 = vpop.permute.xlu1 %2046  ;;  %v2053_v15 = vld [vmem:[#allocation2] sm:$0x3]  ;;  %v2331_v53 = vld [vmem:[#allocation6 + $0xe0] sm:$0xff] }
 0x875   :  { %2049 = vst.msk [vmem:[#allocation5] sm:$0x3] %vm56_vm0, %v2047_v41  ;;  %4084 = vmatmul.mubr.msk.f32.vlgmr.msra.gmra.mrb[8].mxu0 %vm112_vm1, %v2053_v15  ;;  %v2320_v41 = vld [vmem:[#allocation6 + $0x88] sm:$0xff]  ;;  %v2322_v15 = vld [vmem:[#allocation6 + $0x98] sm:$0xff] }
 0x876   :  { %4524 = vmatpush1.bf16.msra.mxu0 %v6215_v22  ;;  %2241 = vmatprep.mubr.f32.mxu0 %v5171_v0  ;;  %v6324_v23 = vpack.c.bf16 %v2322_v15, %v2320_v41  ;;  %v6367_v41 = vpack.c.bf16 %v2086_v32, %v2084_v43  ;;  %v6369_v15 = vpack.c.bf16 %v2330_v61, %v2328_v34  ;;  %v4088_v43 = vld [vmem:[%s6934_s0 + $0x6] sm:$0x3] }
 0x877   :  { %4526 = vmatprep.subr.bf16.mxu0 %v6223_v3 }
 0x878   :  { %v2054_v11 = vld [vmem:[#allocation3] sm:$0x3]  ;;  %v2301_v20 = vld [vmem:[#allocation4] sm:$0x3] }
 0x879   :  { %2276 = vrot.lane.b32.xlu0 %v2054_v11, %s5172_s19  ;;  %4089 = vmatmul.mubr.msk.f32.vlgmr.msra.gmra.mrb[8].mxu1 %vm112_vm1, %v2301_v20  ;;  %v2082_v11 = vld [vmem:[%s6935_s1 + $0xd8] sm:$0xff] }
 0x87a   :  { %4528 = vmatpush1.bf16.msra.mxu0 %v6237_v57  ;;  %4572 = vmatpush1.bf16.msra.mxu1 %v6239_v42  ;;  %v2324_v20 = vld [vmem:[#allocation6 + $0xa8] sm:$0xff]  ;;  %v6346_v35 = vpack.c.bf16 %v2082_v11, %v2080_v1  ;;  %v2334_v1 = vld [vmem:[#allocation6 + $0xf8] sm:$0xff]  ;;  %v6376_v11 = vpack.c.bf16 %v2085_v17, %v2083_v38 }
 0x87b   :  { %4530 = vmatprep.subr.bf16.mxu0 %v6246_v62  ;;  %4574 = vmatprep.subr.bf16.mxu1 %v6248_v25  ;;  %v6348_v29 = vpack.c.bf16 %v2326_v10, %v2324_v20  ;;  %v6378_v20 = vpack.c.bf16 %v2329_v30, %v2327_v60  ;;  %v6382_v10 = vpack.c.bf16 %v2334_v1, %v2332_v39 }
 0x87c   :  { %v2302_v55 = vld [vmem:[#allocation5] sm:$0x3]  ;;  %2489 = vmatprep.mubr.f32.mxu1 %v5171_v0 }
 0x87d   :  { %2524 = vrot.lane.b32.xlu1 %v2302_v55, %s5172_s19  ;;  %v2323_v55 = vld [vmem:[#allocation6 + $0xa0] sm:$0xff] }
 0x87e   :  { %4532 = vmatpush1.bf16.msra.mxu0 %v6260_v51  ;;  %4576 = vmatpush1.bf16.msra.mxu1 %v6262_v46  ;;  %v6360_v63 = vpack.c.bf16 %v2325_v12, %v2323_v55  ;;  %v4083_v55 = vld [vmem:[%s6934_s0 + $0x8] sm:$0x3]  ;;  %v6389_v12 = vpack.c.bf16 %v2333_v31, %v2331_v53 }
 0x87f   :  { %4534 = vmatprep.subr.bf16.mxu0 %v6272_v19  ;;  %4578 = vmatprep.subr.bf16.mxu1 %v6274_v36 }
 0x882   :  { %4536 = vmatpush1.bf16.msra.mxu0 %v6286_v6  ;;  %4580 = vmatpush1.bf16.msra.mxu1 %v6288_v7 }
 0x883   :  { %4538 = vmatprep.subr.bf16.mxu0 %v6298_v48  ;;  %4582 = vmatprep.subr.bf16.mxu1 %v6300_v49 }
 0x886   :  { %4540 = vmatpush1.bf16.msra.mxu0 %v6310_v33  ;;  %4584 = vmatpush1.bf16.msra.mxu1 %v6312_v14 }
 0x887   :  { %4542 = vmatprep.subr.bf16.mxu0 %v6322_v21  ;;  %4586 = vmatprep.subr.bf16.mxu1 %v6324_v23 }
 0x88a   :  { %4544 = vmatpush1.bf16.msra.mxu0 %v6334_v47  ;;  %4588 = vmatpush1.bf16.msra.mxu1 %v6336_v8 }
 0x88b   :  { %4546 = vmatprep.subr.bf16.mxu0 %v6346_v35  ;;  %4590 = vmatprep.subr.bf16.mxu1 %v6348_v29 }
 0x88e   :  { %4548 = vmatpush1.bf16.msra.mxu0 %v6358_v37  ;;  %4592 = vmatpush1.bf16.msra.mxu1 %v6360_v63 }
 0x88f   :  { %4550 = vmatprep.subr.bf16.mxu0 %v6367_v41  ;;  %4594 = vmatprep.subr.bf16.mxu1 %v6369_v15 }
 0x892   :  { %4552 = vmatpush1.bf16.msra.mxu0 %v6376_v11  ;;  %4596 = vmatpush1.bf16.msra.mxu1 %v6378_v20 }
 0x893   :  { %4598 = vmatprep.subr.bf16.mxu1 %v6382_v10  ;;  %4602 = vmatprep.subr.bf16.mxu0 %v6089_v28  ;;  %v2248_v28 = vld [vmem:[%s6937_s3] sm:$0x3] }
 0x895   :  { %2242 = vmatmul.mubr.f32.vlgmr.msra.gmra.mrb[8].mxu0 %v4083_v55 }
 0x896   :  { %4600 = vmatpush1.bf16.msra.mxu1 %v6389_v12  ;;  %4604 = vmatpush1.bf16.msra.mxu0 %v6100_v26  ;;  %v2253_v26 = vrot.slane %v2248_v28, %v5572_v9 }
 0x897   :  { %4606 = vmatprep.subr.bf16.mxu0 %v6102_v40  ;;  %4650 = vmatprep.subr.bf16.mxu1 %v6108_v4  ;;  %v2496_v40 = vld [vmem:[%s6940_s6] sm:$0x3] }
 0x898   :  { %2666 = vmatprep.mubr.f32.mxu0 %v5171_v0 }
 0x899   :  { %2490 = vmatmul.mubr.f32.vlgmr.msra.gmra.mrb[8].mxu1 %v4088_v43 }
 0x89a   :  { %4608 = vmatpush1.bf16.msra.mxu0 %v6114_v44  ;;  %4652 = vmatpush1.bf16.msra.mxu1 %v6116_v5 }
 0x89b   :  { %4610 = vmatprep.subr.bf16.mxu0 %v6126_v56  ;;  %4654 = vmatprep.subr.bf16.mxu1 %v6131_v50  ;;  %v2501_v56 = vrot.slane %v2496_v40, %v5572_v9 }
 0x89c   :  { %2914 = vmatprep.mubr.f32.mxu1 %v5171_v0 }
 0x89e   :  { %4612 = vmatpush1.bf16.msra.mxu0 %v6139_v16  ;;  %4656 = vmatpush1.bf16.msra.mxu1 %v6142_v13 }
 0x89f   :  { %4614 = vmatprep.subr.bf16.mxu0 %v6151_v59  ;;  %4658 = vmatprep.subr.bf16.mxu1 %v6154_v58 }
 0x8a2   :  { %4616 = vmatpush1.bf16.msra.mxu0 %v6163_v27  ;;  %4660 = vmatpush1.bf16.msra.mxu1 %v6166_v2  ;;  %v2257_v27 = vrot.slane %v2248_v28, %v5582_v52 }
 0x8a3   :  { %4618 = vmatprep.subr.bf16.mxu0 %v6175_v54  ;;  %4662 = vmatprep.subr.bf16.mxu1 %v6178_v24  ;;  %v2505_v54 = vrot.slane %v2496_v40, %v5582_v52 }
 0x8a6   :  { %4664 = vmatpush1.bf16.msra.mxu1 %v6182_v45 }
 0x8a7   :  { %4666 = vmatprep.subr.bf16.mxu1 %v6185_v18 }
 0x8eb   :  { %v2277_v55 = vpop.permute.xlu0 %2276 }
 0x8ef   :  { %v2525_v40 = vpop.permute.xlu1 %2524 }
 0x968   :  { %v2243_v4 = vpop.f32.mrb[8].mxu0 }
 0x969   :  { %v2260_v44 = vadd.f32 %v2253_v26, %v2243_v4  ;;  %v2245_v5 = vpop.f32.mrb[9].mxu0 }
 0x96a   :  { %v2261_v2 = vadd.f32 %v2257_v27, %v2245_v5 }
 0x96b   :  { %v4085_v50 = vmul.f32 -1.442695, %v2260_v44 }
 0x96c   :  { %v2491_v16 = vpop.f32.mrb[8].mxu1  ;;  %v4086_v1 = vmul.f32 -1.442695, %v2261_v2 }
 0x96d   :  { %5023 = vpow2.f32 %v4085_v50  ;;  %v2508_v13 = vadd.f32 %v2501_v56, %v2491_v16  ;;  %v2493_v59 = vpop.f32.mrb[9].mxu1 }
 0x96e   :  { %v2509_v18 = vadd.f32 %v2505_v54, %v2493_v59 }
 0x96f   :  { %v4090_v58 = vmul.f32 -1.442695, %v2508_v13 }
 0x970   :  { %v4091_v53 = vmul.f32 -1.442695, %v2509_v18 }
 0x971   :  { %5025 = vpow2.f32 %v4090_v58 }
 0x972   :  { %5027 = vtanh.f32 %v2261_v2 }
 0x977   :  { %v5024_v24 = vpop.eup %5023 }
 0x978   :  { %v2265_v45 = vadd.f32 1.0, %v5024_v24 }
 0x97a   :  { %5029 = vrcp.f32 %v2265_v45 }
 0x97b   :  { %v5026_v32 = vpop.eup %5025  ;;  %5031 = vtanh.f32 %v2509_v18 }
 0x97c   :  { %v2513_v34 = vadd.f32 1.0, %v5026_v32  ;;  %v5028_v61 = vpop.eup %5027 }
 0x97e   :  { %5033 = vrcp.f32 %v2513_v34 }
 0x97f   :  { %5035 = vpow2.f32 %v4086_v1  ;;  %v3084_v1 = vld [vmem:[%s6936_s2 + $0x28] sm:$0xff] }
 0x980   :  { %5037 = vpow2.f32 %v4091_v53  ;;  %v3086_v53 = vld [vmem:[%s6936_s2 + $0x38] sm:$0xff] }
 0x984   :  { %v5030_v38 = vpop.eup %5029 }
 0x985   :  { %v2280_v17 = vmul.f32 %v5030_v38, %v5028_v61  ;;  %v5032_v60 = vpop.eup %5031  ;;  %v2279_v26 = vmul.f32 %v5030_v38, %v2277_v55  ;;  %v6522_v55 = vpack.c.bf16 %v3086_v53, %v3084_v1  ;;  %v3296_v53 = vld [vmem:[#allocation6 + $0x8] sm:$0xff] }
 0x987   :  { %2282 = vrot.lane.b32.xlu0 %v2280_v17, %s5172_s19 }
 0x988   :  { %v5034_v30 = vpop.eup %5033 }
 0x989   :  { %v2528_v39 = vmul.f32 %v5034_v30, %v5032_v60  ;;  %v5036_v31 = vpop.eup %5035  ;;  %v2527_v56 = vmul.f32 %v5034_v30, %v2525_v40  ;;  %v3079_v60 = vld [vmem:[%s6936_s2] sm:$0xff] }
 0x98a   :  { %v2272_v43 = vadd.f32 1.0, %v5036_v31  ;;  %v5038_v28 = vpop.eup %5037 }
 0x98b   :  { %2530 = vrot.lane.b32.xlu1 %v2528_v39, %s5172_s19  ;;  %v2520_v5 = vadd.f32 1.0, %v5038_v28  ;;  %v3081_v39 = vld [vmem:[%s6936_s2 + $0x10] sm:$0xff]  ;;  %v3330_v28 = vld [vmem:[#allocation8 + $0x18] sm:$0xff] }
 0x98c   :  { %5039 = vrcp.f32 %v2272_v43  ;;  %v6520_v31 = vpack.c.bf16 %v3081_v39, %v3079_v60  ;;  %v3328_v43 = vld [vmem:[#allocation8 + $0x8] sm:$0xff]  ;;  %v3341_v60 = vld [vmem:[#allocation8 + $0x70] sm:$0xff] }
 0x98d   :  { %v6528_v40 = vpack.c.bf16 %v3330_v28, %v3328_v43  ;;  %v3298_v28 = vld [vmem:[#allocation6 + $0x18] sm:$0xff] }
 0x996   :  { %v5040_v13 = vpop.eup %5039 }
 0x9f9   :  { %v2283_v4 = vpop.permute.xlu0 %2282 }
 0x9fa   :  { %v2285_v44 = vadd.f32 %v2283_v4, %v2279_v26  ;;  %v3083_v26 = vld [vmem:[%s6936_s2 + $0x20] sm:$0xff]  ;;  %v3085_v4 = vld [vmem:[%s6936_s2 + $0x30] sm:$0xff] }
 0x9fc   :  { %5041 = vtanh.f32 %v2285_v44 }
 0x9fd   :  { %v2531_v50 = vpop.permute.xlu1 %2530  ;;  %5043 = vrcp.f32 %v2520_v5  ;;  %v3329_v5 = vld [vmem:[#allocation8 + $0x10] sm:$0xff] }
 0x9fe   :  { %v2533_v16 = vadd.f32 %v2531_v50, %v2527_v56  ;;  %v6534_v56 = vpack.c.bf16 %v3085_v4, %v3083_v26  ;;  %v6605_v4 = vpack.c.bf16 %v3298_v28, %v3296_v53  ;;  %v3061_v53 = vld [vmem:[%s6935_s1 + $0x70] sm:$0xff] }
 0xa00   :  { %5045 = vtanh.f32 %v2533_v16 }
 0xa06   :  { %v5042_v59 = vpop.eup %5041 }
 0xa07   :  { %v2287_v58 = vmul.f32 %v5042_v59, %v5040_v13  ;;  %v5044_v27 = vpop.eup %5043  ;;  %v3090_v13 = vld [vmem:[%s6936_s2 + $0x58] sm:$0xff] }
 0xa09   :  { %2289 = vrot.lane.b32.xlu0 %v2287_v58, %s5172_s19 }
 0xa0a   :  { %v5046_v2 = vpop.eup %5045 }
 0xa0b   :  { %v2535_v54 = vmul.f32 %v5046_v2, %v5044_v27 }
 0xa0d   :  { %2294 = vrot.lane.b32.xlu0 %v2285_v44, %s5172_s19  ;;  %2537 = vrot.lane.b32.xlu1 %v2535_v54, %s5172_s19  ;;  %v3327_v44 = vld [vmem:[#allocation8] sm:$0xff] }
 0xa0e   :  { %v6536_v50 = vpack.c.bf16 %v3329_v5, %v3327_v44 }
 0xa11   :  { %2542 = vrot.lane.b32.xlu1 %v2533_v16, %s5172_s19  ;;  %v3088_v16 = vld [vmem:[%s6936_s2 + $0x48] sm:$0xff] }
 0xa12   :  { %v6546_v59 = vpack.c.bf16 %v3090_v13, %v3088_v16 }
 0xa7b   :  { %v2290_v24 = vpop.permute.xlu0 %2289 }
 0xa7c   :  { %2292 = vst.msk [vmem:[#allocation2] sm:$0x3] %vm56_vm0, %v2290_v24  ;;  %4087 = vst.msk [vmem:[%s6941_s7 + $0x8] sm:$0x3] %vm56_vm0, %v2290_v24 }
 0xa7f   :  { %v2295_v45 = vpop.permute.xlu0 %2294  ;;  %v2538_v18 = vpop.permute.xlu1 %2537 }
 0xa80   :  { %2297 = vst.msk [vmem:[#allocation3] sm:$0x3] %vm56_vm0, %v2295_v45  ;;  %2540 = vst.msk [vmem:[#allocation4] sm:$0x3] %vm56_vm0, %v2538_v18 }
 0xa81   :  { %4092 = vst.msk [vmem:[%s6942_s8 + $0x6] sm:$0x3] %vm56_vm0, %v2538_v18 }
 0xa83   :  { %v2543_v32 = vpop.permute.xlu1 %2542  ;;  %v2549_v34 = vld [vmem:[#allocation2] sm:$0x3] }
 0xa84   :  { %2545 = vst.msk [vmem:[#allocation5] sm:$0x3] %vm56_vm0, %v2543_v32  ;;  %4094 = vmatmul.mubr.msk.f32.vlgmr.msra.gmra.mrb[10].mxu0 %vm112_vm1, %v2549_v34  ;;  %v3332_v32 = vld [vmem:[#allocation8 + $0x28] sm:$0xff]  ;;  %v3334_v34 = vld [vmem:[#allocation8 + $0x38] sm:$0xff] }
 0xa85   :  { %4620 = vmatpush1.bf16.msra.mxu0 %v6215_v22  ;;  %2737 = vmatprep.mubr.f32.mxu0 %v5171_v0  ;;  %v4093_v22 = vld [vmem:[%s6934_s0 + $0xa] sm:$0x3] }
 0xa86   :  { %4622 = vmatprep.subr.bf16.mxu0 %v6223_v3  ;;  %v4098_v3 = vld [vmem:[%s6934_s0 + $0x4] sm:$0x3] }
 0xa87   :  { %v2550_v61 = vld [vmem:[#allocation3] sm:$0x3]  ;;  %v2797_v38 = vld [vmem:[#allocation4] sm:$0x3] }
 0xa88   :  { %2772 = vrot.lane.b32.xlu0 %v2550_v61, %s5172_s19  ;;  %4099 = vmatmul.mubr.msk.f32.vlgmr.msra.gmra.mrb[10].mxu1 %vm112_vm1, %v2797_v38 }
 0xa89   :  { %4624 = vmatpush1.bf16.msra.mxu0 %v6237_v57  ;;  %4668 = vmatpush1.bf16.msra.mxu1 %v6239_v42  ;;  %v2744_v57 = vld [vmem:[%s6937_s3] sm:$0x3] }
 0xa8a   :  { %4626 = vmatprep.subr.bf16.mxu0 %v6246_v62  ;;  %4670 = vmatprep.subr.bf16.mxu1 %v6248_v25  ;;  %v2749_v42 = vrot.slane %v2744_v57, %v5572_v9  ;;  %v2992_v62 = vld [vmem:[%s6940_s6] sm:$0x3] }
 0xa8b   :  { %v2798_v17 = vld [vmem:[#allocation5] sm:$0x3]  ;;  %2985 = vmatprep.mubr.f32.mxu1 %v5171_v0 }
 0xa8c   :  { %3020 = vrot.lane.b32.xlu1 %v2798_v17, %s5172_s19  ;;  %v6551_v17 = vpack.c.bf16 %v3334_v34, %v3332_v32  ;;  %v3051_v32 = vld [vmem:[%s6935_s1 + $0x20] sm:$0xff]  ;;  %v3053_v34 = vld [vmem:[%s6935_s1 + $0x30] sm:$0xff] }
 0xa8d   :  { %4628 = vmatpush1.bf16.msra.mxu0 %v6260_v51  ;;  %4672 = vmatpush1.bf16.msra.mxu1 %v6262_v46 }
 0xa8e   :  { %4630 = vmatprep.subr.bf16.mxu0 %v6272_v19  ;;  %4674 = vmatprep.subr.bf16.mxu1 %v6274_v36  ;;  %v2997_v19 = vrot.slane %v2992_v62, %v5572_v9 }
 0xa91   :  { %4632 = vmatpush1.bf16.msra.mxu0 %v6286_v6  ;;  %4676 = vmatpush1.bf16.msra.mxu1 %v6288_v7 }
 0xa92   :  { %4634 = vmatprep.subr.bf16.mxu0 %v6298_v48  ;;  %4678 = vmatprep.subr.bf16.mxu1 %v6300_v49 }
 0xa95   :  { %4636 = vmatpush1.bf16.msra.mxu0 %v6310_v33  ;;  %4680 = vmatpush1.bf16.msra.mxu1 %v6312_v14  ;;  %v2753_v33 = vrot.slane %v2744_v57, %v5582_v52  ;;  %v3331_v57 = vld [vmem:[#allocation8 + $0x20] sm:$0xff] }
 0xa96   :  { %4638 = vmatprep.subr.bf16.mxu0 %v6322_v21  ;;  %4682 = vmatprep.subr.bf16.mxu1 %v6324_v23  ;;  %v3001_v21 = vrot.slane %v2992_v62, %v5582_v52 }
 0xa99   :  { %4640 = vmatpush1.bf16.msra.mxu0 %v6334_v47  ;;  %4684 = vmatpush1.bf16.msra.mxu1 %v6336_v8 }
 0xa9a   :  { %4642 = vmatprep.subr.bf16.mxu0 %v6346_v35  ;;  %4686 = vmatprep.subr.bf16.mxu1 %v6348_v29 }
 0xa9d   :  { %4644 = vmatpush1.bf16.msra.mxu0 %v6358_v37  ;;  %4688 = vmatpush1.bf16.msra.mxu1 %v6360_v63 }
 0xa9e   :  { %4646 = vmatprep.subr.bf16.mxu0 %v6367_v41  ;;  %4690 = vmatprep.subr.bf16.mxu1 %v6369_v15 }
 0xaa1   :  { %4648 = vmatpush1.bf16.msra.mxu0 %v6376_v11  ;;  %4692 = vmatpush1.bf16.msra.mxu1 %v6378_v20 }
 0xaa2   :  { %4694 = vmatprep.subr.bf16.mxu1 %v6382_v10  ;;  %v3080_v10 = vld [vmem:[%s6936_s2 + $0x8] sm:$0xff] }
 0xaa4   :  { %2738 = vmatmul.mubr.f32.vlgmr.msra.gmra.mrb[10].mxu0 %v4093_v22  ;;  %v3087_v22 = vld [vmem:[%s6936_s2 + $0x40] sm:$0xff] }
 0xaa5   :  { %4696 = vmatpush1.bf16.msra.mxu1 %v6389_v12  ;;  %3162 = vmatprep.mubr.f32.mxu0 %v5171_v0  ;;  %v3082_v12 = vld [vmem:[%s6936_s2 + $0x18] sm:$0xff] }
 0xaa6   :  { %v6509_v30 = vpack.c.bf16 %v3082_v12, %v3080_v10  ;;  %4746 = vmatprep.subr.bf16.mxu1 %v6528_v40  ;;  %v3339_v12 = vld [vmem:[#allocation8 + $0x60] sm:$0xff] }
 0xaa7   :  { %v6601_v39 = vpack.c.bf16 %v3341_v60, %v3339_v12 }
 0xaa8   :  { %2986 = vmatmul.mubr.f32.vlgmr.msra.gmra.mrb[10].mxu1 %v4098_v3  ;;  %4698 = vmatprep.subr.bf16.mxu0 %v6509_v30  ;;  %v3089_v3 = vld [vmem:[%s6936_s2 + $0x50] sm:$0xff] }
 0xaa9   :  { %3410 = vmatprep.mubr.f32.mxu1 %v5171_v0  ;;  %4700 = vmatpush1.bf16.msra.mxu0 %v6520_v31  ;;  %v6559_v62 = vpack.c.bf16 %v3089_v3, %v3087_v22  ;;  %v3297_v22 = vld [vmem:[#allocation6 + $0x10] sm:$0xff]  ;;  %v3056_v3 = vld [vmem:[%s6935_s1 + $0x48] sm:$0xff] }
 0xaaa   :  { %4702 = vmatprep.subr.bf16.mxu0 %v6522_v55  ;;  %4748 = vmatpush1.bf16.msra.mxu1 %v6536_v50 }
 0xaab   :  { %4750 = vmatprep.subr.bf16.mxu1 %v6551_v17 }
 0xaad   :  { %4704 = vmatpush1.bf16.msra.mxu0 %v6534_v56 }
 0xaae   :  { %4706 = vmatprep.subr.bf16.mxu0 %v6546_v59 }
 0xab1   :  { %4708 = vmatpush1.bf16.msra.mxu0 %v6559_v62 }
 0xafa   :  { %v2773_v54 = vpop.permute.xlu0 %2772 }
 0xafe   :  { %v3021_v61 = vpop.permute.xlu1 %3020 }
 0xb77   :  { %v2739_v25 = vpop.f32.mrb[10].mxu0 }
 0xb78   :  { %v2756_v51 = vadd.f32 %v2749_v42, %v2739_v25  ;;  %v2741_v46 = vpop.f32.mrb[11].mxu0  ;;  %v3333_v25 = vld [vmem:[#allocation8 + $0x30] sm:$0xff] }
 0xb79   :  { %v2757_v14 = vadd.f32 %v2753_v33, %v2741_v46  ;;  %v6562_v46 = vpack.c.bf16 %v3333_v25, %v3331_v57  ;;  %v3338_v33 = vld [vmem:[#allocation8 + $0x58] sm:$0xff]  ;;  %v3058_v57 = vld [vmem:[%s6935_s1 + $0x58] sm:$0xff] }
 0xb7a   :  { %v4095_v36 = vmul.f32 -1.442695, %v2756_v51 }
 0xb7b   :  { %v2987_v6 = vpop.f32.mrb[10].mxu1  ;;  %v4096_v58 = vmul.f32 -1.442695, %v2757_v14  ;;  %4752 = vmatpush1.bf16.msra.mxu1 %v6562_v46 }
 0xb7c   :  { %5047 = vpow2.f32 %v4095_v36  ;;  %v3004_v7 = vadd.f32 %v2997_v19, %v2987_v6  ;;  %v2989_v48 = vpop.f32.mrb[11].mxu1  ;;  %v3092_v36 = vld [vmem:[%s6936_s2 + $0x68] sm:$0xff]  ;;  %v3094_v6 = vld [vmem:[%s6936_s2 + $0x78] sm:$0xff] }
 0xb7d   :  { %v3005_v8 = vadd.f32 %v3001_v21, %v2989_v48  ;;  %v3093_v21 = vld [vmem:[%s6936_s2 + $0x70] sm:$0xff] }
 0xb7e   :  { %v4100_v49 = vmul.f32 -1.442695, %v3004_v7  ;;  %v3336_v7 = vld [vmem:[#allocation8 + $0x48] sm:$0xff] }
 0xb7f   :  { %v4101_v27 = vmul.f32 -1.442695, %v3005_v8 }
 0xb80   :  { %5049 = vpow2.f32 %v4100_v49  ;;  %v6572_v49 = vpack.c.bf16 %v3094_v6, %v3092_v36  ;;  %v3055_v36 = vld [vmem:[%s6935_s1 + $0x40] sm:$0xff]  ;;  %v6657_v6 = vpack.c.bf16 %v3053_v34, %v3051_v32 }
 0xb81   :  { %5051 = vtanh.f32 %v2757_v14  ;;  %v3091_v14 = vld [vmem:[%s6936_s2 + $0x60] sm:$0xff] }
 0xb82   :  { %4710 = vmatprep.subr.bf16.mxu0 %v6572_v49 }
 0xb86   :  { %v5048_v23 = vpop.eup %5047 }
 0xb87   :  { %v2761_v47 = vadd.f32 1.0, %v5048_v23 }
 0xb89   :  { %5053 = vrcp.f32 %v2761_v47  ;;  %v6580_v47 = vpack.c.bf16 %v3338_v33, %v3336_v7  ;;  %v3299_v33 = vld [vmem:[#allocation6 + $0x20] sm:$0xff] }
 0xb8a   :  { %v5050_v35 = vpop.eup %5049  ;;  %5055 = vtanh.f32 %v3005_v8  ;;  %v6582_v8 = vpack.c.bf16 %v3093_v21, %v3091_v14  ;;  %v3301_v14 = vld [vmem:[#allocation6 + $0x30] sm:$0xff]  ;;  %v6666_v21 = vpack.c.bf16 %v3058_v57, %v3056_v3  ;;  %v3068_v3 = vld [vmem:[%s6935_s1 + $0xa8] sm:$0xff]  ;;  %v3070_v57 = vld [vmem:[%s6935_s1 + $0xb8] sm:$0xff] }
 0xb8b   :  { %v3009_v29 = vadd.f32 1.0, %v5050_v35  ;;  %v5052_v37 = vpop.eup %5051  ;;  %v3335_v35 = vld [vmem:[#allocation8 + $0x40] sm:$0xff]  ;;  %4754 = vmatprep.subr.bf16.mxu1 %v6580_v47  ;;  %v6682_v60 = vpack.c.bf16 %v3301_v14, %v3299_v33  ;;  %v6742_v33 = vpack.c.bf16 %v3070_v57, %v3068_v3  ;;  %v3075_v57 = vld [vmem:[%s6935_s1 + $0xe0] sm:$0xff] }
 0xb8c   :  { %4712 = vmatpush1.bf16.msra.mxu0 %v6582_v8 }
 0xb8d   :  { %5057 = vrcp.f32 %v3009_v29  ;;  %v3337_v29 = vld [vmem:[#allocation8 + $0x50] sm:$0xff] }
 0xb8e   :  { %5059 = vpow2.f32 %v4096_v58  ;;  %v3047_v58 = vld [vmem:[%s6935_s1] sm:$0xff] }
 0xb8f   :  { %5061 = vpow2.f32 %v4101_v27  ;;  %v3049_v27 = vld [vmem:[%s6935_s1 + $0x10] sm:$0xff] }
 0xb93   :  { %v5054_v63 = vpop.eup %5053 }
 0xb94   :  { %v2776_v41 = vmul.f32 %v5054_v63, %v5052_v37  ;;  %v5056_v15 = vpop.eup %5055  ;;  %v2775_v18 = vmul.f32 %v5054_v63, %v2773_v54  ;;  %v6585_v37 = vpack.c.bf16 %v3337_v29, %v3335_v35  ;;  %v3048_v63 = vld [vmem:[%s6935_s1 + $0x8] sm:$0xff]  ;;  %v3062_v29 = vld [vmem:[%s6935_s1 + $0x78] sm:$0xff] }
 0xb95   :  { %v3060_v35 = vld [vmem:[%s6935_s1 + $0x68] sm:$0xff] }
 0xb96   :  { %2778 = vrot.lane.b32.xlu0 %v2776_v41, %s5172_s19  ;;  %v3050_v41 = vld [vmem:[%s6935_s1 + $0x18] sm:$0xff]  ;;  %4756 = vmatpush1.bf16.msra.mxu1 %v6585_v37  ;;  %v6692_v28 = vpack.c.bf16 %v3062_v29, %v3060_v35  ;;  %v3311_v35 = vld [vmem:[#allocation6 + $0x80] sm:$0xff]  ;;  %v3313_v29 = vld [vmem:[#allocation6 + $0x90] sm:$0xff] }
 0xb97   :  { %v5058_v11 = vpop.eup %5057 }
 0xb98   :  { %v3024_v20 = vmul.f32 %v5058_v11, %v5056_v15  ;;  %v5060_v2 = vpop.eup %5059  ;;  %v3023_v19 = vmul.f32 %v5058_v11, %v3021_v61  ;;  %v3340_v15 = vld [vmem:[#allocation8 + $0x68] sm:$0xff]  ;;  %v6596_v11 = vpack.c.bf16 %v3050_v41, %v3048_v63  ;;  %v3295_v61 = vld [vmem:[#allocation6] sm:$0xff] }
 0xb99   :  { %v2768_v24 = vadd.f32 1.0, %v5060_v2  ;;  %v5062_v45 = vpop.eup %5061  ;;  %v6659_v7 = vpack.c.bf16 %v3297_v22, %v3295_v61  ;;  %v3304_v63 = vld [vmem:[#allocation6 + $0x48] sm:$0xff]  ;;  %v3307_v61 = vld [vmem:[#allocation6 + $0x60] sm:$0xff]  ;;  %v3309_v22 = vld [vmem:[#allocation6 + $0x70] sm:$0xff] }
 0xb9a   :  { %3026 = vrot.lane.b32.xlu1 %v3024_v20, %s5172_s19  ;;  %v3016_v51 = vadd.f32 1.0, %v5062_v45  ;;  %v3342_v20 = vld [vmem:[#allocation8 + $0x78] sm:$0xff]  ;;  %4714 = vmatprep.subr.bf16.mxu0 %v6596_v11  ;;  %v3054_v45 = vld [vmem:[%s6935_s1 + $0x38] sm:$0xff] }
 0xb9b   :  { %5063 = vrcp.f32 %v2768_v24  ;;  %v6598_v10 = vpack.c.bf16 %v3342_v20, %v3340_v15  ;;  %v3052_v24 = vld [vmem:[%s6935_s1 + $0x28] sm:$0xff] }
 0xb9c   :  { %v3306_v20 = vld [vmem:[#allocation6 + $0x58] sm:$0xff] }
 0xb9d   :  { %4758 = vmatprep.subr.bf16.mxu1 %v6598_v10 }
 0xb9e   :  { %4760 = vmatpush1.bf16.msra.mxu1 %v6601_v39 }
 0xb9f   :  { %4762 = vmatprep.subr.bf16.mxu1 %v6605_v4 }
 0xba5   :  { %v5064_v1 = vpop.eup %5063 }
 0xc08   :  { %v2779_v38 = vpop.permute.xlu0 %2778 }
 0xc09   :  { %v2781_v42 = vadd.f32 %v2779_v38, %v2775_v18  ;;  %v6635_v18 = vpack.c.bf16 %v3049_v27, %v3047_v58  ;;  %v6643_v38 = vpack.c.bf16 %v3054_v45, %v3052_v24  ;;  %v3308_v58 = vld [vmem:[#allocation6 + $0x68] sm:$0xff]  ;;  %v3310_v27 = vld [vmem:[#allocation6 + $0x78] sm:$0xff]  ;;  %v3063_v24 = vld [vmem:[%s6935_s1 + $0x80] sm:$0xff] }
 0xc0a   :  { %v3065_v45 = vld [vmem:[%s6935_s1 + $0x90] sm:$0xff]  ;;  %v6720_v34 = vpack.c.bf16 %v3310_v27, %v3308_v58  ;;  %v3317_v58 = vld [vmem:[#allocation6 + $0xb0] sm:$0xff]  ;;  %v3076_v27 = vld [vmem:[%s6935_s1 + $0xe8] sm:$0xff] }
 0xc0b   :  { %5065 = vtanh.f32 %v2781_v42 }
 0xc0c   :  { %v3027_v48 = vpop.permute.xlu1 %3026  ;;  %5067 = vrcp.f32 %v3016_v51  ;;  %v3300_v51 = vld [vmem:[#allocation6 + $0x28] sm:$0xff] }
 0xc0d   :  { %v3029_v23 = vadd.f32 %v3027_v48, %v3023_v19  ;;  %v3302_v19 = vld [vmem:[#allocation6 + $0x38] sm:$0xff]  ;;  %v3057_v48 = vld [vmem:[%s6935_s1 + $0x50] sm:$0xff] }
 0xc0e   :  { %v6680_v12 = vpack.c.bf16 %v3057_v48, %v3055_v36  ;;  %v3067_v36 = vld [vmem:[%s6935_s1 + $0xa0] sm:$0xff]  ;;  %v3069_v48 = vld [vmem:[%s6935_s1 + $0xb0] sm:$0xff] }
 0xc0f   :  { %5069 = vtanh.f32 %v3029_v23 }
 0xc15   :  { %v5066_v43 = vpop.eup %5065 }
 0xc16   :  { %v2783_v26 = vmul.f32 %v5066_v43, %v5064_v1  ;;  %v5068_v44 = vpop.eup %5067  ;;  %v3059_v1 = vld [vmem:[%s6935_s1 + $0x60] sm:$0xff]  ;;  %v3303_v43 = vld [vmem:[#allocation6 + $0x40] sm:$0xff] }
 0xc18   :  { %2785 = vrot.lane.b32.xlu0 %v2783_v26, %s5172_s19  ;;  %v6694_v26 = vpack.c.bf16 %v3306_v20, %v3304_v63  ;;  %v3072_v63 = vld [vmem:[%s6935_s1 + $0xc8] sm:$0xff] }
 0xc19   :  { %v5070_v5 = vpop.eup %5069  ;;  %v3318_v20 = vld [vmem:[#allocation6 + $0xb8] sm:$0xff] }
 0xc1a   :  { %v3031_v16 = vmul.f32 %v5070_v5, %v5068_v44  ;;  %v3305_v44 = vld [vmem:[#allocation6 + $0x50] sm:$0xff]  ;;  %v3064_v5 = vld [vmem:[%s6935_s1 + $0x88] sm:$0xff] }
 0xc1c   :  { %2790 = vrot.lane.b32.xlu0 %v2781_v42, %s5172_s19  ;;  %3033 = vrot.lane.b32.xlu1 %v3031_v16, %s5172_s19  ;;  %v3066_v16 = vld [vmem:[%s6935_s1 + $0x98] sm:$0xff] }
 0xc1d   :  { %v6718_v32 = vpack.c.bf16 %v3066_v16, %v3064_v5 }
 0xc20   :  { %3038 = vrot.lane.b32.xlu1 %v3029_v23, %s5172_s19  ;;  %v6668_v23 = vpack.c.bf16 %v3302_v19, %v3300_v51  ;;  %v6730_v51 = vpack.c.bf16 %v3065_v45, %v3063_v24  ;;  %v6732_v19 = vpack.c.bf16 %v3309_v22, %v3307_v61  ;;  %v3078_v24 = vld [vmem:[%s6935_s1 + $0xf8] sm:$0xff]  ;;  %v3322_v61 = vld [vmem:[#allocation6 + $0xd8] sm:$0xff] }
 0xc21   :  { %v3320_v45 = vld [vmem:[#allocation6 + $0xc8] sm:$0xff] }
 0xc8a   :  { %v2786_v13 = vpop.permute.xlu0 %2785 }
 0xc8b   :  { %2788 = vst.msk [vmem:[#allocation2] sm:$0x3] %vm56_vm0, %v2786_v13  ;;  %4097 = vst.msk [vmem:[%s6941_s7 + $0xa] sm:$0x3] %vm56_vm0, %v2786_v13 }
 0xc8e   :  { %v2791_v2 = vpop.permute.xlu0 %2790  ;;  %v3034_v54 = vpop.permute.xlu1 %3033 }
 0xc8f   :  { %2793 = vst.msk [vmem:[#allocation3] sm:$0x3] %vm56_vm0, %v2791_v2  ;;  %3036 = vst.msk [vmem:[#allocation4] sm:$0x3] %vm56_vm0, %v3034_v54  ;;  %v6706_v2 = vpack.c.bf16 %v3061_v53, %v3059_v1  ;;  %v6754_v1 = vpack.c.bf16 %v3069_v48, %v3067_v36  ;;  %v6756_v53 = vpack.c.bf16 %v3313_v29, %v3311_v35  ;;  %v3077_v36 = vld [vmem:[%s6935_s1 + $0xf0] sm:$0xff]  ;;  %v3321_v35 = vld [vmem:[#allocation6 + $0xd0] sm:$0xff] }
 0xc90   :  { %4102 = vst.msk [vmem:[%s6942_s8 + $0x4] sm:$0x3] %vm56_vm0, %v3034_v54  ;;  %v6708_v54 = vpack.c.bf16 %v3305_v44, %v3303_v43  ;;  %v3071_v43 = vld [vmem:[%s6935_s1 + $0xc0] sm:$0xff]  ;;  %v3073_v44 = vld [vmem:[%s6935_s1 + $0xd0] sm:$0xff]  ;;  %v3324_v29 = vld [vmem:[#allocation6 + $0xe8] sm:$0xff] }
 0xc91   :  { %v6778_v22 = vpack.c.bf16 %v3073_v44, %v3071_v43  ;;  %v3319_v48 = vld [vmem:[#allocation6 + $0xc0] sm:$0xff]  ;;  %v3325_v44 = vld [vmem:[#allocation6 + $0xf0] sm:$0xff] }
 0xc92   :  { %v3039_v42 = vpop.permute.xlu1 %3038  ;;  %v3045_v25 = vld [vmem:[#allocation2] sm:$0x3]  ;;  %v3323_v43 = vld [vmem:[#allocation6 + $0xe0] sm:$0xff] }
 0xc93   :  { %3041 = vst.msk [vmem:[#allocation5] sm:$0x3] %vm56_vm0, %v3039_v42  ;;  %4104 = vmatmul.mubr.msk.f32.vlgmr.msra.gmra.mrb[12].mxu0 %vm112_vm1, %v3045_v25  ;;  %v3312_v42 = vld [vmem:[#allocation6 + $0x88] sm:$0xff]  ;;  %v3314_v25 = vld [vmem:[#allocation6 + $0x98] sm:$0xff] }
 0xc94   :  { %4716 = vmatpush1.bf16.msra.mxu0 %v6635_v18  ;;  %3233 = vmatprep.mubr.f32.mxu0 %v5171_v0  ;;  %v6744_v14 = vpack.c.bf16 %v3314_v25, %v3312_v42  ;;  %v6787_v42 = vpack.c.bf16 %v3078_v24, %v3076_v27  ;;  %v6789_v25 = vpack.c.bf16 %v3322_v61, %v3320_v45  ;;  %v4108_v27 = vld [vmem:[%s6934_s0 + $0x2] sm:$0x3] }
 0xc95   :  { %4718 = vmatprep.subr.bf16.mxu0 %v6643_v38 }
 0xc96   :  { %v3046_v41 = vld [vmem:[#allocation3] sm:$0x3]  ;;  %v3293_v15 = vld [vmem:[#allocation4] sm:$0x3] }
 0xc97   :  { %3268 = vrot.lane.b32.xlu0 %v3046_v41, %s5172_s19  ;;  %4109 = vmatmul.mubr.msk.f32.vlgmr.msra.gmra.mrb[12].mxu1 %vm112_vm1, %v3293_v15  ;;  %v3074_v41 = vld [vmem:[%s6935_s1 + $0xd8] sm:$0xff] }
 0xc98   :  { %4720 = vmatpush1.bf16.msra.mxu0 %v6657_v6  ;;  %4764 = vmatpush1.bf16.msra.mxu1 %v6659_v7  ;;  %v3316_v15 = vld [vmem:[#allocation6 + $0xa8] sm:$0xff]  ;;  %v6766_v5 = vpack.c.bf16 %v3074_v41, %v3072_v63  ;;  %v3326_v63 = vld [vmem:[#allocation6 + $0xf8] sm:$0xff]  ;;  %v6796_v41 = vpack.c.bf16 %v3077_v36, %v3075_v57 }
 0xc99   :  { %4722 = vmatprep.subr.bf16.mxu0 %v6666_v21  ;;  %4766 = vmatprep.subr.bf16.mxu1 %v6668_v23  ;;  %v6768_v16 = vpack.c.bf16 %v3318_v20, %v3316_v15  ;;  %v6798_v15 = vpack.c.bf16 %v3321_v35, %v3319_v48  ;;  %v6802_v20 = vpack.c.bf16 %v3326_v63, %v3324_v29 }
 0xc9a   :  { %v3294_v13 = vld [vmem:[#allocation5] sm:$0x3]  ;;  %3481 = vmatprep.mubr.f32.mxu1 %v5171_v0 }
 0xc9b   :  { %3516 = vrot.lane.b32.xlu1 %v3294_v13, %s5172_s19  ;;  %v3315_v13 = vld [vmem:[#allocation6 + $0xa0] sm:$0xff] }
 0xc9c   :  { %4724 = vmatpush1.bf16.msra.mxu0 %v6680_v12  ;;  %4768 = vmatpush1.bf16.msra.mxu1 %v6682_v60  ;;  %v6780_v3 = vpack.c.bf16 %v3317_v58, %v3315_v13  ;;  %v4103_v13 = vld [vmem:[%s6934_s0 + $0xc] sm:$0x3]  ;;  %v6809_v58 = vpack.c.bf16 %v3325_v44, %v3323_v43 }
 0xc9d   :  { %4726 = vmatprep.subr.bf16.mxu0 %v6692_v28  ;;  %4770 = vmatprep.subr.bf16.mxu1 %v6694_v26 }
 0xca0   :  { %4728 = vmatpush1.bf16.msra.mxu0 %v6706_v2  ;;  %4772 = vmatpush1.bf16.msra.mxu1 %v6708_v54 }
 0xca1   :  { %4730 = vmatprep.subr.bf16.mxu0 %v6718_v32  ;;  %4774 = vmatprep.subr.bf16.mxu1 %v6720_v34 }
 0xca4   :  { %4732 = vmatpush1.bf16.msra.mxu0 %v6730_v51  ;;  %4776 = vmatpush1.bf16.msra.mxu1 %v6732_v19 }
 0xca5   :  { %4734 = vmatprep.subr.bf16.mxu0 %v6742_v33  ;;  %4778 = vmatprep.subr.bf16.mxu1 %v6744_v14 }
 0xca8   :  { %4736 = vmatpush1.bf16.msra.mxu0 %v6754_v1  ;;  %4780 = vmatpush1.bf16.msra.mxu1 %v6756_v53 }
 0xca9   :  { %4738 = vmatprep.subr.bf16.mxu0 %v6766_v5  ;;  %4782 = vmatprep.subr.bf16.mxu1 %v6768_v16 }
 0xcac   :  { %4740 = vmatpush1.bf16.msra.mxu0 %v6778_v22  ;;  %4784 = vmatpush1.bf16.msra.mxu1 %v6780_v3 }
 0xcad   :  { %4742 = vmatprep.subr.bf16.mxu0 %v6787_v42  ;;  %4786 = vmatprep.subr.bf16.mxu1 %v6789_v25 }
 0xcb0   :  { %4744 = vmatpush1.bf16.msra.mxu0 %v6796_v41  ;;  %4788 = vmatpush1.bf16.msra.mxu1 %v6798_v15 }
 0xcb1   :  { %4790 = vmatprep.subr.bf16.mxu1 %v6802_v20  ;;  %4794 = vmatprep.subr.bf16.mxu0 %v6509_v30  ;;  %v3240_v30 = vld [vmem:[%s6937_s3] sm:$0x3] }
 0xcb3   :  { %3234 = vmatmul.mubr.f32.vlgmr.msra.gmra.mrb[12].mxu0 %v4103_v13 }
 0xcb4   :  { %4792 = vmatpush1.bf16.msra.mxu1 %v6809_v58  ;;  %4796 = vmatpush1.bf16.msra.mxu0 %v6520_v31  ;;  %v3245_v31 = vrot.slane %v3240_v30, %v5572_v9 }
 0xcb5   :  { %4798 = vmatprep.subr.bf16.mxu0 %v6522_v55  ;;  %4842 = vmatprep.subr.bf16.mxu1 %v6528_v40  ;;  %v3488_v55 = vld [vmem:[%s6940_s6] sm:$0x3] }
 0xcb6   :  { %3658 = vmatprep.mubr.f32.mxu0 %v5171_v0 }
 0xcb7   :  { %3482 = vmatmul.mubr.f32.vlgmr.msra.gmra.mrb[12].mxu1 %v4108_v27 }
 0xcb8   :  { %4800 = vmatpush1.bf16.msra.mxu0 %v6534_v56  ;;  %4844 = vmatpush1.bf16.msra.mxu1 %v6536_v50 }
 0xcb9   :  { %4802 = vmatprep.subr.bf16.mxu0 %v6546_v59  ;;  %4846 = vmatprep.subr.bf16.mxu1 %v6551_v17  ;;  %v3493_v59 = vrot.slane %v3488_v55, %v5572_v9 }
 0xcba   :  { %3906 = vmatprep.mubr.f32.mxu1 %v5171_v0 }
 0xcbc   :  { %4804 = vmatpush1.bf16.msra.mxu0 %v6559_v62  ;;  %4848 = vmatpush1.bf16.msra.mxu1 %v6562_v46 }
 0xcbd   :  { %4806 = vmatprep.subr.bf16.mxu0 %v6572_v49  ;;  %4850 = vmatprep.subr.bf16.mxu1 %v6580_v47 }
 0xcc0   :  { %4808 = vmatpush1.bf16.msra.mxu0 %v6582_v8  ;;  %4852 = vmatpush1.bf16.msra.mxu1 %v6585_v37  ;;  %v3249_v8 = vrot.slane %v3240_v30, %v5582_v52 }
 0xcc1   :  { %4810 = vmatprep.subr.bf16.mxu0 %v6596_v11  ;;  %4854 = vmatprep.subr.bf16.mxu1 %v6598_v10  ;;  %v3497_v11 = vrot.slane %v3488_v55, %v5582_v52 }
 0xcc4   :  { %4856 = vmatpush1.bf16.msra.mxu1 %v6601_v39 }
 0xcc5   :  { %4858 = vmatprep.subr.bf16.mxu1 %v6605_v4 }
 0xd09   :  { %v3269_v13 = vpop.permute.xlu0 %3268 }
 0xd0d   :  { %v3517_v55 = vpop.permute.xlu1 %3516 }
 0xd86   :  { %v3235_v40 = vpop.f32.mrb[12].mxu0 }
 0xd87   :  { %v3252_v56 = vadd.f32 %v3245_v31, %v3235_v40  ;;  %v3237_v50 = vpop.f32.mrb[13].mxu0 }
 0xd88   :  { %v3253_v37 = vadd.f32 %v3249_v8, %v3237_v50 }
 0xd89   :  { %v4105_v17 = vmul.f32 -1.442695, %v3252_v56 }
 0xd8a   :  { %v3483_v62 = vpop.f32.mrb[12].mxu1  ;;  %v4106_v63 = vmul.f32 -1.442695, %v3253_v37 }
 0xd8b   :  { %5071 = vpow2.f32 %v4105_v17  ;;  %v3500_v46 = vadd.f32 %v3493_v59, %v3483_v62  ;;  %v3485_v49 = vpop.f32.mrb[13].mxu1 }
 0xd8c   :  { %v3501_v4 = vadd.f32 %v3497_v11, %v3485_v49 }
 0xd8d   :  { %v4110_v47 = vmul.f32 -1.442695, %v3500_v46 }
 0xd8e   :  { %v4111_v43 = vmul.f32 -1.442695, %v3501_v4 }
 0xd8f   :  { %5073 = vpow2.f32 %v4110_v47 }
 0xd90   :  { %5075 = vtanh.f32 %v3253_v37 }
 0xd95   :  { %v5072_v10 = vpop.eup %5071 }
 0xd96   :  { %v3257_v39 = vadd.f32 1.0, %v5072_v10 }
 0xd98   :  { %5077 = vrcp.f32 %v3257_v39 }
 0xd99   :  { %v5074_v24 = vpop.eup %5073  ;;  %5079 = vtanh.f32 %v3501_v4 }
 0xd9a   :  { %v3505_v45 = vadd.f32 1.0, %v5074_v24  ;;  %v5076_v61 = vpop.eup %5075 }
 0xd9c   :  { %5081 = vrcp.f32 %v3505_v45 }
 0xd9d   :  { %5083 = vpow2.f32 %v4106_v63 }
 0xd9e   :  { %5085 = vpow2.f32 %v4111_v43 }
 0xda2   :  { %v5078_v57 = vpop.eup %5077 }
 0xda3   :  { %v3272_v36 = vmul.f32 %v5078_v57, %v5076_v61  ;;  %v5080_v48 = vpop.eup %5079  ;;  %v3271_v31 = vmul.f32 %v5078_v57, %v3269_v13 }
 0xda5   :  { %3274 = vrot.lane.b32.xlu0 %v3272_v36, %s5172_s19 }
 0xda6   :  { %v5082_v35 = vpop.eup %5081 }
 0xda7   :  { %v3520_v29 = vmul.f32 %v5082_v35, %v5080_v48  ;;  %v5084_v44 = vpop.eup %5083  ;;  %v3519_v59 = vmul.f32 %v5082_v35, %v3517_v55 }
 0xda8   :  { %v3264_v27 = vadd.f32 1.0, %v5084_v44  ;;  %v5086_v30 = vpop.eup %5085 }
 0xda9   :  { %3522 = vrot.lane.b32.xlu1 %v3520_v29, %s5172_s19  ;;  %v3512_v50 = vadd.f32 1.0, %v5086_v30 }
 0xdaa   :  { %5087 = vrcp.f32 %v3264_v27 }
 0xdb4   :  { %v5088_v46 = vpop.eup %5087 }
 0xe17   :  { %v3275_v40 = vpop.permute.xlu0 %3274 }
 0xe18   :  { %v3277_v56 = vadd.f32 %v3275_v40, %v3271_v31 }
 0xe1a   :  { %5089 = vtanh.f32 %v3277_v56 }
 0xe1b   :  { %v3523_v17 = vpop.permute.xlu1 %3522  ;;  %5091 = vrcp.f32 %v3512_v50 }
 0xe1c   :  { %v3525_v62 = vadd.f32 %v3523_v17, %v3519_v59 }
 0xe1e   :  { %5093 = vtanh.f32 %v3525_v62 }
 0xe24   :  { %v5090_v49 = vpop.eup %5089 }
 0xe25   :  { %v3279_v47 = vmul.f32 %v5090_v49, %v5088_v46  ;;  %v5092_v8 = vpop.eup %5091 }
 0xe27   :  { %3281 = vrot.lane.b32.xlu0 %v3279_v47, %s5172_s19 }
 0xe28   :  { %v5094_v37 = vpop.eup %5093 }
 0xe29   :  { %v3527_v11 = vmul.f32 %v5094_v37, %v5092_v8 }
 0xe2b   :  { %3286 = vrot.lane.b32.xlu0 %v3277_v56, %s5172_s19  ;;  %3529 = vrot.lane.b32.xlu1 %v3527_v11, %s5172_s19 }
 0xe2f   :  { %3534 = vrot.lane.b32.xlu1 %v3525_v62, %s5172_s19 }
 0xe99   :  { %v3282_v10 = vpop.permute.xlu0 %3281 }
 0xe9a   :  { %3284 = vst.msk [vmem:[#allocation2] sm:$0x3] %vm56_vm0, %v3282_v10  ;;  %4107 = vst.msk [vmem:[%s6941_s7 + $0xc] sm:$0x3] %vm56_vm0, %v3282_v10 }
 0xe9d   :  { %v3287_v39 = vpop.permute.xlu0 %3286  ;;  %v3530_v4 = vpop.permute.xlu1 %3529 }
 0xe9e   :  { %3289 = vst.msk [vmem:[#allocation3] sm:$0x3] %vm56_vm0, %v3287_v39  ;;  %3532 = vst.msk [vmem:[#allocation4] sm:$0x3] %vm56_vm0, %v3530_v4 }
 0xe9f   :  { %4112 = vst.msk [vmem:[%s6942_s8 + $0x2] sm:$0x3] %vm56_vm0, %v3530_v4 }
 0xea1   :  { %v3535_v24 = vpop.permute.xlu1 %3534  ;;  %v3541_v45 = vld [vmem:[#allocation2] sm:$0x3] }
 0xea2   :  { %3537 = vst.msk [vmem:[#allocation5] sm:$0x3] %vm56_vm0, %v3535_v24  ;;  %4114 = vmatmul.mubr.msk.f32.vlgmr.msra.gmra.mrb[14].mxu0 %vm112_vm1, %v3541_v45 }
 0xea3   :  { %4812 = vmatpush1.bf16.msra.mxu0 %v6635_v18  ;;  %3729 = vmatprep.mubr.f32.mxu0 %v5171_v0  ;;  %v3788_v18 = vld [vmem:[%s6934_s0] sm:$0x3] }
 0xea4   :  { %4814 = vmatprep.subr.bf16.mxu0 %v6643_v38  ;;  %v3736_v38 = vld [vmem:[%s6937_s3] sm:$0x3] }
 0xea5   :  { %v3542_v61 = vld [vmem:[#allocation3] sm:$0x3]  ;;  %v3789_v57 = vld [vmem:[#allocation4] sm:$0x3] }
 0xea6   :  { %3764 = vrot.lane.b32.xlu0 %v3542_v61, %s5172_s19  ;;  %4118 = vmatmul.mubr.msk.f32.vlgmr.msra.gmra.mrb[14].mxu1 %vm112_vm1, %v3789_v57 }
 0xea7   :  { %4816 = vmatpush1.bf16.msra.mxu0 %v6657_v6  ;;  %4860 = vmatpush1.bf16.msra.mxu1 %v6659_v7  ;;  %v3741_v6 = vrot.slane %v3736_v38, %v5572_v9  ;;  %v3984_v7 = vld [vmem:[%s6940_s6] sm:$0x3] }
 0xea8   :  { %4818 = vmatprep.subr.bf16.mxu0 %v6666_v21  ;;  %4862 = vmatprep.subr.bf16.mxu1 %v6668_v23 }
 0xea9   :  { %v3790_v36 = vld [vmem:[#allocation5] sm:$0x3]  ;;  %3977 = vmatprep.mubr.f32.mxu1 %v5171_v0 }
 0xeaa   :  { %4012 = vrot.lane.b32.xlu1 %v3790_v36, %s5172_s19  ;;  %v4113_v0 = vld [vmem:[%s6934_s0 + $0xe] sm:$0x3] }
 0xeab   :  { %4820 = vmatpush1.bf16.msra.mxu0 %v6680_v12  ;;  %4864 = vmatpush1.bf16.msra.mxu1 %v6682_v60  ;;  %v3989_v60 = vrot.slane %v3984_v7, %v5572_v9 }
 0xeac   :  { %4822 = vmatprep.subr.bf16.mxu0 %v6692_v28  ;;  %4866 = vmatprep.subr.bf16.mxu1 %v6694_v26 }
 0xeaf   :  { %4824 = vmatpush1.bf16.msra.mxu0 %v6706_v2  ;;  %4868 = vmatpush1.bf16.msra.mxu1 %v6708_v54 }
 0xeb0   :  { %4826 = vmatprep.subr.bf16.mxu0 %v6718_v32  ;;  %4870 = vmatprep.subr.bf16.mxu1 %v6720_v34  ;;  %v3745_v34 = vrot.slane %v3736_v38, %v5582_v52 }
 0xeb3   :  { %4828 = vmatpush1.bf16.msra.mxu0 %v6730_v51  ;;  %4872 = vmatpush1.bf16.msra.mxu1 %v6732_v19  ;;  %v3993_v19 = vrot.slane %v3984_v7, %v5582_v52 }
 0xeb4   :  { %4830 = vmatprep.subr.bf16.mxu0 %v6742_v33  ;;  %4874 = vmatprep.subr.bf16.mxu1 %v6744_v14 }
 0xeb7   :  { %4832 = vmatpush1.bf16.msra.mxu0 %v6754_v1  ;;  %4876 = vmatpush1.bf16.msra.mxu1 %v6756_v53 }
 0xeb8   :  { %4834 = vmatprep.subr.bf16.mxu0 %v6766_v5  ;;  %4878 = vmatprep.subr.bf16.mxu1 %v6768_v16 }
 0xebb   :  { %4836 = vmatpush1.bf16.msra.mxu0 %v6778_v22  ;;  %4880 = vmatpush1.bf16.msra.mxu1 %v6780_v3 }
 0xebc   :  { %4838 = vmatprep.subr.bf16.mxu0 %v6787_v42  ;;  %4882 = vmatprep.subr.bf16.mxu1 %v6789_v25 }
 0xebf   :  { %4840 = vmatpush1.bf16.msra.mxu0 %v6796_v41  ;;  %4884 = vmatpush1.bf16.msra.mxu1 %v6798_v15 }
 0xec0   :  { %4886 = vmatprep.subr.bf16.mxu1 %v6802_v20 }
 0xec2   :  { %3730 = vmatmul.mubr.f32.vlgmr.msra.gmra.mrb[14].mxu0 %v4113_v0 }
 0xec3   :  { %4888 = vmatpush1.bf16.msra.mxu1 %v6809_v58 }
 0xec6   :  { %3978 = vmatmul.mubr.f32.vlgmr.msra.gmra.mrb[14].mxu1 %v3788_v18 }
 0xf18   :  { %v3765_v20 = vpop.permute.xlu0 %3764 }
 0xf1c   :  { %v4013_v29 = vpop.permute.xlu1 %4012 }
 0xf95   :  { %v3731_v21 = vpop.f32.mrb[14].mxu0 }
 0xf96   :  { %v3748_v23 = vadd.f32 %v3741_v6, %v3731_v21  ;;  %v3733_v12 = vpop.f32.mrb[15].mxu0 }
 0xf97   :  { %v3749_v51 = vadd.f32 %v3745_v34, %v3733_v12 }
 0xf98   :  { %v4115_v28 = vmul.f32 -1.442695, %v3748_v23 }
 0xf99   :  { %v3979_v26 = vpop.f32.mrb[14].mxu1  ;;  %v4116_v52 = vmul.f32 -1.442695, %v3749_v51 }
 0xf9a   :  { %5095 = vpow2.f32 %v4115_v28  ;;  %v3996_v2 = vadd.f32 %v3989_v60, %v3979_v26  ;;  %v3981_v54 = vpop.f32.mrb[15].mxu1 }
 0xf9b   :  { %v3997_v1 = vadd.f32 %v3993_v19, %v3981_v54 }
 0xf9c   :  { %v4119_v32 = vmul.f32 -1.442695, %v3996_v2 }
 0xf9d   :  { %v4120_v41 = vmul.f32 -1.442695, %v3997_v1 }
 0xf9e   :  { %5097 = vpow2.f32 %v4119_v32 }
 0xf9f   :  { %5099 = vtanh.f32 %v3749_v51 }
 0xfa4   :  { %v5096_v33 = vpop.eup %5095 }
 0xfa5   :  { %v3753_v14 = vadd.f32 1.0, %v5096_v33 }
 0xfa7   :  { %5101 = vrcp.f32 %v3753_v14 }
 0xfa8   :  { %v5098_v53 = vpop.eup %5097  ;;  %5103 = vtanh.f32 %v3997_v1 }
 0xfa9   :  { %v4001_v5 = vadd.f32 1.0, %v5098_v53  ;;  %v5100_v9 = vpop.eup %5099 }
 0xfab   :  { %5105 = vrcp.f32 %v4001_v5 }
 0xfac   :  { %5107 = vpow2.f32 %v4116_v52 }
 0xfad   :  { %5109 = vpow2.f32 %v4120_v41 }
 0xfb1   :  { %v5102_v16 = vpop.eup %5101 }
 0xfb2   :  { %v3768_v22 = vmul.f32 %v5102_v16, %v5100_v9  ;;  %v5104_v3 = vpop.eup %5103  ;;  %v3767_v35 = vmul.f32 %v5102_v16, %v3765_v20 }
 0xfb4   :  { %3770 = vrot.lane.b32.xlu0 %v3768_v22, %s5172_s19 }
 0xfb5   :  { %v5106_v42 = vpop.eup %5105 }
 0xfb6   :  { %v4016_v25 = vmul.f32 %v5106_v42, %v5104_v3  ;;  %v5108_v15 = vpop.eup %5107  ;;  %v4015_v13 = vmul.f32 %v5106_v42, %v4013_v29 }
 0xfb7   :  { %v3760_v58 = vadd.f32 1.0, %v5108_v15  ;;  %v5110_v48 = vpop.eup %5109 }
 0xfb8   :  { %4018 = vrot.lane.b32.xlu1 %v4016_v25, %s5172_s19  ;;  %v4008_v44 = vadd.f32 1.0, %v5110_v48 }
 0xfb9   :  { %5111 = vrcp.f32 %v3760_v58 }
 0xfc3   :  { %v5112_v31 = vpop.eup %5111 }
0x1026   :  { %v3771_v63 = vpop.permute.xlu0 %3770 }
0x1027   :  { %v3773_v43 = vadd.f32 %v3771_v63, %v3767_v35 }
0x1029   :  { %5113 = vtanh.f32 %v3773_v43  ;;  %3782 = vrot.lane.b32.xlu1 %v3773_v43, %s5172_s19 }
0x102a   :  { %v4019_v27 = vpop.permute.xlu1 %4018  ;;  %5115 = vrcp.f32 %v4008_v44 }
0x102b   :  { %v4021_v30 = vadd.f32 %v4019_v27, %v4015_v13 }
0x102d   :  { %5117 = vtanh.f32 %v4021_v30  ;;  %4030 = vrot.lane.b32.xlu1 %v4021_v30, %s5172_s19 }
0x1033   :  { %v5114_v55 = vpop.eup %5113 }
0x1034   :  { %v3775_v40 = vmul.f32 %v5114_v55, %v5112_v31  ;;  %v5116_v56 = vpop.eup %5115 }
0x1036   :  { %3777 = vrot.lane.b32.xlu0 %v3775_v40, %s5172_s19 }
0x1037   :  { %v5118_v50 = vpop.eup %5117 }
0x1038   :  { %v4023_v59 = vmul.f32 %v5118_v50, %v5116_v56 }
0x103a   :  { %4025 = vrot.lane.b32.xlu0 %v4023_v59, %s5172_s19 }
0x109b   :  { %v3783_v17 = vpop.permute.xlu1 %3782 }
0x109c   :  { %3785 = vst.msk [vmem:[#allocation3] sm:$0x3] %vm56_vm0, %v3783_v17 }
0x109f   :  { %v4031_v62 = vpop.permute.xlu1 %4030 }
0x10a0   :  { %4033 = vst.msk [vmem:[#allocation5] sm:$0x3] %vm56_vm0, %v4031_v62 }
0x10a8   :  { %v3778_v46 = vpop.permute.xlu0 %3777 }
0x10a9   :  { %3780 = vst.msk [vmem:[#allocation2] sm:$0x3] %vm56_vm0, %v3778_v46  ;;  %4117 = vst.msk [vmem:[%s6941_s7 + $0xe] sm:$0x3] %vm56_vm0, %v3778_v46 }
0x10ac   :  { %v4026_v49 = vpop.permute.xlu0 %4025 }
0x10ad   :  { %4028 = vst.msk [vmem:[#allocation4] sm:$0x3] %vm56_vm0, %v4026_v49  ;;  %4034 = vst.msk [vmem:[%s6942_s8] sm:$0x3] %vm56_vm0, %v4026_v49 }
0x10ae   :  { %4043 = vsyncpa [#allocation7], 1 }
0x10af   :  { %4044 = vsyncpa [#allocation9], 1 }

</bundles_post_ra>
